<compile_context>
chip_gen: v5e
topology: v5e:2x2
jax: 0.10.0
libtpu: 0.0.40
codegen_flags: <defaults>
</compile_context>

<pallas_src>
import functools

import jax
import jax.numpy as jnp
from jax import lax
from jax.experimental import pallas as pl
from jax.experimental.pallas import tpu as pltpu

LRELU_SLOPE = 0.2
BN_EPS = 1e-5


# ----------------------------------------------------------------------------
# Pallas kernels
# ----------------------------------------------------------------------------
def conv_gemm_kernel(x_ref, w_ref, y_ref, stats_ref, acc_ref, *,
                     apply_lrelu, slope):
    """K-reduction GEMM (bf16 x bf16 -> f32 acc) with a fused epilogue.

    Epilogue (last K step):
      * per-channel sum / sum-of-squares of the *pre-activation* tile
        (batch-norm statistics) emitted as a small second output,
      * optional LeakyReLU (conv1 only; BN layers apply it later),
      * bf16 store of the output tile.
    """
    k = pl.program_id(1)

    @pl.when(k == 0)
    def _():
        acc_ref[...] = jnp.zeros_like(acc_ref)

    acc_ref[...] += jnp.dot(x_ref[...], w_ref[...],
                            preferred_element_type=jnp.float32)

    @pl.when(k == pl.num_programs(1) - 1)
    def _():
        y = acc_ref[...]
        s = jnp.sum(y, axis=0, keepdims=True)            # (1, Cout)
        sq = jnp.sum(y * y, axis=0, keepdims=True)       # (1, Cout)
        stats_ref[...] = jnp.concatenate([s, sq], axis=0)[None, :, :]
        if apply_lrelu:
            y = jnp.where(y > 0, y, slope * y)
        y_ref[...] = y.astype(y_ref.dtype)


def fc_kernel(x_ref, scale_ref, shift_ref, w_ref, b_ref, o_ref, acc_ref, *,
              slope):
    """Linear(fc_in, 1) as a lane-dense multiply + reduce over K tiles.

    The previous layer's batch-norm scale/shift + LeakyReLU are fused into the
    prologue (per-column affine), and the unpadded fc weight is streamed as
    (1, tk) tiles (no 128x lane padding).
    """
    k = pl.program_id(0)

    @pl.when(k == 0)
    def _():
        acc_ref[...] = jnp.zeros_like(acc_ref)

    a = x_ref[...].astype(jnp.float32) * scale_ref[...] + shift_ref[...]
    a = jnp.where(a > 0, a, slope * a)
    acc_ref[...] += a * w_ref[...]                       # (B, tk) * (1, tk)

    @pl.when(k == pl.num_programs(0) - 1)
    def _():
        o_ref[...] = (jnp.sum(acc_ref[...], axis=1, keepdims=True)
                      + b_ref[...]).astype(o_ref.dtype)


# ----------------------------------------------------------------------------
# Pallas wrappers
# ----------------------------------------------------------------------------
def _pick_tile(n, candidates):
    for t in candidates:
        if n % t == 0:
            return t
    return n


def pallas_conv_gemm(x, w, *, apply_lrelu, slope=LRELU_SLOPE):
    """x: (M, K) patches, w: (K, Cout).  Returns (y bf16 (M, Cout),
    per-row-tile stats f32 (M//tm, 2, Cout)) — stats rows are [sum, sumsq]."""
    M, K = x.shape
    K2, cout = w.shape
    assert K == K2
    # tm=512 keeps double-buffered bf16 tiles + f32 acc well under v7x's VMEM;
    # on v5e/v6e (128 MiB VMEM) tm=1024 would further amortize weight streaming.
    tm = _pick_tile(M, (512, 256, 128))
    tk = _pick_tile(K, (512, 256, 128))
    grid = (M // tm, K // tk)
    kernel = functools.partial(conv_gemm_kernel,
                               apply_lrelu=apply_lrelu, slope=slope)
    return pl.pallas_call(
        kernel,
        out_shape=(jax.ShapeDtypeStruct((M, cout), jnp.bfloat16),
                   jax.ShapeDtypeStruct((M // tm, 2, cout), jnp.float32)),
        grid_spec=pltpu.PrefetchScalarGridSpec(
            num_scalar_prefetch=0,
            grid=grid,
            in_specs=[pl.BlockSpec((tm, tk), lambda i, k: (i, k)),
                      pl.BlockSpec((tk, cout), lambda i, k: (k, 0))],
            out_specs=[pl.BlockSpec((tm, cout), lambda i, k: (i, 0)),
                       pl.BlockSpec((1, 2, cout), lambda i, k: (i, 0, 0))],
            scratch_shapes=[pltpu.VMEM((tm, cout), jnp.float32)]),
        compiler_params=pltpu.CompilerParams(
            dimension_semantics=("parallel", "arbitrary")),
    )(x.astype(jnp.bfloat16), w.astype(jnp.bfloat16))


def pallas_fc(x, scale, shift, w, b, *, slope=LRELU_SLOPE):
    """x: (B, Kf) bf16 conv4 output (NHWC flatten); scale/shift/w: (1, Kf);
    b: (1, 1).  Returns logits (B, 1) f32."""
    B, kf = x.shape
    tk = _pick_tile(kf, (2048, 1024, 512, 256, 128))
    kernel = functools.partial(fc_kernel, slope=slope)
    return pl.pallas_call(
        kernel,
        out_shape=jax.ShapeDtypeStruct((B, 1), jnp.float32),
        grid_spec=pltpu.PrefetchScalarGridSpec(
            num_scalar_prefetch=0,
            grid=(kf // tk,),
            in_specs=[pl.BlockSpec((B, tk), lambda k: (0, k)),
                      pl.BlockSpec((1, tk), lambda k: (0, k)),
                      pl.BlockSpec((1, tk), lambda k: (0, k)),
                      pl.BlockSpec((1, tk), lambda k: (0, k)),
                      pl.BlockSpec((1, 1), lambda k: (0, 0))],
            out_specs=pl.BlockSpec((B, 1), lambda k: (0, 0)),
            scratch_shapes=[pltpu.VMEM((B, tk), jnp.float32)]),
        compiler_params=pltpu.CompilerParams(
            dimension_semantics=("arbitrary",)),
    )(x.astype(jnp.bfloat16), scale.astype(jnp.float32),
      shift.astype(jnp.float32), w.astype(jnp.float32),
      b.astype(jnp.float32))


# ----------------------------------------------------------------------------
# Model glue (im2col with optional fused BN+LeakyReLU, layer composition)
# ----------------------------------------------------------------------------
def im2col_act(x, kh, kw, stride, pad, scale=None, shift=None,
               slope=LRELU_SLOPE, out_dtype=jnp.bfloat16):
    """x: (N, H, W, C) NHWC -> (N*OH*OW, kh*kw*C) bf16 patch matrix.

    If scale/shift are given, the previous layer's batch-norm affine +
    LeakyReLU are applied elementwise *before* zero padding (so conv padding
    semantics stay exact); XLA fuses this with the patch extraction, so it
    costs no extra HBM pass.  Patch feature ordering is (ki, kj, cin)."""
    N, H, W, C = x.shape
    x = x.astype(jnp.float32)
    if scale is not None:
        x = x * scale + shift
        x = jnp.where(x > 0, x, slope * x)
    xp = jnp.pad(x, ((0, 0), (pad, pad), (pad, pad), (0, 0)))
    OH = (H + 2 * pad - kh) // stride + 1
    OW = (W + 2 * pad - kw) // stride + 1
    cols = []
    for i in range(kh):
        for j in range(kw):
            cols.append(xp[:, i:i + stride * (OH - 1) + 1:stride,
                           j:j + stride * (OW - 1) + 1:stride, :])
    p = jnp.concatenate(cols, axis=-1)            # (N, OH, OW, kh*kw*C)
    return p.reshape(N * OH * OW, kh * kw * C).astype(out_dtype), OH, OW


def discriminator_forward(x_nchw, params):
    # layout: internal layout is NHWC; input arrives NCHW (PyTorch convention).
    x = jnp.transpose(x_nchw, (0, 2, 3, 1)).astype(jnp.float32)
    N = x.shape[0]

    # conv1: LeakyReLU fused in the GEMM epilogue (no BN).
    patches, OH, OW = im2col_act(x, 4, 4, 2, 1)
    y, _ = pallas_conv_gemm(patches, params["w1"], apply_lrelu=True)
    h = y.reshape(N, OH, OW, params["w1"].shape[1])
    scale = shift = None            # conv1 activation is already applied

    # conv2..conv4: GEMM emits the pre-BN output (bf16) + fused batch stats.
    # The BN scale/shift + LeakyReLU are applied lazily (next im2col / FC).
    for l in (2, 3, 4):
        w = params[f"w{l}"]
        patches, OH, OW = im2col_act(h, 4, 4, 2, 1, scale=scale, shift=shift)
        y, part = pallas_conv_gemm(patches, w, apply_lrelu=False)
        stats = part.sum(axis=0)                        # (2, Cout)
        cnt = jnp.float32(y.shape[0])                   # N*OH*OW rows
        mean = stats[0] / cnt
        var = stats[1] / cnt - mean * mean              # biased (PyTorch BN training)
        scale = params[f"g{l}"] / jnp.sqrt(var + BN_EPS)
        shift = params[f"b{l}"] - mean * scale
        h = y.reshape(N, OH, OW, w.shape[1])

    # FC: BN4 + LeakyReLU fused into the kernel prologue; NHWC flatten is a
    # free reshape because fc_w rows were permuted to NHWC order at init.
    c4 = h.shape[-1]
    feat = h.reshape(N, OH * OW * c4)
    scale_fc = jnp.tile(scale, OH * OW).reshape(1, -1)
    shift_fc = jnp.tile(shift, OH * OW).reshape(1, -1)
    return pallas_fc(feat, scale_fc, shift_fc,
                     params["fc_w_nhwc"], params["fc_b_2d"])


# ----------------------------------------------------------------------------
# Pure-JAX reference (for verification)
# ----------------------------------------------------------------------------
def reference_forward(x_nchw, params):
    x = jnp.transpose(x_nchw, (0, 2, 3, 1)).astype(jnp.float32)

    def conv(x, w):
        cin, cout = x.shape[-1], w.shape[1]
        k = w.reshape(4, 4, cin, cout)
        return lax.conv_general_dilated(x, k, (2, 2), [(1, 1), (1, 1)],
                                        dimension_numbers=("NHWC", "HWIO", "NHWC"))

    def lrelu(v):
        return jnp.where(v > 0, v, LRELU_SLOPE * v)

    def bn(v, g, b):
        mean = jnp.mean(v, axis=(0, 1, 2))
        var = jnp.mean((v - mean) ** 2, axis=(0, 1, 2))
        return g * (v - mean) / jnp.sqrt(var + BN_EPS) + b

    h = lrelu(conv(x, params["w1"]))
    h = lrelu(bn(conv(h, params["w2"]), params["g2"], params["b2"]))
    h = lrelu(bn(conv(h, params["w3"]), params["g3"], params["b3"]))
    h = lrelu(bn(conv(h, params["w4"]), params["g4"], params["b4"]))
    feat = jnp.transpose(h, (0, 3, 1, 2)).reshape(x.shape[0], -1)  # NCHW flatten
    return feat @ params["fc_w"] + params["fc_b"]


# ----------------------------------------------------------------------------
# Deterministic parameter init + demo
# ----------------------------------------------------------------------------
def init_params(conv_dim, key):
    ks = jax.random.split(key, 12)
    cd = conv_dim
    chans = [1, cd, 2 * cd, 4 * cd, 8 * cd]
    p = {}
    # Conv weights stored in patch layout (kh*kw*Cin, Cout), ordering (ki, kj, cin).
    for l in range(1, 5):
        cin, cout = chans[l - 1], chans[l]
        p[f"w{l}"] = 0.05 * jax.random.normal(ks[l - 1], (4 * 4 * cin, cout),
                                              jnp.float32)
    # BatchNorm affine params for layers 2..4 (nontrivial values on purpose).
    for l, ki in zip((2, 3, 4), (4, 5, 6)):
        c = chans[l]
        p[f"g{l}"] = 1.0 + 0.1 * jax.random.normal(ks[ki], (c,), jnp.float32)
        p[f"b{l}"] = 0.1 * jax.random.normal(ks[ki + 3], (c,), jnp.float32)
    fc_in = 8 * 8 * 8 * cd
    c4 = 8 * cd
    p["fc_w"] = 0.02 * jax.random.normal(ks[10], (fc_in, 1), jnp.float32)
    p["fc_b"] = 0.01 * jax.random.normal(ks[11], (1,), jnp.float32)
    # FC weight permuted to NHWC flatten order (row hw*C4 + c <- NCHW c*64 + hw),
    # stored unpadded as a (1, fc_in) row for the lane-dense FC kernel.
    p["fc_w_nhwc"] = p["fc_w"][:, 0].reshape(c4, 64).T.reshape(1, fc_in)
    p["fc_b_2d"] = p["fc_b"].reshape(1, 1)
    return p


if __name__ == "__main__":
    CONV_DIM = 8          # small conv_dim for the demo (module default is 128)
    BATCH = 2
    # Spatial size must be 128: the fc layer (8*8*8*conv_dim) implies 8x8 after
    # four stride-2 convs.
    key = jax.random.PRNGKey(0)
    kx, kp = jax.random.split(key)
    x = jax.random.normal(kx, (BATCH, 1, 128, 128), jnp.float32)   # NCHW input

    params = init_params(CONV_DIM, kp)

    fwd = jax.jit(discriminator_forward)
    logits = jax.block_until_ready(fwd(x, params))
    assert logits.shape == (BATCH, 1), logits.shape

    ref = jax.block_until_ready(reference_forward(x, params))
    # Tolerance is slightly wider than the pure-f32 version because GEMM
    # operands are bf16 (per perf feedback); accumulation and BN stats are f32.
    if not bool(jnp.allclose(logits, ref, rtol=5e-2, atol=5e-2)):
        raise AssertionError(
            f"mismatch vs reference: {logits} vs {ref} "
            f"(max abs diff {jnp.max(jnp.abs(logits - ref))})")

    print("KERNEL_OK")
</pallas_src>

<mosaic_0001>
module attributes {stable_mosaic.version = 11 : i64} {
  func.func @conv_gemm_kernel(%arg0: i32, %arg1: i32, %arg2: memref<512x16xbf16, #tpu.memory_space<vmem>>, %arg3: memref<16x8xbf16, #tpu.memory_space<vmem>>, %arg4: memref<512x8xbf16, #tpu.memory_space<vmem>>, %arg5: memref<1x2x8xf32, #tpu.memory_space<vmem>>, %arg6: memref<512x8xf32, #tpu.memory_space<vmem>>) attributes {dimension_semantics = [#tpu.dimension_semantics<parallel>, #tpu.dimension_semantics<arbitrary>], iteration_bounds = array<i64: 16, 1>, scalar_prefetch = 0 : i64, scratch_operands = 1 : i64, tpu.core_type = #tpu.core_type<tc>, window_params = [{transform_indices = @transform_0, window_bounds = array<i64: 512, 16>}, {transform_indices = @transform_1, window_bounds = array<i64: 16, 8>}, {transform_indices = @transform_2, window_bounds = array<i64: 512, 8>}, {transform_indices = @transform_3, window_bounds = array<i64: 1, 2, 8>}]} {
    %c0_i32 = arith.constant 0 : i32
    %0 = arith.cmpi eq, %arg1, %c0_i32 : i32
    %1 = arith.extui %0 : i1 to i32
    %c0_i32_0 = arith.constant 0 : i32
    %2 = arith.cmpi ne, %1, %c0_i32_0 : i32
    scf.if %2 {
      %cst_10 = arith.constant 0.000000e+00 : f32
      %12 = vector.broadcast %cst_10 : f32 to vector<512x8xf32>
      %c0_11 = arith.constant 0 : index
      %c0_12 = arith.constant 0 : index
      %13 = vector.load %arg6[%c0_11, %c0_12] : memref<512x8xf32, #tpu.memory_space<vmem>>, vector<512x8xf32>
      tpu.vector_store %arg6[%c0_11, %c0_12], %12 {strides = array<i32>} : memref<512x8xf32, #tpu.memory_space<vmem>>, vector<512x8xf32>,
    } else {
    }
    %c0 = arith.constant 0 : index
    %c0_1 = arith.constant 0 : index
    %3 = vector.load %arg6[%c0, %c0_1] : memref<512x8xf32, #tpu.memory_space<vmem>>, vector<512x8xf32>
    %c0_2 = arith.constant 0 : index
    %c0_3 = arith.constant 0 : index
    %4 = vector.load %arg2[%c0_2, %c0_3] : memref<512x16xbf16, #tpu.memory_space<vmem>>, vector<512x16xbf16>
    %c0_4 = arith.constant 0 : index
    %c0_5 = arith.constant 0 : index
    %5 = vector.load %arg3[%c0_4, %c0_5] : memref<16x8xbf16, #tpu.memory_space<vmem>>, vector<16x8xbf16>
    %cst = arith.constant dense<0.000000e+00> : vector<512x8xf32>
    %6 = tpu.matmul %4, %5, %cst {dimension_numbers = #tpu.dot_dimension_numbers<[1], [0], [0], [1], [0, 0, 1, 1], [], []>} : vector<512x16xbf16>, vector<16x8xbf16>, vector<512x8xf32> -> vector<512x8xf32>
    %7 = arith.addf %3, %6 : vector<512x8xf32>
    %c0_6 = arith.constant 0 : index
    %c0_7 = arith.constant 0 : index
    %8 = vector.load %arg6[%c0_6, %c0_7] : memref<512x8xf32, #tpu.memory_space<vmem>>, vector<512x8xf32>
    tpu.vector_store %arg6[%c0_6, %c0_7], %7 {strides = array<i32>} : memref<512x8xf32, #tpu.memory_space<vmem>>, vector<512x8xf32>,
    %c0_i32_8 = arith.constant 0 : i32
    %9 = arith.cmpi eq, %arg1, %c0_i32_8 : i32
    %10 = arith.extui %9 : i1 to i32
    %c0_i32_9 = arith.constant 0 : i32
    %11 = arith.cmpi ne, %10, %c0_i32_9 : i32
    scf.if %11 {
      %c0_10 = arith.constant 0 : index
      %c0_11 = arith.constant 0 : index
      %12 = vector.load %arg6[%c0_10, %c0_11] : memref<512x8xf32, #tpu.memory_space<vmem>>, vector<512x8xf32>
      %cst_12 = arith.constant dense<0.000000e+00> : vector<8xf32>
      %13 = vector.multi_reduction <add>, %12, %cst_12 [0] : vector<512x8xf32> to vector<8xf32>
      %14 = vector.shape_cast %13 : vector<8xf32> to vector<1x8xf32>
      %15 = arith.mulf %12, %12 : vector<512x8xf32>
      %cst_13 = arith.constant dense<0.000000e+00> : vector<8xf32>
      %16 = vector.multi_reduction <add>, %15, %cst_13 [0] : vector<512x8xf32> to vector<8xf32>
      %17 = vector.shape_cast %16 : vector<8xf32> to vector<1x8xf32>
      %18 = tpu.concatenate %14, %17 in 0 : vector<1x8xf32>, vector<1x8xf32> -> vector<2x8xf32>
      %19 = vector.shape_cast %18 : vector<2x8xf32> to vector<1x2x8xf32>
      %c0_14 = arith.constant 0 : index
      %c0_15 = arith.constant 0 : index
      %c0_16 = arith.constant 0 : index
      %20 = vector.load %arg5[%c0_14, %c0_15, %c0_16] : memref<1x2x8xf32, #tpu.memory_space<vmem>>, vector<1x2x8xf32>
      tpu.vector_store %arg5[%c0_14, %c0_15, %c0_16], %19 {strides = array<i32>} : memref<1x2x8xf32, #tpu.memory_space<vmem>>, vector<1x2x8xf32>,
      %cst_17 = arith.constant 0.000000e+00 : f32
      %21 = vector.broadcast %cst_17 : f32 to vector<512x8xf32>
      %22 = arith.cmpf ogt, %12, %21 : vector<512x8xf32>
      %cst_18 = arith.constant 2.000000e-01 : f32
      %23 = vector.broadcast %cst_18 : f32 to vector<512x8xf32>
      %24 = arith.mulf %23, %12 : vector<512x8xf32>
      %25 = arith.select %22, %12, %24 : vector<512x8xi1>, vector<512x8xf32>
      %26 = arith.truncf %25 : vector<512x8xf32> to vector<512x8xbf16>
      %c0_19 = arith.constant 0 : index
      %c0_20 = arith.constant 0 : index
      %27 = vector.load %arg4[%c0_19, %c0_20] : memref<512x8xbf16, #tpu.memory_space<vmem>>, vector<512x8xbf16>
      tpu.vector_store %arg4[%c0_19, %c0_20], %26 {strides = array<i32>} : memref<512x8xbf16, #tpu.memory_space<vmem>>, vector<512x8xbf16>,
    } else {
    }
    return
  }
  func.func @transform_0(%arg0: i32, %arg1: i32) -> (i32, i32) {
    %c0_i32 = arith.constant 0 : i32
    return %arg0, %arg1 : i32, i32
  }
  func.func @transform_1(%arg0: i32, %arg1: i32) -> (i32, i32) {
    %c0_i32 = arith.constant 0 : i32
    %c0_i32_0 = arith.constant 0 : i32
    return %arg1, %c0_i32 : i32, i32
  }
  func.func @transform_2(%arg0: i32, %arg1: i32) -> (i32, i32) {
    %c0_i32 = arith.constant 0 : i32
    %c0_i32_0 = arith.constant 0 : i32
    return %arg0, %c0_i32 : i32, i32
  }
  func.func @transform_3(%arg0: i32, %arg1: i32) -> (i32, i32, i32) {
    %c0_i32 = arith.constant 0 : i32
    %c0_i32_0 = arith.constant 0 : i32
    %c0_i32_1 = arith.constant 0 : i32
    return %arg0, %c0_i32, %c0_i32_0 : i32, i32, i32
  }
}

module attributes {stable_mosaic.version = 11 : i64} {
  func.func @conv_gemm_kernel(%arg0: i32, %arg1: i32, %arg2: memref<512x128xbf16, #tpu.memory_space<vmem>>, %arg3: memref<128x16xbf16, #tpu.memory_space<vmem>>, %arg4: memref<512x16xbf16, #tpu.memory_space<vmem>>, %arg5: memref<1x2x16xf32, #tpu.memory_space<vmem>>, %arg6: memref<512x16xf32, #tpu.memory_space<vmem>>) attributes {dimension_semantics = [#tpu.dimension_semantics<parallel>, #tpu.dimension_semantics<arbitrary>], iteration_bounds = array<i64: 4, 1>, scalar_prefetch = 0 : i64, scratch_operands = 1 : i64, tpu.core_type = #tpu.core_type<tc>, window_params = [{transform_indices = @transform_0, window_bounds = array<i64: 512, 128>}, {transform_indices = @transform_1, window_bounds = array<i64: 128, 16>}, {transform_indices = @transform_2, window_bounds = array<i64: 512, 16>}, {transform_indices = @transform_3, window_bounds = array<i64: 1, 2, 16>}]} {
    %c0_i32 = arith.constant 0 : i32
    %0 = arith.cmpi eq, %arg1, %c0_i32 : i32
    %1 = arith.extui %0 : i1 to i32
    %c0_i32_0 = arith.constant 0 : i32
    %2 = arith.cmpi ne, %1, %c0_i32_0 : i32
    scf.if %2 {
      %cst_10 = arith.constant 0.000000e+00 : f32
      %12 = vector.broadcast %cst_10 : f32 to vector<512x16xf32>
      %c0_11 = arith.constant 0 : index
      %c0_12 = arith.constant 0 : index
      %13 = vector.load %arg6[%c0_11, %c0_12] : memref<512x16xf32, #tpu.memory_space<vmem>>, vector<512x16xf32>
      tpu.vector_store %arg6[%c0_11, %c0_12], %12 {strides = array<i32>} : memref<512x16xf32, #tpu.memory_space<vmem>>, vector<512x16xf32>,
    } else {
    }
    %c0 = arith.constant 0 : index
    %c0_1 = arith.constant 0 : index
    %3 = vector.load %arg6[%c0, %c0_1] : memref<512x16xf32, #tpu.memory_space<vmem>>, vector<512x16xf32>
    %c0_2 = arith.constant 0 : index
    %c0_3 = arith.constant 0 : index
    %4 = vector.load %arg2[%c0_2, %c0_3] : memref<512x128xbf16, #tpu.memory_space<vmem>>, vector<512x128xbf16>
    %c0_4 = arith.constant 0 : index
    %c0_5 = arith.constant 0 : index
    %5 = vector.load %arg3[%c0_4, %c0_5] : memref<128x16xbf16, #tpu.memory_space<vmem>>, vector<128x16xbf16>
    %cst = arith.constant dense<0.000000e+00> : vector<512x16xf32>
    %6 = tpu.matmul %4, %5, %cst {dimension_numbers = #tpu.dot_dimension_numbers<[1], [0], [0], [1], [0, 0, 1, 1], [], []>} : vector<512x128xbf16>, vector<128x16xbf16>, vector<512x16xf32> -> vector<512x16xf32>
    %7 = arith.addf %3, %6 : vector<512x16xf32>
    %c0_6 = arith.constant 0 : index
    %c0_7 = arith.constant 0 : index
    %8 = vector.load %arg6[%c0_6, %c0_7] : memref<512x16xf32, #tpu.memory_space<vmem>>, vector<512x16xf32>
    tpu.vector_store %arg6[%c0_6, %c0_7], %7 {strides = array<i32>} : memref<512x16xf32, #tpu.memory_space<vmem>>, vector<512x16xf32>,
    %c0_i32_8 = arith.constant 0 : i32
    %9 = arith.cmpi eq, %arg1, %c0_i32_8 : i32
    %10 = arith.extui %9 : i1 to i32
    %c0_i32_9 = arith.constant 0 : i32
    %11 = arith.cmpi ne, %10, %c0_i32_9 : i32
    scf.if %11 {
      %c0_10 = arith.constant 0 : index
      %c0_11 = arith.constant 0 : index
      %12 = vector.load %arg6[%c0_10, %c0_11] : memref<512x16xf32, #tpu.memory_space<vmem>>, vector<512x16xf32>
      %cst_12 = arith.constant dense<0.000000e+00> : vector<16xf32>
      %13 = vector.multi_reduction <add>, %12, %cst_12 [0] : vector<512x16xf32> to vector<16xf32>
      %14 = vector.shape_cast %13 : vector<16xf32> to vector<1x16xf32>
      %15 = arith.mulf %12, %12 : vector<512x16xf32>
      %cst_13 = arith.constant dense<0.000000e+00> : vector<16xf32>
      %16 = vector.multi_reduction <add>, %15, %cst_13 [0] : vector<512x16xf32> to vector<16xf32>
      %17 = vector.shape_cast %16 : vector<16xf32> to vector<1x16xf32>
      %18 = tpu.concatenate %14, %17 in 0 : vector<1x16xf32>, vector<1x16xf32> -> vector<2x16xf32>
      %19 = vector.shape_cast %18 : vector<2x16xf32> to vector<1x2x16xf32>
      %c0_14 = arith.constant 0 : index
      %c0_15 = arith.constant 0 : index
      %c0_16 = arith.constant 0 : index
      %20 = vector.load %arg5[%c0_14, %c0_15, %c0_16] : memref<1x2x16xf32, #tpu.memory_space<vmem>>, vector<1x2x16xf32>
      tpu.vector_store %arg5[%c0_14, %c0_15, %c0_16], %19 {strides = array<i32>} : memref<1x2x16xf32, #tpu.memory_space<vmem>>, vector<1x2x16xf32>,
      %21 = arith.truncf %12 : vector<512x16xf32> to vector<512x16xbf16>
      %c0_17 = arith.constant 0 : index
      %c0_18 = arith.constant 0 : index
      %22 = vector.load %arg4[%c0_17, %c0_18] : memref<512x16xbf16, #tpu.memory_space<vmem>>, vector<512x16xbf16>
      tpu.vector_store %arg4[%c0_17, %c0_18], %21 {strides = array<i32>} : memref<512x16xbf16, #tpu.memory_space<vmem>>, vector<512x16xbf16>,
    } else {
    }
    return
  }
  func.func @transform_0(%arg0: i32, %arg1: i32) -> (i32, i32) {
    %c0_i32 = arith.constant 0 : i32
    return %arg0, %arg1 : i32, i32
  }
  func.func @transform_1(%arg0: i32, %arg1: i32) -> (i32, i32) {
    %c0_i32 = arith.constant 0 : i32
    %c0_i32_0 = arith.constant 0 : i32
    return %arg1, %c0_i32 : i32, i32
  }
  func.func @transform_2(%arg0: i32, %arg1: i32) -> (i32, i32) {
    %c0_i32 = arith.constant 0 : i32
    %c0_i32_0 = arith.constant 0 : i32
    return %arg0, %c0_i32 : i32, i32
  }
  func.func @transform_3(%arg0: i32, %arg1: i32) -> (i32, i32, i32) {
    %c0_i32 = arith.constant 0 : i32
    %c0_i32_0 = arith.constant 0 : i32
    %c0_i32_1 = arith.constant 0 : i32
    return %arg0, %c0_i32, %c0_i32_0 : i32, i32, i32
  }
}

module attributes {stable_mosaic.version = 11 : i64} {
  func.func @conv_gemm_kernel(%arg0: i32, %arg1: i32, %arg2: memref<512x256xbf16, #tpu.memory_space<vmem>>, %arg3: memref<256x32xbf16, #tpu.memory_space<vmem>>, %arg4: memref<512x32xbf16, #tpu.memory_space<vmem>>, %arg5: memref<1x2x32xf32, #tpu.memory_space<vmem>>, %arg6: memref<512x32xf32, #tpu.memory_space<vmem>>) attributes {dimension_semantics = [#tpu.dimension_semantics<parallel>, #tpu.dimension_semantics<arbitrary>], iteration_bounds = array<i64: 1, 1>, scalar_prefetch = 0 : i64, scratch_operands = 1 : i64, tpu.core_type = #tpu.core_type<tc>, window_params = [{transform_indices = @transform_0, window_bounds = array<i64: 512, 256>}, {transform_indices = @transform_1, window_bounds = array<i64: 256, 32>}, {transform_indices = @transform_2, window_bounds = array<i64: 512, 32>}, {transform_indices = @transform_3, window_bounds = array<i64: 1, 2, 32>}]} {
    %c0_i32 = arith.constant 0 : i32
    %0 = arith.cmpi eq, %arg1, %c0_i32 : i32
    %1 = arith.extui %0 : i1 to i32
    %c0_i32_0 = arith.constant 0 : i32
    %2 = arith.cmpi ne, %1, %c0_i32_0 : i32
    scf.if %2 {
      %cst_10 = arith.constant 0.000000e+00 : f32
      %12 = vector.broadcast %cst_10 : f32 to vector<512x32xf32>
      %c0_11 = arith.constant 0 : index
      %c0_12 = arith.constant 0 : index
      %13 = vector.load %arg6[%c0_11, %c0_12] : memref<512x32xf32, #tpu.memory_space<vmem>>, vector<512x32xf32>
      tpu.vector_store %arg6[%c0_11, %c0_12], %12 {strides = array<i32>} : memref<512x32xf32, #tpu.memory_space<vmem>>, vector<512x32xf32>,
    } else {
    }
    %c0 = arith.constant 0 : index
    %c0_1 = arith.constant 0 : index
    %3 = vector.load %arg6[%c0, %c0_1] : memref<512x32xf32, #tpu.memory_space<vmem>>, vector<512x32xf32>
    %c0_2 = arith.constant 0 : index
    %c0_3 = arith.constant 0 : index
    %4 = vector.load %arg2[%c0_2, %c0_3] : memref<512x256xbf16, #tpu.memory_space<vmem>>, vector<512x256xbf16>
    %c0_4 = arith.constant 0 : index
    %c0_5 = arith.constant 0 : index
    %5 = vector.load %arg3[%c0_4, %c0_5] : memref<256x32xbf16, #tpu.memory_space<vmem>>, vector<256x32xbf16>
    %cst = arith.constant dense<0.000000e+00> : vector<512x32xf32>
    %6 = tpu.matmul %4, %5, %cst {dimension_numbers = #tpu.dot_dimension_numbers<[1], [0], [0], [1], [0, 0, 1, 1], [], []>} : vector<512x256xbf16>, vector<256x32xbf16>, vector<512x32xf32> -> vector<512x32xf32>
    %7 = arith.addf %3, %6 : vector<512x32xf32>
    %c0_6 = arith.constant 0 : index
    %c0_7 = arith.constant 0 : index
    %8 = vector.load %arg6[%c0_6, %c0_7] : memref<512x32xf32, #tpu.memory_space<vmem>>, vector<512x32xf32>
    tpu.vector_store %arg6[%c0_6, %c0_7], %7 {strides = array<i32>} : memref<512x32xf32, #tpu.memory_space<vmem>>, vector<512x32xf32>,
    %c0_i32_8 = arith.constant 0 : i32
    %9 = arith.cmpi eq, %arg1, %c0_i32_8 : i32
    %10 = arith.extui %9 : i1 to i32
    %c0_i32_9 = arith.constant 0 : i32
    %11 = arith.cmpi ne, %10, %c0_i32_9 : i32
    scf.if %11 {
      %c0_10 = arith.constant 0 : index
      %c0_11 = arith.constant 0 : index
      %12 = vector.load %arg6[%c0_10, %c0_11] : memref<512x32xf32, #tpu.memory_space<vmem>>, vector<512x32xf32>
      %cst_12 = arith.constant dense<0.000000e+00> : vector<32xf32>
      %13 = vector.multi_reduction <add>, %12, %cst_12 [0] : vector<512x32xf32> to vector<32xf32>
      %14 = vector.shape_cast %13 : vector<32xf32> to vector<1x32xf32>
      %15 = arith.mulf %12, %12 : vector<512x32xf32>
      %cst_13 = arith.constant dense<0.000000e+00> : vector<32xf32>
      %16 = vector.multi_reduction <add>, %15, %cst_13 [0] : vector<512x32xf32> to vector<32xf32>
      %17 = vector.shape_cast %16 : vector<32xf32> to vector<1x32xf32>
      %18 = tpu.concatenate %14, %17 in 0 : vector<1x32xf32>, vector<1x32xf32> -> vector<2x32xf32>
      %19 = vector.shape_cast %18 : vector<2x32xf32> to vector<1x2x32xf32>
      %c0_14 = arith.constant 0 : index
      %c0_15 = arith.constant 0 : index
      %c0_16 = arith.constant 0 : index
      %20 = vector.load %arg5[%c0_14, %c0_15, %c0_16] : memref<1x2x32xf32, #tpu.memory_space<vmem>>, vector<1x2x32xf32>
      tpu.vector_store %arg5[%c0_14, %c0_15, %c0_16], %19 {strides = array<i32>} : memref<1x2x32xf32, #tpu.memory_space<vmem>>, vector<1x2x32xf32>,
      %21 = arith.truncf %12 : vector<512x32xf32> to vector<512x32xbf16>
      %c0_17 = arith.constant 0 : index
      %c0_18 = arith.constant 0 : index
      %22 = vector.load %arg4[%c0_17, %c0_18] : memref<512x32xbf16, #tpu.memory_space<vmem>>, vector<512x32xbf16>
      tpu.vector_store %arg4[%c0_17, %c0_18], %21 {strides = array<i32>} : memref<512x32xbf16, #tpu.memory_space<vmem>>, vector<512x32xbf16>,
    } else {
    }
    return
  }
  func.func @transform_0(%arg0: i32, %arg1: i32) -> (i32, i32) {
    %c0_i32 = arith.constant 0 : i32
    return %arg0, %arg1 : i32, i32
  }
  func.func @transform_1(%arg0: i32, %arg1: i32) -> (i32, i32) {
    %c0_i32 = arith.constant 0 : i32
    %c0_i32_0 = arith.constant 0 : i32
    return %arg1, %c0_i32 : i32, i32
  }
  func.func @transform_2(%arg0: i32, %arg1: i32) -> (i32, i32) {
    %c0_i32 = arith.constant 0 : i32
    %c0_i32_0 = arith.constant 0 : i32
    return %arg0, %c0_i32 : i32, i32
  }
  func.func @transform_3(%arg0: i32, %arg1: i32) -> (i32, i32, i32) {
    %c0_i32 = arith.constant 0 : i32
    %c0_i32_0 = arith.constant 0 : i32
    %c0_i32_1 = arith.constant 0 : i32
    return %arg0, %c0_i32, %c0_i32_0 : i32, i32, i32
  }
}

module attributes {stable_mosaic.version = 11 : i64} {
  func.func @conv_gemm_kernel(%arg0: i32, %arg1: i32, %arg2: memref<128x512xbf16, #tpu.memory_space<vmem>>, %arg3: memref<512x64xbf16, #tpu.memory_space<vmem>>, %arg4: memref<128x64xbf16, #tpu.memory_space<vmem>>, %arg5: memref<1x2x64xf32, #tpu.memory_space<vmem>>, %arg6: memref<128x64xf32, #tpu.memory_space<vmem>>) attributes {dimension_semantics = [#tpu.dimension_semantics<parallel>, #tpu.dimension_semantics<arbitrary>], iteration_bounds = array<i64: 1, 1>, scalar_prefetch = 0 : i64, scratch_operands = 1 : i64, tpu.core_type = #tpu.core_type<tc>, window_params = [{transform_indices = @transform_0, window_bounds = array<i64: 128, 512>}, {transform_indices = @transform_1, window_bounds = array<i64: 512, 64>}, {transform_indices = @transform_2, window_bounds = array<i64: 128, 64>}, {transform_indices = @transform_3, window_bounds = array<i64: 1, 2, 64>}]} {
    %c0_i32 = arith.constant 0 : i32
    %0 = arith.cmpi eq, %arg1, %c0_i32 : i32
    %1 = arith.extui %0 : i1 to i32
    %c0_i32_0 = arith.constant 0 : i32
    %2 = arith.cmpi ne, %1, %c0_i32_0 : i32
    scf.if %2 {
      %cst_10 = arith.constant 0.000000e+00 : f32
      %12 = vector.broadcast %cst_10 : f32 to vector<128x64xf32>
      %c0_11 = arith.constant 0 : index
      %c0_12 = arith.constant 0 : index
      %13 = vector.load %arg6[%c0_11, %c0_12] : memref<128x64xf32, #tpu.memory_space<vmem>>, vector<128x64xf32>
      tpu.vector_store %arg6[%c0_11, %c0_12], %12 {strides = array<i32>} : memref<128x64xf32, #tpu.memory_space<vmem>>, vector<128x64xf32>,
    } else {
    }
    %c0 = arith.constant 0 : index
    %c0_1 = arith.constant 0 : index
    %3 = vector.load %arg6[%c0, %c0_1] : memref<128x64xf32, #tpu.memory_space<vmem>>, vector<128x64xf32>
    %c0_2 = arith.constant 0 : index
    %c0_3 = arith.constant 0 : index
    %4 = vector.load %arg2[%c0_2, %c0_3] : memref<128x512xbf16, #tpu.memory_space<vmem>>, vector<128x512xbf16>
    %c0_4 = arith.constant 0 : index
    %c0_5 = arith.constant 0 : index
    %5 = vector.load %arg3[%c0_4, %c0_5] : memref<512x64xbf16, #tpu.memory_space<vmem>>, vector<512x64xbf16>
    %cst = arith.constant dense<0.000000e+00> : vector<128x64xf32>
    %6 = tpu.matmul %4, %5, %cst {dimension_numbers = #tpu.dot_dimension_numbers<[1], [0], [0], [1], [0, 0, 1, 1], [], []>} : vector<128x512xbf16>, vector<512x64xbf16>, vector<128x64xf32> -> vector<128x64xf32>
    %7 = arith.addf %3, %6 : vector<128x64xf32>
    %c0_6 = arith.constant 0 : index
    %c0_7 = arith.constant 0 : index
    %8 = vector.load %arg6[%c0_6, %c0_7] : memref<128x64xf32, #tpu.memory_space<vmem>>, vector<128x64xf32>
    tpu.vector_store %arg6[%c0_6, %c0_7], %7 {strides = array<i32>} : memref<128x64xf32, #tpu.memory_space<vmem>>, vector<128x64xf32>,
    %c0_i32_8 = arith.constant 0 : i32
    %9 = arith.cmpi eq, %arg1, %c0_i32_8 : i32
    %10 = arith.extui %9 : i1 to i32
    %c0_i32_9 = arith.constant 0 : i32
    %11 = arith.cmpi ne, %10, %c0_i32_9 : i32
    scf.if %11 {
      %c0_10 = arith.constant 0 : index
      %c0_11 = arith.constant 0 : index
      %12 = vector.load %arg6[%c0_10, %c0_11] : memref<128x64xf32, #tpu.memory_space<vmem>>, vector<128x64xf32>
      %cst_12 = arith.constant dense<0.000000e+00> : vector<64xf32>
      %13 = vector.multi_reduction <add>, %12, %cst_12 [0] : vector<128x64xf32> to vector<64xf32>
      %14 = vector.shape_cast %13 : vector<64xf32> to vector<1x64xf32>
      %15 = arith.mulf %12, %12 : vector<128x64xf32>
      %cst_13 = arith.constant dense<0.000000e+00> : vector<64xf32>
      %16 = vector.multi_reduction <add>, %15, %cst_13 [0] : vector<128x64xf32> to vector<64xf32>
      %17 = vector.shape_cast %16 : vector<64xf32> to vector<1x64xf32>
      %18 = tpu.concatenate %14, %17 in 0 : vector<1x64xf32>, vector<1x64xf32> -> vector<2x64xf32>
      %19 = vector.shape_cast %18 : vector<2x64xf32> to vector<1x2x64xf32>
      %c0_14 = arith.constant 0 : index
      %c0_15 = arith.constant 0 : index
      %c0_16 = arith.constant 0 : index
      %20 = vector.load %arg5[%c0_14, %c0_15, %c0_16] : memref<1x2x64xf32, #tpu.memory_space<vmem>>, vector<1x2x64xf32>
      tpu.vector_store %arg5[%c0_14, %c0_15, %c0_16], %19 {strides = array<i32>} : memref<1x2x64xf32, #tpu.memory_space<vmem>>, vector<1x2x64xf32>,
      %21 = arith.truncf %12 : vector<128x64xf32> to vector<128x64xbf16>
      %c0_17 = arith.constant 0 : index
      %c0_18 = arith.constant 0 : index
      %22 = vector.load %arg4[%c0_17, %c0_18] : memref<128x64xbf16, #tpu.memory_space<vmem>>, vector<128x64xbf16>
      tpu.vector_store %arg4[%c0_17, %c0_18], %21 {strides = array<i32>} : memref<128x64xbf16, #tpu.memory_space<vmem>>, vector<128x64xbf16>,
    } else {
    }
    return
  }
  func.func @transform_0(%arg0: i32, %arg1: i32) -> (i32, i32) {
    %c0_i32 = arith.constant 0 : i32
    return %arg0, %arg1 : i32, i32
  }
  func.func @transform_1(%arg0: i32, %arg1: i32) -> (i32, i32) {
    %c0_i32 = arith.constant 0 : i32
    %c0_i32_0 = arith.constant 0 : i32
    return %arg1, %c0_i32 : i32, i32
  }
  func.func @transform_2(%arg0: i32, %arg1: i32) -> (i32, i32) {
    %c0_i32 = arith.constant 0 : i32
    %c0_i32_0 = arith.constant 0 : i32
    return %arg0, %c0_i32 : i32, i32
  }
  func.func @transform_3(%arg0: i32, %arg1: i32) -> (i32, i32, i32) {
    %c0_i32 = arith.constant 0 : i32
    %c0_i32_0 = arith.constant 0 : i32
    %c0_i32_1 = arith.constant 0 : i32
    return %arg0, %c0_i32, %c0_i32_0 : i32, i32, i32
  }
}

module attributes {stable_mosaic.version = 11 : i64} {
  func.func @fc_kernel(%arg0: i32, %arg1: memref<2x2048xbf16, #tpu.memory_space<vmem>>, %arg2: memref<1x2048xf32, #tpu.memory_space<vmem>>, %arg3: memref<1x2048xf32, #tpu.memory_space<vmem>>, %arg4: memref<1x2048xf32, #tpu.memory_space<vmem>>, %arg5: memref<1x1xf32, #tpu.memory_space<vmem>>, %arg6: memref<2x1xf32, #tpu.memory_space<vmem>>, %arg7: memref<2x2048xf32, #tpu.memory_space<vmem>>) attributes {dimension_semantics = [#tpu.dimension_semantics<arbitrary>], iteration_bounds = array<i64: 2>, scalar_prefetch = 0 : i64, scratch_operands = 1 : i64, tpu.core_type = #tpu.core_type<tc>, window_params = [{transform_indices = @transform_0, window_bounds = array<i64: 2, 2048>}, {transform_indices = @transform_1, window_bounds = array<i64: 1, 2048>}, {transform_indices = @transform_2, window_bounds = array<i64: 1, 2048>}, {transform_indices = @transform_3, window_bounds = array<i64: 1, 2048>}, {pipeline_mode = #tpu.pipeline_mode<synchronous>, transform_indices = @transform_4, window_bounds = array<i64: 1, 1>}, {pipeline_mode = #tpu.pipeline_mode<synchronous>, transform_indices = @transform_5, window_bounds = array<i64: 2, 1>}]} {
    %c0_i32 = arith.constant 0 : i32
    %0 = arith.cmpi eq, %arg0, %c0_i32 : i32
    %1 = arith.extui %0 : i1 to i32
    %c0_i32_0 = arith.constant 0 : i32
    %2 = arith.cmpi ne, %1, %c0_i32_0 : i32
    scf.if %2 {
      %cst_14 = arith.constant 0.000000e+00 : f32
      %25 = vector.broadcast %cst_14 : f32 to vector<2x2048xf32>
      %c0_15 = arith.constant 0 : index
      %c0_16 = arith.constant 0 : index
      %26 = vector.load %arg7[%c0_15, %c0_16] : memref<2x2048xf32, #tpu.memory_space<vmem>>, vector<2x2048xf32>
      tpu.vector_store %arg7[%c0_15, %c0_16], %25 {strides = array<i32>} : memref<2x2048xf32, #tpu.memory_space<vmem>>, vector<2x2048xf32>,
    } else {
    }
    %c0 = arith.constant 0 : index
    %c0_1 = arith.constant 0 : index
    %3 = vector.load %arg1[%c0, %c0_1] : memref<2x2048xbf16, #tpu.memory_space<vmem>>, vector<2x2048xbf16>
    %4 = arith.extf %3 : vector<2x2048xbf16> to vector<2x2048xf32>
    %c0_2 = arith.constant 0 : index
    %c0_3 = arith.constant 0 : index
    %5 = vector.load %arg2[%c0_2, %c0_3] : memref<1x2048xf32, #tpu.memory_space<vmem>>, vector<1x2048xf32>
    %6 = vector.broadcast %5 : vector<1x2048xf32> to vector<2x2048xf32>
    %7 = arith.mulf %4, %6 : vector<2x2048xf32>
    %c0_4 = arith.constant 0 : index
    %c0_5 = arith.constant 0 : index
    %8 = vector.load %arg3[%c0_4, %c0_5] : memref<1x2048xf32, #tpu.memory_space<vmem>>, vector<1x2048xf32>
    %9 = vector.broadcast %8 : vector<1x2048xf32> to vector<2x2048xf32>
    %10 = arith.addf %7, %9 : vector<2x2048xf32>
    %cst = arith.constant 0.000000e+00 : f32
    %11 = vector.broadcast %cst : f32 to vector<2x2048xf32>
    %12 = arith.cmpf ogt, %10, %11 : vector<2x2048xf32>
    %cst_6 = arith.constant 2.000000e-01 : f32
    %13 = vector.broadcast %cst_6 : f32 to vector<2x2048xf32>
    %14 = arith.mulf %13, %10 : vector<2x2048xf32>
    %15 = arith.select %12, %10, %14 : vector<2x2048xi1>, vector<2x2048xf32>
    %c0_7 = arith.constant 0 : index
    %c0_8 = arith.constant 0 : index
    %16 = vector.load %arg7[%c0_7, %c0_8] : memref<2x2048xf32, #tpu.memory_space<vmem>>, vector<2x2048xf32>
    %c0_9 = arith.constant 0 : index
    %c0_10 = arith.constant 0 : index
    %17 = vector.load %arg4[%c0_9, %c0_10] : memref<1x2048xf32, #tpu.memory_space<vmem>>, vector<1x2048xf32>
    %18 = vector.broadcast %17 : vector<1x2048xf32> to vector<2x2048xf32>
    %19 = arith.mulf %15, %18 : vector<2x2048xf32>
    %20 = arith.addf %16, %19 : vector<2x2048xf32>
    %c0_11 = arith.constant 0 : index
    %c0_12 = arith.constant 0 : index
    %21 = vector.load %arg7[%c0_11, %c0_12] : memref<2x2048xf32, #tpu.memory_space<vmem>>, vector<2x2048xf32>
    tpu.vector_store %arg7[%c0_11, %c0_12], %20 {strides = array<i32>} : memref<2x2048xf32, #tpu.memory_space<vmem>>, vector<2x2048xf32>,
    %c1_i32 = arith.constant 1 : i32
    %22 = arith.cmpi eq, %arg0, %c1_i32 : i32
    %23 = arith.extui %22 : i1 to i32
    %c0_i32_13 = arith.constant 0 : i32
    %24 = arith.cmpi ne, %23, %c0_i32_13 : i32
    scf.if %24 {
      %c0_14 = arith.constant 0 : index
      %c0_15 = arith.constant 0 : index
      %25 = vector.load %arg7[%c0_14, %c0_15] : memref<2x2048xf32, #tpu.memory_space<vmem>>, vector<2x2048xf32>
      %cst_16 = arith.constant dense<0.000000e+00> : vector<2xf32>
      %26 = vector.multi_reduction <add>, %25, %cst_16 [1] : vector<2x2048xf32> to vector<2xf32>
      %27 = vector.shape_cast %26 : vector<2xf32> to vector<2x1xf32>
      %c0_17 = arith.constant 0 : index
      %c0_18 = arith.constant 0 : index
      %28 = vector.load %arg5[%c0_17, %c0_18] : memref<1x1xf32, #tpu.memory_space<vmem>>, vector<1x1xf32>
      %29 = vector.broadcast %28 : vector<1x1xf32> to vector<2x1xf32>
      %30 = arith.addf %27, %29 : vector<2x1xf32>
      %c0_19 = arith.constant 0 : index
      %c0_20 = arith.constant 0 : index
      %31 = vector.load %arg6[%c0_19, %c0_20] : memref<2x1xf32, #tpu.memory_space<vmem>>, vector<2x1xf32>
      tpu.vector_store %arg6[%c0_19, %c0_20], %30 {strides = array<i32>} : memref<2x1xf32, #tpu.memory_space<vmem>>, vector<2x1xf32>,
    } else {
    }
    return
  }
  func.func @transform_0(%arg0: i32) -> (i32, i32) {
    %c0_i32 = arith.constant 0 : i32
    %c0_i32_0 = arith.constant 0 : i32
    return %c0_i32, %arg0 : i32, i32
  }
  func.func @transform_1(%arg0: i32) -> (i32, i32) {
    %c0_i32 = arith.constant 0 : i32
    %c0_i32_0 = arith.constant 0 : i32
    return %c0_i32, %arg0 : i32, i32
  }
  func.func @transform_2(%arg0: i32) -> (i32, i32) {
    %c0_i32 = arith.constant 0 : i32
    %c0_i32_0 = arith.constant 0 : i32
    return %c0_i32, %arg0 : i32, i32
  }
  func.func @transform_3(%arg0: i32) -> (i32, i32) {
    %c0_i32 = arith.constant 0 : i32
    %c0_i32_0 = arith.constant 0 : i32
    return %c0_i32, %arg0 : i32, i32
  }
  func.func @transform_4(%arg0: i32) -> (i32, i32) {
    %c0_i32 = arith.constant 0 : i32
    %c0_i32_0 = arith.constant 0 : i32
    %c0_i32_1 = arith.constant 0 : i32
    return %c0_i32, %c0_i32_0 : i32, i32
  }
  func.func @transform_5(%arg0: i32) -> (i32, i32) {
    %c0_i32 = arith.constant 0 : i32
    %c0_i32_0 = arith.constant 0 : i32
    %c0_i32_1 = arith.constant 0 : i32
    return %c0_i32, %c0_i32_0 : i32, i32
  }
}

</mosaic_0001>

<bundles_post_ra>
// kernel: discriminator_forward.5
= control target key start
LH: loop header
LB: loop body
LE: loop exit
PB: predicated region body
PF: predicated region fallthrough
CT: control target
= control target key end

     0   :  { %9 = vsyncpa [#allocation4], 0  ;;  %s3358_s0 = inlined_call_operand.vmem [shape: bf16[8192,16], index: 0, kind: input, shape index: {}]   ;;  %s3359_s1 = inlined_call_operand.vmem [shape: bf16[16,8], index: 1, kind: input, shape index: {}]   ;;  %s3360_s2 = inlined_call_operand.vmem [shape: bf16[8192,8], index: 2, kind: output, shape index: {0}]   ;;  %s3361_s3 = inlined_call_operand.hbm [shape: f32[16,2,8], index: 3, kind: output, shape index: {1}]  }
   0x1   :  { %11 = vsyncpa [#allocation4 + $0x1], 0  ;;  %s2226_s12 = smov 0   ;;  %s2228_s13 = smov 0  }
   0x2   :  { %s2230_s14 = smov 0   ;;  %s2232_s15 = smov 0  }
   0x3   :  { %s2234_s16 = smov 0   ;;  %s2236_s17 = smov 0  }
   0x4 LB: > { %s1848_s18 = sadd.s32 4294967295, %s2203_s17   ;;  %s1849_s19 = sadd.s32 4294967294, %s2203_s17   ;;  %s2203_s17 = sphi %s2236_s17, %s17_s17   ;;  %s2199_s16 = sphi %s2234_s16, %s3368_s16   ;;  %s2195_s15 = sphi %s2232_s15, %s3367_s15   ;;  %s2191_s14 = sphi %s2230_s14, %s3366_s14   ;;  %s2187_s13 = sphi %s2228_s13, %s3365_s13   ;;  %s2183_s12 = sphi %s2226_s12, %s3364_s12  }
   0x5   : > { %s29_s20 = sadd.s32 1, %s2199_s16  ;;  %s116_s21 = sadd.s32 1, %s2191_s14 }
   0x6   : > { %p31_p0 = scmp.ge.s32.totalorder %s29_s20, 16  ;;  %p126_p1 = scmp.ne.s32.totalorder %s2191_s14, %s2187_s13 }
   0x7   : > { %p127_p2 = scmp.eq.s32.totalorder %s1848_s18, 15  ;;  %p132_p3 = scmp.ne.s32.totalorder %s2187_s13, %s2183_s12 }
   0x8   : > { %s3370_s20 = smov (%p31_p0, %s29_s20), 0  ;;  %p133_p5 = scmp.eq.s32.totalorder %s1849_s19, 15 }
   0x9   : > { %p2266_p4 = por %p127_p2, %p126_p1  ;;  %s113_s23 = ssub.s32 %s2199_s16, %s3370_s20 }
   0xa   : > { %p1853_p6 = scmp.ge.s32.totalorder %s2203_s17, 1  ;;  %p114_p7 = scmp.eq.s32.totalorder %s113_s23, 0 }
   0xb   : > { %p2273_p8 = por %p133_p5, %p132_p3  ;;  %p172_p9 = scmp.lt.s32.totalorder %s2203_s17, 17 }
   0xc   : > { %s2279_s25 = scalar_select %p114_p7, %s2191_s14, %s116_s21  }
   0xd   : > { %p173_p10 = pnand %p1853_p6, %p172_p9 }
   0xe   : > { %s1855_s28 = sshll.u32 (!%p173_p10), %s2195_s15, 6  ;;  %s206_s9 = sand.u32 (!%p173_p10), 1, %s2187_s13  }
   0xf   : > { %176 = sbr.rel (%p173_p10) target bundleno = 397 (0x18d), region = 28  ;;  %p210_p11 = scmp.lt.s32.totalorder (!%p173_p10), %s1855_s28, 1023 }
  0x10   : > { %s1854_s10 = sshll.u32 (!%p173_p10), %s206_s9, 1  ;;  %s2024_s11 = sshll.u32 (!%p173_p10), %s2195_s15, 1 }
  0x11   : > { %s1733_s21 = scalar_lea.hbm (!%p173_p10), %s3361_s3, %s2024_s11  ;;  %s208_s23 = scalar_lea.vmem (!%p173_p10), [#allocation3], %s1854_s10 }
  0x12   : > { %s1735_s26 = sshll.u32 (!%p173_p10), %s208_s23, 4  ;;  %s1737_s27 = sshll.u32 (!%p173_p10), %s1733_s21, 4  ;;  %s1736_s26 = int_to_ptr.vmem [resolvable:$true] %s1735_s26  ;;  %s1738_s27 = int_to_ptr.hbm [resolvable:$true] %s1737_s27 }
  0x13   : > { %s1719_s15 = scalar_lea.sflag (!%p173_p10), [#allocation4], %s206_s9 }
  0x14   : > { %v2059_v0 = vld [vmem:[%s3359_s1] sm:$0xff]  ;;  %s3372_s28 = smov (!%p210_p11, %s1855_s28), 1023  ;;  %vm596_vm0 = vcmask 130048   ;;  %vm235_vm1 = vcmask 64512   ;;  %v2205_v21 = vmov 0.0   ;;  %vm1648_vm3 = vcmask 60416  }
  0x15   : > { %700 = vmatpush.bf16.msra.mxu0 %v2059_v0  ;;  %2060 = vmatpush.bf16.msra.mxu1 %v2059_v0  ;;  %s1856_s29 = sshll.u32 %s3372_s28, 2  ;;  %236 = vst.msk [vmem:[#allocation2] sm:$0xff] %vm235_vm1, %v2205_v21  ;;  %s2139_s28 = sshra.s32 %s1738_s27, 4  ;;  %s2140_s28 = int_to_ptr.hbm [resolvable:$true] %s2139_s28 }
  0x16   : > { %2061 = vmatpush.bf16.msra.mxu2 %v2059_v0  ;;  %2062 = vmatpush.bf16.msra.mxu3 %v2059_v0  ;;  %s2293_s5 = scalar_lea.vmem %s3358_s0, %s1856_s29  ;;  %237 = vst.msk [vmem:[#allocation2 + $0x8] sm:$0xff] %vm235_vm1, %v2205_v21  ;;  %s2471_s8 = scalar_lea.vmem %s3360_s2, %s1856_s29 }
  0x17   : > { %v2027_v1 = vld [vmem:[%s2293_s5] sm:$0xff]  ;;  %v2028_v3 = vld [vmem:[%s2293_s5 + $0x8] sm:$0xff]  ;;  %v2029_v6 = vld [vmem:[%s2293_s5 + $0x10] sm:$0xff]  ;;  %238 = vst.msk [vmem:[#allocation2 + $0x10] sm:$0xff] %vm235_vm1, %v2205_v21  ;;  %s2141_s29 = scalar_lea.hbm %s2140_s28, 2  ;;  %p2146_p1 = scmp.lt.s32.totalorder %s2140_s28, %s3361_s3 }
  0x18   : > { %v2035_v2 = vld [vmem:[%s2293_s5 + $0x40] sm:$0xff]  ;;  %1991 = vmatmul.msk.bf16.vlgmr.msra.gmra.mxu0 %vm596_vm0, %v2027_v1  ;;  %v2036_v4 = vld [vmem:[%s2293_s5 + $0x48] sm:$0xff]  ;;  %v2037_v7 = vld [vmem:[%s2293_s5 + $0x50] sm:$0xff]  ;;  %239 = vst.msk [vmem:[#allocation2 + $0x18] sm:$0xff] %vm235_vm1, %v2205_v21  ;;  %p2142_p12 = scmp.ne.s32.totalorder %s2140_s28, %s2141_s29 }
  0x19   : > { %1999 = vmatmul.msk.bf16.vlgmr.msra.gmra.mxu1 %vm596_vm0, %v2035_v2  ;;  %v2043_v5 = vld [vmem:[%s2293_s5 + $0x80] sm:$0xff]  ;;  %v2044_v8 = vld [vmem:[%s2293_s5 + $0x88] sm:$0xff]  ;;  %v2030_v9 = vld [vmem:[%s2293_s5 + $0x18] sm:$0xff]  ;;  %240 = vst.msk [vmem:[#allocation2 + $0x20] sm:$0xff] %vm235_vm1, %v2205_v21 }
  0x1a   : > { %2007 = vmatmul.msk.bf16.vlgmr.msra.gmra.mxu2 %vm596_vm0, %v2043_v5  ;;  %v2038_v10 = vld [vmem:[%s2293_s5 + $0x58] sm:$0xff]  ;;  %v2045_v11 = vld [vmem:[%s2293_s5 + $0x90] sm:$0xff]  ;;  %v2051_v12 = vld [vmem:[%s2293_s5 + $0xc0] sm:$0xff]  ;;  %241 = vst.msk [vmem:[#allocation2 + $0x28] sm:$0xff] %vm235_vm1, %v2205_v21  ;;  %p2143_p13 = pnand %p2142_p12, %p2266_p4 }
  0x1b   : > { %2015 = vmatmul.msk.bf16.vlgmr.msra.gmra.mxu3 %vm596_vm0, %v2051_v12  ;;  %v2031_v13 = vld [vmem:[%s2293_s5 + $0x20] sm:$0xff]  ;;  %v2046_v15 = vld [vmem:[%s2293_s5 + $0x98] sm:$0xff]  ;;  %v2052_v16 = vld [vmem:[%s2293_s5 + $0xc8] sm:$0xff]  ;;  %242 = vst.msk [vmem:[#allocation2 + $0x30] sm:$0xff] %vm235_vm1, %v2205_v21 }
  0x1c   : > { %v2039_v14 = vld [vmem:[%s2293_s5 + $0x60] sm:$0xff]  ;;  %v2032_v17 = vld [vmem:[%s2293_s5 + $0x28] sm:$0xff]  ;;  %v2053_v20 = vld [vmem:[%s2293_s5 + $0xd0] sm:$0xff]  ;;  %243 = vst.msk [vmem:[#allocation2 + $0x38] sm:$0xff] %vm235_vm1, %v2205_v21  ;;  %p2144_p0 = pneg %p2143_p13 }
  0x1d   : > { %v2040_v18 = vld [vmem:[%s2293_s5 + $0x68] sm:$0xff]  ;;  %v2047_v19 = vld [vmem:[%s2293_s5 + $0xa0] sm:$0xff]  ;;  %244 = vst.msk [vmem:[#allocation2 + $0x40] sm:$0xff] %vm235_vm1, %v2205_v21  ;;  %v2033_v22 = vld [vmem:[%s2293_s5 + $0x30] sm:$0xff] }
  0x1e   : > { %245 = vst.msk [vmem:[#allocation2 + $0x48] sm:$0xff] %vm235_vm1, %v2205_v21  ;;  %v2041_v23 = vld [vmem:[%s2293_s5 + $0x70] sm:$0xff]  ;;  %v2048_v24 = vld [vmem:[%s2293_s5 + $0xa8] sm:$0xff]  ;;  %v2054_v25 = vld [vmem:[%s2293_s5 + $0xd8] sm:$0xff] }
  0x1f   : > { %246 = vst.msk [vmem:[#allocation2 + $0x50] sm:$0xff] %vm235_vm1, %v2205_v21  ;;  %v2034_v26 = vld [vmem:[%s2293_s5 + $0x38] sm:$0xff]  ;;  %v2049_v28 = vld [vmem:[%s2293_s5 + $0xb0] sm:$0xff]  ;;  %v2055_v29 = vld [vmem:[%s2293_s5 + $0xe0] sm:$0xff] }
  0x20   : > { %247 = vst.msk [vmem:[#allocation2 + $0x58] sm:$0xff] %vm235_vm1, %v2205_v21  ;;  %v2042_v27 = vld [vmem:[%s2293_s5 + $0x78] sm:$0xff]  ;;  %v300_v30 = vld [vmem:[#allocation2] sm:$0xff]  ;;  %v2056_v39 = vld [vmem:[%s2293_s5 + $0xe8] sm:$0xff] }
  0x21   : > { %248 = vst.msk [vmem:[#allocation2 + $0x60] sm:$0xff] %vm235_vm1, %v2205_v21  ;;  %v2050_v38 = vld [vmem:[%s2293_s5 + $0xb8] sm:$0xff]  ;;  %v301_v42 = vld [vmem:[#allocation2 + $0x8] sm:$0xff]  ;;  %v302_v43 = vld [vmem:[#allocation2 + $0x10] sm:$0xff] }
  0x22   : > { %249 = vst.msk [vmem:[#allocation2 + $0x68] sm:$0xff] %vm235_vm1, %v2205_v21  ;;  %v303_v52 = vld [vmem:[#allocation2 + $0x18] sm:$0xff]  ;;  %v2057_v61 = vld [vmem:[%s2293_s5 + $0xf0] sm:$0xff] }
  0x23   : > { %250 = vst.msk [vmem:[#allocation2 + $0x70] sm:$0xff] %vm235_vm1, %v2205_v21 }
  0x24   : > { %251 = vst.msk [vmem:[#allocation2 + $0x78] sm:$0xff] %vm235_vm1, %v2205_v21 }
  0x25   : > { %252 = vst.msk [vmem:[#allocation2 + $0x80] sm:$0xff] %vm235_vm1, %v2205_v21 }
  0x26   : > { %253 = vst.msk [vmem:[#allocation2 + $0x88] sm:$0xff] %vm235_vm1, %v2205_v21 }
  0x27   : > { %254 = vst.msk [vmem:[#allocation2 + $0x90] sm:$0xff] %vm235_vm1, %v2205_v21 }
  0x28   : > { %1992 = vmatmul.msk.bf16.gmra.mxu0 %vm596_vm0, %v2028_v3  ;;  %255 = vst.msk [vmem:[#allocation2 + $0x98] sm:$0xff] %vm235_vm1, %v2205_v21 }
  0x29   : > { %2000 = vmatmul.msk.bf16.gmra.mxu1 %vm596_vm0, %v2036_v4  ;;  %256 = vst.msk [vmem:[#allocation2 + $0xa0] sm:$0xff] %vm235_vm1, %v2205_v21 }
  0x2a   : > { %2008 = vmatmul.msk.bf16.gmra.mxu2 %vm596_vm0, %v2044_v8  ;;  %257 = vst.msk [vmem:[#allocation2 + $0xa8] sm:$0xff] %vm235_vm1, %v2205_v21 }
  0x2b   : > { %2016 = vmatmul.msk.bf16.gmra.mxu3 %vm596_vm0, %v2052_v16  ;;  %258 = vst.msk [vmem:[#allocation2 + $0xb0] sm:$0xff] %vm235_vm1, %v2205_v21 }
  0x2c   : > { %259 = vst.msk [vmem:[#allocation2 + $0xb8] sm:$0xff] %vm235_vm1, %v2205_v21  ;;  %v316_v45 = vld [vmem:[#allocation2 + $0x80] sm:$0xff] }
  0x2d   : > { %260 = vst.msk [vmem:[#allocation2 + $0xc0] sm:$0xff] %vm235_vm1, %v2205_v21  ;;  %v317_v48 = vld [vmem:[#allocation2 + $0x88] sm:$0xff] }
  0x2e   : > { %261 = vst.msk [vmem:[#allocation2 + $0xc8] sm:$0xff] %vm235_vm1, %v2205_v21  ;;  %v318_v53 = vld [vmem:[#allocation2 + $0x90] sm:$0xff] }
  0x2f   : > { %262 = vst.msk [vmem:[#allocation2 + $0xd0] sm:$0xff] %vm235_vm1, %v2205_v21  ;;  %v319_v57 = vld [vmem:[#allocation2 + $0x98] sm:$0xff] }
  0x30   : > { %263 = vst.msk [vmem:[#allocation2 + $0xd8] sm:$0xff] %vm235_vm1, %v2205_v21 }
  0x31   : > { %264 = vst.msk [vmem:[#allocation2 + $0xe0] sm:$0xff] %vm235_vm1, %v2205_v21 }
  0x32   : > { %265 = vst.msk [vmem:[#allocation2 + $0xe8] sm:$0xff] %vm235_vm1, %v2205_v21 }
  0x33   : > { %266 = vst.msk [vmem:[#allocation2 + $0xf0] sm:$0xff] %vm235_vm1, %v2205_v21 }
  0x34   : > { %267 = vst.msk [vmem:[#allocation2 + $0xf8] sm:$0xff] %vm235_vm1, %v2205_v21 }
  0x35   : > { %268 = vst.msk [vmem:[#allocation2 + $0x100] sm:$0xff] %vm235_vm1, %v2205_v21 }
  0x36   : > { %269 = vst.msk [vmem:[#allocation2 + $0x108] sm:$0xff] %vm235_vm1, %v2205_v21 }
  0x37   : > { %270 = vst.msk [vmem:[#allocation2 + $0x110] sm:$0xff] %vm235_vm1, %v2205_v21 }
  0x38   : > { %1993 = vmatmul.msk.bf16.gmra.mxu0 %vm596_vm0, %v2029_v6  ;;  %271 = vst.msk [vmem:[#allocation2 + $0x118] sm:$0xff] %vm235_vm1, %v2205_v21 }
  0x39   : > { %2001 = vmatmul.msk.bf16.gmra.mxu1 %vm596_vm0, %v2037_v7  ;;  %272 = vst.msk [vmem:[#allocation2 + $0x120] sm:$0xff] %vm235_vm1, %v2205_v21 }
  0x3a   : > { %2009 = vmatmul.msk.bf16.gmra.mxu2 %vm596_vm0, %v2045_v11  ;;  %273 = vst.msk [vmem:[#allocation2 + $0x128] sm:$0xff] %vm235_vm1, %v2205_v21 }
  0x3b   : > { %2017 = vmatmul.msk.bf16.gmra.mxu3 %vm596_vm0, %v2053_v20  ;;  %274 = vst.msk [vmem:[#allocation2 + $0x130] sm:$0xff] %vm235_vm1, %v2205_v21 }
  0x3c   : > { %275 = vst.msk [vmem:[#allocation2 + $0x138] sm:$0xff] %vm235_vm1, %v2205_v21 }
  0x3d   : > { %276 = vst.msk [vmem:[#allocation2 + $0x140] sm:$0xff] %vm235_vm1, %v2205_v21 }
  0x3e   : > { %277 = vst.msk [vmem:[#allocation2 + $0x148] sm:$0xff] %vm235_vm1, %v2205_v21 }
  0x3f   : > { %278 = vst.msk [vmem:[#allocation2 + $0x150] sm:$0xff] %vm235_vm1, %v2205_v21 }
  0x40   : > { %279 = vst.msk [vmem:[#allocation2 + $0x158] sm:$0xff] %vm235_vm1, %v2205_v21 }
  0x41   : > { %280 = vst.msk [vmem:[#allocation2 + $0x160] sm:$0xff] %vm235_vm1, %v2205_v21 }
  0x42   : > { %281 = vst.msk [vmem:[#allocation2 + $0x168] sm:$0xff] %vm235_vm1, %v2205_v21 }
  0x43   : > { %282 = vst.msk [vmem:[#allocation2 + $0x170] sm:$0xff] %vm235_vm1, %v2205_v21 }
  0x44   : > { %283 = vst.msk [vmem:[#allocation2 + $0x178] sm:$0xff] %vm235_vm1, %v2205_v21 }
  0x45   : > { %284 = vst.msk [vmem:[#allocation2 + $0x180] sm:$0xff] %vm235_vm1, %v2205_v21 }
  0x46   : > { %285 = vst.msk [vmem:[#allocation2 + $0x188] sm:$0xff] %vm235_vm1, %v2205_v21 }
  0x47   : > { %286 = vst.msk [vmem:[#allocation2 + $0x190] sm:$0xff] %vm235_vm1, %v2205_v21 }
  0x48   : > { %1994 = vmatmul.msk.bf16.gmra.mxu0 %vm596_vm0, %v2030_v9  ;;  %287 = vst.msk [vmem:[#allocation2 + $0x198] sm:$0xff] %vm235_vm1, %v2205_v21 }
  0x49   : > { %2002 = vmatmul.msk.bf16.gmra.mxu1 %vm596_vm0, %v2038_v10  ;;  %288 = vst.msk [vmem:[#allocation2 + $0x1a0] sm:$0xff] %vm235_vm1, %v2205_v21 }
  0x4a   : > { %2010 = vmatmul.msk.bf16.gmra.mxu2 %vm596_vm0, %v2046_v15  ;;  %289 = vst.msk [vmem:[#allocation2 + $0x1a8] sm:$0xff] %vm235_vm1, %v2205_v21 }
  0x4b   : > { %2018 = vmatmul.msk.bf16.gmra.mxu3 %vm596_vm0, %v2054_v25  ;;  %290 = vst.msk [vmem:[#allocation2 + $0x1b0] sm:$0xff] %vm235_vm1, %v2205_v21 }
  0x4c   : > { %291 = vst.msk [vmem:[#allocation2 + $0x1b8] sm:$0xff] %vm235_vm1, %v2205_v21 }
  0x4d   : > { %292 = vst.msk [vmem:[#allocation2 + $0x1c0] sm:$0xff] %vm235_vm1, %v2205_v21 }
  0x4e   : > { %293 = vst.msk [vmem:[#allocation2 + $0x1c8] sm:$0xff] %vm235_vm1, %v2205_v21 }
  0x4f   : > { %294 = vst.msk [vmem:[#allocation2 + $0x1d0] sm:$0xff] %vm235_vm1, %v2205_v21 }
  0x50   : > { %295 = vst.msk [vmem:[#allocation2 + $0x1d8] sm:$0xff] %vm235_vm1, %v2205_v21 }
  0x51   : > { %296 = vst.msk [vmem:[#allocation2 + $0x1e0] sm:$0xff] %vm235_vm1, %v2205_v21 }
  0x52   : > { %297 = vst.msk [vmem:[#allocation2 + $0x1e8] sm:$0xff] %vm235_vm1, %v2205_v21 }
  0x53   : > { %298 = vst.msk [vmem:[#allocation2 + $0x1f0] sm:$0xff] %vm235_vm1, %v2205_v21 }
  0x54   : > { %299 = vst.msk [vmem:[#allocation2 + $0x1f8] sm:$0xff] %vm235_vm1, %v2205_v21 }
  0x58   : > { %1995 = vmatmul.msk.bf16.gmra.mxu0 %vm596_vm0, %v2031_v13 }
  0x59   : > { %2003 = vmatmul.msk.bf16.gmra.mxu1 %vm596_vm0, %v2039_v14 }
  0x5a   : > { %2011 = vmatmul.msk.bf16.gmra.mxu2 %vm596_vm0, %v2047_v19 }
  0x5b   : > { %2019 = vmatmul.msk.bf16.gmra.mxu3 %vm596_vm0, %v2055_v29  ;;  %v304_v29 = vld [vmem:[#allocation2 + $0x20] sm:$0xff] }
  0x68   : > { %1996 = vmatmul.msk.bf16.gmra.mxu0 %vm596_vm0, %v2032_v17 }
  0x69   : > { %2004 = vmatmul.msk.bf16.gmra.mxu1 %vm596_vm0, %v2040_v18 }
  0x6a   : > { %2012 = vmatmul.msk.bf16.gmra.mxu2 %vm596_vm0, %v2048_v24 }
  0x6b   : > { %2020 = vmatmul.msk.bf16.gmra.mxu3 %vm596_vm0, %v2056_v39 }
  0x78   : > { %1997 = vmatmul.msk.bf16.gmra.mxu0 %vm596_vm0, %v2033_v22 }
  0x79   : > { %2005 = vmatmul.msk.bf16.gmra.mxu1 %vm596_vm0, %v2041_v23 }
  0x7a   : > { %2013 = vmatmul.msk.bf16.gmra.mxu2 %vm596_vm0, %v2049_v28 }
  0x7b   : > { %2021 = vmatmul.msk.bf16.gmra.mxu3 %vm596_vm0, %v2057_v61 }
  0x88   : > { %1998 = vmatmul.msk.bf16.gmra.mxu0 %vm596_vm0, %v2034_v26 }
  0x89   : > { %2006 = vmatmul.msk.bf16.gmra.mxu1 %vm596_vm0, %v2042_v27 }
  0x8a   : > { %2014 = vmatmul.msk.bf16.gmra.mxu2 %vm596_vm0, %v2050_v38 }
  0x95   : > { %v702_v31 = vpop.f32.mrf.mxu0 }
  0x96   : > { %v862_v32 = vadd.f32 %v702_v31, %v300_v30  ;;  %v742_v33 = vpop.f32.mrf.mxu1 }
  0x97   : > { %v878_v50 = vadd.f32 %v742_v33, %v316_v45 }
  0x98   : > { %927 = vst.msk [vmem:[#allocation2] sm:$0xff] %vm235_vm1, %v862_v32 }
  0x99   : > { %943 = vst.msk [vmem:[#allocation2 + $0x80] sm:$0xff] %vm235_vm1, %v878_v50 }
  0x9d   : > { %v704_v34 = vpop.f32.mrf.mxu0  ;;  %v782_v18 = vpop.f32.mrf.mxu2 }
  0x9e   : > { %v744_v35 = vpop.f32.mrf.mxu1  ;;  %v863_v47 = vadd.f32 %v704_v34, %v301_v42 }
  0x9f   : > { %v994_v36 = vld [vmem:[#allocation2] sm:$0xff]  ;;  %v879_v51 = vadd.f32 %v744_v35, %v317_v48 }
  0xa0   : > { %vm1392_vm2 = vcmp.gt.f32.partialorder %v994_v36, 0.0  ;;  %v1456_v37 = vmul.f32 0.2, %v994_v36  ;;  %928 = vst.msk [vmem:[#allocation2 + $0x8] sm:$0xff] %vm235_vm1, %v863_v47  ;;  %v1191_v60 = vmul.f32 %v994_v36, %v994_v36  ;;  %v1058_v62 = vsel %vm235_vm1, %v994_v36, 0.0  ;;  %v2505_v7 = vld [vmem:[#allocation2 + $0x80] sm:$0xff] }
  0xa1   : > { %944 = vst.msk [vmem:[#allocation2 + $0x88] sm:$0xff] %vm235_vm1, %v879_v51  ;;  %vm1408_vm6 = vcmp.gt.f32.partialorder %v2505_v7, 0.0  ;;  %v1472_v20 = vmul.f32 0.2, %v2505_v7  ;;  %v332_v47 = vld [vmem:[#allocation2 + $0x100] sm:$0xff]  ;;  %v321_v51 = vld [vmem:[#allocation2 + $0xa8] sm:$0xff] }
  0xa2   : > { %v1520_v40 = vsel %vm1392_vm2, %v994_v36, %v1456_v37  ;;  %v1255_v8 = vsel %vm235_vm1, %v1191_v60, 0.0  ;;  %v305_v36 = vld [vmem:[#allocation2 + $0x28] sm:$0xff] }
  0xa3   : > { %v1584_v41 = vpack.c.bf16 %v1520_v40, %v1520_v40  ;;  %v1536_v27 = vsel %vm1408_vm6, %v2505_v7, %v1472_v20 }
  0xa4   : > { %v1600_v30 = vpack.c.bf16 %v1536_v27, %v1536_v27 }
  0xa5   : > { %1649 = vst.msk [vmem:[%s2471_s8] sm:$0xf] %vm1648_vm3, %v1584_v41  ;;  %v707_v44 = vpop.f32.mrf.mxu0 }
  0xa6   : > { %v747_v46 = vpop.f32.mrf.mxu1  ;;  %v864_v49 = vadd.f32 %v707_v44, %v302_v43  ;;  %1665 = vst.msk [vmem:[%s2471_s8 + $0x40] sm:$0xf] %vm1648_vm3, %v1600_v30  ;;  %v320_v43 = vld [vmem:[#allocation2 + $0xa0] sm:$0xff] }
  0xa7   : > { %v880_v54 = vadd.f32 %v747_v46, %v318_v53  ;;  %v995_v63 = vld [vmem:[#allocation2 + $0x8] sm:$0xff] }
  0xa8   : > { %929 = vst.msk [vmem:[#allocation2 + $0x10] sm:$0xff] %vm235_vm1, %v864_v49  ;;  %v1059_v0 = vsel %vm235_vm1, %v995_v63, 0.0  ;;  %v1192_v1 = vmul.f32 %v995_v63, %v995_v63  ;;  %vm1393_vm4 = vcmp.gt.f32.partialorder %v995_v63, 0.0  ;;  %v1457_v2 = vmul.f32 0.2, %v995_v63  ;;  %v2515_v26 = vld [vmem:[#allocation2 + $0x88] sm:$0xff]  ;;  %v784_v49 = vpop.f32.mrf.mxu2 }
  0xa9   : > { %945 = vst.msk [vmem:[#allocation2 + $0x90] sm:$0xff] %vm235_vm1, %v880_v54  ;;  %v1060_v4 = vadd.f32 %v1059_v0, %v1058_v62  ;;  %vm1409_vm8 = vcmp.gt.f32.partialorder %v2515_v26, 0.0  ;;  %v1473_v35 = vmul.f32 0.2, %v2515_v26  ;;  %v333_v54 = vld [vmem:[#allocation2 + $0x108] sm:$0xff]  ;;  %v306_v62 = vld [vmem:[#allocation2 + $0x30] sm:$0xff] }
  0xaa   : > { %v1256_v9 = vsel %vm235_vm1, %v1192_v1, 0.0  ;;  %v1521_v10 = vsel %vm1393_vm4, %v995_v63, %v1457_v2  ;;  %v895_v61 = vadd.f32 %v784_v49, %v333_v54  ;;  %v322_v1 = vld [vmem:[#allocation2 + $0xb0] sm:$0xff] }
  0xab   : > { %v1257_v13 = vadd.f32 %v1256_v9, %v1255_v8  ;;  %v1585_v14 = vpack.c.bf16 %v1521_v10, %v1521_v10  ;;  %v1537_v41 = vsel %vm1409_vm8, %v2515_v26, %v1473_v35  ;;  %v334_v2 = vld [vmem:[#allocation2 + $0x110] sm:$0xff] }
  0xac   : > { %v1601_v44 = vpack.c.bf16 %v1537_v41, %v1537_v41  ;;  %960 = vst.msk [vmem:[#allocation2 + $0x108] sm:$0xff] %vm235_vm1, %v895_v61 }
  0xad   : > { %v709_v55 = vpop.f32.mrf.mxu0  ;;  %1650 = vst.msk [vmem:[%s2471_s8 + $0x4] sm:$0xf] %vm1648_vm3, %v1585_v14 }
  0xae   : > { %v865_v56 = vadd.f32 %v709_v55, %v303_v52  ;;  %v749_v58 = vpop.f32.mrf.mxu1  ;;  %1666 = vst.msk [vmem:[%s2471_s8 + $0x44] sm:$0xf] %vm1648_vm3, %v1601_v44 }
  0xaf   : > { %v881_v59 = vadd.f32 %v749_v58, %v319_v57  ;;  %v996_v3 = vld [vmem:[#allocation2 + $0x10] sm:$0xff]  ;;  %v894_v57 = vadd.f32 %v782_v18, %v332_v47  ;;  %v2058_v58 = vld [vmem:[%s2293_s5 + $0xf8] sm:$0xff]  ;;  %s2145_s5 = scalar_lea.hbm %s3361_s3, 32 }
  0xb0   : > { %930 = vst.msk [vmem:[#allocation2 + $0x18] sm:$0xff] %vm235_vm1, %v865_v56  ;;  %v1061_v5 = vsel %vm235_vm1, %v996_v3, 0.0  ;;  %v1193_v6 = vmul.f32 %v996_v3, %v996_v3  ;;  %vm1394_vm5 = vcmp.gt.f32.partialorder %v996_v3, 0.0  ;;  %v1458_v11 = vmul.f32 0.2, %v996_v3  ;;  %v2521_v33 = vld [vmem:[#allocation2 + $0x90] sm:$0xff]  ;;  %2022 = vmatmul.msk.bf16.gmra.mxu3 %vm596_vm0, %v2058_v58  ;;  %v787_v8 = vpop.f32.mrf.mxu2  ;;  %p2147_p2 = scmp.lt.s32.totalorder %s2145_s5, %s2141_s29 }
  0xb1   : > { %946 = vst.msk [vmem:[#allocation2 + $0x98] sm:$0xff] %vm235_vm1, %v881_v59  ;;  %v1062_v15 = vadd.f32 %v1061_v5, %v1060_v4  ;;  %vm1410_vm9 = vcmp.gt.f32.partialorder %v2521_v33, 0.0  ;;  %v1474_v45 = vmul.f32 0.2, %v2521_v33 }
  0xb2   : > { %v1258_v16 = vsel %vm235_vm1, %v1193_v6, 0.0  ;;  %v1522_v19 = vsel %vm1394_vm5, %v996_v3, %v1458_v11  ;;  %959 = vst.msk [vmem:[#allocation2 + $0x100] sm:$0xff] %vm235_vm1, %v894_v57  ;;  %v822_v57 = vpop.f32.mrf.mxu3  ;;  %p2148_p3 = por %p2147_p2, %p2146_p1 }
  0xb3   : > { %v1259_v22 = vadd.f32 %v1258_v16, %v1257_v13  ;;  %v1586_v23 = vpack.c.bf16 %v1522_v19, %v1522_v19  ;;  %v1538_v52 = vsel %vm1410_vm9, %v2521_v33, %v1474_v45  ;;  %v1027_v45 = vld [vmem:[#allocation2 + $0x108] sm:$0xff] }
  0xb4   : > { %v1602_v55 = vpack.c.bf16 %v1538_v52, %v1538_v52  ;;  %vm1425_vm2 = vcmp.gt.f32.partialorder %v1027_v45, 0.0  ;;  %v1489_v54 = vmul.f32 0.2, %v1027_v45  ;;  %p2149_p5 = pnand %p2148_p3, %p2144_p0 }
  0xb5   : > { %v712_v12 = vpop.f32.mrf.mxu0  ;;  %1651 = vst.msk [vmem:[%s2471_s8 + $0x8] sm:$0xf] %vm1648_vm3, %v1586_v23 }
  0xb6   : > { %v752_v17 = vpop.f32.mrf.mxu1  ;;  %v866_v38 = vadd.f32 %v712_v12, %v304_v29  ;;  %1667 = vst.msk [vmem:[%s2471_s8 + $0x48] sm:$0xf] %vm1648_vm3, %v1602_v55  ;;  %v307_v29 = vld [vmem:[#allocation2 + $0x38] sm:$0xff] }
  0xb7   : > { %v997_v21 = vld [vmem:[#allocation2 + $0x18] sm:$0xff]  ;;  %v882_v53 = vadd.f32 %v752_v17, %v320_v43 }
  0xb8   : > { %v1063_v24 = vsel %vm235_vm1, %v997_v21, 0.0  ;;  %v1194_v25 = vmul.f32 %v997_v21, %v997_v21  ;;  %vm1395_vm7 = vcmp.gt.f32.partialorder %v997_v21, 0.0  ;;  %v1459_v32 = vmul.f32 0.2, %v997_v21  ;;  %v2527_v39 = vld [vmem:[#allocation2 + $0x98] sm:$0xff]  ;;  %931 = vst.msk [vmem:[#allocation2 + $0x20] sm:$0xff] %vm235_vm1, %v866_v38  ;;  %v789_v38 = vpop.f32.mrf.mxu2 }
  0xb9   : > { %v1064_v28 = vadd.f32 %v1063_v24, %v1062_v15  ;;  %vm1411_vm10 = vcmp.gt.f32.partialorder %v2527_v39, 0.0  ;;  %v1475_v50 = vmul.f32 0.2, %v2527_v39  ;;  %947 = vst.msk [vmem:[#allocation2 + $0xa0] sm:$0xff] %vm235_vm1, %v882_v53  ;;  %v896_v15 = vadd.f32 %v787_v8, %v334_v2 }
  0xba   : > { %v1260_v31 = vsel %vm235_vm1, %v1194_v25, 0.0  ;;  %v1523_v37 = vsel %vm1395_vm7, %v997_v21, %v1459_v32 }
  0xbb   : > { %v1261_v34 = vadd.f32 %v1260_v31, %v1259_v22  ;;  %v1587_v40 = vpack.c.bf16 %v1523_v37, %v1523_v37  ;;  %v1539_v56 = vsel %vm1411_vm10, %v2527_v39, %v1475_v50  ;;  %961 = vst.msk [vmem:[#allocation2 + $0x110] sm:$0xff] %vm235_vm1, %v896_v15 }
  0xbc   : > { %v1603_v59 = vpack.c.bf16 %v1539_v56, %v1539_v56  ;;  %v323_v56 = vld [vmem:[#allocation2 + $0xb8] sm:$0xff] }
  0xbd   : > { %v714_v42 = vpop.f32.mrf.mxu0  ;;  %1652 = vst.msk [vmem:[%s2471_s8 + $0xc] sm:$0xf] %vm1648_vm3, %v1587_v40 }
  0xbe   : > { %v867_v46 = vadd.f32 %v714_v42, %v305_v36  ;;  %v754_v48 = vpop.f32.mrf.mxu1  ;;  %1668 = vst.msk [vmem:[%s2471_s8 + $0x4c] sm:$0xf] %vm1648_vm3, %v1603_v59 }
  0xbf   : > { %v883_v60 = vadd.f32 %v754_v48, %v321_v51  ;;  %v998_v63 = vld [vmem:[#allocation2 + $0x20] sm:$0xff] }
  0xc0   : > { %932 = vst.msk [vmem:[#allocation2 + $0x28] sm:$0xff] %vm235_vm1, %v867_v46  ;;  %v1065_v3 = vsel %vm235_vm1, %v998_v63, 0.0  ;;  %v1195_v4 = vmul.f32 %v998_v63, %v998_v63  ;;  %vm1396_vm11 = vcmp.gt.f32.partialorder %v998_v63, 0.0  ;;  %v1460_v5 = vmul.f32 0.2, %v998_v63  ;;  %v2556_v20 = vld [vmem:[#allocation2 + $0xa0] sm:$0xff]  ;;  %v792_v61 = vpop.f32.mrf.mxu2 }
  0xc1   : > { %948 = vst.msk [vmem:[#allocation2 + $0xa8] sm:$0xff] %vm235_vm1, %v883_v60  ;;  %v1066_v9 = vadd.f32 %v1065_v3, %v1064_v28  ;;  %vm1412_vm13 = vcmp.gt.f32.partialorder %v2556_v20, 0.0  ;;  %v1476_v24 = vmul.f32 0.2, %v2556_v20  ;;  %v1026_v28 = vld [vmem:[#allocation2 + $0x100] sm:$0xff] }
  0xc2   : > { %v1262_v12 = vsel %vm235_vm1, %v1195_v4, 0.0  ;;  %v1524_v13 = vsel %vm1396_vm11, %v998_v63, %v1460_v5  ;;  %vm1424_vm14 = vcmp.gt.f32.partialorder %v1026_v28, 0.0  ;;  %v1488_v36 = vmul.f32 0.2, %v1026_v28  ;;  %v308_v51 = vld [vmem:[#allocation2 + $0x40] sm:$0xff]  ;;  %v1028_v53 = vld [vmem:[#allocation2 + $0x110] sm:$0xff] }
  0xc3   : > { %v1263_v16 = vadd.f32 %v1262_v12, %v1261_v34  ;;  %v1588_v17 = vpack.c.bf16 %v1524_v13, %v1524_v13  ;;  %v1540_v31 = vsel %vm1412_vm13, %v2556_v20, %v1476_v24  ;;  %vm1426_vm5 = vcmp.gt.f32.partialorder %v1028_v53, 0.0  ;;  %v335_v4 = vld [vmem:[#allocation2 + $0x118] sm:$0xff]  ;;  %v309_v12 = vld [vmem:[#allocation2 + $0x48] sm:$0xff] }
  0xc4   : > { %v1604_v35 = vpack.c.bf16 %v1540_v31, %v1540_v31  ;;  %v1552_v42 = vsel %vm1424_vm14, %v1026_v28, %v1488_v36  ;;  %v1490_v63 = vmul.f32 0.2, %v1028_v53  ;;  %v897_v13 = vadd.f32 %v789_v38, %v335_v4  ;;  %v824_v31 = vpop.f32.mrf.mxu3  ;;  %v349_v36 = vld [vmem:[#allocation2 + $0x188] sm:$0xff] }
  0xc5   : > { %v717_v0 = vpop.f32.mrf.mxu0  ;;  %1653 = vst.msk [vmem:[%s2471_s8 + $0x10] sm:$0xf] %vm1648_vm3, %v1588_v17  ;;  %v1616_v46 = vpack.c.bf16 %v1552_v42, %v1552_v42 }
  0xc6   : > { %v757_v6 = vpop.f32.mrf.mxu1  ;;  %v868_v10 = vadd.f32 %v717_v0, %v306_v62  ;;  %1669 = vst.msk [vmem:[%s2471_s8 + $0x50] sm:$0xf] %vm1648_vm3, %v1604_v35  ;;  %v1553_v62 = vsel %vm1425_vm2, %v1027_v45, %v1489_v54  ;;  %v1554_v8 = vsel %vm1426_vm5, %v1028_v53, %v1490_v63 }
  0xc7   : > { %v884_v11 = vadd.f32 %v757_v6, %v322_v1  ;;  %v999_v14 = vld [vmem:[#allocation2 + $0x28] sm:$0xff]  ;;  %1681 = vst.msk [vmem:[%s2471_s8 + $0x80] sm:$0xf] %vm1648_vm3, %v1616_v46  ;;  %v1617_v1 = vpack.c.bf16 %v1553_v62, %v1553_v62 }
  0xc8   : > { %v1067_v18 = vsel %vm235_vm1, %v999_v14, 0.0  ;;  %v1196_v19 = vmul.f32 %v999_v14, %v999_v14  ;;  %933 = vst.msk [vmem:[#allocation2 + $0x30] sm:$0xff] %vm235_vm1, %v868_v10  ;;  %vm1397_vm12 = vcmp.gt.f32.partialorder %v999_v14, 0.0  ;;  %v1461_v22 = vmul.f32 0.2, %v999_v14  ;;  %v2570_v34 = vld [vmem:[#allocation2 + $0xa8] sm:$0xff] }
  0xc9   : > { %v2558_v21 = vadd.f32 %v1067_v18, %v1066_v9  ;;  %949 = vst.msk [vmem:[#allocation2 + $0xb0] sm:$0xff] %vm235_vm1, %v884_v11  ;;  %vm1413_vm15 = vcmp.gt.f32.partialorder %v2570_v34, 0.0  ;;  %v1477_v43 = vmul.f32 0.2, %v2570_v34  ;;  %v324_v9 = vld [vmem:[#allocation2 + $0xc0] sm:$0xff]  ;;  %v1618_v11 = vpack.c.bf16 %v1554_v8, %v1554_v8 }
  0xca   : > { %v1264_v23 = vsel %vm235_vm1, %v1196_v19, 0.0  ;;  %v1525_v27 = vsel %vm1397_vm12, %v999_v14, %v1461_v22  ;;  %1682 = vst.msk [vmem:[%s2471_s8 + $0x84] sm:$0xf] %vm1648_vm3, %v1617_v1  ;;  %v336_v14 = vld [vmem:[#allocation2 + $0x120] sm:$0xff] }
  0xcb   : > { %v2566_v25 = vadd.f32 %v1264_v23, %v1263_v16  ;;  %v1589_v30 = vpack.c.bf16 %v1525_v27, %v1525_v27  ;;  %v1541_v47 = vsel %vm1413_vm15, %v2570_v34, %v1477_v43  ;;  %v348_v16 = vld [vmem:[#allocation2 + $0x180] sm:$0xff]  ;;  %1683 = vst.msk [vmem:[%s2471_s8 + $0x88] sm:$0xf] %vm1648_vm3, %v1618_v11  ;;  %v898_v22 = vadd.f32 %v792_v61, %v336_v14  ;;  %v325_v23 = vld [vmem:[#allocation2 + $0xc8] sm:$0xff]  ;;  %v794_v27 = vpop.f32.mrf.mxu2  ;;  %v310_v43 = vld [vmem:[#allocation2 + $0x50] sm:$0xff] }
  0xcc   : > { %v1605_v50 = vpack.c.bf16 %v1541_v47, %v1541_v47  ;;  %962 = vst.msk [vmem:[#allocation2 + $0x118] sm:$0xff] %vm235_vm1, %v897_v13 }
  0xcd   : > { %v719_v32 = vpop.f32.mrf.mxu0  ;;  %1654 = vst.msk [vmem:[%s2471_s8 + $0x14] sm:$0xf] %vm1648_vm3, %v1589_v30  ;;  %v337_v30 = vld [vmem:[#allocation2 + $0x128] sm:$0xff] }
  0xce   : > { %v759_v37 = vpop.f32.mrf.mxu1  ;;  %v869_v40 = vadd.f32 %v719_v32, %v307_v29  ;;  %1670 = vst.msk [vmem:[%s2471_s8 + $0x54] sm:$0xf] %vm1648_vm3, %v1605_v50  ;;  %v910_v29 = vadd.f32 %v822_v57, %v348_v16 }
  0xcf   : > { %v2575_v41 = vld [vmem:[#allocation2 + $0x30] sm:$0xff]  ;;  %v885_v3 = vadd.f32 %v759_v37, %v323_v56  ;;  %963 = vst.msk [vmem:[#allocation2 + $0x120] sm:$0xff] %vm235_vm1, %v898_v22 }
  0xd0   : > { %vm1398_vm0 = vcmp.gt.f32.partialorder %v2575_v41, 0.0  ;;  %v1462_v44 = vmul.f32 0.2, %v2575_v41  ;;  %934 = vst.msk [vmem:[#allocation2 + $0x38] sm:$0xff] %vm235_vm1, %v869_v40  ;;  %v2584_v48 = vld [vmem:[#allocation2 + $0xb0] sm:$0xff]  ;;  %v899_v40 = vadd.f32 %v794_v27, %v337_v30 }
  0xd1   : > { %vm1414_vm4 = vcmp.gt.f32.partialorder %v2584_v48, 0.0  ;;  %v1478_v59 = vmul.f32 0.2, %v2584_v48  ;;  %950 = vst.msk [vmem:[#allocation2 + $0xb8] sm:$0xff] %vm235_vm1, %v885_v3  ;;  %v311_v3 = vld [vmem:[#allocation2 + $0x58] sm:$0xff] }
  0xd2   : > { %v1526_v49 = vsel %vm1398_vm0, %v2575_v41, %v1462_v44  ;;  %975 = vst.msk [vmem:[#allocation2 + $0x180] sm:$0xff] %vm235_vm1, %v910_v29  ;;  %v911_v44 = vadd.f32 %v824_v31, %v349_v36  ;;  %v312_v31 = vld [vmem:[#allocation2 + $0x60] sm:$0xff] }
  0xd3   : > { %v1590_v52 = vpack.c.bf16 %v1526_v49, %v1526_v49  ;;  %v1542_v2 = vsel %vm1414_vm4, %v2584_v48, %v1478_v59  ;;  %v2629_v49 = vld [vmem:[#allocation2 + $0x118] sm:$0xff]  ;;  %964 = vst.msk [vmem:[#allocation2 + $0x128] sm:$0xff] %vm235_vm1, %v899_v40 }
  0xd4   : > { %v1606_v6 = vpack.c.bf16 %v1542_v2, %v1542_v2  ;;  %976 = vst.msk [vmem:[#allocation2 + $0x188] sm:$0xff] %vm235_vm1, %v911_v44  ;;  %vm1427_vm10 = vcmp.gt.f32.partialorder %v2629_v49, 0.0 }
  0xd5   : > { %v722_v55 = vpop.f32.mrf.mxu0  ;;  %1655 = vst.msk [vmem:[%s2471_s8 + $0x18] sm:$0xf] %vm1648_vm3, %v1590_v52  ;;  %v2634_v52 = vpop.f32.mrf.mxu2 }
  0xd6   : > { %v870_v58 = vadd.f32 %v722_v55, %v308_v51  ;;  %v762_v60 = vpop.f32.mrf.mxu1  ;;  %1671 = vst.msk [vmem:[%s2471_s8 + $0x58] sm:$0xf] %vm1648_vm3, %v1606_v6  ;;  %v2639_v55 = vpop.f32.mrf.mxu3 }
  0xd7   : > { %v2595_v0 = vld [vmem:[#allocation2 + $0x38] sm:$0xff]  ;;  %v886_v18 = vadd.f32 %v762_v60, %v324_v9  ;;  %v2652_v60 = vld [vmem:[#allocation2 + $0x120] sm:$0xff] }
  0xd8   : > { %935 = vst.msk [vmem:[#allocation2 + $0x40] sm:$0xff] %vm235_vm1, %v870_v58  ;;  %vm1399_vm6 = vcmp.gt.f32.partialorder %v2595_v0, 0.0  ;;  %v1463_v5 = vmul.f32 0.2, %v2595_v0  ;;  %v2619_v38 = vld [vmem:[#allocation2 + $0xb8] sm:$0xff]  ;;  %vm1428_vm12 = vcmp.gt.f32.partialorder %v2652_v60, 0.0 }
  0xd9   : > { %951 = vst.msk [vmem:[#allocation2 + $0xc0] sm:$0xff] %vm235_vm1, %v886_v18  ;;  %vm1415_vm8 = vcmp.gt.f32.partialorder %v2619_v38, 0.0  ;;  %v1479_v45 = vmul.f32 0.2, %v2619_v38  ;;  %v1491_v58 = vmul.f32 0.2, %v2629_v49 }
  0xda   : > { %v1527_v10 = vsel %vm1399_vm6, %v2595_v0, %v1463_v5  ;;  %v1042_v1 = vld [vmem:[#allocation2 + $0x180] sm:$0xff]  ;;  %v1492_v5 = vmul.f32 0.2, %v2652_v60  ;;  %v2677_v22 = vld [vmem:[#allocation2 + $0x128] sm:$0xff] }
  0xdb   : > { %v1591_v15 = vpack.c.bf16 %v1527_v10, %v1527_v10  ;;  %v1543_v47 = vsel %vm1415_vm8, %v2619_v38, %v1479_v45  ;;  %v1555_v62 = vsel %vm1427_vm10, %v2629_v49, %v1491_v58  ;;  %vm1440_vm13 = vcmp.gt.f32.partialorder %v1042_v1, 0.0  ;;  %v1043_v30 = vld [vmem:[#allocation2 + $0x188] sm:$0xff] }
  0xdc   : > { %v1607_v54 = vpack.c.bf16 %v1543_v47, %v1543_v47  ;;  %v1619_v2 = vpack.c.bf16 %v1555_v62, %v1555_v62  ;;  %v1556_v11 = vsel %vm1428_vm12, %v2652_v60, %v1492_v5  ;;  %vm1429_vm0 = vcmp.gt.f32.partialorder %v2677_v22, 0.0  ;;  %v339_v5 = vld [vmem:[#allocation2 + $0x138] sm:$0xff] }
  0xdd   : > { %v724_v17 = vpop.f32.mrf.mxu0  ;;  %1656 = vst.msk [vmem:[%s2471_s8 + $0x1c] sm:$0xf] %vm1648_vm3, %v1591_v15  ;;  %v2663_v9 = vpop.f32.mrf.mxu2  ;;  %v1620_v18 = vpack.c.bf16 %v1556_v11, %v1556_v11  ;;  %v1493_v36 = vmul.f32 0.2, %v2677_v22  ;;  %vm1441_vm2 = vcmp.gt.f32.partialorder %v1043_v30, 0.0 }
  0xde   : > { %v871_v19 = vadd.f32 %v724_v17, %v309_v12  ;;  %v764_v24 = vpop.f32.mrf.mxu1  ;;  %1672 = vst.msk [vmem:[%s2471_s8 + $0x5c] sm:$0xf] %vm1648_vm3, %v1607_v54  ;;  %v1504_v12 = vmul.f32 0.2, %v1042_v1  ;;  %v2668_v15 = vpop.f32.mrf.mxu3 }
  0xdf   : > { %v2611_v28 = vld [vmem:[#allocation2 + $0x40] sm:$0xff]  ;;  %v887_v35 = vadd.f32 %v764_v24, %v325_v23  ;;  %1684 = vst.msk [vmem:[%s2471_s8 + $0x8c] sm:$0xf] %vm1648_vm3, %v1619_v2  ;;  %v1557_v45 = vsel %vm1429_vm0, %v2677_v22, %v1493_v36  ;;  %v2741_v36 = vmul.f32 %v2515_v26, %v2515_v26 }
  0xe0   : > { %vm1400_vm7 = vcmp.gt.f32.partialorder %v2611_v28, 0.0  ;;  %v1464_v32 = vmul.f32 0.2, %v2611_v28  ;;  %936 = vst.msk [vmem:[#allocation2 + $0x48] sm:$0xff] %vm235_vm1, %v871_v19  ;;  %v2645_v57 = vld [vmem:[#allocation2 + $0xc0] sm:$0xff]  ;;  %v1568_v19 = vsel %vm1440_vm13, %v1042_v1, %v1504_v12  ;;  %v327_v1 = vld [vmem:[#allocation2 + $0xd8] sm:$0xff] }
  0xe1   : > { %952 = vst.msk [vmem:[#allocation2 + $0xc8] sm:$0xff] %vm235_vm1, %v887_v35  ;;  %vm1416_vm11 = vcmp.gt.f32.partialorder %v2645_v57, 0.0  ;;  %v1480_v63 = vmul.f32 0.2, %v2645_v57  ;;  %v1632_v24 = vpack.c.bf16 %v1568_v19, %v1568_v19  ;;  %v328_v12 = vld [vmem:[#allocation2 + $0xe0] sm:$0xff] }
  0xe2   : > { %v1528_v37 = vsel %vm1400_vm7, %v2611_v28, %v1464_v32  ;;  %1685 = vst.msk [vmem:[%s2471_s8 + $0x90] sm:$0xf] %vm1648_vm3, %v1620_v18  ;;  %v326_v32 = vld [vmem:[#allocation2 + $0xd0] sm:$0xff]  ;;  %v901_v18 = vadd.f32 %v2663_v9, %v339_v5 }
  0xe3   : > { %v1592_v42 = vpack.c.bf16 %v1528_v37, %v1528_v37  ;;  %v1544_v4 = vsel %vm1416_vm11, %v2645_v57, %v1480_v63  ;;  %1697 = vst.msk [vmem:[%s2471_s8 + $0xc0] sm:$0xf] %vm1648_vm3, %v1632_v24 }
  0xe4   : > { %v1608_v8 = vpack.c.bf16 %v1544_v4, %v1544_v4  ;;  %v313_v4 = vld [vmem:[#allocation2 + $0x68] sm:$0xff]  ;;  %966 = vst.msk [vmem:[#allocation2 + $0x138] sm:$0xff] %vm235_vm1, %v901_v18 }
  0xe5   : > { %1657 = vst.msk [vmem:[%s2471_s8 + $0x20] sm:$0xf] %vm1648_vm3, %v1592_v42  ;;  %v727_v46 = vpop.f32.mrf.mxu0  ;;  %v1505_v42 = vmul.f32 0.2, %v1043_v30  ;;  %v802_v44 = vpop.f32.mrf.mxu2 }
  0xe6   : > { %v872_v50 = vadd.f32 %v727_v46, %v310_v43  ;;  %v2632_v51 = vpop.f32.mrf.mxu1  ;;  %1673 = vst.msk [vmem:[%s2471_s8 + $0x60] sm:$0xf] %vm1648_vm3, %v1608_v8  ;;  %v338_v43 = vld [vmem:[#allocation2 + $0x130] sm:$0xff]  ;;  %v351_v8 = vld [vmem:[#allocation2 + $0x198] sm:$0xff] }
  0xe7   : > { %v2636_v53 = vld [vmem:[#allocation2 + $0x48] sm:$0xff]  ;;  %v888_v47 = vadd.f32 %v2632_v51, %v326_v32  ;;  %v1569_v58 = vsel %vm1441_vm2, %v1043_v30, %v1505_v42  ;;  %v900_v62 = vadd.f32 %v2634_v52, %v338_v43  ;;  %v913_v24 = vadd.f32 %v2668_v15, %v351_v8  ;;  %v352_v30 = vld [vmem:[#allocation2 + $0x1a0] sm:$0xff] }
  0xe8   : > { %vm1401_vm9 = vcmp.gt.f32.partialorder %v2636_v53, 0.0  ;;  %v1465_v56 = vmul.f32 0.2, %v2636_v53  ;;  %937 = vst.msk [vmem:[#allocation2 + $0x50] sm:$0xff] %vm235_vm1, %v872_v50  ;;  %v2674_v17 = vld [vmem:[#allocation2 + $0xc8] sm:$0xff]  ;;  %v832_v50 = vpop.f32.mrf.mxu3  ;;  %v1633_v51 = vpack.c.bf16 %v1569_v58, %v1569_v58  ;;  %v2750_v42 = vsel %vm235_vm1, %v2521_v33, 0.0 }
  0xe9   : > { %vm1417_vm15 = vcmp.gt.f32.partialorder %v2674_v17, 0.0  ;;  %v1481_v29 = vmul.f32 0.2, %v2674_v17  ;;  %953 = vst.msk [vmem:[#allocation2 + $0xd0] sm:$0xff] %vm235_vm1, %v888_v47 }
  0xea   : > { %v1529_v59 = vsel %vm1401_vm9, %v2636_v53, %v1465_v56  ;;  %v1621_v56 = vpack.c.bf16 %v1557_v45, %v1557_v45  ;;  %1698 = vst.msk [vmem:[%s2471_s8 + $0xc4] sm:$0xf] %vm1648_vm3, %v1633_v51  ;;  %v314_v45 = vld [vmem:[#allocation2 + $0x70] sm:$0xff] }
  0xeb   : > { %v1593_v61 = vpack.c.bf16 %v1529_v59, %v1529_v59  ;;  %v1545_v35 = vsel %vm1417_vm15, %v2674_v17, %v1481_v29  ;;  %v350_v59 = vld [vmem:[#allocation2 + $0x190] sm:$0xff]  ;;  %965 = vst.msk [vmem:[#allocation2 + $0x130] sm:$0xff] %vm235_vm1, %v900_v62 }
  0xec   : > { %v1609_v40 = vpack.c.bf16 %v1545_v35, %v1545_v35  ;;  %1686 = vst.msk [vmem:[%s2471_s8 + $0x94] sm:$0xf] %vm1648_vm3, %v1621_v56 }
  0xed   : > { %1658 = vst.msk [vmem:[%s2471_s8 + $0x24] sm:$0xf] %vm1648_vm3, %v1593_v61  ;;  %v729_v6 = vpop.f32.mrf.mxu0  ;;  %v804_v19 = vpop.f32.mrf.mxu2 }
  0xee   : > { %v873_v13 = vadd.f32 %v729_v6, %v311_v3  ;;  %v769_v14 = vpop.f32.mrf.mxu1  ;;  %1674 = vst.msk [vmem:[%s2471_s8 + $0x64] sm:$0xf] %vm1648_vm3, %v1609_v40  ;;  %v912_v3 = vadd.f32 %v2639_v55, %v350_v59  ;;  %v340_v55 = vld [vmem:[#allocation2 + $0x140] sm:$0xff] }
  0xef   : > { %v2665_v10 = vld [vmem:[#allocation2 + $0x50] sm:$0xff]  ;;  %v889_v11 = vadd.f32 %v769_v14, %v327_v1  ;;  %v2722_v14 = vsel %vm235_vm1, %v2505_v7, 0.0  ;;  %v902_v15 = vadd.f32 %v802_v44, %v340_v55  ;;  %978 = vst.msk [vmem:[#allocation2 + $0x198] sm:$0xff] %vm235_vm1, %v913_v24  ;;  %v353_v55 = vld [vmem:[#allocation2 + $0x1a8] sm:$0xff] }
  0xf0   : > { %vm1402_vm14 = vcmp.gt.f32.partialorder %v2665_v10, 0.0  ;;  %v1466_v16 = vmul.f32 0.2, %v2665_v10  ;;  %938 = vst.msk [vmem:[#allocation2 + $0x58] sm:$0xff] %vm235_vm1, %v873_v13  ;;  %v1207_v13 = vmul.f32 %v2505_v7, %v2505_v7  ;;  %v2737_v7 = vsel %vm235_vm1, %v2515_v26, 0.0  ;;  %v2745_v40 = vld [vmem:[#allocation2 + $0xd0] sm:$0xff] }
  0xf1   : > { %977 = vst.msk [vmem:[#allocation2 + $0x190] sm:$0xff] %vm235_vm1, %v912_v3  ;;  %v914_v26 = vadd.f32 %v832_v50, %v352_v30  ;;  %vm1418_vm6 = vcmp.gt.f32.partialorder %v2745_v40, 0.0  ;;  %v1482_v58 = vmul.f32 0.2, %v2745_v40  ;;  %v1199_v50 = vmul.f32 %v2611_v28, %v2611_v28 }
  0xf2   : > { %v1530_v23 = vsel %vm1402_vm14, %v2665_v10, %v1466_v16  ;;  %954 = vst.msk [vmem:[#allocation2 + $0xd8] sm:$0xff] %vm235_vm1, %v889_v11  ;;  %v2733_v35 = vsel %vm235_vm1, %v1207_v13, 0.0  ;;  %v2759_v59 = vld [vmem:[#allocation2 + $0x130] sm:$0xff]  ;;  %v1073_v30 = vsel %vm235_vm1, %v2611_v28, 0.0 }
  0xf3   : > { %v1594_v27 = vpack.c.bf16 %v1530_v23, %v1530_v23  ;;  %v1197_v23 = vmul.f32 %v2575_v41, %v2575_v41  ;;  %vm1430_vm7 = vcmp.gt.f32.partialorder %v2759_v59, 0.0  ;;  %967 = vst.msk [vmem:[#allocation2 + $0x140] sm:$0xff] %vm235_vm1, %v902_v15  ;;  %v1546_v51 = vsel %vm1418_vm6, %v2745_v40, %v1482_v58  ;;  %v2804_v15 = vld [vmem:[#allocation2 + $0x138] sm:$0xff] }
  0xf4   : > { %v1494_v1 = vmul.f32 0.2, %v2759_v59  ;;  %v1610_v8 = vpack.c.bf16 %v1546_v51, %v1546_v51  ;;  %979 = vst.msk [vmem:[#allocation2 + $0x1a0] sm:$0xff] %vm235_vm1, %v914_v26  ;;  %vm1431_vm11 = vcmp.gt.f32.partialorder %v2804_v15, 0.0 }
  0xf5   : > { %1659 = vst.msk [vmem:[%s2471_s8 + $0x28] sm:$0xf] %vm1648_vm3, %v1594_v27  ;;  %v732_v37 = vpop.f32.mrf.mxu0  ;;  %v2718_v27 = vpop.f32.mrf.mxu3  ;;  %v1266_v43 = vsel %vm235_vm1, %v1197_v23, 0.0 }
  0xf6   : > { %v874_v46 = vadd.f32 %v732_v37, %v312_v31  ;;  %v772_v63 = vpop.f32.mrf.mxu1  ;;  %v1198_v31 = vmul.f32 %v2595_v0, %v2595_v0  ;;  %v1069_v37 = vsel %vm235_vm1, %v2575_v41, 0.0  ;;  %v1071_v41 = vsel %vm235_vm1, %v2595_v0, 0.0  ;;  %v341_v0 = vld [vmem:[#allocation2 + $0x148] sm:$0xff]  ;;  %1675 = vst.msk [vmem:[%s2471_s8 + $0x68] sm:$0xf] %vm1648_vm3, %v1610_v8 }
  0xf7   : > { %v2693_v54 = vld [vmem:[#allocation2 + $0x58] sm:$0xff]  ;;  %v890_v9 = vadd.f32 %v772_v63, %v328_v12  ;;  %v1267_v5 = vadd.f32 %v1266_v43, %v2566_v25  ;;  %v1200_v12 = vmul.f32 %v2636_v53, %v2636_v53  ;;  %v1558_v13 = vsel %vm1430_vm7, %v2759_v59, %v1494_v1 }
  0xf8   : > { %vm1403_vm4 = vcmp.gt.f32.partialorder %v2693_v54, 0.0  ;;  %v1467_v61 = vmul.f32 0.2, %v2693_v54  ;;  %939 = vst.msk [vmem:[#allocation2 + $0x60] sm:$0xff] %vm235_vm1, %v874_v46  ;;  %v329_v46 = vld [vmem:[#allocation2 + $0xe8] sm:$0xff]  ;;  %v1268_v62 = vsel %vm235_vm1, %v1198_v31, 0.0  ;;  %v903_v18 = vadd.f32 %v804_v19, %v341_v0 }
  0xf9   : > { %955 = vst.msk [vmem:[#allocation2 + $0xe0] sm:$0xff] %vm235_vm1, %v890_v9  ;;  %v2789_v25 = vld [vmem:[#allocation2 + $0xd8] sm:$0xff]  ;;  %v1269_v23 = vadd.f32 %v1268_v62, %v1267_v5  ;;  %v1622_v24 = vpack.c.bf16 %v1558_v13, %v1558_v13  ;;  %v1270_v31 = vsel %vm235_vm1, %v1199_v50, 0.0  ;;  %v1272_v26 = vsel %vm235_vm1, %v1200_v12, 0.0 }
  0xfa   : > { %v1531_v2 = vsel %vm1403_vm4, %v2693_v54, %v1467_v61  ;;  %v1070_v61 = vadd.f32 %v1069_v37, %v2558_v21  ;;  %v2806_v37 = vld [vmem:[#allocation2 + $0x198] sm:$0xff]  ;;  %vm1419_vm10 = vcmp.gt.f32.partialorder %v2789_v25, 0.0  ;;  %968 = vst.msk [vmem:[#allocation2 + $0x148] sm:$0xff] %vm235_vm1, %v903_v18  ;;  %v1202_v0 = vmul.f32 %v2693_v54, %v2693_v54  ;;  %v2846_v12 = vld [vmem:[#allocation2 + $0x140] sm:$0xff] }
  0xfb   : > { %v1595_v6 = vpack.c.bf16 %v1531_v2, %v1531_v2  ;;  %v2772_v2 = vld [vmem:[#allocation2 + $0x190] sm:$0xff]  ;;  %1687 = vst.msk [vmem:[%s2471_s8 + $0x98] sm:$0xf] %vm1648_vm3, %v1622_v24  ;;  %vm1443_vm12 = vcmp.gt.f32.partialorder %v2806_v37, 0.0  ;;  %vm1432_vm15 = vcmp.gt.f32.partialorder %v2846_v12, 0.0 }
  0xfc   : > { %vm1442_vm8 = vcmp.gt.f32.partialorder %v2772_v2, 0.0 }
  0xfd   : > { %v734_v52 = vpop.f32.mrf.mxu0  ;;  %1660 = vst.msk [vmem:[%s2471_s8 + $0x2c] sm:$0xf] %vm1648_vm3, %v1595_v6  ;;  %v1072_v6 = vadd.f32 %v1071_v41, %v1070_v61  ;;  %v2781_v11 = vpop.f32.mrf.mxu3  ;;  %v1507_v61 = vmul.f32 0.2, %v2806_v37 }
  0xfe   : > { %v875_v16 = vadd.f32 %v734_v52, %v313_v4  ;;  %v774_v47 = vpop.f32.mrf.mxu1  ;;  %v2774_v4 = vpop.f32.mrf.mxu2 }
  0xff   : > { %v2724_v29 = vld [vmem:[#allocation2 + $0x60] sm:$0xff]  ;;  %v891_v3 = vadd.f32 %v774_v47, %v329_v46  ;;  %v1483_v47 = vmul.f32 0.2, %v2789_v25  ;;  %v1074_v41 = vadd.f32 %v1073_v30, %v1072_v6  ;;  %v1571_v8 = vsel %vm1443_vm12, %v2806_v37, %v1507_v61 }
 0x100   : > { %940 = vst.msk [vmem:[#allocation2 + $0x68] sm:$0xff] %vm235_vm1, %v875_v16  ;;  %vm1404_vm5 = vcmp.gt.f32.partialorder %v2724_v29, 0.0  ;;  %v1468_v32 = vmul.f32 0.2, %v2724_v29  ;;  %v1506_v16 = vmul.f32 0.2, %v2772_v2 }
 0x101   : > { %956 = vst.msk [vmem:[#allocation2 + $0xe8] sm:$0xff] %vm235_vm1, %v891_v3  ;;  %v1547_v58 = vsel %vm1419_vm10, %v2789_v25, %v1483_v47  ;;  %v2830_v62 = vld [vmem:[#allocation2 + $0xe0] sm:$0xff] }
 0x102   : > { %v1532_v44 = vsel %vm1404_vm5, %v2724_v29, %v1468_v32  ;;  %v1201_v32 = vmul.f32 %v2665_v10, %v2665_v10  ;;  %v1570_v19 = vsel %vm1442_vm8, %v2772_v2, %v1506_v16  ;;  %v1611_v51 = vpack.c.bf16 %v1547_v58, %v1547_v58  ;;  %v2860_v30 = vld [vmem:[#allocation2 + $0x1a0] sm:$0xff] }
 0x103   : > { %v1596_v56 = vpack.c.bf16 %v1532_v44, %v1532_v44  ;;  %v1634_v43 = vpack.c.bf16 %v1570_v19, %v1570_v19  ;;  %v915_v44 = vadd.f32 %v2718_v27, %v353_v55  ;;  %v1271_v27 = vadd.f32 %v1270_v31, %v1269_v23  ;;  %v315_v31 = vld [vmem:[#allocation2 + $0x78] sm:$0xff] }
 0x104   : > { %1676 = vst.msk [vmem:[%s2471_s8 + $0x6c] sm:$0xf] %vm1648_vm3, %v1611_v51  ;;  %v1635_v16 = vpack.c.bf16 %v1571_v8, %v1571_v8  ;;  %vm1420_vm14 = vcmp.gt.f32.partialorder %v2830_v62, 0.0  ;;  %v2855_v55 = vmul.f32 %v2521_v33, %v2521_v33  ;;  %v1079_v19 = vsel %vm235_vm1, %v2693_v54, 0.0 }
 0x105   : > { %v737_v63 = vpop.f32.mrf.mxu0  ;;  %1661 = vst.msk [vmem:[%s2471_s8 + $0x30] sm:$0xf] %vm1648_vm3, %v1596_v56  ;;  %v1495_v56 = vmul.f32 0.2, %v2804_v15  ;;  %v1273_v5 = vadd.f32 %v1272_v26, %v1271_v27  ;;  %v1496_v54 = vmul.f32 0.2, %v2846_v12 }
 0x106   : > { %v876_v21 = vadd.f32 %v737_v63, %v314_v45  ;;  %v1075_v45 = vsel %vm235_vm1, %v2636_v53, 0.0  ;;  %1699 = vst.msk [vmem:[%s2471_s8 + $0xc8] sm:$0xf] %vm1648_vm3, %v1634_v43  ;;  %v1077_v53 = vsel %vm235_vm1, %v2665_v10, 0.0  ;;  %v2832_v50 = vpop.f32.mrf.mxu2  ;;  %v1274_v63 = vsel %vm235_vm1, %v1201_v32, 0.0  ;;  %v777_v13 = vpop.f32.mrf.mxu1 }
 0x107   : > { %v2778_v52 = vld [vmem:[#allocation2 + $0x68] sm:$0xff]  ;;  %v1559_v1 = vsel %vm1431_vm11, %v2804_v15, %v1495_v56  ;;  %980 = vst.msk [vmem:[#allocation2 + $0x1a8] sm:$0xff] %vm235_vm1, %v915_v44  ;;  %v1076_v3 = vadd.f32 %v1075_v45, %v1074_v41  ;;  %v1275_v24 = vadd.f32 %v1274_v63, %v1273_v5  ;;  %v1276_v43 = vsel %vm235_vm1, %v1202_v0, 0.0  ;;  %v330_v63 = vld [vmem:[#allocation2 + $0xf0] sm:$0xff] }
 0x108   : > { %941 = vst.msk [vmem:[#allocation2 + $0x70] sm:$0xff] %vm235_vm1, %v876_v21  ;;  %vm1405_vm9 = vcmp.gt.f32.partialorder %v2778_v52, 0.0  ;;  %v1469_v9 = vmul.f32 0.2, %v2778_v52  ;;  %v2841_v21 = vpop.f32.mrf.mxu3  ;;  %v1623_v6 = vpack.c.bf16 %v1559_v1, %v1559_v1  ;;  %v1203_v44 = vmul.f32 %v2724_v29, %v2724_v29  ;;  %v2879_v56 = vld [vmem:[#allocation2 + $0x148] sm:$0xff]  ;;  %v342_v5 = vld [vmem:[#allocation2 + $0x150] sm:$0xff] }
 0x109   : > { %v1078_v23 = vadd.f32 %v1077_v53, %v1076_v3  ;;  %1700 = vst.msk [vmem:[%s2471_s8 + $0xcc] sm:$0xf] %vm1648_vm3, %v1635_v16  ;;  %vm1444_vm0 = vcmp.gt.f32.partialorder %v2860_v30, 0.0  ;;  %v1508_v47 = vmul.f32 0.2, %v2860_v30  ;;  %v1081_v53 = vsel %vm235_vm1, %v2724_v29, 0.0 }
 0x10a   : > { %v1533_v28 = vsel %vm1405_vm9, %v2778_v52, %v1469_v9  ;;  %1688 = vst.msk [vmem:[%s2471_s8 + $0x9c] sm:$0xf] %vm1648_vm3, %v1623_v6  ;;  %v1484_v9 = vmul.f32 0.2, %v2830_v62  ;;  %v1560_v58 = vsel %vm1432_vm15, %v2846_v12, %v1496_v54  ;;  %v1204_v51 = vmul.f32 %v2778_v52, %v2778_v52 }
 0x10b   : > { %v1597_v46 = vpack.c.bf16 %v1533_v28, %v1533_v28  ;;  %v2869_v28 = vld [vmem:[#allocation2 + $0xe8] sm:$0xff]  ;;  %v1080_v27 = vadd.f32 %v1079_v19, %v1078_v23  ;;  %v1624_v1 = vpack.c.bf16 %v1560_v58, %v1560_v58  ;;  %v1572_v3 = vsel %vm1444_vm0, %v2860_v30, %v1508_v47 }
 0x10c   : > { %v1548_v26 = vsel %vm1420_vm14, %v2830_v62, %v1484_v9  ;;  %vm1421_vm2 = vcmp.gt.f32.partialorder %v2869_v28, 0.0  ;;  %v1485_v29 = vmul.f32 0.2, %v2869_v28  ;;  %v1278_v8 = vsel %vm235_vm1, %v1203_v44, 0.0 }
 0x10d   : > { %1662 = vst.msk [vmem:[%s2471_s8 + $0x34] sm:$0xf] %vm1648_vm3, %v1597_v46  ;;  %v739_v32 = vpop.f32.mrf.mxu0  ;;  %v1612_v46 = vpack.c.bf16 %v1548_v26, %v1548_v26  ;;  %v1083_v16 = vsel %vm235_vm1, %v2778_v52, 0.0  ;;  %vm1433_vm4 = vcmp.gt.f32.partialorder %v2879_v56, 0.0  ;;  %v1497_v9 = vmul.f32 0.2, %v2879_v56 }
 0x10e   : > { %v877_v41 = vadd.f32 %v739_v32, %v315_v31  ;;  %v2887_v61 = vld [vmem:[#allocation2 + $0x1a8] sm:$0xff]  ;;  %v812_v0 = vpop.f32.mrf.mxu2  ;;  %1689 = vst.msk [vmem:[%s2471_s8 + $0xa0] sm:$0xf] %vm1648_vm3, %v1624_v1  ;;  %v1549_v23 = vsel %vm1421_vm2, %v2869_v28, %v1485_v29  ;;  %v892_v31 = vadd.f32 %v777_v13, %v330_v63  ;;  %v354_v32 = vld [vmem:[#allocation2 + $0x1b0] sm:$0xff]  ;;  %v904_v44 = vadd.f32 %v2774_v4, %v342_v5  ;;  %v779_v26 = vpop.f32.mrf.mxu1  ;;  %v344_v5 = vld [vmem:[#allocation2 + $0x160] sm:$0xff] }
 0x10f   : > { %v2838_v10 = vld [vmem:[#allocation2 + $0x70] sm:$0xff]  ;;  %1677 = vst.msk [vmem:[%s2471_s8 + $0x70] sm:$0xf] %vm1648_vm3, %v1612_v46  ;;  %vm1445_vm5 = vcmp.gt.f32.partialorder %v2887_v61, 0.0  ;;  %v1613_v19 = vpack.c.bf16 %v1549_v23, %v1549_v23  ;;  %v1277_v54 = vadd.f32 %v1276_v43, %v1275_v24  ;;  %v1082_v46 = vadd.f32 %v1081_v53, %v1080_v27  ;;  %v355_v27 = vld [vmem:[#allocation2 + $0x1b8] sm:$0xff] }
 0x110   : > { %vm1406_vm13 = vcmp.gt.f32.partialorder %v2838_v10, 0.0  ;;  %v1470_v18 = vmul.f32 0.2, %v2838_v10  ;;  %v2895_v6 = vpop.f32.mrf.mxu3  ;;  %942 = vst.msk [vmem:[#allocation2 + $0x78] sm:$0xff] %vm235_vm1, %v877_v41  ;;  %v1205_v52 = vmul.f32 %v2838_v10, %v2838_v10  ;;  %v1280_v47 = vsel %vm235_vm1, %v1204_v51, 0.0  ;;  %v343_v41 = vld [vmem:[#allocation2 + $0x158] sm:$0xff] }
 0x111   : > { %v1561_v13 = vsel %vm1433_vm4, %v2879_v56, %v1497_v9  ;;  %957 = vst.msk [vmem:[#allocation2 + $0xf0] sm:$0xff] %vm235_vm1, %v892_v31  ;;  %v1085_v58 = vsel %vm235_vm1, %v2838_v10, 0.0  ;;  %v916_v43 = vadd.f32 %v2781_v11, %v354_v32  ;;  %v1279_v53 = vadd.f32 %v1278_v8, %v1277_v54 }
 0x112   : > { %v1534_v33 = vsel %vm1406_vm13, %v2838_v10, %v1470_v18  ;;  %v1636_v18 = vpack.c.bf16 %v1572_v3, %v1572_v3  ;;  %1678 = vst.msk [vmem:[%s2471_s8 + $0x74] sm:$0xf] %vm1648_vm3, %v1613_v19  ;;  %v1625_v4 = vpack.c.bf16 %v1561_v13, %v1561_v13  ;;  %v1084_v63 = vadd.f32 %v1083_v16, %v1082_v46 }
 0x113   : > { %v1598_v45 = vpack.c.bf16 %v1534_v33, %v1534_v33  ;;  %v1509_v33 = vmul.f32 0.2, %v2887_v61  ;;  %969 = vst.msk [vmem:[#allocation2 + $0x150] sm:$0xff] %vm235_vm1, %v904_v44  ;;  %v1288_v10 = vsel %vm235_vm1, %v2741_v36, 0.0  ;;  %v1210_v3 = vmul.f32 %v2527_v39, %v2527_v39  ;;  %v356_v36 = vld [vmem:[#allocation2 + $0x1c0] sm:$0xff] }
 0x114   : > { %1701 = vst.msk [vmem:[%s2471_s8 + $0xd0] sm:$0xf] %vm1648_vm3, %v1636_v18  ;;  %v1282_v29 = vsel %vm235_vm1, %v1205_v52, 0.0  ;;  %v905_v11 = vadd.f32 %v2832_v50, %v343_v41  ;;  %v1281_v8 = vadd.f32 %v1280_v47, %v1279_v53  ;;  %v1086_v16 = vadd.f32 %v1085_v58, %v1084_v63  ;;  %v345_v50 = vld [vmem:[#allocation2 + $0x168] sm:$0xff] }
 0x115   : > { %1663 = vst.msk [vmem:[%s2471_s8 + $0x38] sm:$0xf] %vm1648_vm3, %v1598_v45  ;;  %v331_v45 = vld [vmem:[#allocation2 + $0xf8] sm:$0xff]  ;;  %v1573_v24 = vsel %vm1445_vm5, %v2887_v61, %v1509_v33  ;;  %v917_v9 = vadd.f32 %v2841_v21, %v355_v27  ;;  %v906_v31 = vadd.f32 %v812_v0, %v344_v5  ;;  %v1290_v44 = vsel %vm235_vm1, %v2855_v55, 0.0  ;;  %v357_v21 = vld [vmem:[#allocation2 + $0x1c8] sm:$0xff] }
 0x116   : > { %v1637_v51 = vpack.c.bf16 %v1573_v24, %v1573_v24  ;;  %v893_v1 = vadd.f32 %v779_v26, %v331_v45  ;;  %1690 = vst.msk [vmem:[%s2471_s8 + $0xa4] sm:$0xf] %vm1648_vm3, %v1625_v4  ;;  %v814_v18 = vpop.f32.mrf.mxu2  ;;  %v1095_v45 = vsel %vm235_vm1, %v2527_v39, 0.0  ;;  %v1283_v26 = vadd.f32 %v1282_v29, %v1281_v8 }
 0x117   : > { %v1009_v23 = vld [vmem:[#allocation2 + $0x78] sm:$0xff]  ;;  %981 = vst.msk [vmem:[#allocation2 + $0x1b0] sm:$0xff] %vm235_vm1, %v916_v43  ;;  %v1211_v0 = vmul.f32 %v2556_v20, %v2556_v20  ;;  %v918_v55 = vadd.f32 %v2895_v6, %v356_v36  ;;  %v907_v4 = vadd.f32 %v814_v18, %v345_v50  ;;  %v1292_v24 = vsel %vm235_vm1, %v1210_v3, 0.0 }
 0x118   : > { %1702 = vst.msk [vmem:[%s2471_s8 + $0xd4] sm:$0xf] %vm1648_vm3, %v1637_v51  ;;  %v844_v32 = vpop.f32.mrf.mxu3  ;;  %v1087_v19 = vsel %vm235_vm1, %v1009_v23, 0.0  ;;  %v1206_v33 = vmul.f32 %v1009_v23, %v1009_v23  ;;  %vm1407_vm6 = vcmp.gt.f32.partialorder %v1009_v23, 0.0  ;;  %v1471_v52 = vmul.f32 0.2, %v1009_v23 }
 0x119   : > { %v1088_v54 = vadd.f32 %v1087_v19, %v1086_v16  ;;  %958 = vst.msk [vmem:[#allocation2 + $0xf8] sm:$0xff] %vm235_vm1, %v893_v1  ;;  %v2950_v13 = vld [vmem:[#allocation2 + $0xf0] sm:$0xff]  ;;  %v919_v53 = vadd.f32 %v844_v32, %v357_v21  ;;  %v1097_v6 = vsel %vm235_vm1, %v2556_v20, 0.0  ;;  %v1294_v1 = vsel %vm235_vm1, %v1211_v0, 0.0 }
 0x11a   : > { %v1284_v46 = vsel %vm235_vm1, %v1206_v33, 0.0  ;;  %v1535_v47 = vsel %vm1407_vm6, %v1009_v23, %v1471_v52  ;;  %970 = vst.msk [vmem:[#allocation2 + $0x158] sm:$0xff] %vm235_vm1, %v905_v11  ;;  %vm1422_vm7 = vcmp.gt.f32.partialorder %v2950_v13, 0.0  ;;  %v1486_v43 = vmul.f32 0.2, %v2950_v13  ;;  %v2959_v27 = vld [vmem:[#allocation2 + $0x150] sm:$0xff] }
 0x11b   : > { %v1090_v39 = vadd.f32 %v2722_v14, %v1088_v54  ;;  %v1285_v41 = vadd.f32 %v1284_v46, %v1283_v26  ;;  %v1599_v58 = vpack.c.bf16 %v1535_v47, %v1535_v47  ;;  %982 = vst.msk [vmem:[#allocation2 + $0x1b8] sm:$0xff] %vm235_vm1, %v917_v9  ;;  %v1212_v14 = vmul.f32 %v2570_v34, %v2570_v34 }
 0x11c   : > { %971 = vst.msk [vmem:[#allocation2 + $0x160] sm:$0xff] %vm235_vm1, %v906_v31  ;;  %v1550_v3 = vsel %vm1422_vm7, %v2950_v13, %v1486_v43  ;;  %vm1434_vm8 = vcmp.gt.f32.partialorder %v2959_v27, 0.0  ;;  %v1498_v29 = vmul.f32 0.2, %v2959_v27  ;;  %v1099_v20 = vsel %vm235_vm1, %v2570_v34, 0.0 }
 0x11d   : > { %v1092_v63 = vadd.f32 %v2737_v7, %v1090_v39  ;;  %v1287_v51 = vadd.f32 %v2733_v35, %v1285_v41  ;;  %1664 = vst.msk [vmem:[%s2471_s8 + $0x3c] sm:$0xf] %vm1648_vm3, %v1599_v58  ;;  %v1614_v35 = vpack.c.bf16 %v1550_v3, %v1550_v3  ;;  %v1213_v8 = vmul.f32 %v2584_v48, %v2584_v48 }
 0x11e   : > { %983 = vst.msk [vmem:[#allocation2 + $0x1c0] sm:$0xff] %vm235_vm1, %v918_v55  ;;  %v2978_v5 = vld [vmem:[#allocation2 + $0x1b0] sm:$0xff]  ;;  %v1562_v16 = vsel %vm1434_vm8, %v2959_v27, %v1498_v29  ;;  %v1214_v19 = vmul.f32 %v2619_v38, %v2619_v38  ;;  %v1101_v50 = vsel %vm235_vm1, %v2584_v48, 0.0  ;;  %v1103_v0 = vsel %vm235_vm1, %v2619_v38, 0.0 }
 0x11f   : > { %v1094_v11 = vadd.f32 %v2750_v42, %v1092_v63  ;;  %v1289_v7 = vadd.f32 %v1288_v10, %v1287_v51  ;;  %972 = vst.msk [vmem:[#allocation2 + $0x168] sm:$0xff] %vm235_vm1, %v907_v4  ;;  %vm1446_vm9 = vcmp.gt.f32.partialorder %v2978_v5, 0.0  ;;  %v1510_v34 = vmul.f32 0.2, %v2978_v5  ;;  %v2991_v42 = vpop.f32.mrf.mxu2 }
 0x120   : > { %v2981_v18 = vpop.f32.mrf.mxu3  ;;  %v2988_v23 = vld [vmem:[#allocation2 + $0xf8] sm:$0xff]  ;;  %984 = vst.msk [vmem:[#allocation2 + $0x1c8] sm:$0xff] %vm235_vm1, %v919_v53  ;;  %v1296_v10 = vsel %vm235_vm1, %v1212_v14, 0.0  ;;  %v1626_v36 = vpack.c.bf16 %v1562_v16, %v1562_v16  ;;  %v1298_v21 = vsel %vm235_vm1, %v1213_v8, 0.0  ;;  %v1300_v58 = vsel %vm235_vm1, %v1214_v19, 0.0  ;;  %v358_v8 = vld [vmem:[#allocation2 + $0x1d0] sm:$0xff] }
 0x121   : > { %v1096_v9 = vadd.f32 %v1095_v45, %v1094_v11  ;;  %v1291_v31 = vadd.f32 %v1290_v44, %v1289_v7  ;;  %1679 = vst.msk [vmem:[%s2471_s8 + $0x78] sm:$0xf] %vm1648_vm3, %v1614_v35  ;;  %v2996_v32 = vld [vmem:[#allocation2 + $0x158] sm:$0xff]  ;;  %v1574_v33 = vsel %vm1446_vm9, %v2978_v5, %v1510_v34  ;;  %vm1423_vm10 = vcmp.gt.f32.partialorder %v2988_v23, 0.0  ;;  %v346_v35 = vld [vmem:[#allocation2 + $0x170] sm:$0xff] }
 0x122   : > { %v1487_v52 = vmul.f32 0.2, %v2988_v23  ;;  %1691 = vst.msk [vmem:[%s2471_s8 + $0xa8] sm:$0xf] %vm1648_vm3, %v1626_v36  ;;  %v1638_v26 = vpack.c.bf16 %v1574_v33, %v1574_v33  ;;  %v3007_v54 = vld [vmem:[#allocation2 + $0x1b8] sm:$0xff]  ;;  %vm1435_vm11 = vcmp.gt.f32.partialorder %v2996_v32, 0.0  ;;  %v1215_v4 = vmul.f32 %v2645_v57, %v2645_v57 }
 0x123   : > { %v1098_v45 = vadd.f32 %v1097_v6, %v1096_v9  ;;  %v1293_v44 = vadd.f32 %v1292_v24, %v1291_v31  ;;  %v1499_v39 = vmul.f32 0.2, %v2996_v32  ;;  %v3017_v41 = vld [vmem:[#allocation2 + $0x160] sm:$0xff]  ;;  %vm1447_vm12 = vcmp.gt.f32.partialorder %v3007_v54, 0.0  ;;  %v347_v9 = vld [vmem:[#allocation2 + $0x178] sm:$0xff] }
 0x124   : > { %v1551_v46 = vsel %vm1423_vm10, %v2988_v23, %v1487_v52  ;;  %1703 = vst.msk [vmem:[%s2471_s8 + $0xd8] sm:$0xf] %vm1648_vm3, %v1638_v26  ;;  %v1511_v38 = vmul.f32 0.2, %v3007_v54  ;;  %v1216_v24 = vmul.f32 %v2674_v17, %v2674_v17  ;;  %vm1436_vm13 = vcmp.gt.f32.partialorder %v3017_v41, 0.0  ;;  %v359_v52 = vld [vmem:[#allocation2 + $0x1d8] sm:$0xff] }
 0x125   : > { %v1100_v47 = vadd.f32 %v1099_v20, %v1098_v45  ;;  %v1295_v55 = vadd.f32 %v1294_v1, %v1293_v44  ;;  %v1615_v48 = vpack.c.bf16 %v1551_v46, %v1551_v46  ;;  %v1563_v6 = vsel %vm1435_vm11, %v2996_v32, %v1499_v39  ;;  %v2119_v39 = vld [vmem:[#allocation2 + $0x100] sm:$0xff] }
 0x126   : > { %v3029_v14 = vld [vmem:[#allocation2 + $0x168] sm:$0xff]  ;;  %v1627_v51 = vpack.c.bf16 %v1563_v6, %v1563_v6  ;;  %v1575_v1 = vsel %vm1447_vm12, %v3007_v54, %v1511_v38  ;;  %v1500_v3 = vmul.f32 0.2, %v3017_v41  ;;  %v1105_v29 = vsel %vm235_vm1, %v2645_v57, 0.0 }
 0x127   : > { %v1297_v43 = vadd.f32 %v1296_v10, %v1295_v55  ;;  %v1102_v53 = vadd.f32 %v1101_v50, %v1100_v47  ;;  %1680 = vst.msk [vmem:[%s2471_s8 + $0x7c] sm:$0xf] %vm1648_vm3, %v1615_v48  ;;  %v1639_v7 = vpack.c.bf16 %v1575_v1, %v1575_v1  ;;  %v1302_v16 = vsel %vm235_vm1, %v1215_v4, 0.0  ;;  %v819_v31 = vpop.f32.mrf.mxu2 }
 0x128   : > { %v849_v63 = vpop.f32.mrf.mxu3  ;;  %v1107_v34 = vsel %vm235_vm1, %v2674_v17, 0.0  ;;  %1692 = vst.msk [vmem:[%s2471_s8 + $0xac] sm:$0xf] %vm1648_vm3, %v1627_v51  ;;  %v1564_v10 = vsel %vm1436_vm13, %v3017_v41, %v1500_v3  ;;  %vm1437_vm14 = vcmp.gt.f32.partialorder %v3029_v14, 0.0  ;;  %v1501_v33 = vmul.f32 0.2, %v3029_v14 }
 0x129   : > { %v1104_v20 = vadd.f32 %v1103_v0, %v1102_v53  ;;  %v1299_v11 = vadd.f32 %v1298_v21, %v1297_v43  ;;  %1704 = vst.msk [vmem:[%s2471_s8 + $0xdc] sm:$0xf] %vm1648_vm3, %v1639_v7  ;;  %v1628_v19 = vpack.c.bf16 %v1564_v10, %v1564_v10  ;;  %v1304_v50 = vsel %vm235_vm1, %v1216_v24, 0.0  ;;  %v3066_v43 = vld [vmem:[#allocation2 + $0x1c8] sm:$0xff] }
 0x12a   : > { %v1217_v17 = vmul.f32 %v2745_v40, %v2745_v40  ;;  %v908_v45 = vadd.f32 %v2991_v42, %v346_v35  ;;  %v920_v44 = vadd.f32 %v2981_v18, %v358_v8  ;;  %v1565_v0 = vsel %vm1437_vm14, %v3029_v14, %v1501_v33  ;;  %v3061_v42 = vld [vmem:[#allocation2 + $0x1c0] sm:$0xff]  ;;  %v2120_v51 = vld [vmem:[#allocation2 + $0x108] sm:$0xff] }
 0x12b   : > { %v1106_v57 = vadd.f32 %v1105_v29, %v1104_v20  ;;  %v1301_v36 = vadd.f32 %v1300_v58, %v1299_v11  ;;  %1693 = vst.msk [vmem:[%s2471_s8 + $0xb0] sm:$0xf] %vm1648_vm3, %v1628_v19  ;;  %v909_v46 = vadd.f32 %v819_v31, %v347_v9  ;;  %v1109_v47 = vsel %vm235_vm1, %v2745_v40, 0.0 }
 0x12c   : > { %v1218_v55 = vmul.f32 %v2789_v25, %v2789_v25  ;;  %v1629_v48 = vpack.c.bf16 %v1565_v0, %v1565_v0  ;;  %973 = vst.msk [vmem:[#allocation2 + $0x170] sm:$0xff] %vm235_vm1, %v908_v45  ;;  %v921_v18 = vadd.f32 %v849_v63, %v359_v52  ;;  %v3063_v58 = vmul.f32 %v2119_v39, %v2119_v39  ;;  %v361_v45 = vld [vmem:[#allocation2 + $0x1e8] sm:$0xff] }
 0x12d   : > { %v1108_v26 = vadd.f32 %v1107_v34, %v1106_v57  ;;  %v1303_v21 = vadd.f32 %v1302_v16, %v1301_v36  ;;  %985 = vst.msk [vmem:[#allocation2 + $0x1d0] sm:$0xff] %vm235_vm1, %v920_v44  ;;  %v1306_v40 = vsel %vm235_vm1, %v1217_v17, 0.0  ;;  %v1111_v53 = vsel %vm235_vm1, %v2789_v25, 0.0  ;;  %v360_v17 = vld [vmem:[#allocation2 + $0x1e0] sm:$0xff] }
 0x12e   : > { %v1219_v6 = vmul.f32 %v2830_v62, %v2830_v62  ;;  %v1220_v63 = vmul.f32 %v2869_v28, %v2869_v28  ;;  %1694 = vst.msk [vmem:[%s2471_s8 + $0xb4] sm:$0xf] %vm1648_vm3, %v1629_v48  ;;  %v1224_v1 = vmul.f32 %v2120_v51, %v2120_v51  ;;  %vm1448_vm15 = vcmp.gt.f32.partialorder %v3061_v42, 0.0 }
 0x12f   : > { %v1110_v4 = vadd.f32 %v1109_v47, %v1108_v26  ;;  %v1305_v38 = vadd.f32 %v1304_v50, %v1303_v21  ;;  %974 = vst.msk [vmem:[#allocation2 + $0x178] sm:$0xff] %vm235_vm1, %v909_v46  ;;  %v1308_v20 = vsel %vm235_vm1, %v1218_v55, 0.0  ;;  %v1113_v25 = vsel %vm235_vm1, %v2830_v62, 0.0 }
 0x130   : > { %v852_v24 = vpop.f32.mrf.mxu3  ;;  %986 = vst.msk [vmem:[#allocation2 + $0x1d8] sm:$0xff] %vm235_vm1, %v921_v18  ;;  %vm1449_vm0 = vcmp.gt.f32.partialorder %v3066_v43, 0.0  ;;  %v1512_v11 = vmul.f32 0.2, %v3061_v42  ;;  %v1221_v8 = vmul.f32 %v2950_v13, %v2950_v13  ;;  %v1513_v16 = vmul.f32 0.2, %v3066_v43 }
 0x131   : > { %v1112_v3 = vadd.f32 %v1111_v53, %v1110_v4  ;;  %v1307_v29 = vadd.f32 %v1306_v40, %v1305_v38  ;;  %v1310_v34 = vsel %vm235_vm1, %v1219_v6, 0.0  ;;  %v1115_v10 = vsel %vm235_vm1, %v2869_v28, 0.0 }
 0x132   : > { %v1312_v62 = vsel %vm235_vm1, %v1220_v63, 0.0  ;;  %v1576_v9 = vsel %vm1448_vm15, %v3061_v42, %v1512_v11  ;;  %v1577_v19 = vsel %vm1449_vm0, %v3066_v43, %v1513_v16  ;;  %v1117_v52 = vsel %vm235_vm1, %v2950_v13, 0.0 }
 0x133   : > { %v1114_v7 = vadd.f32 %v1113_v25, %v1112_v3  ;;  %v1309_v35 = vadd.f32 %v1308_v20, %v1307_v29  ;;  %v3093_v36 = vld [vmem:[#allocation2 + $0x170] sm:$0xff]  ;;  %v1640_v33 = vpack.c.bf16 %v1576_v9, %v1576_v9  ;;  %v1222_v50 = vmul.f32 %v2988_v23, %v2988_v23 }
 0x134   : > { %vm1438_vm2 = vcmp.gt.f32.partialorder %v3093_v36, 0.0  ;;  %v1502_v28 = vmul.f32 0.2, %v3093_v36  ;;  %v1314_v21 = vsel %vm235_vm1, %v1221_v8, 0.0  ;;  %v922_v0 = vadd.f32 %v852_v24, %v360_v17  ;;  %v3112_v24 = vld [vmem:[#allocation2 + $0x1d0] sm:$0xff] }
 0x135   : > { %v1116_v31 = vadd.f32 %v1115_v10, %v1114_v7  ;;  %v1311_v57 = vadd.f32 %v1310_v34, %v1309_v35  ;;  %1705 = vst.msk [vmem:[%s2471_s8 + $0xe0] sm:$0xf] %vm1648_vm3, %v1640_v33  ;;  %v1119_v13 = vsel %vm235_vm1, %v2988_v23, 0.0  ;;  %v1641_v18 = vpack.c.bf16 %v1577_v19, %v1577_v19  ;;  %v2121_v3 = vld [vmem:[#allocation2 + $0x110] sm:$0xff] }
 0x136   : > { %v1566_v47 = vsel %vm1438_vm2, %v3093_v36, %v1502_v28  ;;  %v3108_v55 = vld [vmem:[#allocation2 + $0x178] sm:$0xff]  ;;  %v1121_v4 = vsel %vm235_vm1, %v2119_v39, 0.0  ;;  %987 = vst.msk [vmem:[#allocation2 + $0x1e0] sm:$0xff] %vm235_vm1, %v922_v0  ;;  %v1316_v6 = vsel %vm235_vm1, %v1222_v50, 0.0  ;;  %v1318_v39 = vsel %vm235_vm1, %v3063_v58, 0.0  ;;  %v362_v34 = vld [vmem:[#allocation2 + $0x1f0] sm:$0xff] }
 0x137   : > { %v1313_v44 = vadd.f32 %v1312_v62, %v1311_v57  ;;  %v1118_v26 = vadd.f32 %v1117_v52, %v1116_v31  ;;  %v1630_v53 = vpack.c.bf16 %v1566_v47, %v1566_v47  ;;  %vm1439_vm4 = vcmp.gt.f32.partialorder %v3108_v55, 0.0  ;;  %v3118_v63 = vld [vmem:[#allocation2 + $0x1d8] sm:$0xff]  ;;  %1706 = vst.msk [vmem:[%s2471_s8 + $0xe4] sm:$0xf] %vm1648_vm3, %v1641_v18 }
 0x138   : > { %v854_v46 = vpop.f32.mrf.mxu3  ;;  %v1503_v23 = vmul.f32 0.2, %v3108_v55  ;;  %v1225_v29 = vmul.f32 %v2121_v3, %v2121_v3  ;;  %v1123_v11 = vsel %vm235_vm1, %v2120_v51, 0.0  ;;  %v1320_v7 = vsel %vm235_vm1, %v1224_v1, 0.0  ;;  %v2122_v31 = vld [vmem:[#allocation2 + $0x118] sm:$0xff] }
 0x139   : > { %v923_v48 = vadd.f32 %v854_v46, %v361_v45  ;;  %v1315_v38 = vadd.f32 %v1314_v21, %v1313_v44  ;;  %v1120_v40 = vadd.f32 %v1119_v13, %v1118_v26  ;;  %1695 = vst.msk [vmem:[%s2471_s8 + $0xb8] sm:$0xf] %vm1648_vm3, %v1630_v53  ;;  %vm1450_vm5 = vcmp.gt.f32.partialorder %v3112_v24, 0.0 }
 0x13a   : > { %v1567_v35 = vsel %vm1439_vm4, %v3108_v55, %v1503_v23  ;;  %vm1451_vm6 = vcmp.gt.f32.partialorder %v3118_v63, 0.0  ;;  %v1125_v10 = vsel %vm235_vm1, %v2121_v3, 0.0  ;;  %v1226_v51 = vmul.f32 %v2629_v49, %v2629_v49 }
 0x13b   : > { %988 = vst.msk [vmem:[#allocation2 + $0x1e8] sm:$0xff] %vm235_vm1, %v923_v48  ;;  %v1122_v20 = vadd.f32 %v1121_v4, %v1120_v40  ;;  %v1317_v25 = vadd.f32 %v1316_v6, %v1315_v38  ;;  %v1631_v58 = vpack.c.bf16 %v1567_v35, %v1567_v35  ;;  %v1514_v1 = vmul.f32 0.2, %v3112_v24 }
 0x13c   : > { %v1515_v62 = vmul.f32 0.2, %v3118_v63  ;;  %v1322_v9 = vsel %vm235_vm1, %v1225_v29, 0.0  ;;  %v1127_v57 = vsel %vm235_vm1, %v2122_v31, 0.0  ;;  %v1227_v50 = vmul.f32 %v2652_v60, %v2652_v60 }
 0x13d   : > { %v1124_v8 = vadd.f32 %v1123_v11, %v1122_v20  ;;  %v1319_v16 = vadd.f32 %v1318_v39, %v1317_v25  ;;  %1696 = vst.msk [vmem:[%s2471_s8 + $0xbc] sm:$0xf] %vm1648_vm3, %v1631_v58  ;;  %v1578_v49 = vsel %vm1450_vm5, %v3112_v24, %v1514_v1  ;;  %v1324_v0 = vsel %vm235_vm1, %v1226_v51, 0.0  ;;  %v3152_v18 = vld [vmem:[#allocation2 + $0x1e0] sm:$0xff]  ;;  %v363_v39 = vld [vmem:[#allocation2 + $0x1f8] sm:$0xff] }
 0x13e   : > { %v1579_v17 = vsel %vm1451_vm6, %v3118_v63, %v1515_v62  ;;  %v1642_v26 = vpack.c.bf16 %v1578_v49, %v1578_v49  ;;  %v1129_v46 = vsel %vm235_vm1, %v2652_v60, 0.0  ;;  %v1228_v13 = vmul.f32 %v2677_v22, %v2677_v22 }
 0x13f   : > { %v1126_v19 = vadd.f32 %v1125_v10, %v1124_v8  ;;  %v1321_v33 = vadd.f32 %v1320_v7, %v1319_v16  ;;  %v1643_v21 = vpack.c.bf16 %v1579_v17, %v1579_v17  ;;  %v1326_v38 = vsel %vm235_vm1, %v1227_v50, 0.0 }
 0x140   : > { %v857_v52 = vpop.f32.mrf.mxu3  ;;  %1707 = vst.msk [vmem:[%s2471_s8 + $0xe8] sm:$0xf] %vm1648_vm3, %v1642_v26  ;;  %v1131_v40 = vsel %vm235_vm1, %v2677_v22, 0.0  ;;  %v1229_v60 = vmul.f32 %v2759_v59, %v2759_v59  ;;  %v1230_v53 = vmul.f32 %v2804_v15, %v2804_v15  ;;  %v1328_v3 = vsel %vm235_vm1, %v1228_v13, 0.0 }
 0x141   : > { %v924_v28 = vadd.f32 %v857_v52, %v362_v34  ;;  %v1128_v45 = vadd.f32 %v1127_v57, %v1126_v19  ;;  %v1323_v44 = vadd.f32 %v1322_v9, %v1321_v33  ;;  %1708 = vst.msk [vmem:[%s2471_s8 + $0xec] sm:$0xf] %vm1648_vm3, %v1643_v21  ;;  %v1133_v29 = vsel %vm235_vm1, %v2759_v59, 0.0 }
 0x142   : > { %v3154_v4 = vld [vmem:[#allocation2 + $0x1e8] sm:$0xff]  ;;  %vm1452_vm7 = vcmp.gt.f32.partialorder %v3152_v18, 0.0  ;;  %v1516_v11 = vmul.f32 0.2, %v3152_v18  ;;  %v1330_v35 = vsel %vm235_vm1, %v1229_v60, 0.0  ;;  %v1135_v8 = vsel %vm235_vm1, %v2804_v15, 0.0 }
 0x143   : > { %989 = vst.msk [vmem:[#allocation2 + $0x1f0] sm:$0xff] %vm235_vm1, %v924_v28  ;;  %v1130_v47 = vadd.f32 %v1129_v46, %v1128_v45  ;;  %v1325_v48 = vadd.f32 %v1324_v0, %v1323_v44  ;;  %vm1453_vm8 = vcmp.gt.f32.partialorder %v3154_v4, 0.0  ;;  %v1517_v7 = vmul.f32 0.2, %v3154_v4 }
 0x144   : > { %v1231_v16 = vmul.f32 %v2846_v12, %v2846_v12  ;;  %v1332_v58 = vsel %vm235_vm1, %v1230_v53, 0.0  ;;  %v1137_v51 = vsel %vm235_vm1, %v2846_v12, 0.0  ;;  %v1232_v1 = vmul.f32 %v2879_v56, %v2879_v56 }
 0x145   : > { %v1327_v6 = vadd.f32 %v1326_v38, %v1325_v48  ;;  %v1132_v23 = vadd.f32 %v1131_v40, %v1130_v47  ;;  %v1580_v15 = vsel %vm1452_vm7, %v3152_v18, %v1516_v11  ;;  %v1581_v62 = vsel %vm1453_vm8, %v3154_v4, %v1517_v7  ;;  %v2123_v7 = vld [vmem:[#allocation2 + $0x180] sm:$0xff] }
 0x146   : > { %v1644_v57 = vpack.c.bf16 %v1580_v15, %v1580_v15  ;;  %v1645_v19 = vpack.c.bf16 %v1581_v62, %v1581_v62  ;;  %v1334_v12 = vsel %vm235_vm1, %v1231_v16, 0.0  ;;  %v1139_v33 = vsel %vm235_vm1, %v2879_v56, 0.0 }
 0x147   : > { %v1134_v22 = vadd.f32 %v1133_v29, %v1132_v23  ;;  %v1329_v20 = vadd.f32 %v1328_v3, %v1327_v6  ;;  %v1233_v52 = vmul.f32 %v2959_v27, %v2959_v27  ;;  %v1336_v49 = vsel %vm235_vm1, %v1232_v1, 0.0 }
 0x148   : > { %v859_v25 = vpop.f32.mrf.mxu3  ;;  %1709 = vst.msk [vmem:[%s2471_s8 + $0xf0] sm:$0xf] %vm1648_vm3, %v1644_v57  ;;  %v1141_v17 = vsel %vm235_vm1, %v2959_v27, 0.0  ;;  %v1234_v45 = vmul.f32 %v2996_v32, %v2996_v32  ;;  %v1143_v21 = vsel %vm235_vm1, %v2996_v32, 0.0  ;;  %v1235_v0 = vmul.f32 %v3017_v41, %v3017_v41 }
 0x149   : > { %v925_v59 = vadd.f32 %v859_v25, %v363_v39  ;;  %v1136_v34 = vadd.f32 %v1135_v8, %v1134_v22  ;;  %v1331_v10 = vadd.f32 %v1330_v35, %v1329_v20  ;;  %1710 = vst.msk [vmem:[%s2471_s8 + $0xf4] sm:$0xf] %vm1648_vm3, %v1645_v19  ;;  %v1338_v56 = vsel %vm235_vm1, %v1233_v52, 0.0 }
 0x14a   : > { %v1236_v27 = vmul.f32 %v3029_v14, %v3029_v14  ;;  %v1340_v47 = vsel %vm235_vm1, %v1234_v45, 0.0  ;;  %v1145_v48 = vsel %vm235_vm1, %v3017_v41, 0.0  ;;  %v3215_v60 = vld [vmem:[#allocation2 + $0x1f0] sm:$0xff]  ;;  %v1342_v32 = vsel %vm235_vm1, %v1235_v0, 0.0 }
 0x14b   : > { %990 = vst.msk [vmem:[#allocation2 + $0x1f8] sm:$0xff] %vm235_vm1, %v925_v59  ;;  %v1138_v9 = vadd.f32 %v1137_v51, %v1136_v34  ;;  %v1333_v31 = vadd.f32 %v1332_v58, %v1331_v10  ;;  %v1147_v6 = vsel %vm235_vm1, %v3029_v14, 0.0  ;;  %v1237_v23 = vmul.f32 %v3093_v36, %v3093_v36  ;;  %v2124_v34 = vld [vmem:[#allocation2 + $0x188] sm:$0xff] }
 0x14c   : > { %v1344_v29 = vsel %vm235_vm1, %v1236_v27, 0.0  ;;  %v1149_v41 = vsel %vm235_vm1, %v3093_v36, 0.0  ;;  %v1238_v22 = vmul.f32 %v3108_v55, %v3108_v55  ;;  %vm1454_vm9 = vcmp.gt.f32.partialorder %v3215_v60, 0.0 }
 0x14d   : > { %v1140_v50 = vadd.f32 %v1139_v33, %v1138_v9  ;;  %v1335_v28 = vadd.f32 %v1334_v12, %v1333_v31  ;;  %v1518_v14 = vmul.f32 0.2, %v3215_v60  ;;  %v1239_v35 = vmul.f32 %v2123_v7, %v2123_v7 }
 0x14e   : > { %v1346_v8 = vsel %vm235_vm1, %v1237_v23, 0.0  ;;  %v1151_v36 = vsel %vm235_vm1, %v3108_v55, 0.0  ;;  %v1153_v16 = vsel %vm235_vm1, %v2123_v7, 0.0  ;;  %v1240_v10 = vmul.f32 %v2124_v34, %v2124_v34 }
 0x14f   : > { %v1142_v44 = vadd.f32 %v1141_v17, %v1140_v50  ;;  %v1337_v26 = vadd.f32 %v1336_v49, %v1335_v28  ;;  %v1348_v51 = vsel %vm235_vm1, %v1238_v22, 0.0  ;;  %v1582_v1 = vsel %vm1454_vm9, %v3215_v60, %v1518_v14 }
 0x150   : > { %v1646_v9 = vpack.c.bf16 %v1582_v1, %v1582_v1  ;;  %v1350_v57 = vsel %vm235_vm1, %v1239_v35, 0.0  ;;  %v1155_v19 = vsel %vm235_vm1, %v2124_v34, 0.0  ;;  %v1241_v12 = vmul.f32 %v2772_v2, %v2772_v2 }
 0x151   : > { %v1144_v46 = vadd.f32 %v1143_v21, %v1142_v44  ;;  %v1339_v13 = vadd.f32 %v1338_v56, %v1337_v26  ;;  %v1157_v50 = vsel %vm235_vm1, %v2772_v2, 0.0  ;;  %v1242_v28 = vmul.f32 %v2806_v37, %v2806_v37 }
 0x152   : > { %v3217_v53 = vld [vmem:[#allocation2 + $0x1f8] sm:$0xff]  ;;  %1711 = vst.msk [vmem:[%s2471_s8 + $0xf8] sm:$0xf] %vm1648_vm3, %v1646_v9  ;;  %v1352_v49 = vsel %vm235_vm1, %v1240_v10, 0.0  ;;  %v1159_v44 = vsel %vm235_vm1, %v2806_v37, 0.0  ;;  %v1243_v26 = vmul.f32 %v2860_v30, %v2860_v30  ;;  %v1354_v56 = vsel %vm235_vm1, %v1241_v12, 0.0 }
 0x153   : > { %v1341_v38 = vadd.f32 %v1340_v47, %v1339_v13  ;;  %v1146_v40 = vadd.f32 %v1145_v48, %v1144_v46  ;;  %vm1455_vm10 = vcmp.gt.f32.partialorder %v3217_v53, 0.0  ;;  %v1519_v11 = vmul.f32 0.2, %v3217_v53 }
 0x154   : > { %v1161_v2 = vsel %vm235_vm1, %v2860_v30, 0.0  ;;  %v1244_v46 = vmul.f32 %v2887_v61, %v2887_v61  ;;  %v1356_v13 = vsel %vm235_vm1, %v1242_v28, 0.0  ;;  %v1163_v37 = vsel %vm235_vm1, %v2887_v61, 0.0 }
 0x155   : > { %v1343_v39 = vadd.f32 %v1342_v32, %v1341_v38  ;;  %v1148_v3 = vadd.f32 %v1147_v6, %v1146_v40  ;;  %v1583_v15 = vsel %vm1455_vm10, %v3217_v53, %v1519_v11  ;;  %v1245_v48 = vmul.f32 %v2978_v5, %v2978_v5 }
 0x156   : > { %v1647_v31 = vpack.c.bf16 %v1583_v15, %v1583_v15  ;;  %v1358_v38 = vsel %vm235_vm1, %v1243_v26, 0.0  ;;  %v1165_v30 = vsel %vm235_vm1, %v2978_v5, 0.0  ;;  %v1246_v6 = vmul.f32 %v3007_v54, %v3007_v54 }
 0x157   : > { %v1345_v20 = vadd.f32 %v1344_v29, %v1343_v39  ;;  %v1150_v25 = vadd.f32 %v1149_v41, %v1148_v3  ;;  %v1360_v23 = vsel %vm235_vm1, %v1244_v46, 0.0  ;;  %v1167_v61 = vsel %vm235_vm1, %v3007_v54, 0.0 }
 0x158   : > { %1712 = vst.msk [vmem:[%s2471_s8 + $0xfc] sm:$0xf] %vm1648_vm3, %v1647_v31  ;;  %v1247_v29 = vmul.f32 %v3061_v42, %v3061_v42  ;;  %v1362_v41 = vsel %vm235_vm1, %v1245_v48, 0.0  ;;  %v1169_v5 = vsel %vm235_vm1, %v3061_v42, 0.0  ;;  %v1364_v14 = vsel %vm235_vm1, %v1246_v6, 0.0 }
 0x159   : > { %v1347_v59 = vadd.f32 %v1346_v8, %v1345_v20  ;;  %v1152_v58 = vadd.f32 %v1151_v36, %v1150_v25  ;;  %v1248_v25 = vmul.f32 %v3066_v43, %v3066_v43  ;;  %v1171_v54 = vsel %vm235_vm1, %v3066_v43, 0.0 }
 0x15a   : > { %v1249_v35 = vmul.f32 %v3112_v24, %v3112_v24  ;;  %v1366_v8 = vsel %vm235_vm1, %v1247_v29, 0.0  ;;  %v1173_v42 = vsel %vm235_vm1, %v3112_v24, 0.0  ;;  %v1175_v43 = vsel %vm235_vm1, %v3118_v63, 0.0 }
 0x15b   : > { %v1349_v62 = vadd.f32 %v1348_v51, %v1347_v59  ;;  %v1154_v55 = vadd.f32 %v1153_v16, %v1152_v58  ;;  %v1250_v59 = vmul.f32 %v3118_v63, %v3118_v63  ;;  %v1368_v58 = vsel %vm235_vm1, %v1248_v25, 0.0 }
 0x15c   : > { %v1251_v51 = vmul.f32 %v3152_v18, %v3152_v18  ;;  %v1370_v1 = vsel %vm235_vm1, %v1249_v35, 0.0  ;;  %v1177_v24 = vsel %vm235_vm1, %v3152_v18, 0.0  ;;  %v1179_v63 = vsel %vm235_vm1, %v3154_v4, 0.0 }
 0x15d   : > { %v1156_v33 = vadd.f32 %v1155_v19, %v1154_v55  ;;  %v1351_v52 = vadd.f32 %v1350_v57, %v1349_v62  ;;  %v1252_v55 = vmul.f32 %v3154_v4, %v3154_v4  ;;  %v1372_v9 = vsel %vm235_vm1, %v1250_v59, 0.0 }
 0x15e   : > { %v1253_v19 = vmul.f32 %v3215_v60, %v3215_v60  ;;  %v1374_v12 = vsel %vm235_vm1, %v1251_v51, 0.0  ;;  %v1181_v18 = vsel %vm235_vm1, %v3215_v60, 0.0  ;;  %v1183_v4 = vsel %vm235_vm1, %v3217_v53, 0.0 }
 0x15f   : > { %v1158_v17 = vadd.f32 %v1157_v50, %v1156_v33  ;;  %v1353_v45 = vadd.f32 %v1352_v49, %v1351_v52  ;;  %v1254_v50 = vmul.f32 %v3217_v53, %v3217_v53  ;;  %v1376_v28 = vsel %vm235_vm1, %v1252_v55, 0.0 }
 0x160   : > { %vm1390_vm3 = vcmask 58368  }
 0x161   : > { %v1160_v21 = vadd.f32 %v1159_v44, %v1158_v17  ;;  %v1355_v0 = vadd.f32 %v1354_v56, %v1353_v45  ;;  %v1378_v45 = vsel %vm235_vm1, %v1253_v19, 0.0  ;;  %v1380_v56 = vsel %vm235_vm1, %v1254_v50, 0.0 }
 0x162   : > { %vm1388_vm1 = vcmask 1040384  }
 0x163   : > { %v1162_v27 = vadd.f32 %v1161_v2, %v1160_v21  ;;  %v1357_v47 = vadd.f32 %v1356_v13, %v1355_v0 }
 0x165   : > { %v1164_v40 = vadd.f32 %v1163_v37, %v1162_v27  ;;  %v1359_v32 = vadd.f32 %v1358_v38, %v1357_v47 }
 0x167   : > { %v1166_v39 = vadd.f32 %v1165_v30, %v1164_v40  ;;  %v1361_v3 = vadd.f32 %v1360_v23, %v1359_v32 }
 0x169   : > { %v1168_v22 = vadd.f32 %v1167_v61, %v1166_v39  ;;  %v1363_v20 = vadd.f32 %v1362_v41, %v1361_v3 }
 0x16b   : > { %v1170_v11 = vadd.f32 %v1169_v5, %v1168_v22  ;;  %v1365_v7 = vadd.f32 %v1364_v14, %v1363_v20 }
 0x16d   : > { %v1172_v36 = vadd.f32 %v1171_v54, %v1170_v11  ;;  %v1367_v16 = vadd.f32 %v1366_v8, %v1365_v7 }
 0x16f   : > { %v1174_v34 = vadd.f32 %v1173_v42, %v1172_v36  ;;  %v1369_v10 = vadd.f32 %v1368_v58, %v1367_v16 }
 0x171   : > { %v1176_v15 = vadd.f32 %v1175_v43, %v1174_v34  ;;  %v1371_v62 = vadd.f32 %v1370_v1, %v1369_v10 }
 0x173   : > { %v1178_v31 = vadd.f32 %v1177_v24, %v1176_v15  ;;  %v1373_v57 = vadd.f32 %v1372_v9, %v1371_v62 }
 0x175   : > { %v1180_v33 = vadd.f32 %v1179_v63, %v1178_v31  ;;  %v1375_v52 = vadd.f32 %v1374_v12, %v1373_v57 }
 0x177   : > { %v1182_v49 = vadd.f32 %v1181_v18, %v1180_v33  ;;  %v1377_v17 = vadd.f32 %v1376_v28, %v1375_v52 }
 0x179   : > { %v1184_v44 = vadd.f32 %v1183_v4, %v1182_v49  ;;  %v1379_v26 = vadd.f32 %v1378_v45, %v1377_v17 }
 0x17b   : > { %v1185_v21 = vrot.slane %v1184_v44, 4  ;;  %v1381_v0 = vadd.f32 %v1380_v56, %v1379_v26 }
 0x17d   : > { %v1186_v60 = vadd.f32 %v1185_v21, %v1184_v44  ;;  %v1382_v2 = vrot.slane %v1381_v0, 4 }
 0x17f   : > { %v1187_v46 = vrot.slane %v1186_v60, 2  ;;  %v1383_v13 = vadd.f32 %v1382_v2, %v1381_v0 }
 0x181   : > { %v1188_v27 = vadd.f32 %v1187_v46, %v1186_v60  ;;  %v1384_v47 = vrot.slane %v1383_v13, 2 }
 0x183   : > { %v1189_v53 = vrot.slane %v1188_v27, 1  ;;  %v1385_v37 = vadd.f32 %v1384_v47, %v1383_v13 }
 0x185   : > { %v1386_v48 = vrot.slane %v1385_v37, 1  ;;  %v1190_v38 = vadd.f32 %v1189_v53, %v1188_v27 }
 0x187   : > { %v1387_v40 = vadd.f32 %v1386_v48, %v1385_v37 }
 0x189   : > { %v1389_v32 = vsel %vm1388_vm1, %v1190_v38, %v1387_v40 }
 0x18a   : > { %1391 = vst.msk [vmem:[%s208_s23] sm:$0x3] %vm1390_vm3, %v1389_v32 }
 0x18b   : > { %2152 = shalt.err (!%p2149_p5)
}
 0x18c   : > { %2063 = dma.vmem_to_hbm [thread:$0]  (%p2266_p4), %s1736_s26, 32, %s1738_s27, %s1719_s15  }
 0x18d PF: > { %p2069_p6 = scmp.ge.s32.totalorder %s2203_s17, 2  ;;  %s1757_s8 = sand.u32 1, %s2183_s12  }
 0x18e   : > { %s1758_s9 = scalar_lea.sflag [#allocation4], %s1757_s8 }
 0x18f   : > { %p2066_p7 = pnand %p2069_p6, %p2273_p8 }
 0x191   : > { %p2067_p9 = pneg %p2066_p7 }
 0x193   : > { %2178 = dma.done.wait (%p2067_p9), %s1758_s9, 32  }
 0x194   : > { %2180 = vsyncadd (%p2067_p9), %s1758_s9, 4294967264  ;;  %s17_s17 = sadd.s32 1, %s2203_s17   ;;  %s3364_s12 = smov %s2187_s13 }
 0x195   : > { %p14_p10 = scmp.ge.s32.totalorder %s17_s17, 18   ;;  %s3365_s13 = smov %s2191_s14 }
 0x196   : > { %s3366_s14 = smov %s2279_s25  ;;  %s3367_s15 = smov %s2199_s16 }
 0x197   : > { %s3368_s16 = smov %s3370_s20  ;;  %16 = sbr.rel (!%p14_p10) target bundleno = 4 (0x4), region = 86 }
 0x19c   :  { %1764 = vsyncpa [#allocation4], 1 }
 0x19d   :  { %1766 = vsyncpa [#allocation4 + $0x1], 1 }

// kernel: discriminator_forward.6
= control target key start
LH: loop header
LB: loop body
LE: loop exit
PB: predicated region body
PF: predicated region fallthrough
CT: control target
= control target key end

     0   :  { %s1932_s12 = smov 0   ;;  %s1934_s13 = smov 0   ;;  %s2889_s0 = inlined_call_operand.vmem [shape: bf16[2048,128], index: 0, kind: input, shape index: {}]   ;;  %s2890_s1 = inlined_call_operand.vmem [shape: bf16[128,16], index: 1, kind: input, shape index: {}]   ;;  %s2891_s2 = inlined_call_operand.vmem [shape: bf16[2048,16], index: 2, kind: output, shape index: {0}]   ;;  %s2892_s3 = inlined_call_operand.vmem [shape: f32[4,2,16], index: 3, kind: output, shape index: {1}]  }
   0x1   :  { %s1936_s14 = smov 0  }
   0x2 LB: > { %s26_s15 = sadd.s32 1, %s1905_s13  ;;  %p1630_p0 = scmp.ge.s32.totalorder %s1909_s14, 1  ;;  %s1909_s14 = sphi %s1936_s14, %s14_s14   ;;  %s1905_s13 = sphi %s1934_s13, %s2894_s13   ;;  %s1901_s12 = sphi %s1932_s12, %s2893_s12  }
   0x3   : > { %p28_p1 = scmp.ge.s32.totalorder %s26_s15, 4  ;;  %p169_p2 = scmp.lt.s32.totalorder %s1909_s14, 5 }
   0x5   : > { %s2896_s15 = smov (%p28_p1, %s26_s15), 0  ;;  %p170_p3 = pnand %p1630_p0, %p169_p2 }
   0x6   : > { %s1631_s24 = sshll.u32 (!%p170_p3), %s1901_s12, 6  ;;  %p226_p5 = scmp.lt.s32.totalorder (!%p170_p3), %s1901_s12, 3 }
   0x7   : > { %173 = sbr.rel (%p170_p3) target bundleno = 415 (0x19f), region = 28  ;;  %p206_p4 = scmp.lt.s32.totalorder (!%p170_p3), %s1631_s24, 255 }
   0xc   : > { %v1837_v0 = vld [vmem:[%s2890_s1 + $0x38] sm:$0xff]  ;;  %v1836_v1 = vld [vmem:[%s2890_s1 + $0x30] sm:$0xff]  ;;  %v1835_v2 = vld [vmem:[%s2890_s1 + $0x28] sm:$0xff]  ;;  %s2898_s24 = smov (!%p206_p4, %s1631_s24), 255  ;;  %vm234_vm0 = vcmask 130048   ;;  %v1911_v28 = vmov 0.0  }
   0xd   : > { %683 = vmatpush.bf16.msra.mxu0 %v1837_v0  ;;  %1838 = vmatpush.bf16.msra.mxu1 %v1837_v0  ;;  %v1834_v3 = vld [vmem:[%s2890_s1 + $0x20] sm:$0xff]  ;;  %v1833_v4 = vld [vmem:[%s2890_s1 + $0x18] sm:$0xff]  ;;  %v1832_v5 = vld [vmem:[%s2890_s1 + $0x10] sm:$0xff]  ;;  %s1632_s4 = sshll.u32 %s2898_s24, 2  ;;  %235 = vst.msk [vmem:[#allocation2] sm:$0xff] %vm234_vm0, %v1911_v28  ;;  %vm1446_vm1 = vcmask 125952  }
   0xe   : > { %1839 = vmatpush.bf16.msra.mxu2 %v1837_v0  ;;  %1840 = vmatpush.bf16.msra.mxu3 %v1837_v0  ;;  %v1831_v6 = vld [vmem:[%s2890_s1 + $0x8] sm:$0xff]  ;;  %v1830_v7 = vld [vmem:[%s2890_s1] sm:$0xff]  ;;  %s1985_s9 = scalar_lea.vmem %s2889_s0, %s1632_s4  ;;  %236 = vst.msk [vmem:[#allocation2 + $0x8] sm:$0xff] %vm234_vm0, %v1911_v28  ;;  %s2127_s16 = scalar_lea.vmem %s2891_s2, %s1632_s4  ;;  %vm1378_vm2 = vcmask 1040384   ;;  %vm1380_vm3 = vcmask 123904  }
   0xf   : > { %v1798_v8 = vld [vmem:[%s1985_s9] sm:$0xff]  ;;  %v1799_v10 = vld [vmem:[%s1985_s9 + $0x8] sm:$0xff]  ;;  %v1800_v13 = vld [vmem:[%s1985_s9 + $0x10] sm:$0xff]  ;;  %237 = vst.msk [vmem:[#allocation2 + $0x10] sm:$0xff] %vm234_vm0, %v1911_v28  ;;  %s2900_s12 = smov (!%p226_p5, %s1901_s12), 3 }
  0x10   : > { %v1806_v9 = vld [vmem:[%s1985_s9 + $0x40] sm:$0xff]  ;;  %v1807_v11 = vld [vmem:[%s1985_s9 + $0x48] sm:$0xff]  ;;  %v1808_v14 = vld [vmem:[%s1985_s9 + $0x50] sm:$0xff]  ;;  %238 = vst.msk [vmem:[#allocation2 + $0x18] sm:$0xff] %vm234_vm0, %v1911_v28  ;;  %s1635_s17 = sshll.u32 %s2900_s12, 1 }
  0x11   : > { %684 = vmatpush.bf16.msra.mxu0 %v1836_v1  ;;  %1841 = vmatpush.bf16.msra.mxu1 %v1836_v1  ;;  %v1814_v12 = vld [vmem:[%s1985_s9 + $0x80] sm:$0xff]  ;;  %v1815_v15 = vld [vmem:[%s1985_s9 + $0x88] sm:$0xff]  ;;  %v1801_v16 = vld [vmem:[%s1985_s9 + $0x18] sm:$0xff]  ;;  %239 = vst.msk [vmem:[#allocation2 + $0x20] sm:$0xff] %vm234_vm0, %v1911_v28  ;;  %s229_s20 = scalar_lea.vmem %s2892_s3, %s1635_s17 }
  0x12   : > { %1842 = vmatpush.bf16.msra.mxu2 %v1836_v1  ;;  %1843 = vmatpush.bf16.msra.mxu3 %v1836_v1  ;;  %v1809_v17 = vld [vmem:[%s1985_s9 + $0x58] sm:$0xff]  ;;  %v1816_v18 = vld [vmem:[%s1985_s9 + $0x90] sm:$0xff]  ;;  %v1822_v19 = vld [vmem:[%s1985_s9 + $0xc0] sm:$0xff]  ;;  %240 = vst.msk [vmem:[#allocation2 + $0x28] sm:$0xff] %vm234_vm0, %v1911_v28 }
  0x13   : > { %v1802_v20 = vld [vmem:[%s1985_s9 + $0x20] sm:$0xff]  ;;  %v1817_v22 = vld [vmem:[%s1985_s9 + $0x98] sm:$0xff]  ;;  %v1823_v23 = vld [vmem:[%s1985_s9 + $0xc8] sm:$0xff]  ;;  %241 = vst.msk [vmem:[#allocation2 + $0x30] sm:$0xff] %vm234_vm0, %v1911_v28 }
  0x14   : > { %v1810_v21 = vld [vmem:[%s1985_s9 + $0x60] sm:$0xff]  ;;  %v1803_v24 = vld [vmem:[%s1985_s9 + $0x28] sm:$0xff]  ;;  %v1824_v27 = vld [vmem:[%s1985_s9 + $0xd0] sm:$0xff]  ;;  %242 = vst.msk [vmem:[#allocation2 + $0x38] sm:$0xff] %vm234_vm0, %v1911_v28 }
  0x15   : > { %685 = vmatpush.bf16.msra.mxu0 %v1835_v2  ;;  %1844 = vmatpush.bf16.msra.mxu1 %v1835_v2  ;;  %v1811_v25 = vld [vmem:[%s1985_s9 + $0x68] sm:$0xff]  ;;  %v1818_v26 = vld [vmem:[%s1985_s9 + $0xa0] sm:$0xff]  ;;  %243 = vst.msk [vmem:[#allocation2 + $0x40] sm:$0xff] %vm234_vm0, %v1911_v28  ;;  %v1804_v29 = vld [vmem:[%s1985_s9 + $0x30] sm:$0xff] }
  0x16   : > { %1845 = vmatpush.bf16.msra.mxu2 %v1835_v2  ;;  %1846 = vmatpush.bf16.msra.mxu3 %v1835_v2  ;;  %244 = vst.msk [vmem:[#allocation2 + $0x48] sm:$0xff] %vm234_vm0, %v1911_v28  ;;  %v1812_v30 = vld [vmem:[%s1985_s9 + $0x70] sm:$0xff]  ;;  %v1819_v31 = vld [vmem:[%s1985_s9 + $0xa8] sm:$0xff]  ;;  %v1825_v32 = vld [vmem:[%s1985_s9 + $0xd8] sm:$0xff] }
  0x17   : > { %245 = vst.msk [vmem:[#allocation2 + $0x50] sm:$0xff] %vm234_vm0, %v1911_v28  ;;  %v1805_v33 = vld [vmem:[%s1985_s9 + $0x38] sm:$0xff]  ;;  %v299_v35 = vld [vmem:[#allocation2] sm:$0xff]  ;;  %v1820_v36 = vld [vmem:[%s1985_s9 + $0xb0] sm:$0xff] }
  0x18   : > { %246 = vst.msk [vmem:[#allocation2 + $0x58] sm:$0xff] %vm234_vm0, %v1911_v28  ;;  %v1813_v34 = vld [vmem:[%s1985_s9 + $0x78] sm:$0xff]  ;;  %v1826_v37 = vld [vmem:[%s1985_s9 + $0xe0] sm:$0xff]  ;;  %v1827_v46 = vld [vmem:[%s1985_s9 + $0xe8] sm:$0xff] }
  0x19   : > { %686 = vmatpush.bf16.msra.mxu0 %v1834_v3  ;;  %1847 = vmatpush.bf16.msra.mxu1 %v1834_v3  ;;  %247 = vst.msk [vmem:[#allocation2 + $0x60] sm:$0xff] %vm234_vm0, %v1911_v28  ;;  %v1821_v45 = vld [vmem:[%s1985_s9 + $0xb8] sm:$0xff]  ;;  %v300_v47 = vld [vmem:[#allocation2 + $0x8] sm:$0xff]  ;;  %v301_v48 = vld [vmem:[#allocation2 + $0x10] sm:$0xff] }
  0x1a   : > { %1848 = vmatpush.bf16.msra.mxu2 %v1834_v3  ;;  %1849 = vmatpush.bf16.msra.mxu3 %v1834_v3  ;;  %248 = vst.msk [vmem:[#allocation2 + $0x68] sm:$0xff] %vm234_vm0, %v1911_v28  ;;  %v302_v57 = vld [vmem:[#allocation2 + $0x18] sm:$0xff] }
  0x1b   : > { %249 = vst.msk [vmem:[#allocation2 + $0x70] sm:$0xff] %vm234_vm0, %v1911_v28 }
  0x1c   : > { %250 = vst.msk [vmem:[#allocation2 + $0x78] sm:$0xff] %vm234_vm0, %v1911_v28 }
  0x1d   : > { %687 = vmatpush.bf16.msra.mxu0 %v1833_v4  ;;  %1850 = vmatpush.bf16.msra.mxu1 %v1833_v4  ;;  %251 = vst.msk [vmem:[#allocation2 + $0x80] sm:$0xff] %vm234_vm0, %v1911_v28 }
  0x1e   : > { %1851 = vmatpush.bf16.msra.mxu2 %v1833_v4  ;;  %1852 = vmatpush.bf16.msra.mxu3 %v1833_v4  ;;  %252 = vst.msk [vmem:[#allocation2 + $0x88] sm:$0xff] %vm234_vm0, %v1911_v28 }
  0x1f   : > { %253 = vst.msk [vmem:[#allocation2 + $0x90] sm:$0xff] %vm234_vm0, %v1911_v28 }
  0x20   : > { %254 = vst.msk [vmem:[#allocation2 + $0x98] sm:$0xff] %vm234_vm0, %v1911_v28 }
  0x21   : > { %688 = vmatpush.bf16.msra.mxu0 %v1832_v5  ;;  %1853 = vmatpush.bf16.msra.mxu1 %v1832_v5  ;;  %255 = vst.msk [vmem:[#allocation2 + $0xa0] sm:$0xff] %vm234_vm0, %v1911_v28 }
  0x22   : > { %1854 = vmatpush.bf16.msra.mxu2 %v1832_v5  ;;  %1855 = vmatpush.bf16.msra.mxu3 %v1832_v5  ;;  %256 = vst.msk [vmem:[#allocation2 + $0xa8] sm:$0xff] %vm234_vm0, %v1911_v28 }
  0x23   : > { %257 = vst.msk [vmem:[#allocation2 + $0xb0] sm:$0xff] %vm234_vm0, %v1911_v28 }
  0x24   : > { %258 = vst.msk [vmem:[#allocation2 + $0xb8] sm:$0xff] %vm234_vm0, %v1911_v28  ;;  %v315_v50 = vld [vmem:[#allocation2 + $0x80] sm:$0xff] }
  0x25   : > { %689 = vmatpush.bf16.msra.mxu0 %v1831_v6  ;;  %1856 = vmatpush.bf16.msra.mxu1 %v1831_v6  ;;  %259 = vst.msk [vmem:[#allocation2 + $0xc0] sm:$0xff] %vm234_vm0, %v1911_v28  ;;  %v316_v52 = vld [vmem:[#allocation2 + $0x88] sm:$0xff] }
  0x26   : > { %1857 = vmatpush.bf16.msra.mxu2 %v1831_v6  ;;  %1858 = vmatpush.bf16.msra.mxu3 %v1831_v6  ;;  %260 = vst.msk [vmem:[#allocation2 + $0xc8] sm:$0xff] %vm234_vm0, %v1911_v28  ;;  %v317_v58 = vld [vmem:[#allocation2 + $0x90] sm:$0xff] }
  0x27   : > { %261 = vst.msk [vmem:[#allocation2 + $0xd0] sm:$0xff] %vm234_vm0, %v1911_v28  ;;  %v318_v62 = vld [vmem:[#allocation2 + $0x98] sm:$0xff] }
  0x28   : > { %262 = vst.msk [vmem:[#allocation2 + $0xd8] sm:$0xff] %vm234_vm0, %v1911_v28 }
  0x29   : > { %690 = vmatpush.bf16.msra.mxu0 %v1830_v7  ;;  %1859 = vmatpush.bf16.msra.mxu1 %v1830_v7  ;;  %263 = vst.msk [vmem:[#allocation2 + $0xe0] sm:$0xff] %vm234_vm0, %v1911_v28 }
  0x2a   : > { %1860 = vmatpush.bf16.msra.mxu2 %v1830_v7  ;;  %1861 = vmatpush.bf16.msra.mxu3 %v1830_v7  ;;  %264 = vst.msk [vmem:[#allocation2 + $0xe8] sm:$0xff] %vm234_vm0, %v1911_v28 }
  0x2b   : > { %265 = vst.msk [vmem:[#allocation2 + $0xf0] sm:$0xff] %vm234_vm0, %v1911_v28 }
  0x2c   : > { %691 = vmatmul.bf16.vlgmr.msra.gmra.mxu0 %v1798_v8  ;;  %731 = vmatmul.bf16.vlgmr.msra.gmra.mxu1 %v1806_v9  ;;  %266 = vst.msk [vmem:[#allocation2 + $0xf8] sm:$0xff] %vm234_vm0, %v1911_v28  ;;  %v303_v8 = vld [vmem:[#allocation2 + $0x20] sm:$0xff]  ;;  %v1828_v9 = vld [vmem:[%s1985_s9 + $0xf0] sm:$0xff] }
  0x2d   : > { %771 = vmatmul.bf16.vlgmr.msra.gmra.mxu2 %v1814_v12  ;;  %811 = vmatmul.bf16.vlgmr.msra.gmra.mxu3 %v1822_v19  ;;  %267 = vst.msk [vmem:[#allocation2 + $0x100] sm:$0xff] %vm234_vm0, %v1911_v28 }
  0x2e   : > { %268 = vst.msk [vmem:[#allocation2 + $0x108] sm:$0xff] %vm234_vm0, %v1911_v28 }
  0x2f   : > { %269 = vst.msk [vmem:[#allocation2 + $0x110] sm:$0xff] %vm234_vm0, %v1911_v28 }
  0x30   : > { %270 = vst.msk [vmem:[#allocation2 + $0x118] sm:$0xff] %vm234_vm0, %v1911_v28 }
  0x31   : > { %271 = vst.msk [vmem:[#allocation2 + $0x120] sm:$0xff] %vm234_vm0, %v1911_v28 }
  0x32   : > { %272 = vst.msk [vmem:[#allocation2 + $0x128] sm:$0xff] %vm234_vm0, %v1911_v28 }
  0x33   : > { %273 = vst.msk [vmem:[#allocation2 + $0x130] sm:$0xff] %vm234_vm0, %v1911_v28 }
  0x34   : > { %274 = vst.msk [vmem:[#allocation2 + $0x138] sm:$0xff] %vm234_vm0, %v1911_v28 }
  0x35   : > { %275 = vst.msk [vmem:[#allocation2 + $0x140] sm:$0xff] %vm234_vm0, %v1911_v28 }
  0x36   : > { %276 = vst.msk [vmem:[#allocation2 + $0x148] sm:$0xff] %vm234_vm0, %v1911_v28 }
  0x37   : > { %277 = vst.msk [vmem:[#allocation2 + $0x150] sm:$0xff] %vm234_vm0, %v1911_v28 }
  0x38   : > { %278 = vst.msk [vmem:[#allocation2 + $0x158] sm:$0xff] %vm234_vm0, %v1911_v28 }
  0x39   : > { %279 = vst.msk [vmem:[#allocation2 + $0x160] sm:$0xff] %vm234_vm0, %v1911_v28 }
  0x3a   : > { %280 = vst.msk [vmem:[#allocation2 + $0x168] sm:$0xff] %vm234_vm0, %v1911_v28 }
  0x3b   : > { %281 = vst.msk [vmem:[#allocation2 + $0x170] sm:$0xff] %vm234_vm0, %v1911_v28 }
  0x3c   : > { %696 = vmatmul.bf16.gmra.mxu0 %v1799_v10  ;;  %736 = vmatmul.bf16.gmra.mxu1 %v1807_v11  ;;  %282 = vst.msk [vmem:[#allocation2 + $0x178] sm:$0xff] %vm234_vm0, %v1911_v28 }
  0x3d   : > { %776 = vmatmul.bf16.gmra.mxu2 %v1815_v15  ;;  %816 = vmatmul.bf16.gmra.mxu3 %v1823_v23  ;;  %283 = vst.msk [vmem:[#allocation2 + $0x180] sm:$0xff] %vm234_vm0, %v1911_v28 }
  0x3e   : > { %284 = vst.msk [vmem:[#allocation2 + $0x188] sm:$0xff] %vm234_vm0, %v1911_v28 }
  0x3f   : > { %285 = vst.msk [vmem:[#allocation2 + $0x190] sm:$0xff] %vm234_vm0, %v1911_v28 }
  0x40   : > { %286 = vst.msk [vmem:[#allocation2 + $0x198] sm:$0xff] %vm234_vm0, %v1911_v28 }
  0x41   : > { %287 = vst.msk [vmem:[#allocation2 + $0x1a0] sm:$0xff] %vm234_vm0, %v1911_v28 }
  0x42   : > { %288 = vst.msk [vmem:[#allocation2 + $0x1a8] sm:$0xff] %vm234_vm0, %v1911_v28 }
  0x43   : > { %289 = vst.msk [vmem:[#allocation2 + $0x1b0] sm:$0xff] %vm234_vm0, %v1911_v28 }
  0x44   : > { %290 = vst.msk [vmem:[#allocation2 + $0x1b8] sm:$0xff] %vm234_vm0, %v1911_v28 }
  0x45   : > { %291 = vst.msk [vmem:[#allocation2 + $0x1c0] sm:$0xff] %vm234_vm0, %v1911_v28 }
  0x46   : > { %292 = vst.msk [vmem:[#allocation2 + $0x1c8] sm:$0xff] %vm234_vm0, %v1911_v28 }
  0x47   : > { %293 = vst.msk [vmem:[#allocation2 + $0x1d0] sm:$0xff] %vm234_vm0, %v1911_v28 }
  0x48   : > { %294 = vst.msk [vmem:[#allocation2 + $0x1d8] sm:$0xff] %vm234_vm0, %v1911_v28 }
  0x49   : > { %295 = vst.msk [vmem:[#allocation2 + $0x1e0] sm:$0xff] %vm234_vm0, %v1911_v28 }
  0x4a   : > { %296 = vst.msk [vmem:[#allocation2 + $0x1e8] sm:$0xff] %vm234_vm0, %v1911_v28 }
  0x4b   : > { %297 = vst.msk [vmem:[#allocation2 + $0x1f0] sm:$0xff] %vm234_vm0, %v1911_v28 }
  0x4c   : > { %701 = vmatmul.bf16.gmra.mxu0 %v1800_v13  ;;  %741 = vmatmul.bf16.gmra.mxu1 %v1808_v14  ;;  %298 = vst.msk [vmem:[#allocation2 + $0x1f8] sm:$0xff] %vm234_vm0, %v1911_v28 }
  0x4d   : > { %781 = vmatmul.bf16.gmra.mxu2 %v1816_v18  ;;  %821 = vmatmul.bf16.gmra.mxu3 %v1824_v27 }
  0x5c   : > { %706 = vmatmul.bf16.gmra.mxu0 %v1801_v16  ;;  %746 = vmatmul.bf16.gmra.mxu1 %v1809_v17 }
  0x5d   : > { %786 = vmatmul.bf16.gmra.mxu2 %v1817_v22  ;;  %826 = vmatmul.bf16.gmra.mxu3 %v1825_v32 }
  0x6c   : > { %711 = vmatmul.bf16.gmra.mxu0 %v1802_v20  ;;  %751 = vmatmul.bf16.gmra.mxu1 %v1810_v21 }
  0x6d   : > { %791 = vmatmul.bf16.gmra.mxu2 %v1818_v26  ;;  %831 = vmatmul.bf16.gmra.mxu3 %v1826_v37 }
  0x7c   : > { %716 = vmatmul.bf16.gmra.mxu0 %v1803_v24  ;;  %756 = vmatmul.bf16.gmra.mxu1 %v1811_v25 }
  0x7d   : > { %796 = vmatmul.bf16.gmra.mxu2 %v1819_v31  ;;  %836 = vmatmul.bf16.gmra.mxu3 %v1827_v46 }
  0x8c   : > { %721 = vmatmul.bf16.gmra.mxu0 %v1804_v29  ;;  %761 = vmatmul.bf16.gmra.mxu1 %v1812_v30 }
  0x8d   : > { %801 = vmatmul.bf16.gmra.mxu2 %v1820_v36  ;;  %841 = vmatmul.bf16.gmra.mxu3 %v1828_v9 }
  0x9c   : > { %726 = vmatmul.bf16.gmra.mxu0 %v1805_v33  ;;  %766 = vmatmul.bf16.gmra.mxu1 %v1813_v34 }
  0x9d   : > { %806 = vmatmul.bf16.gmra.mxu2 %v1821_v45 }
  0xa9   : > { %v692_v38 = vpop.f32.mrf.mxu0  ;;  %v732_v40 = vpop.f32.mrf.mxu1 }
  0xaa   : > { %v852_v39 = vadd.f32 %v692_v38, %v299_v35  ;;  %v868_v55 = vadd.f32 %v732_v40, %v315_v50  ;;  %v304_v38 = vld [vmem:[#allocation2 + $0x28] sm:$0xff]  ;;  %v331_v40 = vld [vmem:[#allocation2 + $0x100] sm:$0xff] }
  0xab   : > { %v320_v50 = vld [vmem:[#allocation2 + $0xa8] sm:$0xff] }
  0xac   : > { %917 = vst.msk [vmem:[#allocation2] sm:$0xff] %vm234_vm0, %v852_v39  ;;  %v319_v39 = vld [vmem:[#allocation2 + $0xa0] sm:$0xff] }
  0xad   : > { %933 = vst.msk [vmem:[#allocation2 + $0x80] sm:$0xff] %vm234_vm0, %v868_v55 }
  0xb0   : > { %v772_v32 = vpop.f32.mrf.mxu2 }
  0xb1   : > { %v694_v41 = vpop.f32.mrf.mxu0  ;;  %v734_v44 = vpop.f32.mrf.mxu1 }
  0xb2   : > { %v853_v51 = vadd.f32 %v694_v41, %v300_v47  ;;  %v869_v56 = vadd.f32 %v734_v44, %v316_v52  ;;  %v884_v44 = vadd.f32 %v772_v32, %v331_v40  ;;  %v332_v52 = vld [vmem:[#allocation2 + $0x108] sm:$0xff] }
  0xb3   : > { %v984_v42 = vld [vmem:[#allocation2] sm:$0xff] }
  0xb4   : > { %v1382_v43 = vpack.c.bf16 %v984_v42, %v984_v42  ;;  %918 = vst.msk [vmem:[#allocation2 + $0x8] sm:$0xff] %vm234_vm0, %v853_v51  ;;  %v1181_v0 = vmul.f32 %v984_v42, %v984_v42  ;;  %v1048_v3 = vsel %vm234_vm0, %v984_v42, 0.0  ;;  %v2166_v14 = vld [vmem:[#allocation2 + $0x80] sm:$0xff] }
  0xb5   : > { %934 = vst.msk [vmem:[#allocation2 + $0x88] sm:$0xff] %vm234_vm0, %v869_v56  ;;  %v1398_v17 = vpack.c.bf16 %v2166_v14, %v2166_v14 }
  0xb6   : > { %1447 = vst.msk [vmem:[%s2127_s16] sm:$0xf] %vm1446_vm1, %v1382_v43  ;;  %v1245_v15 = vsel %vm234_vm0, %v1181_v0, 0.0 }
  0xb7   : > { %1463 = vst.msk [vmem:[%s2127_s16 + $0x40] sm:$0xf] %vm1446_vm1, %v1398_v17 }
  0xb8   : > { %949 = vst.msk [vmem:[#allocation2 + $0x100] sm:$0xff] %vm234_vm0, %v884_v44 }
  0xb9   : > { %v697_v49 = vpop.f32.mrf.mxu0  ;;  %v737_v54 = vpop.f32.mrf.mxu1 }
  0xba   : > { %v854_v53 = vadd.f32 %v697_v49, %v301_v48  ;;  %v870_v59 = vadd.f32 %v737_v54, %v317_v58 }
  0xbb   : > { %v985_v2 = vld [vmem:[#allocation2 + $0x8] sm:$0xff] }
  0xbc   : > { %919 = vst.msk [vmem:[#allocation2 + $0x10] sm:$0xff] %vm234_vm0, %v854_v53  ;;  %v1049_v4 = vsel %vm234_vm0, %v985_v2, 0.0  ;;  %v1182_v5 = vmul.f32 %v985_v2, %v985_v2  ;;  %v1383_v6 = vpack.c.bf16 %v985_v2, %v985_v2  ;;  %v2174_v19 = vld [vmem:[#allocation2 + $0x88] sm:$0xff]  ;;  %v774_v53 = vpop.f32.mrf.mxu2 }
  0xbd   : > { %935 = vst.msk [vmem:[#allocation2 + $0x90] sm:$0xff] %vm234_vm0, %v870_v59  ;;  %v1050_v10 = vadd.f32 %v1049_v4, %v1048_v3  ;;  %v1399_v25 = vpack.c.bf16 %v2174_v19, %v2174_v19  ;;  %v885_v56 = vadd.f32 %v774_v53, %v332_v52  ;;  %v305_v59 = vld [vmem:[#allocation2 + $0x30] sm:$0xff] }
  0xbe   : > { %v1246_v16 = vsel %vm234_vm0, %v1182_v5, 0.0  ;;  %1448 = vst.msk [vmem:[%s2127_s16 + $0x4] sm:$0xf] %vm1446_vm1, %v1383_v6 }
  0xbf   : > { %v1247_v20 = vadd.f32 %v1246_v16, %v1245_v15  ;;  %1464 = vst.msk [vmem:[%s2127_s16 + $0x44] sm:$0xf] %vm1446_vm1, %v1399_v25  ;;  %v2225_v3 = vld [vmem:[#allocation2 + $0x100] sm:$0xff] }
  0xc0   : > { %950 = vst.msk [vmem:[#allocation2 + $0x108] sm:$0xff] %vm234_vm0, %v885_v56  ;;  %v1414_v6 = vpack.c.bf16 %v2225_v3, %v2225_v3 }
  0xc1   : > { %v699_v60 = vpop.f32.mrf.mxu0  ;;  %v739_v63 = vpop.f32.mrf.mxu1 }
  0xc2   : > { %v855_v61 = vadd.f32 %v699_v60, %v302_v57  ;;  %v871_v1 = vadd.f32 %v739_v63, %v318_v62  ;;  %v1829_v60 = vld [vmem:[%s1985_s9 + $0xf8] sm:$0xff]  ;;  %1479 = vst.msk [vmem:[%s2127_s16 + $0x80] sm:$0xf] %vm1446_vm1, %v1414_v6 }
  0xc3   : > { %v986_v7 = vld [vmem:[#allocation2 + $0x10] sm:$0xff]  ;;  %846 = vmatmul.bf16.gmra.mxu3 %v1829_v60  ;;  %v336_v60 = vld [vmem:[#allocation2 + $0x128] sm:$0xff] }
  0xc4   : > { %920 = vst.msk [vmem:[#allocation2 + $0x18] sm:$0xff] %vm234_vm0, %v855_v61  ;;  %v1051_v11 = vsel %vm234_vm0, %v986_v7, 0.0  ;;  %v1183_v12 = vmul.f32 %v986_v7, %v986_v7  ;;  %v1384_v13 = vpack.c.bf16 %v986_v7, %v986_v7  ;;  %v2183_v26 = vld [vmem:[#allocation2 + $0x90] sm:$0xff]  ;;  %v777_v5 = vpop.f32.mrf.mxu2 }
  0xc5   : > { %936 = vst.msk [vmem:[#allocation2 + $0x98] sm:$0xff] %vm234_vm0, %v871_v1  ;;  %v1052_v21 = vadd.f32 %v1051_v11, %v1050_v10  ;;  %v1400_v35 = vpack.c.bf16 %v2183_v26, %v2183_v26  ;;  %v321_v10 = vld [vmem:[#allocation2 + $0xb0] sm:$0xff] }
  0xc6   : > { %v1248_v22 = vsel %vm234_vm0, %v1183_v12, 0.0  ;;  %1449 = vst.msk [vmem:[%s2127_s16 + $0x8] sm:$0xf] %vm1446_vm1, %v1384_v13  ;;  %v333_v13 = vld [vmem:[#allocation2 + $0x110] sm:$0xff] }
  0xc7   : > { %v1249_v27 = vadd.f32 %v1248_v22, %v1247_v20  ;;  %1465 = vst.msk [vmem:[%s2127_s16 + $0x48] sm:$0xf] %vm1446_vm1, %v1400_v35  ;;  %v2235_v9 = vld [vmem:[#allocation2 + $0x108] sm:$0xff]  ;;  %v886_v20 = vadd.f32 %v777_v5, %v333_v13  ;;  %v322_v22 = vld [vmem:[#allocation2 + $0xb8] sm:$0xff]  ;;  %v309_v5 = vld [vmem:[#allocation2 + $0x50] sm:$0xff] }
  0xc8   : > { %v1415_v12 = vpack.c.bf16 %v2235_v9, %v2235_v9 }
  0xc9   : > { %v702_v18 = vpop.f32.mrf.mxu0  ;;  %v742_v31 = vpop.f32.mrf.mxu1  ;;  %951 = vst.msk [vmem:[#allocation2 + $0x110] sm:$0xff] %vm234_vm0, %v886_v20 }
  0xca   : > { %v856_v23 = vadd.f32 %v702_v18, %v303_v8  ;;  %v872_v42 = vadd.f32 %v742_v31, %v319_v39  ;;  %v306_v8 = vld [vmem:[#allocation2 + $0x38] sm:$0xff]  ;;  %1480 = vst.msk [vmem:[%s2127_s16 + $0x84] sm:$0xf] %vm1446_vm1, %v1415_v12  ;;  %v812_v39 = vpop.f32.mrf.mxu3 }
  0xcb   : > { %v987_v24 = vld [vmem:[#allocation2 + $0x18] sm:$0xff] }
  0xcc   : > { %v1053_v28 = vsel %vm234_vm0, %v987_v24, 0.0  ;;  %v1184_v29 = vmul.f32 %v987_v24, %v987_v24  ;;  %v1385_v30 = vpack.c.bf16 %v987_v24, %v987_v24  ;;  %921 = vst.msk [vmem:[#allocation2 + $0x20] sm:$0xff] %vm234_vm0, %v856_v23  ;;  %v2194_v36 = vld [vmem:[#allocation2 + $0x98] sm:$0xff]  ;;  %v779_v25 = vpop.f32.mrf.mxu2 }
  0xcd   : > { %v1054_v33 = vadd.f32 %v1053_v28, %v1052_v21  ;;  %v1401_v41 = vpack.c.bf16 %v2194_v36, %v2194_v36  ;;  %937 = vst.msk [vmem:[#allocation2 + $0xa0] sm:$0xff] %vm234_vm0, %v872_v42  ;;  %v334_v24 = vld [vmem:[#allocation2 + $0x118] sm:$0xff] }
  0xce   : > { %v1250_v34 = vsel %vm234_vm0, %v1184_v29, 0.0  ;;  %1450 = vst.msk [vmem:[%s2127_s16 + $0xc] sm:$0xf] %vm1446_vm1, %v1385_v30  ;;  %v887_v28 = vadd.f32 %v779_v25, %v334_v24  ;;  %v307_v29 = vld [vmem:[#allocation2 + $0x40] sm:$0xff] }
  0xcf   : > { %v1251_v37 = vadd.f32 %v1250_v34, %v1249_v27  ;;  %1466 = vst.msk [vmem:[%s2127_s16 + $0x4c] sm:$0xf] %vm1446_vm1, %v1401_v41  ;;  %v308_v41 = vld [vmem:[#allocation2 + $0x48] sm:$0xff] }
  0xd0   : > { %952 = vst.msk [vmem:[#allocation2 + $0x118] sm:$0xff] %vm234_vm0, %v887_v28  ;;  %v2269_v40 = vld [vmem:[#allocation2 + $0x110] sm:$0xff] }
  0xd1   : > { %v704_v43 = vpop.f32.mrf.mxu0  ;;  %v744_v51 = vpop.f32.mrf.mxu1 }
  0xd2   : > { %v857_v45 = vadd.f32 %v704_v43, %v304_v38  ;;  %v873_v55 = vadd.f32 %v744_v51, %v320_v50  ;;  %v1416_v43 = vpack.c.bf16 %v2269_v40, %v2269_v40  ;;  %v347_v51 = vld [vmem:[#allocation2 + $0x180] sm:$0xff] }
  0xd3   : > { %v988_v46 = vld [vmem:[#allocation2 + $0x20] sm:$0xff] }
  0xd4   : > { %v1055_v47 = vsel %vm234_vm0, %v988_v46, 0.0  ;;  %v1185_v48 = vmul.f32 %v988_v46, %v988_v46  ;;  %v1386_v49 = vpack.c.bf16 %v988_v46, %v988_v46  ;;  %922 = vst.msk [vmem:[#allocation2 + $0x28] sm:$0xff] %vm234_vm0, %v857_v45  ;;  %v2216_v63 = vld [vmem:[#allocation2 + $0xa0] sm:$0xff] }
  0xd5   : > { %v2205_v54 = vadd.f32 %v1055_v47, %v1054_v33  ;;  %938 = vst.msk [vmem:[#allocation2 + $0xa8] sm:$0xff] %vm234_vm0, %v873_v55  ;;  %v1402_v1 = vpack.c.bf16 %v2216_v63, %v2216_v63  ;;  %v323_v46 = vld [vmem:[#allocation2 + $0xc0] sm:$0xff] }
  0xd6   : > { %v1252_v57 = vsel %vm234_vm0, %v1185_v48, 0.0  ;;  %1451 = vst.msk [vmem:[%s2127_s16 + $0x10] sm:$0xf] %vm1446_vm1, %v1386_v49  ;;  %v335_v49 = vld [vmem:[#allocation2 + $0x120] sm:$0xff] }
  0xd7   : > { %v2211_v58 = vadd.f32 %v1252_v57, %v1251_v37  ;;  %1467 = vst.msk [vmem:[%s2127_s16 + $0x50] sm:$0xf] %vm1446_vm1, %v1402_v1  ;;  %v782_v37 = vpop.f32.mrf.mxu2  ;;  %v2279_v45 = vld [vmem:[#allocation2 + $0x118] sm:$0xff]  ;;  %v324_v57 = vld [vmem:[#allocation2 + $0xc8] sm:$0xff]  ;;  %v814_v1 = vpop.f32.mrf.mxu3 }
  0xd8   : > { %v1417_v48 = vpack.c.bf16 %v2279_v45, %v2279_v45  ;;  %1481 = vst.msk [vmem:[%s2127_s16 + $0x88] sm:$0xf] %vm1446_vm1, %v1416_v43  ;;  %v888_v56 = vadd.f32 %v782_v37, %v335_v49  ;;  %v349_v43 = vld [vmem:[#allocation2 + $0x190] sm:$0xff] }
  0xd9   : > { %v707_v61 = vpop.f32.mrf.mxu0  ;;  %v747_v4 = vpop.f32.mrf.mxu1 }
  0xda   : > { %v858_v62 = vadd.f32 %v707_v61, %v305_v59  ;;  %v874_v16 = vadd.f32 %v747_v4, %v321_v10  ;;  %1482 = vst.msk [vmem:[%s2127_s16 + $0x8c] sm:$0xf] %vm1446_vm1, %v1417_v48  ;;  %v348_v4 = vld [vmem:[#allocation2 + $0x188] sm:$0xff] }
  0xdb   : > { %v2218_v0 = vld [vmem:[#allocation2 + $0x28] sm:$0xff]  ;;  %953 = vst.msk [vmem:[#allocation2 + $0x120] sm:$0xff] %vm234_vm0, %v888_v56  ;;  %v901_v10 = vadd.f32 %v814_v1, %v348_v4 }
  0xdc   : > { %v1387_v2 = vpack.c.bf16 %v2218_v0, %v2218_v0  ;;  %923 = vst.msk [vmem:[#allocation2 + $0x30] sm:$0xff] %vm234_vm0, %v858_v62  ;;  %v2233_v7 = vld [vmem:[#allocation2 + $0xa8] sm:$0xff]  ;;  %v900_v62 = vadd.f32 %v812_v39, %v347_v51 }
  0xdd   : > { %v1403_v11 = vpack.c.bf16 %v2233_v7, %v2233_v7  ;;  %939 = vst.msk [vmem:[#allocation2 + $0xb0] sm:$0xff] %vm234_vm0, %v874_v16 }
  0xde   : > { %1452 = vst.msk [vmem:[%s2127_s16 + $0x14] sm:$0xf] %vm1446_vm1, %v1387_v2 }
  0xdf   : > { %1468 = vst.msk [vmem:[%s2127_s16 + $0x54] sm:$0xf] %vm1446_vm1, %v1403_v11  ;;  %v784_v61 = vpop.f32.mrf.mxu2 }
  0xe0   : > { %v889_v6 = vadd.f32 %v784_v61, %v336_v60  ;;  %965 = vst.msk [vmem:[#allocation2 + $0x180] sm:$0xff] %vm234_vm0, %v900_v62  ;;  %v350_v61 = vld [vmem:[#allocation2 + $0x198] sm:$0xff] }
  0xe1   : > { %v709_v15 = vpop.f32.mrf.mxu0  ;;  %v749_v23 = vpop.f32.mrf.mxu1  ;;  %966 = vst.msk [vmem:[#allocation2 + $0x188] sm:$0xff] %vm234_vm0, %v901_v10 }
  0xe2   : > { %v859_v17 = vadd.f32 %v709_v15, %v306_v8  ;;  %v875_v27 = vadd.f32 %v749_v23, %v322_v22  ;;  %954 = vst.msk [vmem:[#allocation2 + $0x128] sm:$0xff] %vm234_vm0, %v889_v6  ;;  %v2313_v23 = vld [vmem:[#allocation2 + $0x120] sm:$0xff] }
  0xe3   : > { %v2245_v18 = vld [vmem:[#allocation2 + $0x30] sm:$0xff]  ;;  %v1418_v24 = vpack.c.bf16 %v2313_v23, %v2313_v23 }
  0xe4   : > { %v1388_v21 = vpack.c.bf16 %v2245_v18, %v2245_v18  ;;  %924 = vst.msk [vmem:[#allocation2 + $0x38] sm:$0xff] %vm234_vm0, %v859_v17  ;;  %v2263_v34 = vld [vmem:[#allocation2 + $0xb0] sm:$0xff]  ;;  %v817_v17 = vpop.f32.mrf.mxu3 }
  0xe5   : > { %940 = vst.msk [vmem:[#allocation2 + $0xb8] sm:$0xff] %vm234_vm0, %v875_v27  ;;  %v1404_v38 = vpack.c.bf16 %v2263_v34, %v2263_v34  ;;  %v902_v56 = vadd.f32 %v817_v17, %v349_v43 }
  0xe6   : > { %1453 = vst.msk [vmem:[%s2127_s16 + $0x18] sm:$0xf] %vm1446_vm1, %v1388_v21  ;;  %v310_v21 = vld [vmem:[#allocation2 + $0x58] sm:$0xff] }
  0xe7   : > { %1469 = vst.msk [vmem:[%s2127_s16 + $0x58] sm:$0xf] %vm1446_vm1, %v1404_v38  ;;  %v787_v16 = vpop.f32.mrf.mxu2  ;;  %v2317_v25 = vld [vmem:[#allocation2 + $0x180] sm:$0xff]  ;;  %v337_v38 = vld [vmem:[#allocation2 + $0x130] sm:$0xff] }
  0xe8   : > { %v1430_v28 = vpack.c.bf16 %v2317_v25, %v2317_v25  ;;  %1483 = vst.msk [vmem:[%s2127_s16 + $0x90] sm:$0xf] %vm1446_vm1, %v1418_v24  ;;  %v890_v51 = vadd.f32 %v787_v16, %v337_v38  ;;  %v327_v38 = vld [vmem:[#allocation2 + $0xe0] sm:$0xff] }
  0xe9   : > { %v712_v30 = vpop.f32.mrf.mxu0  ;;  %v752_v35 = vpop.f32.mrf.mxu1  ;;  %967 = vst.msk [vmem:[#allocation2 + $0x190] sm:$0xff] %vm234_vm0, %v902_v56 }
  0xea   : > { %v860_v31 = vadd.f32 %v712_v30, %v307_v29  ;;  %v876_v53 = vadd.f32 %v752_v35, %v323_v46  ;;  %1495 = vst.msk [vmem:[%s2127_s16 + $0xc0] sm:$0xf] %vm1446_vm1, %v1430_v28 }
  0xeb   : > { %v2258_v32 = vld [vmem:[#allocation2 + $0x38] sm:$0xff]  ;;  %955 = vst.msk [vmem:[#allocation2 + $0x130] sm:$0xff] %vm234_vm0, %v890_v51  ;;  %v339_v51 = vld [vmem:[#allocation2 + $0x140] sm:$0xff] }
  0xec   : > { %v1389_v33 = vpack.c.bf16 %v2258_v32, %v2258_v32  ;;  %925 = vst.msk [vmem:[#allocation2 + $0x40] sm:$0xff] %vm234_vm0, %v860_v31  ;;  %v2273_v42 = vld [vmem:[#allocation2 + $0xb8] sm:$0xff]  ;;  %v2327_v31 = vld [vmem:[#allocation2 + $0x128] sm:$0xff]  ;;  %v819_v49 = vpop.f32.mrf.mxu3 }
  0xed   : > { %v1405_v44 = vpack.c.bf16 %v2273_v42, %v2273_v42  ;;  %941 = vst.msk [vmem:[#allocation2 + $0xc0] sm:$0xff] %vm234_vm0, %v876_v53  ;;  %v326_v53 = vld [vmem:[#allocation2 + $0xd8] sm:$0xff] }
  0xee   : > { %1454 = vst.msk [vmem:[%s2127_s16 + $0x1c] sm:$0xf] %vm1446_vm1, %v1389_v33  ;;  %v325_v33 = vld [vmem:[#allocation2 + $0xd0] sm:$0xff] }
  0xef   : > { %1470 = vst.msk [vmem:[%s2127_s16 + $0x5c] sm:$0xf] %vm1446_vm1, %v1405_v44  ;;  %v789_v46 = vpop.f32.mrf.mxu2 }
  0xf0   : > { %v2373_v24 = vld [vmem:[#allocation2 + $0x190] sm:$0xff] }
  0xf1   : > { %v714_v47 = vpop.f32.mrf.mxu0  ;;  %v754_v59 = vpop.f32.mrf.mxu1  ;;  %v1432_v28 = vpack.c.bf16 %v2373_v24, %v2373_v24 }
  0xf2   : > { %v861_v50 = vadd.f32 %v714_v47, %v308_v41  ;;  %v877_v2 = vadd.f32 %v754_v59, %v324_v57  ;;  %v2338_v41 = vld [vmem:[#allocation2 + $0x188] sm:$0xff]  ;;  %v1419_v47 = vpack.c.bf16 %v2327_v31, %v2327_v31  ;;  %v338_v57 = vld [vmem:[#allocation2 + $0x138] sm:$0xff]  ;;  %v2369_v17 = vld [vmem:[#allocation2 + $0x130] sm:$0xff] }
  0xf3   : > { %v2285_v52 = vld [vmem:[#allocation2 + $0x40] sm:$0xff]  ;;  %1497 = vst.msk [vmem:[%s2127_s16 + $0xc8] sm:$0xf] %vm1446_vm1, %v1432_v28 }
  0xf4   : > { %v1390_v55 = vpack.c.bf16 %v2285_v52, %v2285_v52  ;;  %926 = vst.msk [vmem:[#allocation2 + $0x48] sm:$0xff] %vm234_vm0, %v861_v50  ;;  %v2309_v20 = vld [vmem:[#allocation2 + $0xc0] sm:$0xff]  ;;  %v1431_v50 = vpack.c.bf16 %v2338_v41, %v2338_v41  ;;  %v822_v10 = vpop.f32.mrf.mxu3 }
  0xf5   : > { %942 = vst.msk [vmem:[#allocation2 + $0xc8] sm:$0xff] %vm234_vm0, %v877_v2  ;;  %v1406_v22 = vpack.c.bf16 %v2309_v20, %v2309_v20  ;;  %v891_v2 = vadd.f32 %v789_v46, %v338_v57  ;;  %v1057_v46 = vsel %vm234_vm0, %v2218_v0, 0.0  ;;  %v1059_v57 = vsel %vm234_vm0, %v2245_v18, 0.0 }
  0xf6   : > { %1455 = vst.msk [vmem:[%s2127_s16 + $0x20] sm:$0xf] %vm1446_vm1, %v1390_v55  ;;  %v311_v55 = vld [vmem:[#allocation2 + $0x60] sm:$0xff] }
  0xf7   : > { %1471 = vst.msk [vmem:[%s2127_s16 + $0x60] sm:$0xf] %vm1446_vm1, %v1406_v22  ;;  %v1420_v22 = vpack.c.bf16 %v2369_v17, %v2369_v17 }
  0xf8   : > { %1484 = vst.msk [vmem:[%s2127_s16 + $0x94] sm:$0xf] %vm1446_vm1, %v1419_v47  ;;  %v1187_v47 = vmul.f32 %v2245_v18, %v2245_v18  ;;  %v1061_v18 = vsel %vm234_vm0, %v2258_v32, 0.0 }
  0xf9   : > { %v717_v8 = vpop.f32.mrf.mxu0  ;;  %v757_v15 = vpop.f32.mrf.mxu1  ;;  %1496 = vst.msk [vmem:[%s2127_s16 + $0xc4] sm:$0xf] %vm1446_vm1, %v1431_v50 }
  0xfa   : > { %v862_v11 = vadd.f32 %v717_v8, %v309_v5  ;;  %v878_v48 = vadd.f32 %v757_v15, %v325_v33  ;;  %v903_v5 = vadd.f32 %v819_v49, %v350_v61  ;;  %v792_v8 = vpop.f32.mrf.mxu2  ;;  %956 = vst.msk [vmem:[#allocation2 + $0x138] sm:$0xff] %vm234_vm0, %v891_v2  ;;  %v351_v61 = vld [vmem:[#allocation2 + $0x1a0] sm:$0xff] }
  0xfb   : > { %v2300_v12 = vld [vmem:[#allocation2 + $0x48] sm:$0xff]  ;;  %1485 = vst.msk [vmem:[%s2127_s16 + $0x98] sm:$0xf] %vm1446_vm1, %v1420_v22 }
  0xfc   : > { %v1391_v13 = vpack.c.bf16 %v2300_v12, %v2300_v12  ;;  %927 = vst.msk [vmem:[#allocation2 + $0x50] sm:$0xff] %vm234_vm0, %v862_v11  ;;  %v2323_v29 = vld [vmem:[#allocation2 + $0xc8] sm:$0xff] }
  0xfd   : > { %v1407_v37 = vpack.c.bf16 %v2323_v29, %v2323_v29  ;;  %943 = vst.msk [vmem:[#allocation2 + $0xd0] sm:$0xff] %vm234_vm0, %v878_v48  ;;  %v312_v11 = vld [vmem:[#allocation2 + $0x68] sm:$0xff] }
  0xfe   : > { %1456 = vst.msk [vmem:[%s2127_s16 + $0x24] sm:$0xf] %vm1446_vm1, %v1391_v13 }
  0xff   : > { %1472 = vst.msk [vmem:[%s2127_s16 + $0x64] sm:$0xf] %vm1446_vm1, %v1407_v37 }
 0x100   : > { %968 = vst.msk [vmem:[#allocation2 + $0x198] sm:$0xff] %vm234_vm0, %v903_v5  ;;  %v328_v5 = vld [vmem:[#allocation2 + $0xe8] sm:$0xff] }
 0x101   : > { %v719_v27 = vpop.f32.mrf.mxu0  ;;  %v759_v44 = vpop.f32.mrf.mxu1  ;;  %v2398_v49 = vld [vmem:[#allocation2 + $0x138] sm:$0xff] }
 0x102   : > { %v863_v30 = vadd.f32 %v719_v27, %v310_v21  ;;  %v879_v60 = vadd.f32 %v759_v44, %v326_v53  ;;  %v824_v44 = vpop.f32.mrf.mxu3  ;;  %v1188_v53 = vmul.f32 %v2258_v32, %v2258_v32  ;;  %v1063_v32 = vsel %vm234_vm0, %v2285_v52, 0.0 }
 0x103   : > { %v2329_v35 = vld [vmem:[#allocation2 + $0x50] sm:$0xff] }
 0x104   : > { %v1392_v39 = vpack.c.bf16 %v2329_v35, %v2329_v35  ;;  %928 = vst.msk [vmem:[#allocation2 + $0x58] sm:$0xff] %vm234_vm0, %v863_v30  ;;  %v2364_v13 = vld [vmem:[#allocation2 + $0xd0] sm:$0xff]  ;;  %v1186_v30 = vmul.f32 %v2218_v0, %v2218_v0  ;;  %v1258_v22 = vsel %vm234_vm0, %v1188_v53, 0.0  ;;  %v1191_v53 = vmul.f32 %v2329_v35, %v2329_v35 }
 0x105   : > { %944 = vst.msk [vmem:[#allocation2 + $0xd8] sm:$0xff] %vm234_vm0, %v879_v60  ;;  %v1408_v16 = vpack.c.bf16 %v2364_v13, %v2364_v13 }
 0x106   : > { %1457 = vst.msk [vmem:[%s2127_s16 + $0x28] sm:$0xf] %vm1446_vm1, %v1392_v39  ;;  %v794_v39 = vpop.f32.mrf.mxu2  ;;  %v1254_v0 = vsel %vm234_vm0, %v1186_v30, 0.0  ;;  %v352_v30 = vld [vmem:[#allocation2 + $0x1a8] sm:$0xff] }
 0x107   : > { %1473 = vst.msk [vmem:[%s2127_s16 + $0x68] sm:$0xf] %vm1446_vm1, %v1408_v16  ;;  %v2404_v56 = vld [vmem:[#allocation2 + $0x198] sm:$0xff]  ;;  %v340_v16 = vld [vmem:[#allocation2 + $0x148] sm:$0xff] }
 0x108   : > { %v1433_v60 = vpack.c.bf16 %v2404_v56, %v2404_v56 }
 0x109   : > { %v722_v59 = vpop.f32.mrf.mxu0  ;;  %v762_v6 = vpop.f32.mrf.mxu1 }
 0x10a   : > { %v864_v62 = vadd.f32 %v722_v59, %v311_v55  ;;  %v880_v50 = vadd.f32 %v762_v6, %v327_v38  ;;  %v313_v55 = vld [vmem:[#allocation2 + $0x70] sm:$0xff]  ;;  %v1421_v59 = vpack.c.bf16 %v2398_v49, %v2398_v49  ;;  %v1256_v6 = vsel %vm234_vm0, %v1187_v47, 0.0  ;;  %1498 = vst.msk [vmem:[%s2127_s16 + $0xcc] sm:$0xf] %vm1446_vm1, %v1433_v60 }
 0x10b   : > { %v2354_v1 = vld [vmem:[#allocation2 + $0x58] sm:$0xff]  ;;  %v1067_v60 = vsel %vm234_vm0, %v2329_v35, 0.0  ;;  %v1264_v35 = vsel %vm234_vm0, %v1191_v53, 0.0 }
 0x10c   : > { %v1393_v4 = vpack.c.bf16 %v2354_v1, %v2354_v1  ;;  %929 = vst.msk [vmem:[#allocation2 + $0x60] sm:$0xff] %vm234_vm0, %v864_v62  ;;  %v2386_v37 = vld [vmem:[#allocation2 + $0xd8] sm:$0xff]  ;;  %v1058_v62 = vadd.f32 %v1057_v46, %v2205_v54 }
 0x10d   : > { %v1409_v48 = vpack.c.bf16 %v2386_v37, %v2386_v37  ;;  %945 = vst.msk [vmem:[#allocation2 + $0xe0] sm:$0xff] %vm234_vm0, %v880_v50  ;;  %v893_v50 = vadd.f32 %v794_v39, %v340_v16 }
 0x10e   : > { %1458 = vst.msk [vmem:[%s2127_s16 + $0x2c] sm:$0xf] %vm1446_vm1, %v1393_v4  ;;  %v892_v4 = vadd.f32 %v792_v8, %v339_v51  ;;  %v1060_v54 = vadd.f32 %v1059_v57, %v1058_v62  ;;  %v904_v8 = vadd.f32 %v822_v10, %v351_v61  ;;  %v2434_v51 = vpop.f32.mrf.mxu3  ;;  %v314_v57 = vld [vmem:[#allocation2 + $0x78] sm:$0xff] }
 0x10f   : > { %1474 = vst.msk [vmem:[%s2127_s16 + $0x6c] sm:$0xf] %vm1446_vm1, %v1409_v48 }
 0x110   : > { %1486 = vst.msk [vmem:[%s2127_s16 + $0x9c] sm:$0xf] %vm1446_vm1, %v1421_v59  ;;  %v1062_v48 = vadd.f32 %v1061_v18, %v1060_v54 }
 0x111   : > { %v724_v15 = vpop.f32.mrf.mxu0  ;;  %v764_v43 = vpop.f32.mrf.mxu1  ;;  %957 = vst.msk [vmem:[#allocation2 + $0x140] sm:$0xff] %vm234_vm0, %v892_v4 }
 0x112   : > { %v865_v21 = vadd.f32 %v724_v15, %v312_v11  ;;  %v1189_v11 = vmul.f32 %v2285_v52, %v2285_v52  ;;  %v881_v46 = vadd.f32 %v764_v43, %v328_v5  ;;  %v1065_v52 = vsel %vm234_vm0, %v2300_v12, 0.0  ;;  %969 = vst.msk [vmem:[#allocation2 + $0x1a0] sm:$0xff] %vm234_vm0, %v904_v8 }
 0x113   : > { %v2375_v27 = vld [vmem:[#allocation2 + $0x60] sm:$0xff]  ;;  %958 = vst.msk [vmem:[#allocation2 + $0x148] sm:$0xff] %vm234_vm0, %v893_v50 }
 0x114   : > { %v1394_v33 = vpack.c.bf16 %v2375_v27, %v2375_v27  ;;  %930 = vst.msk [vmem:[#allocation2 + $0x68] sm:$0xff] %vm234_vm0, %v865_v21  ;;  %v1255_v21 = vadd.f32 %v1254_v0, %v2211_v58  ;;  %v797_v58 = vpop.f32.mrf.mxu2  ;;  %v1260_v10 = vsel %vm234_vm0, %v1189_v11, 0.0  ;;  %v1064_v0 = vadd.f32 %v1063_v32, %v1062_v48  ;;  %v2449_v61 = vld [vmem:[#allocation2 + $0xe0] sm:$0xff]  ;;  %v341_v32 = vld [vmem:[#allocation2 + $0x150] sm:$0xff] }
 0x115   : > { %946 = vst.msk [vmem:[#allocation2 + $0xe8] sm:$0xff] %vm234_vm0, %v881_v46  ;;  %v1410_v5 = vpack.c.bf16 %v2449_v61, %v2449_v61  ;;  %v1071_v54 = vsel %vm234_vm0, %v2375_v27, 0.0 }
 0x116   : > { %1459 = vst.msk [vmem:[%s2127_s16 + $0x30] sm:$0xf] %vm1446_vm1, %v1394_v33  ;;  %v1190_v33 = vmul.f32 %v2300_v12, %v2300_v12  ;;  %v1257_v47 = vadd.f32 %v1256_v6, %v1255_v21  ;;  %v1192_v12 = vmul.f32 %v2354_v1, %v2354_v1  ;;  %v1066_v62 = vadd.f32 %v1065_v52, %v1064_v0  ;;  %v829_v50 = vpop.f32.mrf.mxu3 }
 0x117   : > { %v1069_v6 = vsel %vm234_vm0, %v2354_v1, 0.0  ;;  %1475 = vst.msk [vmem:[%s2127_s16 + $0x70] sm:$0xf] %vm1446_vm1, %v1410_v5  ;;  %v329_v1 = vld [vmem:[#allocation2 + $0xf0] sm:$0xff]  ;;  %v330_v5 = vld [vmem:[#allocation2 + $0xf8] sm:$0xff] }
 0x118   : > { %v1259_v43 = vadd.f32 %v1258_v22, %v1257_v47  ;;  %v1262_v39 = vsel %vm234_vm0, %v1190_v33, 0.0  ;;  %v1266_v21 = vsel %vm234_vm0, %v1192_v12, 0.0 }
 0x119   : > { %v727_v2 = vpop.f32.mrf.mxu0  ;;  %v767_v59 = vpop.f32.mrf.mxu1  ;;  %v2475_v52 = vld [vmem:[#allocation2 + $0x1a0] sm:$0xff] }
 0x11a   : > { %v866_v15 = vadd.f32 %v727_v2, %v313_v55  ;;  %v905_v55 = vadd.f32 %v824_v44, %v352_v30  ;;  %v1261_v44 = vadd.f32 %v1260_v10, %v1259_v43  ;;  %v1193_v2 = vmul.f32 %v2375_v27, %v2375_v27  ;;  %v2467_v30 = vld [vmem:[#allocation2 + $0x140] sm:$0xff] }
 0x11b   : > { %v997_v28 = vld [vmem:[#allocation2 + $0x68] sm:$0xff]  ;;  %v1422_v48 = vpack.c.bf16 %v2467_v30, %v2467_v30  ;;  %v882_v53 = vadd.f32 %v767_v59, %v329_v1 }
 0x11c   : > { %v1395_v38 = vpack.c.bf16 %v997_v28, %v997_v28  ;;  %931 = vst.msk [vmem:[#allocation2 + $0x70] sm:$0xff] %vm234_vm0, %v866_v15  ;;  %v1263_v11 = vadd.f32 %v1262_v39, %v1261_v44  ;;  %v1068_v15 = vadd.f32 %v1067_v60, %v1066_v62  ;;  %v1194_v22 = vmul.f32 %v997_v28, %v997_v28  ;;  %v799_v33 = vpop.f32.mrf.mxu2  ;;  %v2487_v44 = vld [vmem:[#allocation2 + $0x148] sm:$0xff] }
 0x11d   : > { %970 = vst.msk [vmem:[#allocation2 + $0x1a8] sm:$0xff] %vm234_vm0, %v905_v55  ;;  %v1268_v47 = vsel %vm234_vm0, %v1193_v2, 0.0  ;;  %v1073_v27 = vsel %vm234_vm0, %v997_v28, 0.0  ;;  %v894_v55 = vadd.f32 %v797_v58, %v341_v32  ;;  %v1434_v28 = vpack.c.bf16 %v2475_v52, %v2475_v52  ;;  %v353_v58 = vld [vmem:[#allocation2 + $0x1b0] sm:$0xff] }
 0x11e   : > { %1460 = vst.msk [vmem:[%s2127_s16 + $0x34] sm:$0xf] %vm1446_vm1, %v1395_v38  ;;  %v1265_v38 = vadd.f32 %v1264_v35, %v1263_v11  ;;  %v1070_v46 = vadd.f32 %v1069_v6, %v1068_v15  ;;  %v1270_v39 = vsel %vm234_vm0, %v1194_v22, 0.0  ;;  %v1423_v2 = vpack.c.bf16 %v2487_v44, %v2487_v44  ;;  %v342_v11 = vld [vmem:[#allocation2 + $0x158] sm:$0xff] }
 0x11f   : > { %1487 = vst.msk [vmem:[%s2127_s16 + $0xa0] sm:$0xf] %vm1446_vm1, %v1422_v48  ;;  %v1197_v15 = vmul.f32 %v2166_v14, %v2166_v14  ;;  %v906_v22 = vadd.f32 %v2434_v51, %v353_v58  ;;  %v1198_v51 = vmul.f32 %v2174_v19, %v2174_v19 }
 0x120   : > { %v1267_v43 = vadd.f32 %v1266_v21, %v1265_v38  ;;  %v1072_v0 = vadd.f32 %v1071_v54, %v1070_v46  ;;  %947 = vst.msk [vmem:[#allocation2 + $0xf0] sm:$0xff] %vm234_vm0, %v882_v53  ;;  %v354_v46 = vld [vmem:[#allocation2 + $0x1b8] sm:$0xff]  ;;  %v832_v53 = vpop.f32.mrf.mxu3 }
 0x121   : > { %v729_v4 = vpop.f32.mrf.mxu0  ;;  %959 = vst.msk [vmem:[#allocation2 + $0x150] sm:$0xff] %vm234_vm0, %v894_v55  ;;  %v769_v35 = vpop.f32.mrf.mxu1  ;;  %v1079_v55 = vsel %vm234_vm0, %v2166_v14, 0.0  ;;  %v1276_v14 = vsel %vm234_vm0, %v1197_v15, 0.0 }
 0x122   : > { %v867_v18 = vadd.f32 %v729_v4, %v314_v57  ;;  %v2479_v57 = vld [vmem:[#allocation2 + $0xe8] sm:$0xff]  ;;  %v1269_v59 = vadd.f32 %v1268_v47, %v1267_v43  ;;  %v1074_v62 = vadd.f32 %v1073_v27, %v1072_v0  ;;  %1499 = vst.msk [vmem:[%s2127_s16 + $0xd0] sm:$0xf] %vm1446_vm1, %v1434_v28  ;;  %v883_v38 = vadd.f32 %v769_v35, %v330_v5 }
 0x123   : > { %v998_v16 = vld [vmem:[#allocation2 + $0x70] sm:$0xff]  ;;  %v1411_v12 = vpack.c.bf16 %v2479_v57, %v2479_v57  ;;  %1488 = vst.msk [vmem:[%s2127_s16 + $0xa4] sm:$0xf] %vm1446_vm1, %v1423_v2  ;;  %v1199_v0 = vmul.f32 %v2183_v26, %v2183_v26  ;;  %v1278_v5 = vsel %vm234_vm0, %v1198_v51, 0.0  ;;  %v356_v51 = vld [vmem:[#allocation2 + $0x1c8] sm:$0xff] }
 0x124   : > { %v1396_v8 = vpack.c.bf16 %v998_v16, %v998_v16  ;;  %932 = vst.msk [vmem:[#allocation2 + $0x78] sm:$0xff] %vm234_vm0, %v867_v18  ;;  %v1195_v10 = vmul.f32 %v998_v16, %v998_v16  ;;  %v1075_v60 = vsel %vm234_vm0, %v998_v16, 0.0  ;;  %v2492_v4 = vld [vmem:[#allocation2 + $0x1a8] sm:$0xff]  ;;  %v1271_v16 = vadd.f32 %v1270_v39, %v1269_v59  ;;  %v802_v47 = vpop.f32.mrf.mxu2 }
 0x125   : > { %v1435_v18 = vpack.c.bf16 %v2492_v4, %v2492_v4  ;;  %v1076_v21 = vadd.f32 %v1075_v60, %v1074_v62  ;;  %1476 = vst.msk [vmem:[%s2127_s16 + $0x74] sm:$0xf] %vm1446_vm1, %v1411_v12  ;;  %v1081_v12 = vsel %vm234_vm0, %v2174_v19, 0.0  ;;  %v1200_v19 = vmul.f32 %v2194_v36, %v2194_v36 }
 0x126   : > { %1461 = vst.msk [vmem:[%s2127_s16 + $0x38] sm:$0xf] %vm1446_vm1, %v1396_v8  ;;  %v1272_v6 = vsel %vm234_vm0, %v1195_v10, 0.0  ;;  %v895_v10 = vadd.f32 %v799_v33, %v342_v11  ;;  %v907_v33 = vadd.f32 %v829_v50, %v354_v46  ;;  %v1083_v50 = vsel %vm234_vm0, %v2183_v26, 0.0 }
 0x127   : > { %v1273_v48 = vadd.f32 %v1272_v6, %v1271_v16  ;;  %1500 = vst.msk [vmem:[%s2127_s16 + $0xd4] sm:$0xf] %vm1446_vm1, %v1435_v18  ;;  %v2519_v28 = vld [vmem:[#allocation2 + $0xf0] sm:$0xff]  ;;  %v1280_v6 = vsel %vm234_vm0, %v1199_v0, 0.0  ;;  %v1201_v18 = vmul.f32 %v2216_v63, %v2216_v63  ;;  %v1085_v26 = vsel %vm234_vm0, %v2194_v36, 0.0  ;;  %v343_v16 = vld [vmem:[#allocation2 + $0x160] sm:$0xff] }
 0x128   : > { %971 = vst.msk [vmem:[#allocation2 + $0x1b0] sm:$0xff] %vm234_vm0, %v906_v22  ;;  %v1412_v58 = vpack.c.bf16 %v2519_v28, %v2519_v28  ;;  %v2527_v59 = vld [vmem:[#allocation2 + $0x150] sm:$0xff]  ;;  %v834_v46 = vpop.f32.mrf.mxu3 }
 0x129   : > { %948 = vst.msk [vmem:[#allocation2 + $0xf8] sm:$0xff] %vm234_vm0, %v883_v38  ;;  %v1424_v35 = vpack.c.bf16 %v2527_v59, %v2527_v59 }
 0x12a   : > { %960 = vst.msk [vmem:[#allocation2 + $0x158] sm:$0xff] %vm234_vm0, %v895_v10  ;;  %v1202_v10 = vmul.f32 %v2233_v7, %v2233_v7 }
 0x12b   : > { %v999_v54 = vld [vmem:[#allocation2 + $0x78] sm:$0xff]  ;;  %1477 = vst.msk [vmem:[%s2127_s16 + $0x78] sm:$0xf] %vm1446_vm1, %v1412_v58 }
 0x12c   : > { %v1077_v8 = vsel %vm234_vm0, %v999_v54, 0.0  ;;  %v1196_v1 = vmul.f32 %v999_v54, %v999_v54  ;;  %v1397_v32 = vpack.c.bf16 %v999_v54, %v999_v54  ;;  %972 = vst.msk [vmem:[#allocation2 + $0x1b8] sm:$0xff] %vm234_vm0, %v907_v33  ;;  %v344_v54 = vld [vmem:[#allocation2 + $0x168] sm:$0xff]  ;;  %v804_v22 = vpop.f32.mrf.mxu2 }
 0x12d   : > { %v1078_v27 = vadd.f32 %v1077_v8, %v1076_v21  ;;  %1489 = vst.msk [vmem:[%s2127_s16 + $0xa8] sm:$0xf] %vm1446_vm1, %v1424_v35  ;;  %v355_v21 = vld [vmem:[#allocation2 + $0x1c0] sm:$0xff] }
 0x12e   : > { %v1274_v43 = vsel %vm234_vm0, %v1196_v1, 0.0  ;;  %1462 = vst.msk [vmem:[%s2127_s16 + $0x3c] sm:$0xf] %vm1446_vm1, %v1397_v32  ;;  %v896_v32 = vadd.f32 %v802_v47, %v343_v16  ;;  %v908_v38 = vadd.f32 %v832_v53, %v355_v21  ;;  %v1089_v53 = vsel %vm234_vm0, %v2233_v7, 0.0 }
 0x12f   : > { %v1080_v39 = vadd.f32 %v1079_v55, %v1078_v27  ;;  %v1275_v60 = vadd.f32 %v1274_v43, %v1273_v48  ;;  %v1282_v48 = vsel %vm234_vm0, %v1200_v19, 0.0  ;;  %v1087_v27 = vsel %vm234_vm0, %v2216_v63, 0.0  ;;  %v2553_v36 = vld [vmem:[#allocation2 + $0x1b0] sm:$0xff] }
 0x130   : > { %v897_v55 = vadd.f32 %v804_v22, %v344_v54  ;;  %v1284_v43 = vsel %vm234_vm0, %v1201_v18, 0.0  ;;  %v2556_v47 = vld [vmem:[#allocation2 + $0xf8] sm:$0xff]  ;;  %961 = vst.msk [vmem:[#allocation2 + $0x160] sm:$0xff] %vm234_vm0, %v896_v32  ;;  %v1203_v63 = vmul.f32 %v2263_v34, %v2263_v34  ;;  %v909_v7 = vadd.f32 %v834_v46, %v356_v51  ;;  %v837_v54 = vpop.f32.mrf.mxu3 }
 0x131   : > { %v1082_v62 = vadd.f32 %v1081_v12, %v1080_v39  ;;  %v1277_v2 = vadd.f32 %v1276_v14, %v1275_v60  ;;  %v1436_v60 = vpack.c.bf16 %v2553_v36, %v2553_v36  ;;  %v1413_v33 = vpack.c.bf16 %v2556_v47, %v2556_v47  ;;  %v2567_v14 = vld [vmem:[#allocation2 + $0x158] sm:$0xff]  ;;  %973 = vst.msk [vmem:[#allocation2 + $0x1c0] sm:$0xff] %vm234_vm0, %v908_v38 }
 0x132   : > { %962 = vst.msk [vmem:[#allocation2 + $0x168] sm:$0xff] %vm234_vm0, %v897_v55  ;;  %v1288_v18 = vsel %vm234_vm0, %v1203_v63, 0.0  ;;  %v1207_v32 = vmul.f32 %v2364_v13, %v2364_v13  ;;  %v1099_v63 = vsel %vm234_vm0, %v2364_v13, 0.0 }
 0x133   : > { %v1084_v11 = vadd.f32 %v1083_v50, %v1082_v62  ;;  %v1279_v15 = vadd.f32 %v1278_v5, %v1277_v2  ;;  %v1286_v62 = vsel %vm234_vm0, %v1202_v10, 0.0  ;;  %v1091_v2 = vsel %vm234_vm0, %v2263_v34, 0.0  ;;  %1501 = vst.msk [vmem:[%s2127_s16 + $0xd8] sm:$0xf] %vm1446_vm1, %v1436_v60  ;;  %v2580_v19 = vld [vmem:[#allocation2 + $0x1b8] sm:$0xff] }
 0x134   : > { %v1204_v5 = vmul.f32 %v2273_v42, %v2273_v42  ;;  %v1425_v50 = vpack.c.bf16 %v2567_v14, %v2567_v14  ;;  %1478 = vst.msk [vmem:[%s2127_s16 + $0x7c] sm:$0xf] %vm1446_vm1, %v1413_v33  ;;  %v1093_v34 = vsel %vm234_vm0, %v2273_v42, 0.0  ;;  %v1206_v42 = vmul.f32 %v2323_v29, %v2323_v29 }
 0x135   : > { %v1086_v8 = vadd.f32 %v1085_v26, %v1084_v11  ;;  %v1281_v1 = vadd.f32 %v1280_v6, %v1279_v15  ;;  %v1205_v11 = vmul.f32 %v2309_v20, %v2309_v20  ;;  %v1437_v15 = vpack.c.bf16 %v2580_v19, %v2580_v19  ;;  %v807_v26 = vpop.f32.mrf.mxu2  ;;  %974 = vst.msk [vmem:[#allocation2 + $0x1c8] sm:$0xff] %vm234_vm0, %v909_v7 }
 0x136   : > { %1490 = vst.msk [vmem:[%s2127_s16 + $0xac] sm:$0xf] %vm1446_vm1, %v1425_v50  ;;  %v1290_v22 = vsel %vm234_vm0, %v1204_v5, 0.0  ;;  %v1296_v60 = vsel %vm234_vm0, %v1207_v32, 0.0  ;;  %v1209_v7 = vmul.f32 %v2449_v61, %v2449_v61 }
 0x137   : > { %v1088_v0 = vadd.f32 %v1087_v27, %v1086_v8  ;;  %v1283_v39 = vadd.f32 %v1282_v48, %v1281_v1  ;;  %v1095_v8 = vsel %vm234_vm0, %v2309_v20, 0.0  ;;  %1502 = vst.msk [vmem:[%s2127_s16 + $0xdc] sm:$0xf] %vm1446_vm1, %v1437_v15  ;;  %v2601_v1 = vld [vmem:[#allocation2 + $0x160] sm:$0xff]  ;;  %v1292_v27 = vsel %vm234_vm0, %v1205_v11, 0.0 }
 0x138   : > { %v2605_v48 = vld [vmem:[#allocation2 + $0x1c0] sm:$0xff]  ;;  %v1097_v20 = vsel %vm234_vm0, %v2323_v29, 0.0  ;;  %v1426_v10 = vpack.c.bf16 %v2601_v1, %v2601_v1  ;;  %v839_v11 = vpop.f32.mrf.mxu3  ;;  %v1210_v15 = vmul.f32 %v2479_v57, %v2479_v57 }
 0x139   : > { %v1090_v12 = vadd.f32 %v1089_v53, %v1088_v0  ;;  %v1285_v58 = vadd.f32 %v1284_v43, %v1283_v39  ;;  %v1438_v55 = vpack.c.bf16 %v2605_v48, %v2605_v48  ;;  %v2614_v51 = vld [vmem:[#allocation2 + $0x168] sm:$0xff]  ;;  %v1208_v43 = vmul.f32 %v2386_v37, %v2386_v37 }
 0x13a   : > { %v1294_v53 = vsel %vm234_vm0, %v1206_v42, 0.0  ;;  %1491 = vst.msk [vmem:[%s2127_s16 + $0xb0] sm:$0xf] %vm1446_vm1, %v1426_v10  ;;  %v1427_v29 = vpack.c.bf16 %v2614_v51, %v2614_v51 }
 0x13b   : > { %v1287_v35 = vadd.f32 %v1286_v62, %v1285_v58  ;;  %v1092_v6 = vadd.f32 %v1091_v2, %v1090_v12  ;;  %1503 = vst.msk [vmem:[%s2127_s16 + $0xe0] sm:$0xf] %vm1446_vm1, %v1438_v55  ;;  %v1101_v58 = vsel %vm234_vm0, %v2386_v37, 0.0  ;;  %v345_v62 = vld [vmem:[#allocation2 + $0x170] sm:$0xff]  ;;  %v1298_v50 = vsel %vm234_vm0, %v1208_v43, 0.0  ;;  %v358_v37 = vld [vmem:[#allocation2 + $0x1d8] sm:$0xff] }
 0x13c   : > { %1492 = vst.msk [vmem:[%s2127_s16 + $0xb4] sm:$0xf] %vm1446_vm1, %v1427_v29  ;;  %v2634_v13 = vld [vmem:[#allocation2 + $0x1c8] sm:$0xff]  ;;  %v357_v2 = vld [vmem:[#allocation2 + $0x1d0] sm:$0xff]  ;;  %v1212_v55 = vmul.f32 %v2556_v47, %v2556_v47 }
 0x13d   : > { %v1094_v16 = vadd.f32 %v1093_v34, %v1092_v6  ;;  %v1289_v21 = vadd.f32 %v1288_v18, %v1287_v35  ;;  %v809_v5 = vpop.f32.mrf.mxu2  ;;  %v1103_v6 = vsel %vm234_vm0, %v2449_v61, 0.0  ;;  %v346_v34 = vld [vmem:[#allocation2 + $0x178] sm:$0xff]  ;;  %v1105_v61 = vsel %vm234_vm0, %v2479_v57, 0.0 }
 0x13e   : > { %v899_v32 = vadd.f32 %v809_v5, %v346_v34  ;;  %v1115_v34 = vsel %vm234_vm0, %v2269_v40, 0.0 }
 0x13f   : > { %v1096_v38 = vadd.f32 %v1095_v8, %v1094_v16  ;;  %v1291_v46 = vadd.f32 %v1290_v22, %v1289_v21  ;;  %v1439_v16 = vpack.c.bf16 %v2634_v13, %v2634_v13  ;;  %v898_v21 = vadd.f32 %v807_v26, %v345_v62 }
 0x140   : > { %v910_v22 = vadd.f32 %v837_v54, %v357_v2  ;;  %v1302_v26 = vsel %vm234_vm0, %v1210_v15, 0.0  ;;  %v1107_v54 = vsel %vm234_vm0, %v2519_v28, 0.0  ;;  %964 = vst.msk [vmem:[#allocation2 + $0x178] sm:$0xff] %vm234_vm0, %v899_v32  ;;  %v842_v29 = vpop.f32.mrf.mxu3  ;;  %v1215_v2 = vmul.f32 %v2269_v40, %v2269_v40  ;;  %v359_v32 = vld [vmem:[#allocation2 + $0x1e0] sm:$0xff] }
 0x141   : > { %v1098_v0 = vadd.f32 %v1097_v20, %v1096_v38  ;;  %v1293_v39 = vadd.f32 %v1292_v27, %v1291_v46  ;;  %v1300_v38 = vsel %vm234_vm0, %v1209_v7, 0.0  ;;  %v1211_v46 = vmul.f32 %v2519_v28, %v2519_v28  ;;  %1504 = vst.msk [vmem:[%s2127_s16 + $0xe4] sm:$0xf] %vm1446_vm1, %v1439_v16 }
 0x142   : > { %v911_v27 = vadd.f32 %v839_v11, %v358_v37  ;;  %963 = vst.msk [vmem:[#allocation2 + $0x170] sm:$0xff] %vm234_vm0, %v898_v21  ;;  %v1217_v40 = vmul.f32 %v2313_v23, %v2313_v23 }
 0x143   : > { %v1100_v33 = vadd.f32 %v1099_v63, %v1098_v0  ;;  %v1295_v12 = vadd.f32 %v1294_v53, %v1293_v39  ;;  %975 = vst.msk [vmem:[#allocation2 + $0x1d0] sm:$0xff] %vm234_vm0, %v910_v22  ;;  %v1213_v0 = vmul.f32 %v2225_v3, %v2225_v3  ;;  %v1304_v39 = vsel %vm234_vm0, %v1211_v46, 0.0 }
 0x144   : > { %v1109_v53 = vsel %vm234_vm0, %v2556_v47, 0.0  ;;  %976 = vst.msk [vmem:[#allocation2 + $0x1d8] sm:$0xff] %vm234_vm0, %v911_v27  ;;  %v1113_v47 = vsel %vm234_vm0, %v2235_v9, 0.0  ;;  %v1312_v22 = vsel %vm234_vm0, %v1215_v2, 0.0 }
 0x145   : > { %v1102_v35 = vadd.f32 %v1101_v58, %v1100_v33  ;;  %v1297_v18 = vadd.f32 %v1296_v60, %v1295_v12  ;;  %v1111_v60 = vsel %vm234_vm0, %v2225_v3, 0.0  ;;  %v1214_v33 = vmul.f32 %v2235_v9, %v2235_v9 }
 0x146   : > { %v1306_v12 = vsel %vm234_vm0, %v1212_v55, 0.0  ;;  %v1308_v62 = vsel %vm234_vm0, %v1213_v0, 0.0  ;;  %v1216_v3 = vmul.f32 %v2279_v45, %v2279_v45  ;;  %v1316_v0 = vsel %vm234_vm0, %v1217_v40, 0.0 }
 0x147   : > { %v1104_v8 = vadd.f32 %v1103_v6, %v1102_v35  ;;  %v1299_v42 = vadd.f32 %v1298_v50, %v1297_v18  ;;  %v1310_v18 = vsel %vm234_vm0, %v1214_v33, 0.0  ;;  %v2687_v11 = vld [vmem:[#allocation2 + $0x178] sm:$0xff]  ;;  %v1131_v40 = vsel %vm234_vm0, %v2527_v59, 0.0 }
 0x149   : > { %v1301_v20 = vadd.f32 %v1300_v38, %v1299_v42  ;;  %v1106_v10 = vadd.f32 %v1105_v61, %v1104_v8  ;;  %v2674_v5 = vld [vmem:[#allocation2 + $0x170] sm:$0xff]  ;;  %v1117_v8 = vsel %vm234_vm0, %v2279_v45, 0.0  ;;  %v1429_v42 = vpack.c.bf16 %v2687_v11, %v2687_v11  ;;  %v360_v38 = vld [vmem:[#allocation2 + $0x1e8] sm:$0xff] }
 0x14a   : > { %v2678_v6 = vld [vmem:[#allocation2 + $0x1d0] sm:$0xff]  ;;  %v1428_v9 = vpack.c.bf16 %v2674_v5, %v2674_v5  ;;  %v1314_v61 = vsel %vm234_vm0, %v1216_v3, 0.0 }
 0x14b   : > { %v1303_v57 = vadd.f32 %v1302_v26, %v1301_v20  ;;  %v1108_v43 = vadd.f32 %v1107_v54, %v1106_v10  ;;  %v1440_v37 = vpack.c.bf16 %v2678_v6, %v2678_v6  ;;  %v2689_v21 = vld [vmem:[#allocation2 + $0x1d8] sm:$0xff]  ;;  %v844_v20 = vpop.f32.mrf.mxu3  ;;  %v1119_v10 = vsel %vm234_vm0, %v2313_v23, 0.0  ;;  %1494 = vst.msk [vmem:[%s2127_s16 + $0xbc] sm:$0xf] %vm1446_vm1, %v1429_v42 }
 0x14c   : > { %1493 = vst.msk [vmem:[%s2127_s16 + $0xb8] sm:$0xf] %vm1446_vm1, %v1428_v9  ;;  %v1441_v45 = vpack.c.bf16 %v2689_v21, %v2689_v21  ;;  %v1218_v26 = vmul.f32 %v2327_v31, %v2327_v31  ;;  %v912_v54 = vadd.f32 %v842_v29, %v359_v32  ;;  %v913_v55 = vadd.f32 %v844_v20, %v360_v38 }
 0x14d   : > { %v1305_v28 = vadd.f32 %v1304_v39, %v1303_v57  ;;  %v1110_v63 = vadd.f32 %v1109_v53, %v1108_v43  ;;  %1505 = vst.msk [vmem:[%s2127_s16 + $0xe8] sm:$0xf] %vm1446_vm1, %v1440_v37  ;;  %v1121_v39 = vsel %vm234_vm0, %v2327_v31, 0.0  ;;  %v1219_v53 = vmul.f32 %v2369_v17, %v2369_v17 }
 0x14e   : > { %1506 = vst.msk [vmem:[%s2127_s16 + $0xec] sm:$0xf] %vm1446_vm1, %v1441_v45  ;;  %v1123_v29 = vsel %vm234_vm0, %v2369_v17, 0.0  ;;  %v1127_v17 = vsel %vm234_vm0, %v2467_v30, 0.0  ;;  %v1129_v9 = vsel %vm234_vm0, %v2487_v44, 0.0  ;;  %v1223_v37 = vmul.f32 %v2527_v59, %v2527_v59  ;;  %v361_v59 = vld [vmem:[#allocation2 + $0x1f0] sm:$0xff] }
 0x14f   : > { %v1112_v58 = vadd.f32 %v1111_v60, %v1110_v63  ;;  %v1307_v7 = vadd.f32 %v1306_v12, %v1305_v28  ;;  %977 = vst.msk [vmem:[#allocation2 + $0x1e0] sm:$0xff] %vm234_vm0, %v912_v54  ;;  %v1318_v63 = vsel %vm234_vm0, %v1218_v26, 0.0  ;;  %v1220_v60 = vmul.f32 %v2398_v49, %v2398_v49  ;;  %v362_v45 = vld [vmem:[#allocation2 + $0x1f8] sm:$0xff] }
 0x150   : > { %978 = vst.msk [vmem:[#allocation2 + $0x1e8] sm:$0xff] %vm234_vm0, %v913_v55  ;;  %v1320_v31 = vsel %vm234_vm0, %v1219_v53, 0.0  ;;  %v1224_v42 = vmul.f32 %v2567_v14, %v2567_v14 }
 0x151   : > { %v1114_v50 = vadd.f32 %v1113_v47, %v1112_v58  ;;  %v1309_v35 = vadd.f32 %v1308_v62, %v1307_v7  ;;  %v1125_v58 = vsel %vm234_vm0, %v2398_v49, 0.0  ;;  %v1221_v7 = vmul.f32 %v2467_v30, %v2467_v30 }
 0x152   : > { %v1322_v3 = vsel %vm234_vm0, %v1220_v60, 0.0  ;;  %v1330_v55 = vsel %vm234_vm0, %v1224_v42, 0.0  ;;  %v1139_v60 = vsel %vm234_vm0, %v2674_v5, 0.0 }
 0x153   : > { %v1116_v15 = vadd.f32 %v1115_v34, %v1114_v50  ;;  %v1311_v16 = vadd.f32 %v1310_v18, %v1309_v35  ;;  %v847_v2 = vpop.f32.mrf.mxu3  ;;  %v1222_v50 = vmul.f32 %v2487_v44, %v2487_v44  ;;  %v1324_v49 = vsel %vm234_vm0, %v1221_v7, 0.0 }
 0x154   : > { %v914_v26 = vadd.f32 %v847_v2, %v361_v59  ;;  %v1141_v7 = vsel %vm234_vm0, %v2687_v11, 0.0  ;;  %v1143_v2 = vsel %vm234_vm0, %v2317_v25, 0.0  ;;  %v1234_v59 = vmul.f32 %v2492_v4, %v2492_v4 }
 0x155   : > { %v1118_v46 = vadd.f32 %v1117_v8, %v1116_v15  ;;  %v1313_v27 = vadd.f32 %v1312_v22, %v1311_v16  ;;  %v1326_v8 = vsel %vm234_vm0, %v1222_v50, 0.0 }
 0x156   : > { %v2735_v34 = vld [vmem:[#allocation2 + $0x1e0] sm:$0xff]  ;;  %979 = vst.msk [vmem:[#allocation2 + $0x1f0] sm:$0xff] %vm234_vm0, %v914_v26  ;;  %v1235_v26 = vmul.f32 %v2553_v36, %v2553_v36 }
 0x157   : > { %v1120_v57 = vadd.f32 %v1119_v10, %v1118_v46  ;;  %v1315_v43 = vadd.f32 %v1314_v61, %v1313_v27  ;;  %v1442_v15 = vpack.c.bf16 %v2735_v34, %v2735_v34  ;;  %v2744_v30 = vld [vmem:[#allocation2 + $0x1e8] sm:$0xff]  ;;  %v1328_v61 = vsel %vm234_vm0, %v1223_v37, 0.0 }
 0x158   : > { %v1443_v44 = vpack.c.bf16 %v2744_v30, %v2744_v30  ;;  %v1133_v46 = vsel %vm234_vm0, %v2567_v14, 0.0  ;;  %v1225_v27 = vmul.f32 %v2601_v1, %v2601_v1 }
 0x159   : > { %v1317_v23 = vadd.f32 %v1316_v0, %v1315_v43  ;;  %v1122_v28 = vadd.f32 %v1121_v39, %v1120_v57  ;;  %1507 = vst.msk [vmem:[%s2127_s16 + $0xf0] sm:$0xf] %vm1446_vm1, %v1442_v15  ;;  %v1135_v57 = vsel %vm234_vm0, %v2601_v1, 0.0  ;;  %v1226_v43 = vmul.f32 %v2614_v51, %v2614_v51 }
 0x15a   : > { %1508 = vst.msk [vmem:[%s2127_s16 + $0xf4] sm:$0xf] %vm1446_vm1, %v1443_v44  ;;  %v1332_v53 = vsel %vm234_vm0, %v1225_v27, 0.0  ;;  %v1151_v27 = vsel %vm234_vm0, %v2475_v52, 0.0 }
 0x15b   : > { %v1124_v33 = vadd.f32 %v1123_v29, %v1122_v28  ;;  %v1319_v12 = vadd.f32 %v1318_v63, %v1317_v23  ;;  %v849_v54 = vpop.f32.mrf.mxu3  ;;  %v1137_v23 = vsel %vm234_vm0, %v2614_v51, 0.0  ;;  %v1227_v28 = vmul.f32 %v2674_v5, %v2674_v5 }
 0x15c   : > { %v915_v14 = vadd.f32 %v849_v54, %v362_v45  ;;  %v1334_v29 = vsel %vm234_vm0, %v1226_v43, 0.0  ;;  %v1230_v5 = vmul.f32 %v2338_v41, %v2338_v41  ;;  %v1236_v43 = vmul.f32 %v2580_v19, %v2580_v19 }
 0x15d   : > { %v1126_v62 = vadd.f32 %v1125_v58, %v1124_v33  ;;  %v1321_v47 = vadd.f32 %v1320_v31, %v1319_v12  ;;  %v1228_v33 = vmul.f32 %v2687_v11, %v2687_v11  ;;  %v1229_v12 = vmul.f32 %v2317_v25, %v2317_v25 }
 0x15e   : > { %980 = vst.msk [vmem:[#allocation2 + $0x1f8] sm:$0xff] %vm234_vm0, %v915_v14  ;;  %v1336_v58 = vsel %vm234_vm0, %v1227_v28, 0.0  ;;  %v1145_v11 = vsel %vm234_vm0, %v2338_v41, 0.0  ;;  %v1231_v25 = vmul.f32 %v2373_v24, %v2373_v24 }
 0x15f   : > { %v1128_v35 = vadd.f32 %v1127_v17, %v1126_v62  ;;  %v1323_v18 = vadd.f32 %v1322_v3, %v1321_v47  ;;  %v1338_v3 = vsel %vm234_vm0, %v1228_v33, 0.0  ;;  %v2789_v17 = vld [vmem:[#allocation2 + $0x1f0] sm:$0xff]  ;;  %v1340_v50 = vsel %vm234_vm0, %v1229_v12, 0.0 }
 0x160   : > { %v1344_v44 = vsel %vm234_vm0, %v1231_v25, 0.0  ;;  %v1239_v12 = vmul.f32 %v2678_v6, %v2678_v6 }
 0x161   : > { %v1130_v16 = vadd.f32 %v1129_v9, %v1128_v35  ;;  %v1325_v22 = vadd.f32 %v1324_v49, %v1323_v18  ;;  %v1444_v9 = vpack.c.bf16 %v2789_v17, %v2789_v17 }
 0x163   : > { %v1132_v32 = vadd.f32 %v1131_v40, %v1130_v16  ;;  %v1327_v38 = vadd.f32 %v1326_v8, %v1325_v22  ;;  %v1342_v22 = vsel %vm234_vm0, %v1230_v5, 0.0  ;;  %v1147_v8 = vsel %vm234_vm0, %v2373_v24, 0.0  ;;  %1509 = vst.msk [vmem:[%s2127_s16 + $0xf8] sm:$0xf] %vm1446_vm1, %v1444_v9 }
 0x164   : > { %v1232_v40 = vmul.f32 %v2404_v56, %v2404_v56  ;;  %v1241_v5 = vmul.f32 %v2735_v34, %v2735_v34 }
 0x165   : > { %v1134_v20 = vadd.f32 %v1133_v46, %v1132_v32  ;;  %v1329_v10 = vadd.f32 %v1328_v61, %v1327_v38  ;;  %v2792_v49 = vld [vmem:[#allocation2 + $0x1f8] sm:$0xff]  ;;  %v1149_v32 = vsel %vm234_vm0, %v2404_v56, 0.0  ;;  %v1233_v38 = vmul.f32 %v2475_v52, %v2475_v52 }
 0x166   : > { %v1445_v37 = vpack.c.bf16 %v2792_v49, %v2792_v49  ;;  %v1346_v24 = vsel %vm234_vm0, %v1232_v40, 0.0  ;;  %v1153_v56 = vsel %vm234_vm0, %v2492_v4, 0.0  ;;  %v1155_v52 = vsel %vm234_vm0, %v2553_v36, 0.0 }
 0x167   : > { %v1331_v0 = vadd.f32 %v1330_v55, %v1329_v10  ;;  %v1136_v39 = vadd.f32 %v1135_v57, %v1134_v20  ;;  %v1348_v10 = vsel %vm234_vm0, %v1233_v38, 0.0  ;;  %v1350_v57 = vsel %vm234_vm0, %v1234_v59, 0.0 }
 0x168   : > { %1510 = vst.msk [vmem:[%s2127_s16 + $0xfc] sm:$0xf] %vm1446_vm1, %v1445_v37  ;;  %v1157_v4 = vsel %vm234_vm0, %v2580_v19, 0.0  ;;  %v1159_v36 = vsel %vm234_vm0, %v2605_v48, 0.0  ;;  %v1161_v19 = vsel %vm234_vm0, %v2634_v13, 0.0  ;;  %v1364_v9 = vsel %vm234_vm0, %v1241_v5, 0.0 }
 0x169   : > { %v1333_v63 = vadd.f32 %v1332_v53, %v1331_v0  ;;  %v1138_v1 = vadd.f32 %v1137_v23, %v1136_v39  ;;  %v1352_v39 = vsel %vm234_vm0, %v1235_v26, 0.0  ;;  %v1237_v53 = vmul.f32 %v2605_v48, %v2605_v48 }
 0x16a   : > { %v1163_v48 = vsel %vm234_vm0, %v2678_v6, 0.0  ;;  %v1167_v6 = vsel %vm234_vm0, %v2735_v34, 0.0  ;;  %v1243_v37 = vmul.f32 %v2789_v17, %v2789_v17  ;;  %v1171_v34 = vsel %vm234_vm0, %v2789_v17, 0.0 }
 0x16b   : > { %v1335_v31 = vadd.f32 %v1334_v29, %v1333_v63  ;;  %v1140_v51 = vadd.f32 %v1139_v60, %v1138_v1  ;;  %v1354_v63 = vsel %vm234_vm0, %v1236_v43, 0.0  ;;  %v1238_v1 = vmul.f32 %v2634_v13, %v2634_v13 }
 0x16c   : > { %v1356_v33 = vsel %vm234_vm0, %v1237_v53, 0.0  ;;  %v1165_v13 = vsel %vm234_vm0, %v2689_v21, 0.0 }
 0x16d   : > { %v1337_v62 = vadd.f32 %v1336_v58, %v1335_v31  ;;  %v1142_v47 = vadd.f32 %v1141_v7, %v1140_v51  ;;  %v1358_v58 = vsel %vm234_vm0, %v1238_v1, 0.0  ;;  %v1240_v7 = vmul.f32 %v2689_v21, %v2689_v21 }
 0x16e   : > { %v1169_v21 = vsel %vm234_vm0, %v2744_v30, 0.0 }
 0x16f   : > { %v1144_v35 = vadd.f32 %v1143_v2, %v1142_v47  ;;  %v1339_v18 = vadd.f32 %v1338_v3, %v1337_v62  ;;  %v1360_v2 = vsel %vm234_vm0, %v1239_v12, 0.0 }
 0x171   : > { %v1146_v15 = vadd.f32 %v1145_v11, %v1144_v35  ;;  %v1341_v16 = vadd.f32 %v1340_v50, %v1339_v18  ;;  %v1362_v35 = vsel %vm234_vm0, %v1240_v7, 0.0  ;;  %v1242_v18 = vmul.f32 %v2744_v30, %v2744_v30 }
 0x172   : > { %v1173_v30 = vsel %vm234_vm0, %v2792_v49, 0.0 }
 0x173   : > { %v1148_v41 = vadd.f32 %v1147_v8, %v1146_v15  ;;  %v1343_v42 = vadd.f32 %v1342_v22, %v1341_v16  ;;  %v1366_v22 = vsel %vm234_vm0, %v1242_v18, 0.0  ;;  %v1244_v8 = vmul.f32 %v2792_v49, %v2792_v49 }
 0x175   : > { %v1150_v61 = vadd.f32 %v1149_v32, %v1148_v41  ;;  %v1345_v46 = vadd.f32 %v1344_v44, %v1343_v42  ;;  %v1368_v42 = vsel %vm234_vm0, %v1243_v37, 0.0  ;;  %v1370_v38 = vsel %vm234_vm0, %v1244_v8, 0.0 }
 0x177   : > { %v1152_v45 = vadd.f32 %v1151_v27, %v1150_v61  ;;  %v1347_v20 = vadd.f32 %v1346_v24, %v1345_v46 }
 0x179   : > { %v1349_v54 = vadd.f32 %v1348_v10, %v1347_v20  ;;  %v1154_v55 = vadd.f32 %v1153_v56, %v1152_v45 }
 0x17b   : > { %v1156_v14 = vadd.f32 %v1155_v52, %v1154_v55  ;;  %v1351_v0 = vadd.f32 %v1350_v57, %v1349_v54 }
 0x17d   : > { %v1158_v23 = vadd.f32 %v1157_v4, %v1156_v14  ;;  %v1353_v28 = vadd.f32 %v1352_v39, %v1351_v0 }
 0x17f   : > { %v1160_v29 = vadd.f32 %v1159_v36, %v1158_v23  ;;  %v1355_v60 = vadd.f32 %v1354_v63, %v1353_v28 }
 0x181   : > { %v1162_v31 = vadd.f32 %v1161_v19, %v1160_v29  ;;  %v1357_v51 = vadd.f32 %v1356_v33, %v1355_v60 }
 0x183   : > { %v1164_v62 = vadd.f32 %v1163_v48, %v1162_v31  ;;  %v1359_v47 = vadd.f32 %v1358_v58, %v1357_v51 }
 0x185   : > { %v1166_v3 = vadd.f32 %v1165_v13, %v1164_v62  ;;  %v1361_v50 = vadd.f32 %v1360_v2, %v1359_v47 }
 0x187   : > { %v1363_v11 = vadd.f32 %v1362_v35, %v1361_v50  ;;  %v1168_v25 = vadd.f32 %v1167_v6, %v1166_v3 }
 0x189   : > { %v1365_v15 = vadd.f32 %v1364_v9, %v1363_v11  ;;  %v1170_v16 = vadd.f32 %v1169_v21, %v1168_v25 }
 0x18b   : > { %v1367_v40 = vadd.f32 %v1366_v22, %v1365_v15  ;;  %v1172_v41 = vadd.f32 %v1171_v34, %v1170_v16 }
 0x18d   : > { %v1369_v44 = vadd.f32 %v1368_v42, %v1367_v40  ;;  %v1174_v32 = vadd.f32 %v1173_v30, %v1172_v41 }
 0x18f   : > { %v1175_v61 = vrot.slane %v1174_v32, 4  ;;  %v1371_v46 = vadd.f32 %v1370_v38, %v1369_v44 }
 0x191   : > { %v1176_v24 = vadd.f32 %v1175_v61, %v1174_v32  ;;  %v1372_v17 = vrot.slane %v1371_v46, 4 }
 0x193   : > { %v1177_v27 = vrot.slane %v1176_v24, 2  ;;  %v1373_v59 = vadd.f32 %v1372_v17, %v1371_v46 }
 0x195   : > { %v1178_v45 = vadd.f32 %v1177_v27, %v1176_v24  ;;  %v1374_v20 = vrot.slane %v1373_v59, 2 }
 0x197   : > { %v1179_v10 = vrot.slane %v1178_v45, 1  ;;  %v1375_v56 = vadd.f32 %v1374_v20, %v1373_v59 }
 0x199   : > { %v1376_v26 = vrot.slane %v1375_v56, 1  ;;  %v1180_v49 = vadd.f32 %v1179_v10, %v1178_v45 }
 0x19b   : > { %v1377_v54 = vadd.f32 %v1376_v26, %v1375_v56 }
 0x19d   : > { %v1379_v55 = vsel %vm1378_vm2, %v1180_v49, %v1377_v54 }
 0x19e   : > { %1381 = vst.msk [vmem:[%s229_s20] sm:$0x3] %vm1380_vm3, %v1379_v55 }
 0x19f PF: > { %s14_s14 = sadd.s32 1, %s1909_s14   ;;  %s2893_s12 = smov %s1905_s13 }
 0x1a0   : > { %p11_p6 = scmp.ge.s32.totalorder %s14_s14, 6   ;;  %s2894_s13 = smov %s2896_s15 }
 0x1a2   :  { %13 = sbr.rel (!%p11_p6) target bundleno = 2 (0x2), region = 81 }

// kernel: discriminator_forward.7
= control target key start
LH: loop header
LB: loop body
LE: loop exit
PB: predicated region body
PF: predicated region fallthrough
CT: control target
= control target key end

     0   :  { %vm17_vm0 = vcmask 261120   ;;  %vm1590_vm1 = vcmask 257024   ;;  %vm1522_vm2 = vcmask 1040384   ;;  %vm1524_vm3 = vcmask 254976   ;;  %s3349_s1 = inlined_call_operand.vmem [shape: bf16[256,32], index: 1, kind: input, shape index: {}]   ;;  %s3350_s0 = inlined_call_operand.vmem [shape: bf16[512,256], index: 0, kind: input, shape index: {}]   ;;  %s3351_s2 = inlined_call_operand.vmem [shape: bf16[512,32], index: 2, kind: output, shape index: {0}]   ;;  %s3352_s3 = inlined_call_operand.vmem [shape: f32[1,2,32], index: 3, kind: output, shape index: {1}]  }
   0x1   :  { %v2054_v0 = vld [vmem:[%s3349_s1 + $0x38] sm:$0xff]  ;;  %v2053_v2 = vld [vmem:[%s3349_s1 + $0x30] sm:$0xff]  ;;  %v2052_v4 = vld [vmem:[%s3349_s1 + $0x28] sm:$0xff] }
   0x2   :  { %v2062_v1 = vld [vmem:[%s3349_s1 + $0x78] sm:$0xff]  ;;  %658 = vmatpush.bf16.msra.mxu0 %v2054_v0  ;;  %v2061_v3 = vld [vmem:[%s3349_s1 + $0x70] sm:$0xff]  ;;  %2063 = vmatpush.bf16.msra.mxu2 %v2054_v0  ;;  %v2060_v5 = vld [vmem:[%s3349_s1 + $0x68] sm:$0xff] }
   0x3   :  { %827 = vmatpush.bf16.msra.mxu1 %v2062_v1  ;;  %2071 = vmatpush.bf16.msra.mxu3 %v2062_v1  ;;  %v2051_v6 = vld [vmem:[%s3349_s1 + $0x20] sm:$0xff]  ;;  %v2050_v8 = vld [vmem:[%s3349_s1 + $0x18] sm:$0xff]  ;;  %v2049_v10 = vld [vmem:[%s3349_s1 + $0x10] sm:$0xff] }
   0x4   :  { %v2059_v7 = vld [vmem:[%s3349_s1 + $0x60] sm:$0xff]  ;;  %v2058_v9 = vld [vmem:[%s3349_s1 + $0x58] sm:$0xff]  ;;  %v2057_v11 = vld [vmem:[%s3349_s1 + $0x50] sm:$0xff] }
   0x5   :  { %v2048_v12 = vld [vmem:[%s3349_s1 + $0x8] sm:$0xff]  ;;  %v2047_v14 = vld [vmem:[%s3349_s1] sm:$0xff]  ;;  %v1673_v22 = vld [vmem:[%s3350_s0 + $0x10] sm:$0xf] }
   0x6   :  { %659 = vmatpush.bf16.msra.mxu0 %v2053_v2  ;;  %2064 = vmatpush.bf16.msra.mxu2 %v2053_v2  ;;  %v2056_v13 = vld [vmem:[%s3349_s1 + $0x48] sm:$0xff]  ;;  %v2055_v15 = vld [vmem:[%s3349_s1 + $0x40] sm:$0xff]  ;;  %v1986_v23 = vld [vmem:[%s3350_s0 + $0x14] sm:$0xf0] }
   0x7   :  { %828 = vmatpush.bf16.msra.mxu1 %v2061_v3  ;;  %2072 = vmatpush.bf16.msra.mxu3 %v2061_v3  ;;  %v1665_v16 = vld [vmem:[%s3350_s0] sm:$0xf]  ;;  %v1984_v17 = vld [vmem:[%s3350_s0 + $0x4] sm:$0xf0]  ;;  %v1983_v18 = vld [vmem:[%s3350_s0 + $0x4] sm:$0xf]  ;;  %v1674_v26 = vor.u32 %v1986_v23, %v1673_v22 }
   0x8   :  { %v1667_v19 = vld [vmem:[%s3350_s0 + $0x8] sm:$0xf0]  ;;  %v1666_v20 = vor.u32 %v1984_v17, %v1665_v16  ;;  %v1985_v24 = vld [vmem:[%s3350_s0 + $0x14] sm:$0xf]  ;;  %v1675_v25 = vld [vmem:[%s3350_s0 + $0x18] sm:$0xf0] }
   0x9   :  { %v1670_v21 = vor.u32 %v1983_v18, %v1667_v19  ;;  %v1678_v27 = vor.u32 %v1985_v24, %v1675_v25  ;;  %v1793_v28 = vld [vmem:[%s3350_s0 + $0x100] sm:$0xf]  ;;  %v2016_v29 = vld [vmem:[%s3350_s0 + $0x104] sm:$0xf0]  ;;  %v2015_v30 = vld [vmem:[%s3350_s0 + $0x104] sm:$0xf] }
   0xa   :  { %660 = vmatpush.bf16.msra.mxu0 %v2052_v4  ;;  %2065 = vmatpush.bf16.msra.mxu2 %v2052_v4  ;;  %v1794_v31 = vor.u32 %v2016_v29, %v1793_v28  ;;  %v1795_v32 = vld [vmem:[%s3350_s0 + $0x108] sm:$0xf0]  ;;  %v1681_v34 = vld [vmem:[%s3350_s0 + $0x20] sm:$0xf]  ;;  %v1988_v35 = vld [vmem:[%s3350_s0 + $0x24] sm:$0xf0] }
   0xb   :  { %829 = vmatpush.bf16.msra.mxu1 %v2060_v5  ;;  %2073 = vmatpush.bf16.msra.mxu3 %v2060_v5  ;;  %v1798_v33 = vor.u32 %v2015_v30, %v1795_v32  ;;  %v1987_v36 = vld [vmem:[%s3350_s0 + $0x24] sm:$0xf]  ;;  %v1683_v37 = vld [vmem:[%s3350_s0 + $0x28] sm:$0xf0]  ;;  %v1682_v38 = vor.u32 %v1988_v35, %v1681_v34  ;;  %v1801_v40 = vld [vmem:[%s3350_s0 + $0x110] sm:$0xf] }
   0xc   :  { %v1686_v39 = vor.u32 %v1987_v36, %v1683_v37  ;;  %v2018_v41 = vld [vmem:[%s3350_s0 + $0x114] sm:$0xf0]  ;;  %v2017_v42 = vld [vmem:[%s3350_s0 + $0x114] sm:$0xf]  ;;  %v1803_v44 = vld [vmem:[%s3350_s0 + $0x118] sm:$0xf0] }
   0xd   :  { %v1802_v43 = vor.u32 %v2018_v41, %v1801_v40  ;;  %v1806_v45 = vor.u32 %v2017_v42, %v1803_v44  ;;  %v1689_v46 = vld [vmem:[%s3350_s0 + $0x30] sm:$0xf]  ;;  %v1990_v47 = vld [vmem:[%s3350_s0 + $0x34] sm:$0xf0]  ;;  %v1989_v48 = vld [vmem:[%s3350_s0 + $0x34] sm:$0xf] }
   0xe   :  { %661 = vmatpush.bf16.msra.mxu0 %v2051_v6  ;;  %2066 = vmatpush.bf16.msra.mxu2 %v2051_v6  ;;  %v1691_v49 = vld [vmem:[%s3350_s0 + $0x38] sm:$0xf0]  ;;  %v1690_v50 = vor.u32 %v1990_v47, %v1689_v46  ;;  %v1809_v52 = vld [vmem:[%s3350_s0 + $0x120] sm:$0xf]  ;;  %v2020_v53 = vld [vmem:[%s3350_s0 + $0x124] sm:$0xf0] }
   0xf   :  { %830 = vmatpush.bf16.msra.mxu1 %v2059_v7  ;;  %2074 = vmatpush.bf16.msra.mxu3 %v2059_v7  ;;  %v1694_v51 = vor.u32 %v1989_v48, %v1691_v49  ;;  %v2019_v54 = vld [vmem:[%s3350_s0 + $0x124] sm:$0xf]  ;;  %v1810_v55 = vor.u32 %v2020_v53, %v1809_v52  ;;  %v1811_v56 = vld [vmem:[%s3350_s0 + $0x128] sm:$0xf0]  ;;  %v1697_v58 = vld [vmem:[%s3350_s0 + $0x40] sm:$0xf] }
  0x10   :  { %v1814_v57 = vor.u32 %v2019_v54, %v1811_v56  ;;  %v1992_v59 = vld [vmem:[%s3350_s0 + $0x44] sm:$0xf0]  ;;  %v1991_v60 = vld [vmem:[%s3350_s0 + $0x44] sm:$0xf]  ;;  %v1699_v61 = vld [vmem:[%s3350_s0 + $0x48] sm:$0xf0] }
  0x11   :  { %v1698_v62 = vor.u32 %v1992_v59, %v1697_v58  ;;  %v1702_v63 = vor.u32 %v1991_v60, %v1699_v61  ;;  %v1817_v0 = vld [vmem:[%s3350_s0 + $0x130] sm:$0xf]  ;;  %v2022_v1 = vld [vmem:[%s3350_s0 + $0x134] sm:$0xf0]  ;;  %v2021_v2 = vld [vmem:[%s3350_s0 + $0x134] sm:$0xf] }
  0x12   :  { %662 = vmatpush.bf16.msra.mxu0 %v2050_v8  ;;  %2067 = vmatpush.bf16.msra.mxu2 %v2050_v8  ;;  %v1818_v3 = vor.u32 %v2022_v1, %v1817_v0  ;;  %v1819_v4 = vld [vmem:[%s3350_s0 + $0x138] sm:$0xf0]  ;;  %v1705_v6 = vld [vmem:[%s3350_s0 + $0x50] sm:$0xf]  ;;  %v1994_v7 = vld [vmem:[%s3350_s0 + $0x54] sm:$0xf0] }
  0x13   :  { %831 = vmatpush.bf16.msra.mxu1 %v2058_v9  ;;  %2075 = vmatpush.bf16.msra.mxu3 %v2058_v9  ;;  %v1822_v5 = vor.u32 %v2021_v2, %v1819_v4  ;;  %v1993_v8 = vld [vmem:[%s3350_s0 + $0x54] sm:$0xf]  ;;  %v1707_v9 = vld [vmem:[%s3350_s0 + $0x58] sm:$0xf0]  ;;  %v1827_v16 = vld [vmem:[%s3350_s0 + $0x148] sm:$0xf0] }
  0x14   :  { %v1713_v18 = vld [vmem:[%s3350_s0 + $0x60] sm:$0xf]  ;;  %v1996_v19 = vld [vmem:[%s3350_s0 + $0x64] sm:$0xf0]  ;;  %v1715_v22 = vld [vmem:[%s3350_s0 + $0x68] sm:$0xf0] }
  0x15   :  { %v1714_v23 = vor.u32 %v1996_v19, %v1713_v18  ;;  %v1833_v25 = vld [vmem:[%s3350_s0 + $0x150] sm:$0xf]  ;;  %v2025_v28 = vld [vmem:[%s3350_s0 + $0x154] sm:$0xf]  ;;  %v1835_v29 = vld [vmem:[%s3350_s0 + $0x158] sm:$0xf0] }
  0x16   :  { %663 = vmatpush.bf16.msra.mxu0 %v2049_v10  ;;  %2068 = vmatpush.bf16.msra.mxu2 %v2049_v10  ;;  %v1706_v10 = vor.u32 %v1994_v7, %v1705_v6  ;;  %v1838_v30 = vor.u32 %v2025_v28, %v1835_v29  ;;  %v1998_v32 = vld [vmem:[%s3350_s0 + $0x74] sm:$0xf0]  ;;  %v1723_v34 = vld [vmem:[%s3350_s0 + $0x78] sm:$0xf0]  ;;  %v1729_v37 = vld [vmem:[%s3350_s0 + $0x80] sm:$0xf] }
  0x17   :  { %832 = vmatpush.bf16.msra.mxu1 %v2057_v11  ;;  %2076 = vmatpush.bf16.msra.mxu3 %v2057_v11  ;;  %v1710_v11 = vor.u32 %v1993_v8, %v1707_v9  ;;  %v1731_v40 = vld [vmem:[%s3350_s0 + $0x88] sm:$0xf0]  ;;  %v1841_v47 = vld [vmem:[%s3350_s0 + $0x160] sm:$0xf]  ;;  %v2028_v48 = vld [vmem:[%s3350_s0 + $0x164] sm:$0xf0] }
  0x18   :  { %v1843_v52 = vld [vmem:[%s3350_s0 + $0x168] sm:$0xf0]  ;;  %v1737_v56 = vld [vmem:[%s3350_s0 + $0x90] sm:$0xf]  ;;  %v2001_v59 = vld [vmem:[%s3350_s0 + $0x94] sm:$0xf] }
  0x19   :  { %v1739_v60 = vld [vmem:[%s3350_s0 + $0x98] sm:$0xf0]  ;;  %v1849_v2 = vld [vmem:[%s3350_s0 + $0x170] sm:$0xf]  ;;  %v1745_v19 = vld [vmem:[%s3350_s0 + $0xa0] sm:$0xf] }
  0x1a   :  { %664 = vmatpush.bf16.msra.mxu0 %v2048_v12  ;;  %2069 = vmatpush.bf16.msra.mxu2 %v2048_v12  ;;  %v1825_v12 = vld [vmem:[%s3350_s0 + $0x140] sm:$0xf]  ;;  %v1851_v6 = vld [vmem:[%s3350_s0 + $0x178] sm:$0xf0] }
  0x1b   :  { %833 = vmatpush.bf16.msra.mxu1 %v2056_v13  ;;  %2077 = vmatpush.bf16.msra.mxu3 %v2056_v13  ;;  %v2024_v13 = vld [vmem:[%s3350_s0 + $0x144] sm:$0xf0] }
  0x1e   :  { %665 = vmatpush.bf16.msra.mxu0 %v2047_v14  ;;  %2070 = vmatpush.bf16.msra.mxu2 %v2047_v14  ;;  %v2023_v14 = vld [vmem:[%s3350_s0 + $0x144] sm:$0xf] }
  0x1f   :  { %834 = vmatpush.bf16.msra.mxu1 %v2055_v15  ;;  %2078 = vmatpush.bf16.msra.mxu3 %v2055_v15  ;;  %v1826_v15 = vor.u32 %v2024_v13, %v1825_v12  ;;  %v1830_v17 = vor.u32 %v2023_v14, %v1827_v16 }
  0x21   :  { %666 = vmatmul.bf16.vlgmr.msra.gmra.mxu0 %v1666_v20  ;;  %746 = vmatmul.bf16.vlgmr.msra.gmra.mxu2 %v1794_v31  ;;  %v2088_v20 = vmov 0.0   ;;  %v1721_v31 = vld [vmem:[%s3350_s0 + $0x70] sm:$0xf] }
  0x22   :  { %835 = vmatmul.bf16.vlgmr.msra.gmra.mxu1 %v1670_v21  ;;  %915 = vmatmul.bf16.vlgmr.msra.gmra.mxu3 %v1798_v33  ;;  %18 = vst.msk [vmem:[#allocation2] sm:$0xff] %vm17_vm0, %v2088_v20  ;;  %v1995_v21 = vld [vmem:[%s3350_s0 + $0x64] sm:$0xf]  ;;  %v1997_v33 = vld [vmem:[%s3350_s0 + $0x74] sm:$0xf]  ;;  %v1722_v35 = vor.u32 %v1998_v32, %v1721_v31 }
  0x23   :  { %19 = vst.msk [vmem:[#allocation2 + $0x8] sm:$0xff] %vm17_vm0, %v2088_v20  ;;  %v1718_v24 = vor.u32 %v1995_v21, %v1715_v22  ;;  %v1726_v36 = vor.u32 %v1997_v33, %v1723_v34  ;;  %v2004_v21 = vld [vmem:[%s3350_s0 + $0xa4] sm:$0xf0]  ;;  %v2003_v22 = vld [vmem:[%s3350_s0 + $0xa4] sm:$0xf] }
  0x24   :  { %20 = vst.msk [vmem:[#allocation2 + $0x10] sm:$0xff] %vm17_vm0, %v2088_v20  ;;  %v2032_v31 = vld [vmem:[%s3350_s0 + $0x184] sm:$0xf0]  ;;  %v2031_v34 = vld [vmem:[%s3350_s0 + $0x184] sm:$0xf] }
  0x25   :  { %21 = vst.msk [vmem:[#allocation2 + $0x18] sm:$0xff] %vm17_vm0, %v2088_v20 }
  0x26   :  { %22 = vst.msk [vmem:[#allocation2 + $0x20] sm:$0xff] %vm17_vm0, %v2088_v20 }
  0x27   :  { %23 = vst.msk [vmem:[#allocation2 + $0x28] sm:$0xff] %vm17_vm0, %v2088_v20 }
  0x28   :  { %24 = vst.msk [vmem:[#allocation2 + $0x30] sm:$0xff] %vm17_vm0, %v2088_v20 }
  0x29   :  { %25 = vst.msk [vmem:[#allocation2 + $0x38] sm:$0xff] %vm17_vm0, %v2088_v20  ;;  %v82_v44 = vld [vmem:[#allocation2] sm:$0xff] }
  0x2a   :  { %26 = vst.msk [vmem:[#allocation2 + $0x40] sm:$0xff] %vm17_vm0, %v2088_v20  ;;  %v83_v9 = vld [vmem:[#allocation2 + $0x8] sm:$0xff] }
  0x2b   :  { %27 = vst.msk [vmem:[#allocation2 + $0x48] sm:$0xff] %vm17_vm0, %v2088_v20 }
  0x2c   :  { %28 = vst.msk [vmem:[#allocation2 + $0x50] sm:$0xff] %vm17_vm0, %v2088_v20  ;;  %v85_v13 = vld [vmem:[#allocation2 + $0x18] sm:$0xff] }
  0x2d   :  { %29 = vst.msk [vmem:[#allocation2 + $0x58] sm:$0xff] %vm17_vm0, %v2088_v20 }
  0x2e   :  { %30 = vst.msk [vmem:[#allocation2 + $0x60] sm:$0xff] %vm17_vm0, %v2088_v20 }
  0x2f   :  { %31 = vst.msk [vmem:[#allocation2 + $0x68] sm:$0xff] %vm17_vm0, %v2088_v20 }
  0x30   :  { %32 = vst.msk [vmem:[#allocation2 + $0x70] sm:$0xff] %vm17_vm0, %v2088_v20 }
  0x31   :  { %671 = vmatmul.bf16.gmra.mxu0 %v1674_v26  ;;  %751 = vmatmul.bf16.gmra.mxu2 %v1802_v43  ;;  %v2026_v26 = vld [vmem:[%s3350_s0 + $0x154] sm:$0xf0]  ;;  %33 = vst.msk [vmem:[#allocation2 + $0x78] sm:$0xff] %vm17_vm0, %v2088_v20 }
  0x32   :  { %840 = vmatmul.bf16.gmra.mxu1 %v1678_v27  ;;  %920 = vmatmul.bf16.gmra.mxu3 %v1806_v45  ;;  %v1834_v27 = vor.u32 %v2026_v26, %v1833_v25  ;;  %34 = vst.msk [vmem:[#allocation2 + $0x80] sm:$0xff] %vm17_vm0, %v2088_v20 }
  0x33   :  { %35 = vst.msk [vmem:[#allocation2 + $0x88] sm:$0xff] %vm17_vm0, %v2088_v20 }
  0x34   :  { %36 = vst.msk [vmem:[#allocation2 + $0x90] sm:$0xff] %vm17_vm0, %v2088_v20 }
  0x35   :  { %37 = vst.msk [vmem:[#allocation2 + $0x98] sm:$0xff] %vm17_vm0, %v2088_v20 }
  0x36   :  { %38 = vst.msk [vmem:[#allocation2 + $0xa0] sm:$0xff] %vm17_vm0, %v2088_v20 }
  0x37   :  { %39 = vst.msk [vmem:[#allocation2 + $0xa8] sm:$0xff] %vm17_vm0, %v2088_v20 }
  0x38   :  { %40 = vst.msk [vmem:[#allocation2 + $0xb0] sm:$0xff] %vm17_vm0, %v2088_v20 }
  0x39   :  { %41 = vst.msk [vmem:[#allocation2 + $0xb8] sm:$0xff] %vm17_vm0, %v2088_v20 }
  0x3a   :  { %42 = vst.msk [vmem:[#allocation2 + $0xc0] sm:$0xff] %vm17_vm0, %v2088_v20 }
  0x3b   :  { %43 = vst.msk [vmem:[#allocation2 + $0xc8] sm:$0xff] %vm17_vm0, %v2088_v20 }
  0x3c   :  { %44 = vst.msk [vmem:[#allocation2 + $0xd0] sm:$0xff] %vm17_vm0, %v2088_v20 }
  0x3d   :  { %45 = vst.msk [vmem:[#allocation2 + $0xd8] sm:$0xff] %vm17_vm0, %v2088_v20 }
  0x3e   :  { %46 = vst.msk [vmem:[#allocation2 + $0xe0] sm:$0xff] %vm17_vm0, %v2088_v20 }
  0x3f   :  { %47 = vst.msk [vmem:[#allocation2 + $0xe8] sm:$0xff] %vm17_vm0, %v2088_v20 }
  0x40   :  { %48 = vst.msk [vmem:[#allocation2 + $0xf0] sm:$0xff] %vm17_vm0, %v2088_v20 }
  0x41   :  { %676 = vmatmul.bf16.gmra.mxu0 %v1682_v38  ;;  %756 = vmatmul.bf16.gmra.mxu2 %v1810_v55  ;;  %49 = vst.msk [vmem:[#allocation2 + $0xf8] sm:$0xff] %vm17_vm0, %v2088_v20  ;;  %v2000_v38 = vld [vmem:[%s3350_s0 + $0x84] sm:$0xf0] }
  0x42   :  { %845 = vmatmul.bf16.gmra.mxu1 %v1686_v39  ;;  %925 = vmatmul.bf16.gmra.mxu3 %v1814_v57  ;;  %50 = vst.msk [vmem:[#allocation2 + $0x100] sm:$0xff] %vm17_vm0, %v2088_v20  ;;  %v1999_v39 = vld [vmem:[%s3350_s0 + $0x84] sm:$0xf]  ;;  %v1730_v41 = vor.u32 %v2000_v38, %v1729_v37  ;;  %v2002_v57 = vld [vmem:[%s3350_s0 + $0x94] sm:$0xf0] }
  0x43   :  { %51 = vst.msk [vmem:[#allocation2 + $0x108] sm:$0xff] %vm17_vm0, %v2088_v20  ;;  %v1734_v42 = vor.u32 %v1999_v39, %v1731_v40 }
  0x44   :  { %52 = vst.msk [vmem:[#allocation2 + $0x110] sm:$0xff] %vm17_vm0, %v2088_v20 }
  0x45   :  { %53 = vst.msk [vmem:[#allocation2 + $0x118] sm:$0xff] %vm17_vm0, %v2088_v20 }
  0x46   :  { %54 = vst.msk [vmem:[#allocation2 + $0x120] sm:$0xff] %vm17_vm0, %v2088_v20 }
  0x47   :  { %55 = vst.msk [vmem:[#allocation2 + $0x128] sm:$0xff] %vm17_vm0, %v2088_v20 }
  0x48   :  { %56 = vst.msk [vmem:[#allocation2 + $0x130] sm:$0xff] %vm17_vm0, %v2088_v20 }
  0x49   :  { %57 = vst.msk [vmem:[#allocation2 + $0x138] sm:$0xff] %vm17_vm0, %v2088_v20 }
  0x4a   :  { %58 = vst.msk [vmem:[#allocation2 + $0x140] sm:$0xff] %vm17_vm0, %v2088_v20 }
  0x4b   :  { %59 = vst.msk [vmem:[#allocation2 + $0x148] sm:$0xff] %vm17_vm0, %v2088_v20 }
  0x4c   :  { %60 = vst.msk [vmem:[#allocation2 + $0x150] sm:$0xff] %vm17_vm0, %v2088_v20 }
  0x4d   :  { %61 = vst.msk [vmem:[#allocation2 + $0x158] sm:$0xff] %vm17_vm0, %v2088_v20 }
  0x4e   :  { %62 = vst.msk [vmem:[#allocation2 + $0x160] sm:$0xff] %vm17_vm0, %v2088_v20 }
  0x4f   :  { %63 = vst.msk [vmem:[#allocation2 + $0x168] sm:$0xff] %vm17_vm0, %v2088_v20 }
  0x50   :  { %64 = vst.msk [vmem:[#allocation2 + $0x170] sm:$0xff] %vm17_vm0, %v2088_v20 }
  0x51   :  { %681 = vmatmul.bf16.gmra.mxu0 %v1690_v50  ;;  %761 = vmatmul.bf16.gmra.mxu2 %v1818_v3  ;;  %v1842_v50 = vor.u32 %v2028_v48, %v1841_v47  ;;  %65 = vst.msk [vmem:[#allocation2 + $0x178] sm:$0xff] %vm17_vm0, %v2088_v20  ;;  %v2030_v3 = vld [vmem:[%s3350_s0 + $0x174] sm:$0xf0] }
  0x52   :  { %850 = vmatmul.bf16.gmra.mxu1 %v1694_v51  ;;  %930 = vmatmul.bf16.gmra.mxu3 %v1822_v5  ;;  %v2027_v51 = vld [vmem:[%s3350_s0 + $0x164] sm:$0xf]  ;;  %66 = vst.msk [vmem:[#allocation2 + $0x180] sm:$0xff] %vm17_vm0, %v2088_v20  ;;  %v1850_v4 = vor.u32 %v2030_v3, %v1849_v2  ;;  %v2029_v5 = vld [vmem:[%s3350_s0 + $0x174] sm:$0xf] }
  0x53   :  { %v1846_v53 = vor.u32 %v2027_v51, %v1843_v52  ;;  %67 = vst.msk [vmem:[#allocation2 + $0x188] sm:$0xff] %vm17_vm0, %v2088_v20  ;;  %v1854_v7 = vor.u32 %v2029_v5, %v1851_v6  ;;  %v1753_v5 = vld [vmem:[%s3350_s0 + $0xb0] sm:$0xf]  ;;  %v2006_v6 = vld [vmem:[%s3350_s0 + $0xb4] sm:$0xf0] }
  0x54   :  { %68 = vst.msk [vmem:[#allocation2 + $0x190] sm:$0xff] %vm17_vm0, %v2088_v20 }
  0x55   :  { %69 = vst.msk [vmem:[#allocation2 + $0x198] sm:$0xff] %vm17_vm0, %v2088_v20 }
  0x56   :  { %70 = vst.msk [vmem:[#allocation2 + $0x1a0] sm:$0xff] %vm17_vm0, %v2088_v20 }
  0x57   :  { %71 = vst.msk [vmem:[#allocation2 + $0x1a8] sm:$0xff] %vm17_vm0, %v2088_v20 }
  0x58   :  { %72 = vst.msk [vmem:[#allocation2 + $0x1b0] sm:$0xff] %vm17_vm0, %v2088_v20 }
  0x59   :  { %73 = vst.msk [vmem:[#allocation2 + $0x1b8] sm:$0xff] %vm17_vm0, %v2088_v20 }
  0x5a   :  { %74 = vst.msk [vmem:[#allocation2 + $0x1c0] sm:$0xff] %vm17_vm0, %v2088_v20 }
  0x5b   :  { %75 = vst.msk [vmem:[#allocation2 + $0x1c8] sm:$0xff] %vm17_vm0, %v2088_v20 }
  0x5c   :  { %76 = vst.msk [vmem:[#allocation2 + $0x1d0] sm:$0xff] %vm17_vm0, %v2088_v20 }
  0x5d   :  { %77 = vst.msk [vmem:[#allocation2 + $0x1d8] sm:$0xff] %vm17_vm0, %v2088_v20 }
  0x5e   :  { %78 = vst.msk [vmem:[#allocation2 + $0x1e0] sm:$0xff] %vm17_vm0, %v2088_v20 }
  0x5f   :  { %79 = vst.msk [vmem:[#allocation2 + $0x1e8] sm:$0xff] %vm17_vm0, %v2088_v20 }
  0x60   :  { %80 = vst.msk [vmem:[#allocation2 + $0x1f0] sm:$0xff] %vm17_vm0, %v2088_v20 }
  0x61   :  { %686 = vmatmul.bf16.gmra.mxu0 %v1698_v62  ;;  %766 = vmatmul.bf16.gmra.mxu2 %v1826_v15  ;;  %v1738_v62 = vor.u32 %v2002_v57, %v1737_v56  ;;  %81 = vst.msk [vmem:[#allocation2 + $0x1f8] sm:$0xff] %vm17_vm0, %v2088_v20 }
  0x62   :  { %855 = vmatmul.bf16.gmra.mxu1 %v1702_v63  ;;  %935 = vmatmul.bf16.gmra.mxu3 %v1830_v17  ;;  %v1742_v63 = vor.u32 %v2001_v59, %v1739_v60 }
  0x71   :  { %691 = vmatmul.bf16.gmra.mxu0 %v1706_v10  ;;  %771 = vmatmul.bf16.gmra.mxu2 %v1834_v27  ;;  %v86_v27 = vld [vmem:[#allocation2 + $0x20] sm:$0xff] }
  0x72   :  { %860 = vmatmul.bf16.gmra.mxu1 %v1710_v11  ;;  %940 = vmatmul.bf16.gmra.mxu3 %v1838_v30  ;;  %v84_v11 = vld [vmem:[#allocation2 + $0x10] sm:$0xff]  ;;  %v1857_v30 = vld [vmem:[%s3350_s0 + $0x180] sm:$0xf] }
  0x73   :  { %v1858_v33 = vor.u32 %v2032_v31, %v1857_v30  ;;  %v2033_v30 = vld [vmem:[%s3350_s0 + $0x194] sm:$0xf]  ;;  %v1867_v31 = vld [vmem:[%s3350_s0 + $0x198] sm:$0xf0] }
  0x81   :  { %696 = vmatmul.bf16.gmra.mxu0 %v1714_v23  ;;  %776 = vmatmul.bf16.gmra.mxu2 %v1842_v50  ;;  %v1747_v23 = vld [vmem:[%s3350_s0 + $0xa8] sm:$0xf0] }
  0x82   :  { %865 = vmatmul.bf16.gmra.mxu1 %v1718_v24  ;;  %945 = vmatmul.bf16.gmra.mxu3 %v1846_v53  ;;  %v1746_v24 = vor.u32 %v2004_v21, %v1745_v19  ;;  %v1750_v25 = vor.u32 %v2003_v22, %v1747_v23  ;;  %v88_v22 = vld [vmem:[#allocation2 + $0x30] sm:$0xff] }
  0x91   :  { %701 = vmatmul.bf16.gmra.mxu0 %v1722_v35  ;;  %781 = vmatmul.bf16.gmra.mxu2 %v1850_v4  ;;  %v1859_v35 = vld [vmem:[%s3350_s0 + $0x188] sm:$0xf0] }
  0x92   :  { %870 = vmatmul.bf16.gmra.mxu1 %v1726_v36  ;;  %950 = vmatmul.bf16.gmra.mxu3 %v1854_v7  ;;  %v1862_v37 = vor.u32 %v2031_v34, %v1859_v35  ;;  %v1870_v34 = vor.u32 %v2033_v30, %v1867_v31 }
  0x9e   :  { %v667_v43 = vpop.f32.mrf.mxu0 }
  0x9f   :  { %v836_v45 = vpop.f32.mrf.mxu1 }
  0xa0   :  { %v837_v46 = vadd.f32 %v836_v45, %v667_v43 }
  0xa1   :  { %706 = vmatmul.bf16.gmra.mxu0 %v1730_v41  ;;  %786 = vmatmul.bf16.gmra.mxu2 %v1858_v33 }
  0xa2   :  { %v996_v49 = vadd.f32 %v837_v46, %v82_v44  ;;  %875 = vmatmul.bf16.gmra.mxu1 %v1734_v42  ;;  %955 = vmatmul.bf16.gmra.mxu3 %v1862_v37 }
  0xa4   :  { %1061 = vst.msk [vmem:[#allocation2] sm:$0xff] %vm17_vm0, %v996_v49  ;;  %v747_v32 = vpop.f32.mrf.mxu2 }
  0xa6   :  { %v669_v54 = vpop.f32.mrf.mxu0 }
  0xa7   :  { %v838_v55 = vpop.f32.mrf.mxu1 }
  0xa8   :  { %v839_v8 = vadd.f32 %v838_v55, %v669_v54 }
  0xaa   :  { %v997_v15 = vadd.f32 %v839_v8, %v83_v9  ;;  %v2005_v9 = vld [vmem:[%s3350_s0 + $0xb4] sm:$0xf] }
  0xab   :  { %v2452_v58 = vld [vmem:[#allocation2] sm:$0xff] }
  0xac   :  { %v1526_v61 = vpack.c.bf16 %v2452_v58, %v2452_v58  ;;  %1062 = vst.msk [vmem:[#allocation2 + $0x8] sm:$0xff] %vm17_vm0, %v997_v15  ;;  %v1325_v20 = vmul.f32 %v2452_v58, %v2452_v58  ;;  %v1192_v38 = vsel %vm17_vm0, %v2452_v58, 0.0  ;;  %v87_v58 = vld [vmem:[#allocation2 + $0x28] sm:$0xff] }
  0xae   :  { %1591 = vst.msk [vmem:[%s3351_s2] sm:$0xf] %vm1590_vm1, %v1526_v61  ;;  %v672_v0 = vpop.f32.mrf.mxu0  ;;  %v1389_v40 = vsel %vm17_vm0, %v1325_v20, 0.0 }
  0xaf   :  { %v841_v1 = vpop.f32.mrf.mxu1 }
  0xb0   :  { %v842_v10 = vadd.f32 %v841_v1, %v672_v0  ;;  %v749_v0 = vpop.f32.mrf.mxu2 }
  0xb1   :  { %711 = vmatmul.bf16.gmra.mxu0 %v1738_v62  ;;  %v114_v62 = vld [vmem:[#allocation2 + $0x100] sm:$0xff] }
  0xb2   :  { %880 = vmatmul.bf16.gmra.mxu1 %v1742_v63  ;;  %v998_v17 = vadd.f32 %v842_v10, %v84_v11  ;;  %v916_v63 = vpop.f32.mrf.mxu3  ;;  %v1755_v10 = vld [vmem:[%s3350_s0 + $0xb8] sm:$0xf0]  ;;  %960 = vmatmul.bf16.gmra.mxu3 %v1870_v34 }
  0xb3   :  { %v1129_v39 = vld [vmem:[#allocation2 + $0x8] sm:$0xff]  ;;  %v917_v3 = vadd.f32 %v916_v63, %v747_v32 }
  0xb4   :  { %1063 = vst.msk [vmem:[#allocation2 + $0x10] sm:$0xff] %vm17_vm0, %v998_v17  ;;  %v1193_v41 = vsel %vm17_vm0, %v1129_v39, 0.0  ;;  %v1326_v42 = vmul.f32 %v1129_v39, %v1129_v39  ;;  %v1527_v43 = vpack.c.bf16 %v1129_v39, %v1129_v39  ;;  %v1754_v17 = vor.u32 %v2006_v6, %v1753_v5 }
  0xb5   :  { %v1194_v45 = vadd.f32 %v1193_v41, %v1192_v38  ;;  %v1028_v11 = vadd.f32 %v917_v3, %v114_v62 }
  0xb6   :  { %v674_v12 = vpop.f32.mrf.mxu0  ;;  %v1390_v50 = vsel %vm17_vm0, %v1326_v42, 0.0  ;;  %1592 = vst.msk [vmem:[%s3351_s2 + $0x4] sm:$0xf] %vm1590_vm1, %v1527_v43 }
  0xb7   :  { %v843_v14 = vpop.f32.mrf.mxu1  ;;  %v1391_v54 = vadd.f32 %v1390_v50, %v1389_v40  ;;  %1093 = vst.msk [vmem:[#allocation2 + $0x100] sm:$0xff] %vm17_vm0, %v1028_v11 }
  0xb8   :  { %v844_v16 = vadd.f32 %v843_v14, %v674_v12 }
  0xba   :  { %v999_v18 = vadd.f32 %v844_v16, %v85_v13 }
  0xbb   :  { %v1130_v44 = vld [vmem:[#allocation2 + $0x10] sm:$0xff] }
  0xbc   :  { %1064 = vst.msk [vmem:[#allocation2 + $0x18] sm:$0xff] %vm17_vm0, %v999_v18  ;;  %v1195_v46 = vsel %vm17_vm0, %v1130_v44, 0.0  ;;  %v1327_v47 = vmul.f32 %v1130_v44, %v1130_v44  ;;  %v1528_v48 = vpack.c.bf16 %v1130_v44, %v1130_v44  ;;  %v1758_v18 = vor.u32 %v2005_v9, %v1755_v10  ;;  %v117_v10 = vld [vmem:[#allocation2 + $0x118] sm:$0xff] }
  0xbd   :  { %v1196_v55 = vadd.f32 %v1195_v46, %v1194_v45  ;;  %v89_v46 = vld [vmem:[#allocation2 + $0x38] sm:$0xff] }
  0xbe   :  { %v677_v26 = vpop.f32.mrf.mxu0  ;;  %v1392_v56 = vsel %vm17_vm0, %v1327_v47, 0.0  ;;  %1593 = vst.msk [vmem:[%s3351_s2 + $0x8] sm:$0xf] %vm1590_vm1, %v1528_v48  ;;  %v1160_v40 = vld [vmem:[#allocation2 + $0x100] sm:$0xff] }
  0xbf   :  { %v846_v28 = vpop.f32.mrf.mxu1  ;;  %v1393_v1 = vadd.f32 %v1392_v56, %v1391_v54  ;;  %v1558_v42 = vpack.c.bf16 %v1160_v40, %v1160_v40  ;;  %v1761_v54 = vld [vmem:[%s3350_s0 + $0xc0] sm:$0xf]  ;;  %v1769_v40 = vld [vmem:[%s3350_s0 + $0xd0] sm:$0xf] }
  0xc0   :  { %v847_v29 = vadd.f32 %v846_v28, %v677_v26  ;;  %v918_v26 = vpop.f32.mrf.mxu3  ;;  %v752_v28 = vpop.f32.mrf.mxu2 }
  0xc1   :  { %716 = vmatmul.bf16.gmra.mxu0 %v1746_v24  ;;  %v919_v20 = vadd.f32 %v918_v26, %v749_v0  ;;  %1623 = vst.msk [vmem:[%s3351_s2 + $0x80] sm:$0xf] %vm1590_vm1, %v1558_v42 }
  0xc2   :  { %v1000_v36 = vadd.f32 %v847_v29, %v86_v27  ;;  %885 = vmatmul.bf16.gmra.mxu1 %v1750_v25  ;;  %v115_v25 = vld [vmem:[#allocation2 + $0x108] sm:$0xff]  ;;  %v1865_v27 = vld [vmem:[%s3350_s0 + $0x190] sm:$0xf]  ;;  %v2034_v29 = vld [vmem:[%s3350_s0 + $0x194] sm:$0xf0] }
  0xc3   :  { %v1131_v49 = vld [vmem:[#allocation2 + $0x18] sm:$0xff]  ;;  %v1866_v33 = vor.u32 %v2034_v29, %v1865_v27 }
  0xc4   :  { %1065 = vst.msk [vmem:[#allocation2 + $0x20] sm:$0xff] %vm17_vm0, %v1000_v36  ;;  %v1197_v51 = vsel %vm17_vm0, %v1131_v49, 0.0  ;;  %v1328_v52 = vmul.f32 %v1131_v49, %v1131_v49  ;;  %v1529_v53 = vpack.c.bf16 %v1131_v49, %v1131_v49  ;;  %v1029_v36 = vadd.f32 %v919_v20, %v115_v25  ;;  %v116_v49 = vld [vmem:[#allocation2 + $0x110] sm:$0xff] }
  0xc5   :  { %v1198_v2 = vadd.f32 %v1197_v51, %v1196_v55  ;;  %791 = vmatmul.bf16.gmra.mxu2 %v1866_v33  ;;  %v2008_v55 = vld [vmem:[%s3350_s0 + $0xc4] sm:$0xf0] }
  0xc6   :  { %v679_v57 = vpop.f32.mrf.mxu0  ;;  %v1394_v60 = vsel %vm17_vm0, %v1328_v52, 0.0  ;;  %1594 = vst.msk [vmem:[%s3351_s2 + $0xc] sm:$0xf] %vm1590_vm1, %v1529_v53  ;;  %v1762_v3 = vor.u32 %v2008_v55, %v1761_v54 }
  0xc7   :  { %v848_v59 = vpop.f32.mrf.mxu1  ;;  %v1395_v7 = vadd.f32 %v1394_v60, %v1393_v1  ;;  %1094 = vst.msk [vmem:[#allocation2 + $0x108] sm:$0xff] %vm17_vm0, %v1029_v36 }
  0xc8   :  { %v849_v61 = vadd.f32 %v848_v59, %v679_v57  ;;  %v921_v50 = vpop.f32.mrf.mxu3  ;;  %v754_v51 = vpop.f32.mrf.mxu2  ;;  %v2007_v57 = vld [vmem:[%s3350_s0 + $0xc4] sm:$0xf] }
  0xc9   :  { %v922_v52 = vadd.f32 %v921_v50, %v752_v28 }
  0xca   :  { %v1001_v4 = vadd.f32 %v849_v61, %v87_v58  ;;  %v1763_v58 = vld [vmem:[%s3350_s0 + $0xc8] sm:$0xf0] }
  0xcb   :  { %v1132_v8 = vld [vmem:[#allocation2 + $0x20] sm:$0xff]  ;;  %v1030_v59 = vadd.f32 %v922_v52, %v116_v49 }
  0xcc   :  { %v1199_v12 = vsel %vm17_vm0, %v1132_v8, 0.0  ;;  %v1329_v13 = vmul.f32 %v1132_v8, %v1132_v8  ;;  %v1530_v14 = vpack.c.bf16 %v1132_v8, %v1132_v8  ;;  %1066 = vst.msk [vmem:[#allocation2 + $0x28] sm:$0xff] %vm17_vm0, %v1001_v4  ;;  %v1766_v4 = vor.u32 %v2007_v57, %v1763_v58  ;;  %v92_v57 = vld [vmem:[#allocation2 + $0x50] sm:$0xff] }
  0xcd   :  { %v1200_v15 = vadd.f32 %v1199_v12, %v1198_v2  ;;  %1095 = vst.msk [vmem:[#allocation2 + $0x110] sm:$0xff] %vm17_vm0, %v1030_v59 }
  0xce   :  { %v1396_v16 = vsel %vm17_vm0, %v1329_v13, 0.0  ;;  %1595 = vst.msk [vmem:[%s3351_s2 + $0x10] sm:$0xf] %vm1590_vm1, %v1530_v14  ;;  %v682_v21 = vpop.f32.mrf.mxu0  ;;  %v1161_v63 = vld [vmem:[#allocation2 + $0x108] sm:$0xff]  ;;  %v1873_v14 = vld [vmem:[%s3350_s0 + $0x1a0] sm:$0xf] }
  0xcf   :  { %v1397_v19 = vadd.f32 %v1396_v16, %v1395_v7  ;;  %v851_v23 = vpop.f32.mrf.mxu1  ;;  %v1559_v1 = vpack.c.bf16 %v1161_v63, %v1161_v63  ;;  %v90_v7 = vld [vmem:[#allocation2 + $0x40] sm:$0xff] }
  0xd0   :  { %v852_v24 = vadd.f32 %v851_v23, %v682_v21  ;;  %v923_v11 = vpop.f32.mrf.mxu3  ;;  %v757_v12 = vpop.f32.mrf.mxu2  ;;  %v2035_v16 = vld [vmem:[%s3350_s0 + $0x1a4] sm:$0xf] }
  0xd1   :  { %721 = vmatmul.bf16.gmra.mxu0 %v1754_v17  ;;  %1624 = vst.msk [vmem:[%s3351_s2 + $0x84] sm:$0xf] %vm1590_vm1, %v1559_v1  ;;  %v924_v13 = vadd.f32 %v923_v11, %v754_v51  ;;  %v2038_v1 = vld [vmem:[%s3350_s0 + $0x1b4] sm:$0xf0] }
  0xd2   :  { %v1002_v32 = vadd.f32 %v852_v24, %v88_v22  ;;  %890 = vmatmul.bf16.gmra.mxu1 %v1758_v18 }
  0xd3   :  { %v1133_v35 = vld [vmem:[#allocation2 + $0x28] sm:$0xff]  ;;  %v1031_v22 = vadd.f32 %v924_v13, %v117_v10 }
  0xd4   :  { %v1201_v37 = vsel %vm17_vm0, %v1133_v35, 0.0  ;;  %v1330_v38 = vmul.f32 %v1133_v35, %v1133_v35  ;;  %v1531_v39 = vpack.c.bf16 %v1133_v35, %v1133_v35  ;;  %1067 = vst.msk [vmem:[#allocation2 + $0x30] sm:$0xff] %vm17_vm0, %v1002_v32  ;;  %v1162_v27 = vld [vmem:[#allocation2 + $0x110] sm:$0xff]  ;;  %v91_v32 = vld [vmem:[#allocation2 + $0x48] sm:$0xff]  ;;  %v118_v35 = vld [vmem:[#allocation2 + $0x120] sm:$0xff] }
  0xd5   :  { %v1202_v41 = vadd.f32 %v1201_v37, %v1200_v15  ;;  %v2036_v15 = vld [vmem:[%s3350_s0 + $0x1a4] sm:$0xf0]  ;;  %v1560_v20 = vpack.c.bf16 %v1162_v27, %v1162_v27  ;;  %1096 = vst.msk [vmem:[#allocation2 + $0x118] sm:$0xff] %vm17_vm0, %v1031_v22  ;;  %v120_v22 = vld [vmem:[#allocation2 + $0x130] sm:$0xff]  ;;  %v1777_v27 = vld [vmem:[%s3350_s0 + $0xe0] sm:$0xf] }
  0xd6   :  { %v1398_v43 = vsel %vm17_vm0, %v1330_v38, 0.0  ;;  %1596 = vst.msk [vmem:[%s3351_s2 + $0x14] sm:$0xf] %vm1590_vm1, %v1531_v39  ;;  %v684_v45 = vpop.f32.mrf.mxu0  ;;  %v1874_v18 = vor.u32 %v2036_v15, %v1873_v14 }
  0xd7   :  { %v1399_v44 = vadd.f32 %v1398_v43, %v1397_v19  ;;  %v853_v47 = vpop.f32.mrf.mxu1  ;;  %v1875_v19 = vld [vmem:[%s3350_s0 + $0x1a8] sm:$0xf0]  ;;  %1625 = vst.msk [vmem:[%s3351_s2 + $0x88] sm:$0xf] %vm1590_vm1, %v1560_v20  ;;  %v2009_v43 = vld [vmem:[%s3350_s0 + $0xd4] sm:$0xf] }
  0xd8   :  { %v854_v48 = vadd.f32 %v853_v47, %v684_v45  ;;  %v1878_v23 = vor.u32 %v2035_v16, %v1875_v19  ;;  %796 = vmatmul.bf16.gmra.mxu2 %v1874_v18  ;;  %v926_v36 = vpop.f32.mrf.mxu3  ;;  %v759_v37 = vpop.f32.mrf.mxu2  ;;  %v93_v18 = vld [vmem:[#allocation2 + $0x58] sm:$0xff] }
  0xd9   :  { %v927_v38 = vadd.f32 %v926_v36, %v757_v12 }
  0xda   :  { %v1003_v53 = vadd.f32 %v854_v48, %v89_v46  ;;  %965 = vmatmul.bf16.gmra.mxu3 %v1878_v23 }
  0xdb   :  { %v1134_v56 = vld [vmem:[#allocation2 + $0x30] sm:$0xff]  ;;  %v1032_v45 = vadd.f32 %v927_v38, %v118_v35 }
  0xdc   :  { %v1203_v60 = vsel %vm17_vm0, %v1134_v56, 0.0  ;;  %v1331_v61 = vmul.f32 %v1134_v56, %v1134_v56  ;;  %v1532_v62 = vpack.c.bf16 %v1134_v56, %v1134_v56  ;;  %1068 = vst.msk [vmem:[#allocation2 + $0x38] sm:$0xff] %vm17_vm0, %v1003_v53  ;;  %v1163_v49 = vld [vmem:[#allocation2 + $0x118] sm:$0xff] }
  0xdd   :  { %v1204_v0 = vadd.f32 %v1203_v60, %v1202_v41  ;;  %v2010_v41 = vld [vmem:[%s3350_s0 + $0xd4] sm:$0xf0]  ;;  %v1561_v51 = vpack.c.bf16 %v1163_v49, %v1163_v49  ;;  %1097 = vst.msk [vmem:[#allocation2 + $0x120] sm:$0xff] %vm17_vm0, %v1032_v45  ;;  %v119_v60 = vld [vmem:[#allocation2 + $0x128] sm:$0xff] }
  0xde   :  { %v1400_v2 = vsel %vm17_vm0, %v1331_v61, 0.0  ;;  %1597 = vst.msk [vmem:[%s3351_s2 + $0x18] sm:$0xf] %vm1590_vm1, %v1532_v62  ;;  %v687_v6 = vpop.f32.mrf.mxu0  ;;  %v1770_v53 = vor.u32 %v2010_v41, %v1769_v40 }
  0xdf   :  { %v1401_v5 = vadd.f32 %v1400_v2, %v1399_v44  ;;  %v856_v8 = vpop.f32.mrf.mxu1  ;;  %v1771_v44 = vld [vmem:[%s3350_s0 + $0xd8] sm:$0xf0]  ;;  %1626 = vst.msk [vmem:[%s3351_s2 + $0x8c] sm:$0xf] %vm1590_vm1, %v1561_v51  ;;  %v2037_v2 = vld [vmem:[%s3350_s0 + $0x1b4] sm:$0xf] }
  0xe0   :  { %v857_v9 = vadd.f32 %v856_v8, %v687_v6  ;;  %v1774_v54 = vor.u32 %v2009_v43, %v1771_v44  ;;  %v928_v61 = vpop.f32.mrf.mxu3  ;;  %v762_v62 = vpop.f32.mrf.mxu2  ;;  %v94_v43 = vld [vmem:[#allocation2 + $0x60] sm:$0xff]  ;;  %v2040_v51 = vld [vmem:[%s3350_s0 + $0x1c4] sm:$0xf0] }
  0xe1   :  { %726 = vmatmul.bf16.gmra.mxu0 %v1762_v3  ;;  %v929_v63 = vadd.f32 %v928_v61, %v759_v37 }
  0xe2   :  { %v1004_v17 = vadd.f32 %v857_v9, %v90_v7  ;;  %895 = vmatmul.bf16.gmra.mxu1 %v1766_v4 }
  0xe3   :  { %v1135_v21 = vld [vmem:[#allocation2 + $0x38] sm:$0xff]  ;;  %v1033_v7 = vadd.f32 %v929_v63, %v119_v60 }
  0xe4   :  { %v1205_v24 = vsel %vm17_vm0, %v1135_v21, 0.0  ;;  %v1332_v25 = vmul.f32 %v1135_v21, %v1135_v21  ;;  %v1533_v26 = vpack.c.bf16 %v1135_v21, %v1135_v21  ;;  %1069 = vst.msk [vmem:[#allocation2 + $0x40] sm:$0xff] %vm17_vm0, %v1004_v17  ;;  %v1164_v12 = vld [vmem:[#allocation2 + $0x120] sm:$0xff] }
  0xe5   :  { %v1206_v28 = vadd.f32 %v1205_v24, %v1204_v0  ;;  %v1881_v0 = vld [vmem:[%s3350_s0 + $0x1b0] sm:$0xf]  ;;  %v1562_v14 = vpack.c.bf16 %v1164_v12, %v1164_v12  ;;  %1098 = vst.msk [vmem:[#allocation2 + $0x128] sm:$0xff] %vm17_vm0, %v1033_v7  ;;  %v122_v7 = vld [vmem:[#allocation2 + $0x140] sm:$0xff]  ;;  %v2014_v12 = vld [vmem:[%s3350_s0 + $0xf4] sm:$0xf0] }
  0xe6   :  { %v1402_v29 = vsel %vm17_vm0, %v1332_v25, 0.0  ;;  %1598 = vst.msk [vmem:[%s3351_s2 + $0x1c] sm:$0xf] %vm1590_vm1, %v1533_v26  ;;  %v689_v31 = vpop.f32.mrf.mxu0  ;;  %v1882_v4 = vor.u32 %v2038_v1, %v1881_v0 }
  0xe7   :  { %v1403_v30 = vadd.f32 %v1402_v29, %v1401_v5  ;;  %v858_v33 = vpop.f32.mrf.mxu1  ;;  %v1883_v5 = vld [vmem:[%s3350_s0 + $0x1b8] sm:$0xf0]  ;;  %1627 = vst.msk [vmem:[%s3351_s2 + $0x90] sm:$0xf] %vm1590_vm1, %v1562_v14  ;;  %v2011_v29 = vld [vmem:[%s3350_s0 + $0xe4] sm:$0xf] }
  0xe8   :  { %v859_v34 = vadd.f32 %v858_v33, %v689_v31  ;;  %v1886_v8 = vor.u32 %v2037_v2, %v1883_v5  ;;  %801 = vmatmul.bf16.gmra.mxu2 %v1882_v4  ;;  %v931_v23 = vpop.f32.mrf.mxu3  ;;  %v764_v24 = vpop.f32.mrf.mxu2  ;;  %v95_v4 = vld [vmem:[#allocation2 + $0x68] sm:$0xff] }
  0xe9   :  { %v932_v25 = vadd.f32 %v931_v23, %v762_v62 }
  0xea   :  { %v1005_v39 = vadd.f32 %v859_v34, %v91_v32  ;;  %970 = vmatmul.bf16.gmra.mxu3 %v1886_v8 }
  0xeb   :  { %v1136_v42 = vld [vmem:[#allocation2 + $0x40] sm:$0xff]  ;;  %v1034_v31 = vadd.f32 %v932_v25, %v120_v22 }
  0xec   :  { %v1207_v46 = vsel %vm17_vm0, %v1136_v42, 0.0  ;;  %v1333_v47 = vmul.f32 %v1136_v42, %v1136_v42  ;;  %v1534_v48 = vpack.c.bf16 %v1136_v42, %v1136_v42  ;;  %1070 = vst.msk [vmem:[#allocation2 + $0x48] sm:$0xff] %vm17_vm0, %v1005_v39  ;;  %v1165_v35 = vld [vmem:[#allocation2 + $0x128] sm:$0xff] }
  0xed   :  { %v1208_v50 = vadd.f32 %v1207_v46, %v1206_v28  ;;  %v2012_v28 = vld [vmem:[%s3350_s0 + $0xe4] sm:$0xf0]  ;;  %v1563_v37 = vpack.c.bf16 %v1165_v35, %v1165_v35  ;;  %1099 = vst.msk [vmem:[#allocation2 + $0x130] sm:$0xff] %vm17_vm0, %v1034_v31  ;;  %v121_v46 = vld [vmem:[#allocation2 + $0x138] sm:$0xff] }
  0xee   :  { %v1404_v52 = vsel %vm17_vm0, %v1333_v47, 0.0  ;;  %1599 = vst.msk [vmem:[%s3351_s2 + $0x20] sm:$0xf] %vm1590_vm1, %v1534_v48  ;;  %v692_v56 = vpop.f32.mrf.mxu0  ;;  %v1778_v39 = vor.u32 %v2012_v28, %v1777_v27  ;;  %v123_v31 = vld [vmem:[#allocation2 + $0x148] sm:$0xff]  ;;  %v2042_v35 = vld [vmem:[%s3350_s0 + $0x1d4] sm:$0xf0] }
  0xef   :  { %v1405_v55 = vadd.f32 %v1404_v52, %v1403_v30  ;;  %v861_v58 = vpop.f32.mrf.mxu1  ;;  %v1779_v30 = vld [vmem:[%s3350_s0 + $0xe8] sm:$0xf0]  ;;  %1628 = vst.msk [vmem:[%s3351_s2 + $0x94] sm:$0xf] %vm1590_vm1, %v1563_v37  ;;  %v2039_v52 = vld [vmem:[%s3350_s0 + $0x1c4] sm:$0xf] }
  0xf0   :  { %v862_v59 = vadd.f32 %v861_v58, %v692_v56  ;;  %v1782_v40 = vor.u32 %v2011_v29, %v1779_v30  ;;  %v933_v47 = vpop.f32.mrf.mxu3  ;;  %v767_v48 = vpop.f32.mrf.mxu2  ;;  %v96_v29 = vld [vmem:[#allocation2 + $0x70] sm:$0xff]  ;;  %v1899_v37 = vld [vmem:[%s3350_s0 + $0x1d8] sm:$0xf0] }
  0xf1   :  { %731 = vmatmul.bf16.gmra.mxu0 %v1770_v53  ;;  %v934_v49 = vadd.f32 %v933_v47, %v764_v24 }
  0xf2   :  { %v1006_v3 = vadd.f32 %v862_v59, %v92_v57  ;;  %900 = vmatmul.bf16.gmra.mxu1 %v1774_v54 }
  0xf3   :  { %v1137_v6 = vld [vmem:[#allocation2 + $0x48] sm:$0xff]  ;;  %v1035_v57 = vadd.f32 %v934_v49, %v121_v46 }
  0xf4   :  { %v1209_v9 = vsel %vm17_vm0, %v1137_v6, 0.0  ;;  %v1334_v10 = vmul.f32 %v1137_v6, %v1137_v6  ;;  %v1535_v11 = vpack.c.bf16 %v1137_v6, %v1137_v6  ;;  %1071 = vst.msk [vmem:[#allocation2 + $0x50] sm:$0xff] %vm17_vm0, %v1006_v3  ;;  %v1166_v62 = vld [vmem:[#allocation2 + $0x130] sm:$0xff] }
  0xf5   :  { %v1210_v13 = vadd.f32 %v1209_v9, %v1208_v50  ;;  %v1889_v50 = vld [vmem:[%s3350_s0 + $0x1c0] sm:$0xf]  ;;  %v1564_v0 = vpack.c.bf16 %v1166_v62, %v1166_v62  ;;  %1100 = vst.msk [vmem:[#allocation2 + $0x138] sm:$0xff] %vm17_vm0, %v1035_v57  ;;  %v124_v57 = vld [vmem:[#allocation2 + $0x150] sm:$0xff] }
  0xf6   :  { %v1406_v15 = vsel %vm17_vm0, %v1334_v10, 0.0  ;;  %1600 = vst.msk [vmem:[%s3351_s2 + $0x24] sm:$0xf] %vm1590_vm1, %v1535_v11  ;;  %v694_v17 = vpop.f32.mrf.mxu0  ;;  %v1890_v54 = vor.u32 %v2040_v51, %v1889_v50  ;;  %v1785_v11 = vld [vmem:[%s3350_s0 + $0xf0] sm:$0xf] }
  0xf7   :  { %v1407_v16 = vadd.f32 %v1406_v15, %v1405_v55  ;;  %v863_v19 = vpop.f32.mrf.mxu1  ;;  %v1891_v55 = vld [vmem:[%s3350_s0 + $0x1c8] sm:$0xf0]  ;;  %1629 = vst.msk [vmem:[%s3351_s2 + $0x98] sm:$0xf] %vm1590_vm1, %v1564_v0  ;;  %v2013_v15 = vld [vmem:[%s3350_s0 + $0xf4] sm:$0xf] }
  0xf8   :  { %v864_v21 = vadd.f32 %v863_v19, %v694_v17  ;;  %v1894_v58 = vor.u32 %v2039_v52, %v1891_v55  ;;  %806 = vmatmul.bf16.gmra.mxu2 %v1890_v54  ;;  %v936_v8 = vpop.f32.mrf.mxu3  ;;  %v97_v54 = vld [vmem:[#allocation2 + $0x78] sm:$0xff] }
  0xf9   :  { %v937_v9 = vadd.f32 %v936_v8, %v767_v48 }
  0xfa   :  { %v1007_v26 = vadd.f32 %v864_v21, %v93_v18  ;;  %975 = vmatmul.bf16.gmra.mxu3 %v1894_v58 }
  0xfb   :  { %v1138_v20 = vld [vmem:[#allocation2 + $0x50] sm:$0xff]  ;;  %v1036_v17 = vadd.f32 %v937_v9, %v122_v7  ;;  %v98_v9 = vld [vmem:[#allocation2 + $0x80] sm:$0xff] }
  0xfc   :  { %v1211_v32 = vsel %vm17_vm0, %v1138_v20, 0.0  ;;  %v1335_v33 = vmul.f32 %v1138_v20, %v1138_v20  ;;  %v1536_v34 = vpack.c.bf16 %v1138_v20, %v1138_v20  ;;  %1072 = vst.msk [vmem:[#allocation2 + $0x58] sm:$0xff] %vm17_vm0, %v1007_v26  ;;  %v2763_v22 = vld [vmem:[#allocation2 + $0x138] sm:$0xff]  ;;  %v1786_v26 = vor.u32 %v2014_v12, %v1785_v11  ;;  %v1905_v12 = vld [vmem:[%s3350_s0 + $0x1e0] sm:$0xf] }
  0xfd   :  { %v1212_v36 = vadd.f32 %v1211_v32, %v1210_v13  ;;  %v769_v13 = vpop.f32.mrf.mxu2  ;;  %v1565_v24 = vpack.c.bf16 %v2763_v22, %v2763_v22  ;;  %1101 = vst.msk [vmem:[#allocation2 + $0x140] sm:$0xff] %vm17_vm0, %v1036_v17  ;;  %v1897_v32 = vld [vmem:[%s3350_s0 + $0x1d0] sm:$0xf]  ;;  %v125_v11 = vld [vmem:[#allocation2 + $0x158] sm:$0xff]  ;;  %v1907_v17 = vld [vmem:[%s3350_s0 + $0x1e8] sm:$0xf0] }
  0xfe   :  { %v1408_v38 = vsel %vm17_vm0, %v1335_v33, 0.0  ;;  %1601 = vst.msk [vmem:[%s3351_s2 + $0x28] sm:$0xf] %vm1590_vm1, %v1536_v34  ;;  %v697_v42 = vpop.f32.mrf.mxu0 }
  0xff   :  { %v1409_v41 = vadd.f32 %v1408_v38, %v1407_v16  ;;  %v866_v44 = vpop.f32.mrf.mxu1  ;;  %v1787_v16 = vld [vmem:[%s3350_s0 + $0xf8] sm:$0xf0]  ;;  %1630 = vst.msk [vmem:[%s3351_s2 + $0x9c] sm:$0xf] %vm1590_vm1, %v1565_v24 }
 0x100   :  { %v867_v45 = vadd.f32 %v866_v44, %v697_v42  ;;  %v1790_v27 = vor.u32 %v2013_v15, %v1787_v16  ;;  %v938_v34 = vpop.f32.mrf.mxu3  ;;  %v2044_v15 = vld [vmem:[%s3350_s0 + $0x1e4] sm:$0xf0]  ;;  %v2043_v16 = vld [vmem:[%s3350_s0 + $0x1e4] sm:$0xf] }
 0x101   :  { %736 = vmatmul.bf16.gmra.mxu0 %v1778_v39  ;;  %v939_v38 = vadd.f32 %v938_v34, %v769_v13  ;;  %v1898_v39 = vor.u32 %v2042_v35, %v1897_v32  ;;  %v99_v34 = vld [vmem:[#allocation2 + $0x88] sm:$0xff] }
 0x102   :  { %v1008_v53 = vadd.f32 %v867_v45, %v94_v43  ;;  %905 = vmatmul.bf16.gmra.mxu1 %v1782_v40 }
 0x103   :  { %v1139_v56 = vld [vmem:[#allocation2 + $0x58] sm:$0xff]  ;;  %v1037_v43 = vadd.f32 %v939_v38, %v123_v31  ;;  %v126_v38 = vld [vmem:[#allocation2 + $0x160] sm:$0xff] }
 0x104   :  { %v1213_v59 = vsel %vm17_vm0, %v1139_v56, 0.0  ;;  %v1336_v60 = vmul.f32 %v1139_v56, %v1139_v56  ;;  %v1537_v61 = vpack.c.bf16 %v1139_v56, %v1139_v56  ;;  %1073 = vst.msk [vmem:[#allocation2 + $0x60] sm:$0xff] %vm17_vm0, %v1008_v53  ;;  %v2791_v47 = vld [vmem:[#allocation2 + $0x140] sm:$0xff] }
 0x105   :  { %v1214_v63 = vadd.f32 %v1213_v59, %v1212_v36  ;;  %v2041_v36 = vld [vmem:[%s3350_s0 + $0x1d4] sm:$0xf]  ;;  %v772_v48 = vpop.f32.mrf.mxu2  ;;  %v1566_v50 = vpack.c.bf16 %v2791_v47, %v2791_v47  ;;  %1102 = vst.msk [vmem:[#allocation2 + $0x148] sm:$0xff] %vm17_vm0, %v1037_v43 }
 0x106   :  { %v1410_v1 = vsel %vm17_vm0, %v1336_v60, 0.0  ;;  %1602 = vst.msk [vmem:[%s3351_s2 + $0x2c] sm:$0xf] %vm1590_vm1, %v1537_v61  ;;  %v699_v3 = vpop.f32.mrf.mxu0  ;;  %v1902_v40 = vor.u32 %v2041_v36, %v1899_v37 }
 0x107   :  { %v1411_v2 = vadd.f32 %v1410_v1, %v1409_v41  ;;  %v868_v5 = vpop.f32.mrf.mxu1  ;;  %1631 = vst.msk [vmem:[%s3351_s2 + $0xa0] sm:$0xf] %vm1590_vm1, %v1566_v50 }
 0x108   :  { %v869_v6 = vadd.f32 %v868_v5, %v699_v3  ;;  %811 = vmatmul.bf16.gmra.mxu2 %v1898_v39  ;;  %v941_v58 = vpop.f32.mrf.mxu3 }
 0x109   :  { %v942_v59 = vadd.f32 %v941_v58, %v772_v48 }
 0x10a   :  { %v1009_v10 = vadd.f32 %v869_v6, %v95_v4  ;;  %980 = vmatmul.bf16.gmra.mxu3 %v1902_v40 }
 0x10b   :  { %v1140_v14 = vld [vmem:[#allocation2 + $0x60] sm:$0xff]  ;;  %v1038_v62 = vadd.f32 %v942_v59, %v124_v57  ;;  %v1913_v57 = vld [vmem:[%s3350_s0 + $0x1f0] sm:$0xf] }
 0x10c   :  { %v1215_v18 = vsel %vm17_vm0, %v1140_v14, 0.0  ;;  %v1337_v19 = vmul.f32 %v1140_v14, %v1140_v14  ;;  %v1538_v21 = vpack.c.bf16 %v1140_v14, %v1140_v14  ;;  %1074 = vst.msk [vmem:[#allocation2 + $0x68] sm:$0xff] %vm17_vm0, %v1009_v10 }
 0x10d   :  { %v1216_v23 = vadd.f32 %v1215_v18, %v1214_v63  ;;  %1103 = vst.msk [vmem:[#allocation2 + $0x150] sm:$0xff] %vm17_vm0, %v1038_v62  ;;  %v774_v6 = vpop.f32.mrf.mxu2  ;;  %v2045_v62 = vld [vmem:[%s3350_s0 + $0x1f4] sm:$0xf] }
 0x10e   :  { %v1412_v25 = vsel %vm17_vm0, %v1337_v19, 0.0  ;;  %1603 = vst.msk [vmem:[%s3351_s2 + $0x30] sm:$0xf] %vm1590_vm1, %v1538_v21  ;;  %v702_v20 = vpop.f32.mrf.mxu0  ;;  %v1906_v19 = vor.u32 %v2044_v15, %v1905_v12  ;;  %v1910_v21 = vor.u32 %v2043_v16, %v1907_v17  ;;  %v101_v16 = vld [vmem:[#allocation2 + $0x98] sm:$0xff] }
 0x10f   :  { %v1413_v28 = vadd.f32 %v1412_v25, %v1411_v2  ;;  %v871_v30 = vpop.f32.mrf.mxu1  ;;  %v2807_v2 = vld [vmem:[#allocation2 + $0x148] sm:$0xff] }
 0x110   :  { %v872_v33 = vadd.f32 %v871_v30, %v702_v20  ;;  %v1567_v4 = vpack.c.bf16 %v2807_v2, %v2807_v2  ;;  %v943_v14 = vpop.f32.mrf.mxu3 }
 0x111   :  { %741 = vmatmul.bf16.gmra.mxu0 %v1786_v26  ;;  %v944_v18 = vadd.f32 %v943_v14, %v774_v6 }
 0x112   :  { %v1010_v41 = vadd.f32 %v872_v33, %v96_v29  ;;  %910 = vmatmul.bf16.gmra.mxu1 %v1790_v27  ;;  %1632 = vst.msk [vmem:[%s3351_s2 + $0xa4] sm:$0xf] %vm1590_vm1, %v1567_v4 }
 0x113   :  { %v1141_v42 = vld [vmem:[#allocation2 + $0x68] sm:$0xff]  ;;  %v1039_v25 = vadd.f32 %v944_v18, %v125_v11 }
 0x114   :  { %v1217_v44 = vsel %vm17_vm0, %v1141_v42, 0.0  ;;  %v1338_v45 = vmul.f32 %v1141_v42, %v1141_v42  ;;  %v1539_v46 = vpack.c.bf16 %v1141_v42, %v1141_v42  ;;  %1075 = vst.msk [vmem:[#allocation2 + $0x70] sm:$0xff] %vm17_vm0, %v1010_v41  ;;  %v2835_v20 = vld [vmem:[#allocation2 + $0x150] sm:$0xff] }
 0x115   :  { %v1218_v49 = vadd.f32 %v1217_v44, %v1216_v23  ;;  %v1568_v30 = vpack.c.bf16 %v2835_v20, %v2835_v20  ;;  %1104 = vst.msk [vmem:[#allocation2 + $0x158] sm:$0xff] %vm17_vm0, %v1039_v25  ;;  %v777_v37 = vpop.f32.mrf.mxu2 }
 0x116   :  { %v1414_v51 = vsel %vm17_vm0, %v1338_v45, 0.0  ;;  %1604 = vst.msk [vmem:[%s3351_s2 + $0x34] sm:$0xf] %vm1590_vm1, %v1539_v46  ;;  %v704_v53 = vpop.f32.mrf.mxu0 }
 0x117   :  { %v1415_v52 = vadd.f32 %v1414_v51, %v1413_v28  ;;  %v873_v55 = vpop.f32.mrf.mxu1  ;;  %1633 = vst.msk [vmem:[%s3351_s2 + $0xa8] sm:$0xf] %vm1590_vm1, %v1568_v30 }
 0x118   :  { %v874_v56 = vadd.f32 %v873_v55, %v704_v53  ;;  %816 = vmatmul.bf16.gmra.mxu2 %v1906_v19  ;;  %v946_v39 = vpop.f32.mrf.mxu3 }
 0x119   :  { %v947_v40 = vadd.f32 %v946_v39, %v777_v37  ;;  %v102_v37 = vld [vmem:[#allocation2 + $0xa0] sm:$0xff] }
 0x11a   :  { %v1011_v60 = vadd.f32 %v874_v56, %v97_v54  ;;  %985 = vmatmul.bf16.gmra.mxu3 %v1910_v21  ;;  %v100_v54 = vld [vmem:[#allocation2 + $0x90] sm:$0xff]  ;;  %v127_v56 = vld [vmem:[#allocation2 + $0x168] sm:$0xff] }
 0x11b   :  { %v1142_v61 = vld [vmem:[#allocation2 + $0x70] sm:$0xff]  ;;  %v1040_v43 = vadd.f32 %v947_v40, %v126_v38 }
 0x11c   :  { %v1219_v63 = vsel %vm17_vm0, %v1142_v61, 0.0  ;;  %v1339_v0 = vmul.f32 %v1142_v61, %v1142_v61  ;;  %v1540_v1 = vpack.c.bf16 %v1142_v61, %v1142_v61  ;;  %1076 = vst.msk [vmem:[#allocation2 + $0x78] sm:$0xff] %vm17_vm0, %v1011_v60  ;;  %v2851_v48 = vld [vmem:[#allocation2 + $0x158] sm:$0xff]  ;;  %v128_v21 = vld [vmem:[#allocation2 + $0x170] sm:$0xff] }
 0x11d   :  { %v1220_v3 = vadd.f32 %v1219_v63, %v1218_v49  ;;  %v1569_v50 = vpack.c.bf16 %v2851_v48, %v2851_v48  ;;  %1105 = vst.msk [vmem:[#allocation2 + $0x160] sm:$0xff] %vm17_vm0, %v1040_v43  ;;  %v779_v59 = vpop.f32.mrf.mxu2  ;;  %v2046_v61 = vld [vmem:[%s3350_s0 + $0x1f4] sm:$0xf0]  ;;  %v1915_v63 = vld [vmem:[%s3350_s0 + $0x1f8] sm:$0xf0] }
 0x11e   :  { %v1416_v5 = vsel %vm17_vm0, %v1339_v0, 0.0  ;;  %1605 = vst.msk [vmem:[%s3351_s2 + $0x38] sm:$0xf] %vm1590_vm1, %v1540_v1  ;;  %v707_v8 = vpop.f32.mrf.mxu0  ;;  %v1914_v1 = vor.u32 %v2046_v61, %v1913_v57 }
 0x11f   :  { %v1417_v7 = vadd.f32 %v1416_v5, %v1415_v52  ;;  %v876_v10 = vpop.f32.mrf.mxu1  ;;  %1634 = vst.msk [vmem:[%s3351_s2 + $0xac] sm:$0xf] %vm1590_vm1, %v1569_v50 }
 0x120   :  { %v877_v13 = vadd.f32 %v876_v10, %v707_v8  ;;  %v948_v60 = vpop.f32.mrf.mxu3 }
 0x121   :  { %v949_v0 = vadd.f32 %v948_v60, %v779_v59 }
 0x122   :  { %v1012_v23 = vadd.f32 %v877_v13, %v98_v9 }
 0x123   :  { %v1143_v24 = vld [vmem:[#allocation2 + $0x78] sm:$0xff]  ;;  %v1041_v6 = vadd.f32 %v949_v0, %v127_v56 }
 0x124   :  { %v1221_v26 = vsel %vm17_vm0, %v1143_v24, 0.0  ;;  %v1340_v27 = vmul.f32 %v1143_v24, %v1143_v24  ;;  %v1541_v28 = vpack.c.bf16 %v1143_v24, %v1143_v24  ;;  %1077 = vst.msk [vmem:[#allocation2 + $0x80] sm:$0xff] %vm17_vm0, %v1012_v23  ;;  %v2879_v10 = vld [vmem:[#allocation2 + $0x160] sm:$0xff] }
 0x125   :  { %v1222_v29 = vadd.f32 %v1221_v26, %v1220_v3  ;;  %v1918_v3 = vor.u32 %v2045_v62, %v1915_v63  ;;  %v1570_v12 = vpack.c.bf16 %v2879_v10, %v2879_v10  ;;  %1106 = vst.msk [vmem:[#allocation2 + $0x168] sm:$0xff] %vm17_vm0, %v1041_v6  ;;  %v782_v19 = vpop.f32.mrf.mxu2  ;;  %v130_v62 = vld [vmem:[#allocation2 + $0x180] sm:$0xff] }
 0x126   :  { %v1418_v31 = vsel %vm17_vm0, %v1340_v27, 0.0  ;;  %1606 = vst.msk [vmem:[%s3351_s2 + $0x3c] sm:$0xf] %vm1590_vm1, %v1541_v28  ;;  %v709_v33 = vpop.f32.mrf.mxu0 }
 0x127   :  { %v1419_v32 = vadd.f32 %v1418_v31, %v1417_v7  ;;  %v878_v35 = vpop.f32.mrf.mxu1  ;;  %1635 = vst.msk [vmem:[%s3351_s2 + $0xb0] sm:$0xf] %vm1590_vm1, %v1570_v12 }
 0x128   :  { %v879_v36 = vadd.f32 %v878_v35, %v709_v33  ;;  %821 = vmatmul.bf16.gmra.mxu2 %v1914_v1  ;;  %v951_v23 = vpop.f32.mrf.mxu3 }
 0x129   :  { %v952_v24 = vadd.f32 %v951_v23, %v782_v19  ;;  %v131_v19 = vld [vmem:[#allocation2 + $0x188] sm:$0xff] }
 0x12a   :  { %v1013_v41 = vadd.f32 %v879_v36, %v99_v34  ;;  %990 = vmatmul.bf16.gmra.mxu3 %v1918_v3 }
 0x12b   :  { %v1144_v42 = vld [vmem:[#allocation2 + $0x80] sm:$0xff]  ;;  %v1042_v27 = vadd.f32 %v952_v24, %v128_v21 }
 0x12c   :  { %v1223_v44 = vsel %vm17_vm0, %v1144_v42, 0.0  ;;  %v1341_v45 = vmul.f32 %v1144_v42, %v1144_v42  ;;  %v1542_v46 = vpack.c.bf16 %v1144_v42, %v1144_v42  ;;  %1078 = vst.msk [vmem:[#allocation2 + $0x88] sm:$0xff] %vm17_vm0, %v1013_v41  ;;  %v2895_v31 = vld [vmem:[#allocation2 + $0x168] sm:$0xff]  ;;  %v129_v41 = vld [vmem:[#allocation2 + $0x178] sm:$0xff] }
 0x12d   :  { %v1224_v49 = vadd.f32 %v1223_v44, %v1222_v29  ;;  %v1571_v33 = vpack.c.bf16 %v2895_v31, %v2895_v31  ;;  %1107 = vst.msk [vmem:[#allocation2 + $0x170] sm:$0xff] %vm17_vm0, %v1042_v27  ;;  %v784_v40 = vpop.f32.mrf.mxu2 }
 0x12e   :  { %v1420_v51 = vsel %vm17_vm0, %v1341_v45, 0.0  ;;  %1607 = vst.msk [vmem:[%s3351_s2 + $0x40] sm:$0xf] %vm1590_vm1, %v1542_v46  ;;  %v712_v53 = vpop.f32.mrf.mxu0 }
 0x12f   :  { %v1421_v52 = vadd.f32 %v1420_v51, %v1419_v32  ;;  %v881_v55 = vpop.f32.mrf.mxu1  ;;  %1636 = vst.msk [vmem:[%s3351_s2 + $0xb4] sm:$0xf] %vm1590_vm1, %v1571_v33 }
 0x130   :  { %v882_v58 = vadd.f32 %v881_v55, %v712_v53  ;;  %v953_v42 = vpop.f32.mrf.mxu3 }
 0x131   :  { %v954_v43 = vadd.f32 %v953_v42, %v784_v40 }
 0x132   :  { %v1014_v4 = vadd.f32 %v882_v58, %v100_v54  ;;  %v103_v58 = vld [vmem:[#allocation2 + $0xa8] sm:$0xff] }
 0x133   :  { %v1145_v5 = vld [vmem:[#allocation2 + $0x88] sm:$0xff]  ;;  %v1043_v46 = vadd.f32 %v954_v43, %v129_v41 }
 0x134   :  { %v1225_v7 = vsel %vm17_vm0, %v1145_v5, 0.0  ;;  %v1342_v8 = vmul.f32 %v1145_v5, %v1145_v5  ;;  %v1543_v9 = vpack.c.bf16 %v1145_v5, %v1145_v5  ;;  %1079 = vst.msk [vmem:[#allocation2 + $0x90] sm:$0xff] %vm17_vm0, %v1014_v4 }
 0x135   :  { %v1226_v11 = vadd.f32 %v1225_v7, %v1224_v49  ;;  %1108 = vst.msk [vmem:[#allocation2 + $0x178] sm:$0xff] %vm17_vm0, %v1043_v46  ;;  %v787_v61 = vpop.f32.mrf.mxu2  ;;  %v106_v46 = vld [vmem:[#allocation2 + $0xc0] sm:$0xff] }
 0x136   :  { %v1422_v13 = vsel %vm17_vm0, %v1342_v8, 0.0  ;;  %1608 = vst.msk [vmem:[%s3351_s2 + $0x44] sm:$0xf] %vm1590_vm1, %v1543_v9  ;;  %v714_v15 = vpop.f32.mrf.mxu0 }
 0x137   :  { %v1423_v14 = vadd.f32 %v1422_v13, %v1421_v52  ;;  %v883_v17 = vpop.f32.mrf.mxu1  ;;  %v2911_v52 = vld [vmem:[#allocation2 + $0x170] sm:$0xff] }
 0x138   :  { %v884_v18 = vadd.f32 %v883_v17, %v714_v15  ;;  %v1572_v54 = vpack.c.bf16 %v2911_v52, %v2911_v52  ;;  %v956_v63 = vpop.f32.mrf.mxu3  ;;  %v104_v15 = vld [vmem:[#allocation2 + $0xb0] sm:$0xff] }
 0x139   :  { %v957_v0 = vadd.f32 %v956_v63, %v787_v61  ;;  %v107_v63 = vld [vmem:[#allocation2 + $0xc8] sm:$0xff] }
 0x13a   :  { %v1015_v25 = vadd.f32 %v884_v18, %v101_v16  ;;  %1637 = vst.msk [vmem:[%s3351_s2 + $0xb8] sm:$0xf] %vm1590_vm1, %v1572_v54 }
 0x13b   :  { %v1146_v26 = vld [vmem:[#allocation2 + $0x90] sm:$0xff]  ;;  %v1044_v4 = vadd.f32 %v957_v0, %v130_v62 }
 0x13c   :  { %v1227_v28 = vsel %vm17_vm0, %v1146_v26, 0.0  ;;  %v1343_v29 = vmul.f32 %v1146_v26, %v1146_v26  ;;  %v1544_v30 = vpack.c.bf16 %v1146_v26, %v1146_v26  ;;  %1080 = vst.msk [vmem:[#allocation2 + $0x98] sm:$0xff] %vm17_vm0, %v1015_v25  ;;  %v2927_v8 = vld [vmem:[#allocation2 + $0x178] sm:$0xff] }
 0x13d   :  { %v1228_v32 = vadd.f32 %v1227_v28, %v1226_v11  ;;  %v1573_v11 = vpack.c.bf16 %v2927_v8, %v2927_v8  ;;  %1109 = vst.msk [vmem:[#allocation2 + $0x180] sm:$0xff] %vm17_vm0, %v1044_v4  ;;  %v789_v18 = vpop.f32.mrf.mxu2  ;;  %v134_v4 = vld [vmem:[#allocation2 + $0x1a0] sm:$0xff] }
 0x13e   :  { %v1424_v34 = vsel %vm17_vm0, %v1343_v29, 0.0  ;;  %1609 = vst.msk [vmem:[%s3351_s2 + $0x48] sm:$0xf] %vm1590_vm1, %v1544_v30  ;;  %v717_v36 = vpop.f32.mrf.mxu0 }
 0x13f   :  { %v1425_v35 = vadd.f32 %v1424_v34, %v1423_v14  ;;  %v886_v38 = vpop.f32.mrf.mxu1  ;;  %1638 = vst.msk [vmem:[%s3351_s2 + $0xbc] sm:$0xf] %vm1590_vm1, %v1573_v11 }
 0x140   :  { %v887_v39 = vadd.f32 %v886_v38, %v717_v36  ;;  %v958_v21 = vpop.f32.mrf.mxu3  ;;  %v132_v36 = vld [vmem:[#allocation2 + $0x190] sm:$0xff] }
 0x141   :  { %v959_v23 = vadd.f32 %v958_v21, %v789_v18  ;;  %v108_v18 = vld [vmem:[#allocation2 + $0xd0] sm:$0xff] }
 0x142   :  { %v1016_v44 = vadd.f32 %v887_v39, %v102_v37 }
 0x143   :  { %v1147_v45 = vld [vmem:[#allocation2 + $0x98] sm:$0xff]  ;;  %v1045_v26 = vadd.f32 %v959_v23, %v131_v19 }
 0x144   :  { %v1229_v49 = vsel %vm17_vm0, %v1147_v45, 0.0  ;;  %v1344_v50 = vmul.f32 %v1147_v45, %v1147_v45  ;;  %v1545_v51 = vpack.c.bf16 %v1147_v45, %v1147_v45  ;;  %1081 = vst.msk [vmem:[#allocation2 + $0xa0] sm:$0xff] %vm17_vm0, %v1016_v44  ;;  %v2950_v28 = vld [vmem:[#allocation2 + $0x180] sm:$0xff] }
 0x145   :  { %v1230_v53 = vadd.f32 %v1229_v49, %v1228_v32  ;;  %v1574_v29 = vpack.c.bf16 %v2950_v28, %v2950_v28  ;;  %1110 = vst.msk [vmem:[#allocation2 + $0x188] sm:$0xff] %vm17_vm0, %v1045_v26  ;;  %v105_v32 = vld [vmem:[#allocation2 + $0xb8] sm:$0xff] }
 0x146   :  { %v1426_v55 = vsel %vm17_vm0, %v1344_v50, 0.0  ;;  %1610 = vst.msk [vmem:[%s3351_s2 + $0x4c] sm:$0xf] %vm1590_vm1, %v1545_v51  ;;  %v719_v57 = vpop.f32.mrf.mxu0 }
 0x147   :  { %v1427_v56 = vadd.f32 %v1426_v55, %v1425_v35  ;;  %v888_v59 = vpop.f32.mrf.mxu1  ;;  %1639 = vst.msk [vmem:[%s3351_s2 + $0xc0] sm:$0xf] %vm1590_vm1, %v1574_v29 }
 0x148   :  { %v889_v60 = vadd.f32 %v888_v59, %v719_v57  ;;  %v792_v35 = vpop.f32.mrf.mxu2  ;;  %v961_v37 = vpop.f32.mrf.mxu3 }
 0x149   :  { %v962_v38 = vadd.f32 %v961_v37, %v792_v35  ;;  %v109_v37 = vld [vmem:[#allocation2 + $0xd8] sm:$0xff] }
 0x14a   :  { %v1017_v1 = vadd.f32 %v889_v60, %v103_v58 }
 0x14b   :  { %v1148_v3 = vld [vmem:[#allocation2 + $0xa0] sm:$0xff]  ;;  %v1046_v41 = vadd.f32 %v962_v38, %v132_v36 }
 0x14c   :  { %v1231_v5 = vsel %vm17_vm0, %v1148_v3, 0.0  ;;  %v1345_v6 = vmul.f32 %v1148_v3, %v1148_v3  ;;  %v1546_v7 = vpack.c.bf16 %v1148_v3, %v1148_v3  ;;  %1082 = vst.msk [vmem:[#allocation2 + $0xa8] sm:$0xff] %vm17_vm0, %v1017_v1  ;;  %v2968_v43 = vld [vmem:[#allocation2 + $0x188] sm:$0xff] }
 0x14d   :  { %v2929_v9 = vadd.f32 %v1231_v5, %v1230_v53  ;;  %v1575_v44 = vpack.c.bf16 %v2968_v43, %v2968_v43  ;;  %1111 = vst.msk [vmem:[#allocation2 + $0x190] sm:$0xff] %vm17_vm0, %v1046_v41  ;;  %v133_v53 = vld [vmem:[#allocation2 + $0x198] sm:$0xff] }
 0x14e   :  { %v1428_v12 = vsel %vm17_vm0, %v1345_v6, 0.0  ;;  %1611 = vst.msk [vmem:[%s3351_s2 + $0x50] sm:$0xf] %vm1590_vm1, %v1546_v7  ;;  %v722_v14 = vpop.f32.mrf.mxu0 }
 0x14f   :  { %v2939_v13 = vadd.f32 %v1428_v12, %v1427_v56  ;;  %v891_v16 = vpop.f32.mrf.mxu1  ;;  %1640 = vst.msk [vmem:[%s3351_s2 + $0xc4] sm:$0xf] %vm1590_vm1, %v1575_v44 }
 0x150   :  { %v892_v17 = vadd.f32 %v891_v16, %v722_v14  ;;  %v794_v51 = vpop.f32.mrf.mxu2  ;;  %v963_v54 = vpop.f32.mrf.mxu3 }
 0x151   :  { %v964_v55 = vadd.f32 %v963_v54, %v794_v51 }
 0x152   :  { %v1018_v24 = vadd.f32 %v892_v17, %v104_v15 }
 0x153   :  { %v2945_v25 = vld [vmem:[#allocation2 + $0xa8] sm:$0xff]  ;;  %v1047_v58 = vadd.f32 %v964_v55, %v133_v53 }
 0x154   :  { %v1547_v27 = vpack.c.bf16 %v2945_v25, %v2945_v25  ;;  %1083 = vst.msk [vmem:[#allocation2 + $0xb0] sm:$0xff] %vm17_vm0, %v1018_v24  ;;  %v2986_v60 = vld [vmem:[#allocation2 + $0x190] sm:$0xff]  ;;  %v135_v24 = vld [vmem:[#allocation2 + $0x1a8] sm:$0xff] }
 0x155   :  { %v1576_v61 = vpack.c.bf16 %v2986_v60, %v2986_v60  ;;  %1112 = vst.msk [vmem:[#allocation2 + $0x198] sm:$0xff] %vm17_vm0, %v1047_v58 }
 0x156   :  { %1612 = vst.msk [vmem:[%s3351_s2 + $0x54] sm:$0xf] %vm1590_vm1, %v1547_v27  ;;  %v724_v30 = vpop.f32.mrf.mxu0 }
 0x157   :  { %v893_v33 = vpop.f32.mrf.mxu1  ;;  %1641 = vst.msk [vmem:[%s3351_s2 + $0xc8] sm:$0xf] %vm1590_vm1, %v1576_v61 }
 0x158   :  { %v894_v34 = vadd.f32 %v893_v33, %v724_v30 }
 0x15a   :  { %v1019_v39 = vadd.f32 %v894_v34, %v105_v32 }
 0x15b   :  { %v2963_v40 = vld [vmem:[#allocation2 + $0xb0] sm:$0xff]  ;;  %v797_v3 = vpop.f32.mrf.mxu2 }
 0x15c   :  { %v1548_v42 = vpack.c.bf16 %v2963_v40, %v2963_v40  ;;  %1084 = vst.msk [vmem:[#allocation2 + $0xb8] sm:$0xff] %vm17_vm0, %v1019_v39  ;;  %v3004_v15 = vld [vmem:[#allocation2 + $0x198] sm:$0xff] }
 0x15d   :  { %v966_v5 = vpop.f32.mrf.mxu3  ;;  %v1577_v16 = vpack.c.bf16 %v3004_v15, %v3004_v15 }
 0x15e   :  { %1613 = vst.msk [vmem:[%s3351_s2 + $0x58] sm:$0xf] %vm1590_vm1, %v1548_v42  ;;  %v727_v45 = vpop.f32.mrf.mxu0  ;;  %v967_v6 = vadd.f32 %v966_v5, %v797_v3  ;;  %v136_v42 = vld [vmem:[#allocation2 + $0x1b0] sm:$0xff] }
 0x15f   :  { %v896_v49 = vpop.f32.mrf.mxu1  ;;  %1642 = vst.msk [vmem:[%s3351_s2 + $0xcc] sm:$0xf] %vm1590_vm1, %v1577_v16 }
 0x160   :  { %v897_v50 = vadd.f32 %v896_v49, %v727_v45  ;;  %v1048_v12 = vadd.f32 %v967_v6, %v134_v4 }
 0x162   :  { %v1020_v56 = vadd.f32 %v897_v50, %v106_v46  ;;  %1113 = vst.msk [vmem:[#allocation2 + $0x1a0] sm:$0xff] %vm17_vm0, %v1048_v12 }
 0x163   :  { %v2981_v57 = vld [vmem:[#allocation2 + $0xb8] sm:$0xff]  ;;  %v799_v23 = vpop.f32.mrf.mxu2 }
 0x164   :  { %v1549_v59 = vpack.c.bf16 %v2981_v57, %v2981_v57  ;;  %1085 = vst.msk [vmem:[#allocation2 + $0xc0] sm:$0xff] %vm17_vm0, %v1020_v56  ;;  %v110_v56 = vld [vmem:[#allocation2 + $0xe0] sm:$0xff] }
 0x165   :  { %v968_v26 = vpop.f32.mrf.mxu3 }
 0x166   :  { %1614 = vst.msk [vmem:[%s3351_s2 + $0x5c] sm:$0xf] %vm1590_vm1, %v1549_v59  ;;  %v729_v62 = vpop.f32.mrf.mxu0  ;;  %v969_v27 = vadd.f32 %v968_v26, %v799_v23  ;;  %v1346_v23 = vmul.f32 %v2945_v25, %v2945_v25 }
 0x167   :  { %v898_v0 = vpop.f32.mrf.mxu1 }
 0x168   :  { %v899_v1 = vadd.f32 %v898_v0, %v729_v62  ;;  %v1049_v32 = vadd.f32 %v969_v27, %v135_v24  ;;  %v137_v62 = vld [vmem:[#allocation2 + $0x1b8] sm:$0xff] }
 0x169   :  { %v3022_v34 = vld [vmem:[#allocation2 + $0x1a0] sm:$0xff] }
 0x16a   :  { %v1021_v7 = vadd.f32 %v899_v1, %v107_v63  ;;  %v1578_v35 = vpack.c.bf16 %v3022_v34, %v3022_v34  ;;  %1114 = vst.msk [vmem:[#allocation2 + $0x1a8] sm:$0xff] %vm17_vm0, %v1049_v32 }
 0x16b   :  { %v2999_v11 = vld [vmem:[#allocation2 + $0xc0] sm:$0xff]  ;;  %v802_v41 = vpop.f32.mrf.mxu2 }
 0x16c   :  { %v1550_v14 = vpack.c.bf16 %v2999_v11, %v2999_v11  ;;  %1086 = vst.msk [vmem:[#allocation2 + $0xc8] sm:$0xff] %vm17_vm0, %v1021_v7 }
 0x16d   :  { %1643 = vst.msk [vmem:[%s3351_s2 + $0xd0] sm:$0xf] %vm1590_vm1, %v1578_v35  ;;  %v971_v44 = vpop.f32.mrf.mxu3  ;;  %v1430_v35 = vsel %vm17_vm0, %v1346_v23, 0.0 }
 0x16e   :  { %1615 = vst.msk [vmem:[%s3351_s2 + $0x60] sm:$0xf] %vm1590_vm1, %v1550_v14  ;;  %v732_v17 = vpop.f32.mrf.mxu0  ;;  %v972_v45 = vadd.f32 %v971_v44, %v802_v41  ;;  %v111_v14 = vld [vmem:[#allocation2 + $0xe8] sm:$0xff] }
 0x16f   :  { %v901_v19 = vpop.f32.mrf.mxu1 }
 0x170   :  { %v902_v21 = vadd.f32 %v901_v19, %v732_v17  ;;  %v1050_v50 = vadd.f32 %v972_v45, %v136_v42 }
 0x171   :  { %v3040_v53 = vld [vmem:[#allocation2 + $0x1a8] sm:$0xff] }
 0x172   :  { %v1022_v29 = vadd.f32 %v902_v21, %v108_v18  ;;  %v1579_v54 = vpack.c.bf16 %v3040_v53, %v3040_v53  ;;  %1115 = vst.msk [vmem:[#allocation2 + $0x1b0] sm:$0xff] %vm17_vm0, %v1050_v50 }
 0x173   :  { %v3017_v30 = vld [vmem:[#allocation2 + $0xc8] sm:$0xff]  ;;  %v804_v61 = vpop.f32.mrf.mxu2 }
 0x174   :  { %v1551_v33 = vpack.c.bf16 %v3017_v30, %v3017_v30  ;;  %1087 = vst.msk [vmem:[#allocation2 + $0xd0] sm:$0xff] %vm17_vm0, %v1022_v29  ;;  %v1347_v29 = vmul.f32 %v2963_v40, %v2963_v40 }
 0x175   :  { %1644 = vst.msk [vmem:[%s3351_s2 + $0xd4] sm:$0xf] %vm1590_vm1, %v1579_v54  ;;  %v973_v63 = vpop.f32.mrf.mxu3  ;;  %v139_v54 = vld [vmem:[#allocation2 + $0x1c8] sm:$0xff] }
 0x176   :  { %1616 = vst.msk [vmem:[%s3351_s2 + $0x64] sm:$0xf] %vm1590_vm1, %v1551_v33  ;;  %v734_v36 = vpop.f32.mrf.mxu0  ;;  %v974_v0 = vadd.f32 %v973_v63, %v804_v61  ;;  %v1233_v33 = vsel %vm17_vm0, %v2945_v25, 0.0  ;;  %v1348_v25 = vmul.f32 %v2981_v57, %v2981_v57  ;;  %v1432_v50 = vsel %vm17_vm0, %v1347_v29, 0.0 }
 0x177   :  { %v903_v38 = vpop.f32.mrf.mxu1  ;;  %v1431_v61 = vadd.f32 %v1430_v35, %v2939_v13 }
 0x178   :  { %v904_v39 = vadd.f32 %v903_v38, %v734_v36  ;;  %v1051_v4 = vadd.f32 %v974_v0, %v137_v62 }
 0x179   :  { %v3058_v6 = vld [vmem:[#allocation2 + $0x1b0] sm:$0xff] }
 0x17a   :  { %v1023_v46 = vadd.f32 %v904_v39, %v109_v37  ;;  %v1580_v7 = vpack.c.bf16 %v3058_v6, %v3058_v6  ;;  %1116 = vst.msk [vmem:[#allocation2 + $0x1b8] sm:$0xff] %vm17_vm0, %v1051_v4  ;;  %v112_v37 = vld [vmem:[#allocation2 + $0xf0] sm:$0xff]  ;;  %v1235_v39 = vsel %vm17_vm0, %v2963_v40, 0.0  ;;  %v1349_v40 = vmul.f32 %v2999_v11, %v2999_v11 }
 0x17b   :  { %v3035_v49 = vld [vmem:[#allocation2 + $0xd0] sm:$0xff]  ;;  %v807_v18 = vpop.f32.mrf.mxu2  ;;  %v1350_v4 = vmul.f32 %v3017_v30, %v3017_v30 }
 0x17c   :  { %v1552_v51 = vpack.c.bf16 %v3035_v49, %v3035_v49  ;;  %1088 = vst.msk [vmem:[#allocation2 + $0xd8] sm:$0xff] %vm17_vm0, %v1023_v46  ;;  %v1234_v46 = vadd.f32 %v1233_v33, %v2929_v9  ;;  %v1434_v9 = vsel %vm17_vm0, %v1348_v25, 0.0  ;;  %v1436_v13 = vsel %vm17_vm0, %v1349_v40, 0.0 }
 0x17d   :  { %1645 = vst.msk [vmem:[%s3351_s2 + $0xd8] sm:$0xf] %vm1590_vm1, %v1580_v7  ;;  %v976_v19 = vpop.f32.mrf.mxu3 }
 0x17e   :  { %1617 = vst.msk [vmem:[%s3351_s2 + $0x68] sm:$0xf] %vm1590_vm1, %v1552_v51  ;;  %v737_v55 = vpop.f32.mrf.mxu0  ;;  %v977_v42 = vadd.f32 %v976_v19, %v807_v18  ;;  %v138_v51 = vld [vmem:[#allocation2 + $0x1c0] sm:$0xff]  ;;  %v1236_v62 = vadd.f32 %v1235_v39, %v1234_v46  ;;  %v113_v18 = vld [vmem:[#allocation2 + $0xf8] sm:$0xff] }
 0x17f   :  { %v906_v58 = vpop.f32.mrf.mxu1 }
 0x180   :  { %v907_v59 = vadd.f32 %v906_v58, %v737_v55 }
 0x181   :  { %v3078_v27 = vld [vmem:[#allocation2 + $0x1b8] sm:$0xff] }
 0x182   :  { %v1024_v1 = vadd.f32 %v907_v59, %v110_v56  ;;  %v1581_v32 = vpack.c.bf16 %v3078_v27, %v3078_v27  ;;  %v1237_v56 = vsel %vm17_vm0, %v2981_v57, 0.0  ;;  %v1052_v59 = vadd.f32 %v977_v42, %v138_v51 }
 0x183   :  { %v3053_v3 = vld [vmem:[#allocation2 + $0xd8] sm:$0xff]  ;;  %v809_v44 = vpop.f32.mrf.mxu2  ;;  %v1433_v57 = vadd.f32 %v1432_v50, %v1431_v61  ;;  %v1238_v7 = vadd.f32 %v1237_v56, %v1236_v62 }
 0x184   :  { %v1553_v5 = vpack.c.bf16 %v3053_v3, %v3053_v3  ;;  %1089 = vst.msk [vmem:[#allocation2 + $0xe0] sm:$0xff] %vm17_vm0, %v1024_v1  ;;  %v1239_v1 = vsel %vm17_vm0, %v2999_v11, 0.0  ;;  %v1352_v23 = vmul.f32 %v3053_v3, %v3053_v3 }
 0x185   :  { %1646 = vst.msk [vmem:[%s3351_s2 + $0xdc] sm:$0xf] %vm1590_vm1, %v1581_v32  ;;  %v978_v45 = vpop.f32.mrf.mxu3  ;;  %v1435_v11 = vadd.f32 %v1434_v9, %v1433_v57  ;;  %v140_v57 = vld [vmem:[#allocation2 + $0x1d0] sm:$0xff] }
 0x186   :  { %1618 = vst.msk [vmem:[%s3351_s2 + $0x6c] sm:$0xf] %vm1590_vm1, %v1553_v5  ;;  %v739_v12 = vpop.f32.mrf.mxu0  ;;  %v979_v55 = vadd.f32 %v978_v45, %v809_v44  ;;  %v1442_v42 = vsel %vm17_vm0, %v1352_v23, 0.0 }
 0x187   :  { %v908_v16 = vpop.f32.mrf.mxu1  ;;  %1117 = vst.msk [vmem:[#allocation2 + $0x1c0] sm:$0xff] %vm17_vm0, %v1052_v59  ;;  %v1437_v33 = vadd.f32 %v1436_v13, %v1435_v11 }
 0x188   :  { %v909_v17 = vadd.f32 %v908_v16, %v739_v12  ;;  %v1053_v0 = vadd.f32 %v979_v55, %v139_v54  ;;  %v1241_v12 = vsel %vm17_vm0, %v3017_v30, 0.0  ;;  %v1240_v16 = vadd.f32 %v1239_v1, %v1238_v7  ;;  %v141_v7 = vld [vmem:[#allocation2 + $0x1d8] sm:$0xff] }
 0x189   :  { %v1243_v30 = vsel %vm17_vm0, %v3035_v49, 0.0 }
 0x18a   :  { %v1025_v21 = vadd.f32 %v909_v17, %v111_v14  ;;  %v1351_v14 = vmul.f32 %v3035_v49, %v3035_v49  ;;  %1118 = vst.msk [vmem:[#allocation2 + $0x1c8] sm:$0xff] %vm17_vm0, %v1053_v0  ;;  %v1242_v35 = vadd.f32 %v1241_v12, %v1240_v16 }
 0x18b   :  { %v3073_v24 = vld [vmem:[#allocation2 + $0xe0] sm:$0xff]  ;;  %v812_v29 = vpop.f32.mrf.mxu2 }
 0x18c   :  { %v1554_v26 = vpack.c.bf16 %v3073_v24, %v3073_v24  ;;  %1090 = vst.msk [vmem:[#allocation2 + $0xe8] sm:$0xff] %vm17_vm0, %v1025_v21  ;;  %v1438_v21 = vsel %vm17_vm0, %v1350_v4, 0.0  ;;  %v1247_v44 = vsel %vm17_vm0, %v3073_v24, 0.0 }
 0x18d   :  { %v981_v32 = vpop.f32.mrf.mxu3  ;;  %v1439_v25 = vadd.f32 %v1438_v21, %v1437_v33 }
 0x18e   :  { %1619 = vst.msk [vmem:[%s3351_s2 + $0x70] sm:$0xf] %vm1590_vm1, %v1554_v26  ;;  %v742_v36 = vpop.f32.mrf.mxu0  ;;  %v3137_v50 = vld [vmem:[#allocation2 + $0x1c0] sm:$0xff]  ;;  %v982_v0 = vadd.f32 %v981_v32, %v812_v29 }
 0x18f   :  { %v911_v38 = vpop.f32.mrf.mxu1  ;;  %v1582_v54 = vpack.c.bf16 %v3137_v50, %v3137_v50 }
 0x190   :  { %v912_v41 = vadd.f32 %v911_v38, %v742_v36  ;;  %v1440_v36 = vsel %vm17_vm0, %v1351_v14, 0.0  ;;  %v1353_v38 = vmul.f32 %v3073_v24, %v3073_v24  ;;  %v1054_v14 = vadd.f32 %v982_v0, %v140_v57 }
 0x191   :  { %v1441_v51 = vadd.f32 %v1440_v36, %v1439_v25  ;;  %v3147_v24 = vld [vmem:[#allocation2 + $0x1c8] sm:$0xff]  ;;  %1647 = vst.msk [vmem:[%s3351_s2 + $0xe0] sm:$0xf] %vm1590_vm1, %v1582_v54 }
 0x192   :  { %v1026_v58 = vadd.f32 %v912_v41, %v112_v37  ;;  %v1245_v37 = vsel %vm17_vm0, %v3053_v3, 0.0  ;;  %v1244_v41 = vadd.f32 %v1243_v30, %v1242_v35  ;;  %v1444_v55 = vsel %vm17_vm0, %v1353_v38, 0.0  ;;  %1119 = vst.msk [vmem:[#allocation2 + $0x1d0] sm:$0xff] %vm17_vm0, %v1054_v14  ;;  %v2081_v35 = vld [vmem:[#allocation2 + $0x108] sm:$0xff] }
 0x193   :  { %v1157_v63 = vld [vmem:[#allocation2 + $0xe8] sm:$0xff]  ;;  %v814_v9 = vpop.f32.mrf.mxu2  ;;  %v1358_v36 = vmul.f32 %v2081_v35, %v2081_v35 }
 0x194   :  { %v1555_v5 = vpack.c.bf16 %v1157_v63, %v1157_v63  ;;  %1091 = vst.msk [vmem:[#allocation2 + $0xf0] sm:$0xff] %vm17_vm0, %v1026_v58  ;;  %v1354_v45 = vmul.f32 %v1157_v63, %v1157_v63  ;;  %v1246_v3 = vadd.f32 %v1245_v37, %v1244_v41  ;;  %v1249_v56 = vsel %vm17_vm0, %v1157_v63, 0.0 }
 0x195   :  { %v1443_v58 = vadd.f32 %v1442_v42, %v1441_v51  ;;  %v1583_v63 = vpack.c.bf16 %v3147_v24, %v3147_v24  ;;  %v983_v1 = vpop.f32.mrf.mxu3  ;;  %v1257_v41 = vsel %vm17_vm0, %v2081_v35, 0.0  ;;  %v143_v35 = vld [vmem:[#allocation2 + $0x1e8] sm:$0xff] }
 0x196   :  { %1620 = vst.msk [vmem:[%s3351_s2 + $0x74] sm:$0xf] %vm1590_vm1, %v1555_v5  ;;  %v744_v17 = vpop.f32.mrf.mxu0  ;;  %v1248_v59 = vadd.f32 %v1247_v44, %v1246_v3  ;;  %v1446_v61 = vsel %vm17_vm0, %v1354_v45, 0.0  ;;  %v984_v13 = vadd.f32 %v983_v1, %v814_v9  ;;  %v1454_v3 = vsel %vm17_vm0, %v1358_v36, 0.0 }
 0x197   :  { %v913_v19 = vpop.f32.mrf.mxu1  ;;  %v1445_v4 = vadd.f32 %v1444_v55, %v1443_v58  ;;  %1648 = vst.msk [vmem:[%s3351_s2 + $0xe4] sm:$0xf] %vm1590_vm1, %v1583_v63  ;;  %v2083_v55 = vld [vmem:[#allocation2 + $0x118] sm:$0xff]  ;;  %v2084_v63 = vld [vmem:[#allocation2 + $0x120] sm:$0xff] }
 0x198   :  { %v914_v26 = vadd.f32 %v913_v19, %v744_v17  ;;  %v1250_v5 = vadd.f32 %v1249_v56, %v1248_v59  ;;  %v2080_v19 = vld [vmem:[#allocation2 + $0x100] sm:$0xff]  ;;  %v1360_v56 = vmul.f32 %v2083_v55, %v2083_v55  ;;  %v1361_v0 = vmul.f32 %v2084_v63, %v2084_v63 }
 0x199   :  { %v1447_v11 = vadd.f32 %v1446_v61, %v1445_v4  ;;  %v1357_v21 = vmul.f32 %v2080_v19, %v2080_v19  ;;  %v1255_v33 = vsel %vm17_vm0, %v2080_v19, 0.0  ;;  %v3175_v59 = vld [vmem:[#allocation2 + $0x1d0] sm:$0xff] }
 0x19a   :  { %v1027_v39 = vadd.f32 %v914_v26, %v113_v18  ;;  %v1055_v18 = vadd.f32 %v984_v13, %v141_v7  ;;  %v1584_v9 = vpack.c.bf16 %v3175_v59, %v3175_v59  ;;  %v1458_v57 = vsel %vm17_vm0, %v1360_v56, 0.0  ;;  %v2085_v13 = vld [vmem:[#allocation2 + $0x128] sm:$0xff]  ;;  %v2086_v19 = vld [vmem:[#allocation2 + $0x130] sm:$0xff] }
 0x19b   :  { %v1158_v49 = vld [vmem:[#allocation2 + $0xf0] sm:$0xff]  ;;  %v1452_v25 = vsel %vm17_vm0, %v1357_v21, 0.0  ;;  %v817_v44 = vpop.f32.mrf.mxu2  ;;  %v1263_v7 = vsel %vm17_vm0, %v2084_v63, 0.0  ;;  %v1363_v21 = vmul.f32 %v2086_v19, %v2086_v19  ;;  %v1366_v56 = vmul.f32 %v2807_v2, %v2807_v2 }
 0x19c   :  { %v1556_v46 = vpack.c.bf16 %v1158_v49, %v1158_v49  ;;  %1092 = vst.msk [vmem:[#allocation2 + $0xf8] sm:$0xff] %vm17_vm0, %v1027_v39  ;;  %v1355_v40 = vmul.f32 %v1158_v49, %v1158_v49  ;;  %v1251_v62 = vsel %vm17_vm0, %v1158_v49, 0.0  ;;  %v2082_v49 = vld [vmem:[#allocation2 + $0x110] sm:$0xff]  ;;  %v1367_v63 = vmul.f32 %v2835_v20, %v2835_v20 }
 0x19d   :  { %v1252_v16 = vadd.f32 %v1251_v62, %v1250_v5  ;;  %1120 = vst.msk [vmem:[#allocation2 + $0x1d8] sm:$0xff] %vm17_vm0, %v1055_v18  ;;  %v1359_v42 = vmul.f32 %v2082_v49, %v2082_v49  ;;  %v986_v45 = vpop.f32.mrf.mxu3  ;;  %v1259_v54 = vsel %vm17_vm0, %v2082_v49, 0.0  ;;  %v1261_v62 = vsel %vm17_vm0, %v2083_v55, 0.0 }
 0x19e   :  { %1621 = vst.msk [vmem:[%s3351_s2 + $0x78] sm:$0xf] %vm1590_vm1, %v1556_v46  ;;  %v1448_v12 = vsel %vm17_vm0, %v1355_v40, 0.0  ;;  %v1265_v18 = vsel %vm17_vm0, %v2085_v13, 0.0  ;;  %v1271_v55 = vsel %vm17_vm0, %v2791_v47, 0.0 }
 0x19f   :  { %v1449_v29 = vadd.f32 %v1448_v12, %v1447_v11  ;;  %v1456_v61 = vsel %vm17_vm0, %v1359_v42, 0.0  ;;  %v1362_v12 = vmul.f32 %v2085_v13, %v2085_v13  ;;  %1649 = vst.msk [vmem:[%s3351_s2 + $0xe8] sm:$0xf] %vm1590_vm1, %v1584_v9 }
 0x1a3   :  { %v1159_v17 = vld [vmem:[#allocation2 + $0xf8] sm:$0xff] }
 0x1a4   :  { %v1253_v30 = vsel %vm17_vm0, %v1159_v17, 0.0  ;;  %v1356_v23 = vmul.f32 %v1159_v17, %v1159_v17  ;;  %v1557_v26 = vpack.c.bf16 %v1159_v17, %v1159_v17  ;;  %v3181_v1 = vld [vmem:[#allocation2 + $0x1d8] sm:$0xff]  ;;  %v1460_v17 = vsel %vm17_vm0, %v1361_v0, 0.0 }
 0x1a5   :  { %v1254_v32 = vadd.f32 %v1253_v30, %v1252_v16  ;;  %v1585_v14 = vpack.c.bf16 %v3181_v1, %v3181_v1  ;;  %v987_v30 = vadd.f32 %v986_v45, %v817_v44  ;;  %v1464_v44 = vsel %vm17_vm0, %v1363_v21, 0.0  ;;  %v2087_v45 = vld [vmem:[#allocation2 + $0x138] sm:$0xff] }
 0x1a6   :  { %v1450_v37 = vsel %vm17_vm0, %v1356_v23, 0.0  ;;  %1622 = vst.msk [vmem:[%s3351_s2 + $0x7c] sm:$0xf] %vm1590_vm1, %v1557_v26  ;;  %v819_v23 = vpop.f32.mrf.mxu2  ;;  %v988_v26 = vpop.f32.mrf.mxu3 }
 0x1a7   :  { %v1256_v38 = vadd.f32 %v1255_v33, %v1254_v32  ;;  %v1451_v39 = vadd.f32 %v1450_v37, %v1449_v29  ;;  %1650 = vst.msk [vmem:[%s3351_s2 + $0xec] sm:$0xf] %vm1590_vm1, %v1585_v14  ;;  %v142_v33 = vld [vmem:[#allocation2 + $0x1e0] sm:$0xff]  ;;  %v989_v36 = vadd.f32 %v988_v26, %v819_v23  ;;  %v1462_v37 = vsel %vm17_vm0, %v1362_v12, 0.0 }
 0x1a8   :  { %v1370_v23 = vmul.f32 %v2895_v31, %v2895_v31 }
 0x1a9   :  { %v1258_v46 = vadd.f32 %v1257_v41, %v1256_v38  ;;  %v1453_v51 = vadd.f32 %v1452_v25, %v1451_v39  ;;  %v1267_v38 = vsel %vm17_vm0, %v2086_v19, 0.0  ;;  %v1364_v39 = vmul.f32 %v2763_v22, %v2763_v22 }
 0x1aa   :  { %v1056_v25 = vadd.f32 %v987_v30, %v142_v33  ;;  %v1057_v42 = vadd.f32 %v989_v36, %v143_v35  ;;  %v1279_v30 = vsel %vm17_vm0, %v2879_v10, 0.0  ;;  %v1281_v33 = vsel %vm17_vm0, %v2895_v31, 0.0 }
 0x1ab   :  { %v1260_v40 = vadd.f32 %v1259_v54, %v1258_v46  ;;  %v1455_v58 = vadd.f32 %v1454_v3, %v1453_v51  ;;  %v1269_v46 = vsel %vm17_vm0, %v2087_v45, 0.0  ;;  %v1365_v51 = vmul.f32 %v2791_v47, %v2791_v47 }
 0x1ac   :  { %1121 = vst.msk [vmem:[#allocation2 + $0x1e0] sm:$0xff] %vm17_vm0, %v1056_v25  ;;  %v1466_v22 = vsel %vm17_vm0, %v1364_v39, 0.0  ;;  %v1275_v47 = vsel %vm17_vm0, %v2835_v20, 0.0  ;;  %v144_v25 = vld [vmem:[#allocation2 + $0x1f0] sm:$0xff]  ;;  %v1283_v31 = vsel %vm17_vm0, %v2911_v52, 0.0 }
 0x1ad   :  { %v1262_v4 = vadd.f32 %v1261_v62, %v1260_v40  ;;  %v1457_v5 = vadd.f32 %v1456_v61, %v1455_v58  ;;  %1122 = vst.msk [vmem:[#allocation2 + $0x1e8] sm:$0xff] %vm17_vm0, %v1057_v42  ;;  %v1468_v61 = vsel %vm17_vm0, %v1365_v51, 0.0  ;;  %v1273_v62 = vsel %vm17_vm0, %v2807_v2, 0.0 }
 0x1ae   :  { %v822_v0 = vpop.f32.mrf.mxu2  ;;  %v991_v9 = vpop.f32.mrf.mxu3  ;;  %v1472_v2 = vsel %vm17_vm0, %v1367_v63, 0.0  ;;  %v1478_v42 = vsel %vm17_vm0, %v1370_v23, 0.0 }
 0x1af   :  { %v1264_v11 = vadd.f32 %v1263_v7, %v1262_v4  ;;  %v1459_v16 = vadd.f32 %v1458_v57, %v1457_v5  ;;  %v1470_v57 = vsel %vm17_vm0, %v1366_v56, 0.0  ;;  %v1368_v7 = vmul.f32 %v2851_v48, %v2851_v48 }
 0x1b0   :  { %v992_v35 = vadd.f32 %v991_v9, %v822_v0  ;;  %v1289_v0 = vsel %vm17_vm0, %v2968_v43, 0.0  ;;  %v1375_v9 = vmul.f32 %v2986_v60, %v2986_v60 }
 0x1b1   :  { %v1266_v29 = vadd.f32 %v1265_v18, %v1264_v11  ;;  %v1461_v32 = vadd.f32 %v1460_v17, %v1459_v16  ;;  %v1277_v11 = vsel %vm17_vm0, %v2851_v48, 0.0  ;;  %v1369_v16 = vmul.f32 %v2879_v10, %v2879_v10 }
 0x1b2   :  { %v1474_v21 = vsel %vm17_vm0, %v1368_v7, 0.0  ;;  %v1371_v10 = vmul.f32 %v2911_v52, %v2911_v52  ;;  %v1058_v45 = vadd.f32 %v992_v35, %v144_v25  ;;  %v1299_v35 = vsel %vm17_vm0, %v3058_v6, 0.0 }
 0x1b3   :  { %v1268_v41 = vadd.f32 %v1267_v38, %v1266_v29  ;;  %v1463_v49 = vadd.f32 %v1462_v37, %v1461_v32  ;;  %v3222_v14 = vld [vmem:[#allocation2 + $0x1e0] sm:$0xff]  ;;  %v1476_v32 = vsel %vm17_vm0, %v1369_v16, 0.0  ;;  %v1381_v25 = vmul.f32 %v3137_v50, %v3137_v50 }
 0x1b4   :  { %v1586_v17 = vpack.c.bf16 %v3222_v14, %v3222_v14  ;;  %v3231_v18 = vld [vmem:[#allocation2 + $0x1e8] sm:$0xff]  ;;  %1123 = vst.msk [vmem:[#allocation2 + $0x1f0] sm:$0xff] %vm17_vm0, %v1058_v45 }
 0x1b5   :  { %v1270_v3 = vadd.f32 %v1269_v46, %v1268_v41  ;;  %v1465_v54 = vadd.f32 %v1464_v44, %v1463_v49  ;;  %v1587_v48 = vpack.c.bf16 %v3231_v18, %v3231_v18  ;;  %v145_v41 = vld [vmem:[#allocation2 + $0x1f8] sm:$0xff]  ;;  %v1372_v44 = vmul.f32 %v2927_v8, %v2927_v8 }
 0x1b6   :  { %1651 = vst.msk [vmem:[%s3351_s2 + $0xf0] sm:$0xf] %vm1590_vm1, %v1586_v17  ;;  %v824_v36 = vpop.f32.mrf.mxu2  ;;  %v993_v37 = vpop.f32.mrf.mxu3 }
 0x1b7   :  { %v1272_v40 = vadd.f32 %v1271_v55, %v1270_v3  ;;  %v1467_v58 = vadd.f32 %v1466_v22, %v1465_v54  ;;  %1652 = vst.msk [vmem:[%s3351_s2 + $0xf4] sm:$0xf] %vm1590_vm1, %v1587_v48  ;;  %v994_v49 = vadd.f32 %v993_v37, %v824_v36  ;;  %v1480_v54 = vsel %vm17_vm0, %v1371_v10, 0.0 }
 0x1b8   :  { %v1285_v22 = vsel %vm17_vm0, %v2927_v8, 0.0  ;;  %v1373_v55 = vmul.f32 %v2950_v28, %v2950_v28  ;;  %v1482_v52 = vsel %vm17_vm0, %v1372_v44, 0.0  ;;  %v1380_v36 = vmul.f32 %v3078_v27, %v3078_v27 }
 0x1b9   :  { %v1274_v4 = vadd.f32 %v1273_v62, %v1272_v40  ;;  %v1469_v5 = vadd.f32 %v1468_v61, %v1467_v58  ;;  %v1059_v3 = vadd.f32 %v994_v49, %v145_v41  ;;  %v1287_v58 = vsel %vm17_vm0, %v2950_v28, 0.0 }
 0x1ba   :  { %v1374_v61 = vmul.f32 %v2968_v43, %v2968_v43  ;;  %v1484_v8 = vsel %vm17_vm0, %v1373_v55, 0.0  ;;  %v1291_v28 = vsel %vm17_vm0, %v2986_v60, 0.0  ;;  %v1293_v43 = vsel %vm17_vm0, %v3004_v15, 0.0 }
 0x1bb   :  { %v1276_v13 = vadd.f32 %v1275_v47, %v1274_v4  ;;  %v1471_v12 = vadd.f32 %v1470_v57, %v1469_v5  ;;  %1124 = vst.msk [vmem:[#allocation2 + $0x1f8] sm:$0xff] %vm17_vm0, %v1059_v3  ;;  %v1376_v47 = vmul.f32 %v3004_v15, %v3004_v15  ;;  %v1384_v55 = vmul.f32 %v3181_v1, %v3181_v1 }
 0x1bc   :  { %v1486_v57 = vsel %vm17_vm0, %v1374_v61, 0.0 }
 0x1bd   :  { %v1278_v20 = vadd.f32 %v1277_v11, %v1276_v13  ;;  %v1473_v19 = vadd.f32 %v1472_v2, %v1471_v12  ;;  %v1190_v12 = vld [vmem:[#allocation2 + $0x1f0] sm:$0xff]  ;;  %v1488_v2 = vsel %vm17_vm0, %v1375_v9, 0.0  ;;  %v1377_v11 = vmul.f32 %v3022_v34, %v3022_v34 }
 0x1be   :  { %v1588_v16 = vpack.c.bf16 %v1190_v12, %v1190_v12  ;;  %v1490_v60 = vsel %vm17_vm0, %v1376_v47, 0.0 }
 0x1bf   :  { %v1475_v26 = vadd.f32 %v1474_v21, %v1473_v19  ;;  %v1280_v29 = vadd.f32 %v1279_v30, %v1278_v20  ;;  %v1295_v21 = vsel %vm17_vm0, %v3022_v34, 0.0  ;;  %v1378_v30 = vmul.f32 %v3040_v53, %v3040_v53 }
 0x1c0   :  { %1653 = vst.msk [vmem:[%s3351_s2 + $0xf8] sm:$0xf] %vm1590_vm1, %v1588_v16 }
 0x1c1   :  { %v1282_v38 = vadd.f32 %v1281_v33, %v1280_v29  ;;  %v1477_v39 = vadd.f32 %v1476_v32, %v1475_v26  ;;  %v1492_v26 = vsel %vm17_vm0, %v1377_v11, 0.0  ;;  %v1297_v29 = vsel %vm17_vm0, %v3040_v53, 0.0 }
 0x1c2   :  { %v1191_v17 = vld [vmem:[#allocation2 + $0x1f8] sm:$0xff]  ;;  %v1379_v32 = vmul.f32 %v3058_v6, %v3058_v6  ;;  %v1494_v10 = vsel %vm17_vm0, %v1378_v30, 0.0  ;;  %v1303_v6 = vsel %vm17_vm0, %v3137_v50, 0.0  ;;  %v1307_v50 = vsel %vm17_vm0, %v3175_v59, 0.0 }
 0x1c3   :  { %v1284_v46 = vadd.f32 %v1283_v31, %v1282_v38  ;;  %v1479_v51 = vadd.f32 %v1478_v42, %v1477_v39  ;;  %v1589_v15 = vpack.c.bf16 %v1191_v17, %v1191_v17  ;;  %v1301_v39 = vsel %vm17_vm0, %v3078_v27, 0.0 }
 0x1c4   :  { %v1496_v38 = vsel %vm17_vm0, %v1379_v32, 0.0  ;;  %v1498_v42 = vsel %vm17_vm0, %v1380_v36, 0.0  ;;  %v1382_v31 = vmul.f32 %v3147_v24, %v3147_v24  ;;  %v1305_v27 = vsel %vm17_vm0, %v3147_v24, 0.0 }
 0x1c5   :  { %v1286_v56 = vadd.f32 %v1285_v22, %v1284_v46  ;;  %v1481_v40 = vadd.f32 %v1480_v54, %v1479_v51  ;;  %1654 = vst.msk [vmem:[%s3351_s2 + $0xfc] sm:$0xf] %vm1590_vm1, %v1589_v15  ;;  %v1500_v46 = vsel %vm17_vm0, %v1381_v25, 0.0  ;;  %v1383_v51 = vmul.f32 %v3175_v59, %v3175_v59 }
 0x1c6   :  { %v1502_v22 = vsel %vm17_vm0, %v1382_v31, 0.0  ;;  %v1309_v24 = vsel %vm17_vm0, %v3181_v1, 0.0  ;;  %v1311_v59 = vsel %vm17_vm0, %v3222_v14, 0.0  ;;  %v1313_v1 = vsel %vm17_vm0, %v3231_v18, 0.0 }
 0x1c7   :  { %v1288_v62 = vadd.f32 %v1287_v58, %v1286_v56  ;;  %v1483_v63 = vadd.f32 %v1482_v52, %v1481_v40  ;;  %v1504_v52 = vsel %vm17_vm0, %v1383_v51, 0.0  ;;  %v1385_v58 = vmul.f32 %v3222_v14, %v3222_v14 }
 0x1c8   :  { %v1317_v11 = vsel %vm17_vm0, %v1191_v17, 0.0 }
 0x1c9   :  { %v1290_v4 = vadd.f32 %v1289_v0, %v1288_v62  ;;  %v1485_v5 = vadd.f32 %v1484_v8, %v1483_v63  ;;  %v1506_v63 = vsel %vm17_vm0, %v1384_v55, 0.0  ;;  %v1386_v8 = vmul.f32 %v3231_v18, %v3231_v18 }
 0x1cb   :  { %v1292_v7 = vadd.f32 %v1291_v28, %v1290_v4  ;;  %v1487_v13 = vadd.f32 %v1486_v57, %v1485_v5  ;;  %v1508_v4 = vsel %vm17_vm0, %v1385_v58, 0.0  ;;  %v1387_v5 = vmul.f32 %v1190_v12, %v1190_v12 }
 0x1cc   :  { %v1510_v47 = vsel %vm17_vm0, %v1386_v8, 0.0 }
 0x1cd   :  { %v1294_v20 = vadd.f32 %v1293_v43, %v1292_v7  ;;  %v1489_v19 = vadd.f32 %v1488_v2, %v1487_v13  ;;  %v1315_v7 = vsel %vm17_vm0, %v1190_v12, 0.0  ;;  %v1388_v13 = vmul.f32 %v1191_v17, %v1191_v17 }
 0x1ce   :  { %v1512_v43 = vsel %vm17_vm0, %v1387_v5, 0.0 }
 0x1cf   :  { %v1296_v23 = vadd.f32 %v1295_v21, %v1294_v20  ;;  %v1491_v48 = vadd.f32 %v1490_v60, %v1489_v19  ;;  %v1514_v19 = vsel %vm17_vm0, %v1388_v13, 0.0 }
 0x1d1   :  { %v1298_v34 = vadd.f32 %v1297_v29, %v1296_v23  ;;  %v1493_v33 = vadd.f32 %v1492_v26, %v1491_v48 }
 0x1d3   :  { %v1300_v37 = vadd.f32 %v1299_v35, %v1298_v34  ;;  %v1495_v53 = vadd.f32 %v1494_v10, %v1493_v33 }
 0x1d5   :  { %v1302_v41 = vadd.f32 %v1301_v39, %v1300_v37  ;;  %v1497_v49 = vadd.f32 %v1496_v38, %v1495_v53 }
 0x1d7   :  { %v1304_v44 = vadd.f32 %v1303_v6, %v1302_v41  ;;  %v1499_v45 = vadd.f32 %v1498_v42, %v1497_v49 }
 0x1d9   :  { %v1501_v3 = vadd.f32 %v1500_v46, %v1499_v45  ;;  %v1306_v54 = vadd.f32 %v1305_v27, %v1304_v44 }
 0x1db   :  { %v1503_v56 = vadd.f32 %v1502_v22, %v1501_v3  ;;  %v1308_v40 = vadd.f32 %v1307_v50, %v1306_v54 }
 0x1dd   :  { %v1505_v61 = vadd.f32 %v1504_v52, %v1503_v56  ;;  %v1310_v62 = vadd.f32 %v1309_v24, %v1308_v40 }
 0x1df   :  { %v1507_v0 = vadd.f32 %v1506_v63, %v1505_v61  ;;  %v1312_v9 = vadd.f32 %v1311_v59, %v1310_v62 }
 0x1e1   :  { %v1509_v57 = vadd.f32 %v1508_v4, %v1507_v0  ;;  %v1314_v28 = vadd.f32 %v1313_v1, %v1312_v9 }
 0x1e3   :  { %v1511_v2 = vadd.f32 %v1510_v47, %v1509_v57  ;;  %v1316_v14 = vadd.f32 %v1315_v7, %v1314_v28 }
 0x1e5   :  { %v1513_v16 = vadd.f32 %v1512_v43, %v1511_v2  ;;  %v1318_v20 = vadd.f32 %v1317_v11, %v1316_v14 }
 0x1e7   :  { %v1319_v60 = vrot.slane %v1318_v20, 4  ;;  %v1515_v18 = vadd.f32 %v1514_v19, %v1513_v16 }
 0x1e9   :  { %v1320_v21 = vadd.f32 %v1319_v60, %v1318_v20  ;;  %v1516_v30 = vrot.slane %v1515_v18, 4 }
 0x1eb   :  { %v1321_v15 = vrot.slane %v1320_v21, 2  ;;  %v1517_v23 = vadd.f32 %v1516_v30, %v1515_v18 }
 0x1ed   :  { %v1322_v48 = vadd.f32 %v1321_v15, %v1320_v21  ;;  %v1518_v26 = vrot.slane %v1517_v23, 2 }
 0x1ef   :  { %v1323_v12 = vrot.slane %v1322_v48, 1  ;;  %v1519_v29 = vadd.f32 %v1518_v26, %v1517_v23 }
 0x1f1   :  { %v1520_v32 = vrot.slane %v1519_v29, 1  ;;  %v1324_v34 = vadd.f32 %v1323_v12, %v1322_v48 }
 0x1f3   :  { %v1521_v33 = vadd.f32 %v1520_v32, %v1519_v29 }
 0x1f5   :  { %v1523_v17 = vsel %vm1522_vm2, %v1324_v34, %v1521_v33 }
 0x1f6   :  { %1525 = vst.msk [vmem:[%s3352_s3] sm:$0x3] %vm1524_vm3, %v1523_v17 }

// kernel: tile.13
= control target key start
LH: loop header
LB: loop body
LE: loop exit
PB: predicated region body
PF: predicated region fallthrough
CT: control target
= control target key end

     0   :  { %s64_s0 = inlined_call_operand.vmem [shape: f32[64], index: 0, kind: input, shape index: {}]   ;;  %s65_s1 = inlined_call_operand.vmem [shape: f32[64,64], index: 1, kind: output, shape index: {}]  }
   0x1   :  { %v4_v0 = vld [vmem:[%s64_s0] ss:$0 sm:$0xff] }
   0x2   :  { %5 = vst [vmem:[%s65_s1] sm:$0xff] %v4_v0 }
   0x3   :  { %20 = vst [vmem:[%s65_s1 + $0x8] sm:$0xff] %v4_v0 }
   0x4   :  { %21 = vst [vmem:[%s65_s1 + $0x10] sm:$0xff] %v4_v0 }
   0x5   :  { %22 = vst [vmem:[%s65_s1 + $0x18] sm:$0xff] %v4_v0 }
   0x6   :  { %23 = vst [vmem:[%s65_s1 + $0x20] sm:$0xff] %v4_v0 }
   0x7   :  { %24 = vst [vmem:[%s65_s1 + $0x28] sm:$0xff] %v4_v0 }
   0x8   :  { %25 = vst [vmem:[%s65_s1 + $0x30] sm:$0xff] %v4_v0 }
   0x9   :  { %26 = vst [vmem:[%s65_s1 + $0x38] sm:$0xff] %v4_v0 }

// kernel: tile.14
= control target key start
LH: loop header
LB: loop body
LE: loop exit
PB: predicated region body
PF: predicated region fallthrough
CT: control target
= control target key end

     0   :  { %s292_s10 = smov 64   ;;  %vm3_vm0 = vcmask 523264   ;;  %vm31_vm1 = vcmask 1048064   ;;  %s431_s0 = inlined_call_operand.vmem [shape: f32[64,64], index: 0, kind: input, shape index: {}]   ;;  %s432_s1 = inlined_call_operand.vmem [shape: f32[1,4096], index: 1, kind: output, shape index: {}]  }
   0x1   :  { %v258_v0 = vld [vmem:[%s431_s0 + $0x21] ss:$2 sm:$0xff]   ;;  %v259_v2 = vld [vmem:[%s431_s0 + $0x31] ss:$2 sm:$0xff]   ;;  %v254_v4 = vld [vmem:[%s431_s0 + $0x20] ss:$2 sm:$0xff]  }
   0x2   :  { %v256_v1 = vld [vmem:[%s431_s0 + $0x1] ss:$2 sm:$0xff]   ;;  %45 = vrot.lane.b32.xlu1 %v258_v0, %s292_s10  ;;  %v257_v3 = vld [vmem:[%s431_s0 + $0x11] ss:$2 sm:$0xff]   ;;  %v2_v5 = vld [vmem:[%s431_s0] ss:$2 sm:$0xff]  }
   0x3   :  { %29 = vrot.lane.b32.xlu0 %v256_v1, %s292_s10  ;;  %17 = vst.msk [vmem:[#allocation0 + $0x80] ss:$8 sm:$0xf] %vm3_vm0, %v254_v4   ;;  %v255_v6 = vld [vmem:[%s431_s0 + $0x30] ss:$2 sm:$0xff]  }
   0x4   :  { %19 = vst.msk [vmem:[#allocation0 + $0x80] ss:$8 sm:$0xf0] %vm3_vm0, %v254_v4   ;;  %v253_v7 = vld [vmem:[%s431_s0 + $0x10] ss:$2 sm:$0xff]  }
   0x5   :  { %4 = vst.msk [vmem:[#allocation0] ss:$8 sm:$0xf] %vm3_vm0, %v2_v5  }
   0x6   :  { %5 = vst.msk [vmem:[#allocation0] ss:$8 sm:$0xf0] %vm3_vm0, %v2_v5  }
   0x7   :  { %24 = vst.msk [vmem:[#allocation0 + $0xc0] ss:$8 sm:$0xf] %vm3_vm0, %v255_v6  }
   0x8   :  { %26 = vst.msk [vmem:[#allocation0 + $0xc0] ss:$8 sm:$0xf0] %vm3_vm0, %v255_v6  }
   0x9   :  { %10 = vst.msk [vmem:[#allocation0 + $0x40] ss:$8 sm:$0xf] %vm3_vm0, %v253_v7  }
   0xa   :  { %54 = vrot.lane.b32.xlu1 %v259_v2, %s292_s10  ;;  %12 = vst.msk [vmem:[#allocation0 + $0x40] ss:$8 sm:$0xf0] %vm3_vm0, %v253_v7  }
   0xb   :  { %36 = vrot.lane.b32.xlu0 %v257_v3, %s292_s10 }
  0x74   :  { %v46_v8 = vpop.permute.xlu1 %45  }
  0x75   :  { %v30_v9 = vpop.permute.xlu0 %29   ;;  %49 = vst.msk [vmem:[#allocation0 + $0x80] ss:$8 sm:$0xf] %vm31_vm1, %v46_v8  }
  0x76   :  { %51 = vst.msk [vmem:[#allocation0 + $0x80] ss:$8 sm:$0xf0] %vm31_vm1, %v46_v8  }
  0x77   :  { %32 = vst.msk [vmem:[#allocation0] ss:$8 sm:$0xf] %vm31_vm1, %v30_v9  }
  0x78   :  { %33 = vst.msk [vmem:[#allocation0] ss:$8 sm:$0xf0] %vm31_vm1, %v30_v9  }
  0x7c   :  { %v158_v10 = vld [vmem:[#allocation0 + $0x80] sm:$0x1]  ;;  %v164_v11 = vld [vmem:[#allocation0 + $0x88] sm:$0x1]  ;;  %v170_v12 = vld [vmem:[#allocation0 + $0x90] sm:$0x1]  ;;  %v55_v13 = vpop.permute.xlu1 %54  }
  0x7d   :  { %v37_v14 = vpop.permute.xlu0 %36   ;;  %275 = vst [vmem:[%s432_s1 + $0x10] sm:$0x1] %v158_v10  ;;  %v176_v15 = vld [vmem:[#allocation0 + $0x98] sm:$0x1]  ;;  %v182_v16 = vld [vmem:[#allocation0 + $0xa0] sm:$0x1] }
  0x7e   :  { %276 = vst [vmem:[%s432_s1 + $0x11] sm:$0x1] %v164_v11  ;;  %v188_v17 = vld [vmem:[#allocation0 + $0xa8] sm:$0x1]  ;;  %v194_v18 = vld [vmem:[#allocation0 + $0xb0] sm:$0x1] }
  0x7f   :  { %277 = vst [vmem:[%s432_s1 + $0x12] sm:$0x1] %v170_v12  ;;  %v200_v19 = vld [vmem:[#allocation0 + $0xb8] sm:$0x1]  ;;  %v63_v20 = vld [vmem:[#allocation0] sm:$0x1] }
  0x80   :  { %278 = vst [vmem:[%s432_s1 + $0x13] sm:$0x1] %v176_v15  ;;  %v68_v21 = vld [vmem:[#allocation0 + $0x8] sm:$0x1]  ;;  %v74_v22 = vld [vmem:[#allocation0 + $0x10] sm:$0x1] }
  0x81   :  { %279 = vst [vmem:[%s432_s1 + $0x14] sm:$0x1] %v182_v16  ;;  %v80_v23 = vld [vmem:[#allocation0 + $0x18] sm:$0x1]  ;;  %v86_v24 = vld [vmem:[#allocation0 + $0x20] sm:$0x1] }
  0x82   :  { %280 = vst [vmem:[%s432_s1 + $0x15] sm:$0x1] %v188_v17  ;;  %v92_v25 = vld [vmem:[#allocation0 + $0x28] sm:$0x1]  ;;  %v98_v26 = vld [vmem:[#allocation0 + $0x30] sm:$0x1] }
  0x83   :  { %281 = vst [vmem:[%s432_s1 + $0x16] sm:$0x1] %v194_v18  ;;  %v104_v27 = vld [vmem:[#allocation0 + $0x38] sm:$0x1] }
  0x84   :  { %282 = vst [vmem:[%s432_s1 + $0x17] sm:$0x1] %v200_v19 }
  0x85   :  { %66 = vst [vmem:[%s432_s1] sm:$0x1] %v63_v20 }
  0x86   :  { %260 = vst [vmem:[%s432_s1 + $0x1] sm:$0x1] %v68_v21 }
  0x87   :  { %261 = vst [vmem:[%s432_s1 + $0x2] sm:$0x1] %v74_v22 }
  0x88   :  { %262 = vst [vmem:[%s432_s1 + $0x3] sm:$0x1] %v80_v23 }
  0x89   :  { %263 = vst [vmem:[%s432_s1 + $0x4] sm:$0x1] %v86_v24 }
  0x8a   :  { %264 = vst [vmem:[%s432_s1 + $0x5] sm:$0x1] %v92_v25 }
  0x8b   :  { %265 = vst [vmem:[%s432_s1 + $0x6] sm:$0x1] %v98_v26 }
  0x8c   :  { %266 = vst [vmem:[%s432_s1 + $0x7] sm:$0x1] %v104_v27 }
  0x8d   :  { %58 = vst.msk [vmem:[#allocation0 + $0xc0] ss:$8 sm:$0xf] %vm31_vm1, %v55_v13  }
  0x8e   :  { %60 = vst.msk [vmem:[#allocation0 + $0xc0] ss:$8 sm:$0xf0] %vm31_vm1, %v55_v13  }
  0x8f   :  { %40 = vst.msk [vmem:[#allocation0 + $0x40] ss:$8 sm:$0xf] %vm31_vm1, %v37_v14  }
  0x90   :  { %42 = vst.msk [vmem:[#allocation0 + $0x40] ss:$8 sm:$0xf0] %vm31_vm1, %v37_v14  }
  0x94   :  { %v206_v28 = vld [vmem:[#allocation0 + $0xc0] sm:$0x1]  ;;  %v212_v29 = vld [vmem:[#allocation0 + $0xc8] sm:$0x1]  ;;  %v218_v30 = vld [vmem:[#allocation0 + $0xd0] sm:$0x1] }
  0x95   :  { %283 = vst [vmem:[%s432_s1 + $0x18] sm:$0x1] %v206_v28  ;;  %v224_v31 = vld [vmem:[#allocation0 + $0xd8] sm:$0x1]  ;;  %v230_v32 = vld [vmem:[#allocation0 + $0xe0] sm:$0x1] }
  0x96   :  { %284 = vst [vmem:[%s432_s1 + $0x19] sm:$0x1] %v212_v29  ;;  %v236_v33 = vld [vmem:[#allocation0 + $0xe8] sm:$0x1]  ;;  %v242_v34 = vld [vmem:[#allocation0 + $0xf0] sm:$0x1] }
  0x97   :  { %285 = vst [vmem:[%s432_s1 + $0x1a] sm:$0x1] %v218_v30  ;;  %v248_v35 = vld [vmem:[#allocation0 + $0xf8] sm:$0x1]  ;;  %v110_v36 = vld [vmem:[#allocation0 + $0x40] sm:$0x1] }
  0x98   :  { %286 = vst [vmem:[%s432_s1 + $0x1b] sm:$0x1] %v224_v31  ;;  %v116_v37 = vld [vmem:[#allocation0 + $0x48] sm:$0x1]  ;;  %v122_v38 = vld [vmem:[#allocation0 + $0x50] sm:$0x1] }
  0x99   :  { %287 = vst [vmem:[%s432_s1 + $0x1c] sm:$0x1] %v230_v32  ;;  %v128_v39 = vld [vmem:[#allocation0 + $0x58] sm:$0x1]  ;;  %v134_v40 = vld [vmem:[#allocation0 + $0x60] sm:$0x1] }
  0x9a   :  { %288 = vst [vmem:[%s432_s1 + $0x1d] sm:$0x1] %v236_v33  ;;  %v140_v41 = vld [vmem:[#allocation0 + $0x68] sm:$0x1]  ;;  %v146_v42 = vld [vmem:[#allocation0 + $0x70] sm:$0x1] }
  0x9b   :  { %289 = vst [vmem:[%s432_s1 + $0x1e] sm:$0x1] %v242_v34  ;;  %v152_v43 = vld [vmem:[#allocation0 + $0x78] sm:$0x1] }
  0x9c   :  { %290 = vst [vmem:[%s432_s1 + $0x1f] sm:$0x1] %v248_v35 }
  0x9d   :  { %267 = vst [vmem:[%s432_s1 + $0x8] sm:$0x1] %v110_v36 }
  0x9e   :  { %268 = vst [vmem:[%s432_s1 + $0x9] sm:$0x1] %v116_v37 }
  0x9f   :  { %269 = vst [vmem:[%s432_s1 + $0xa] sm:$0x1] %v122_v38 }
  0xa0   :  { %270 = vst [vmem:[%s432_s1 + $0xb] sm:$0x1] %v128_v39 }
  0xa1   :  { %271 = vst [vmem:[%s432_s1 + $0xc] sm:$0x1] %v134_v40 }
  0xa2   :  { %272 = vst [vmem:[%s432_s1 + $0xd] sm:$0x1] %v140_v41 }
  0xa3   :  { %273 = vst [vmem:[%s432_s1 + $0xe] sm:$0x1] %v146_v42 }
  0xa4   :  { %274 = vst [vmem:[%s432_s1 + $0xf] sm:$0x1] %v152_v43 }

// kernel: discriminator_forward.8
= control target key start
LH: loop header
LB: loop body
LE: loop exit
PB: predicated region body
PF: predicated region fallthrough
CT: control target
= control target key end

     0   :  { %vm17_vm0 = vcmask 523264   ;;  %vm856_vm1 = vcmask 519168   ;;  %vm836_vm2 = vcmask 1040384   ;;  %vm838_vm3 = vcmask 517120   ;;  %s1697_s1 = inlined_call_operand.vmem [shape: bf16[512,64], index: 1, kind: input, shape index: {}]   ;;  %s1698_s0 = inlined_call_operand.vmem [shape: bf16[128,512], index: 0, kind: input, shape index: {}]   ;;  %s1699_s2 = inlined_call_operand.vmem [shape: bf16[128,64], index: 2, kind: output, shape index: {0}]   ;;  %s1700_s3 = inlined_call_operand.vmem [shape: f32[1,2,64], index: 3, kind: output, shape index: {1}]  }
   0x1   :  { %v1176_v0 = vld [vmem:[%s1697_s1 + $0x38] sm:$0xff]  ;;  %v1175_v4 = vld [vmem:[%s1697_s1 + $0x30] sm:$0xff]  ;;  %v1174_v8 = vld [vmem:[%s1697_s1 + $0x28] sm:$0xff] }
   0x2   :  { %v1184_v1 = vld [vmem:[%s1697_s1 + $0x78] sm:$0xff]  ;;  %498 = vmatpush.bf16.msra.mxu0 %v1176_v0  ;;  %v1183_v5 = vld [vmem:[%s1697_s1 + $0x70] sm:$0xff]  ;;  %v1182_v9 = vld [vmem:[%s1697_s1 + $0x68] sm:$0xff] }
   0x3   :  { %v1192_v2 = vld [vmem:[%s1697_s1 + $0xb8] sm:$0xff]  ;;  %547 = vmatpush.bf16.msra.mxu1 %v1184_v1  ;;  %v1191_v6 = vld [vmem:[%s1697_s1 + $0xb0] sm:$0xff]  ;;  %v1190_v10 = vld [vmem:[%s1697_s1 + $0xa8] sm:$0xff] }
   0x4   :  { %v1200_v3 = vld [vmem:[%s1697_s1 + $0xf8] sm:$0xff]  ;;  %596 = vmatpush.bf16.msra.mxu2 %v1192_v2  ;;  %v1199_v7 = vld [vmem:[%s1697_s1 + $0xf0] sm:$0xff]  ;;  %v1198_v11 = vld [vmem:[%s1697_s1 + $0xe8] sm:$0xff] }
   0x5   :  { %645 = vmatpush.bf16.msra.mxu3 %v1200_v3  ;;  %v1173_v12 = vld [vmem:[%s1697_s1 + $0x20] sm:$0xff]  ;;  %v1172_v16 = vld [vmem:[%s1697_s1 + $0x18] sm:$0xff]  ;;  %v1171_v20 = vld [vmem:[%s1697_s1 + $0x10] sm:$0xff] }
   0x6   :  { %499 = vmatpush.bf16.msra.mxu0 %v1175_v4  ;;  %v1181_v13 = vld [vmem:[%s1697_s1 + $0x60] sm:$0xff]  ;;  %v1180_v17 = vld [vmem:[%s1697_s1 + $0x58] sm:$0xff]  ;;  %v1179_v21 = vld [vmem:[%s1697_s1 + $0x50] sm:$0xff] }
   0x7   :  { %548 = vmatpush.bf16.msra.mxu1 %v1183_v5  ;;  %v1189_v14 = vld [vmem:[%s1697_s1 + $0xa0] sm:$0xff]  ;;  %v1188_v18 = vld [vmem:[%s1697_s1 + $0x98] sm:$0xff]  ;;  %v1187_v22 = vld [vmem:[%s1697_s1 + $0x90] sm:$0xff] }
   0x8   :  { %597 = vmatpush.bf16.msra.mxu2 %v1191_v6  ;;  %v1197_v15 = vld [vmem:[%s1697_s1 + $0xe0] sm:$0xff]  ;;  %v1196_v19 = vld [vmem:[%s1697_s1 + $0xd8] sm:$0xff]  ;;  %v1195_v23 = vld [vmem:[%s1697_s1 + $0xd0] sm:$0xff] }
   0x9   :  { %646 = vmatpush.bf16.msra.mxu3 %v1199_v7  ;;  %v1170_v24 = vld [vmem:[%s1697_s1 + $0x8] sm:$0xff]  ;;  %v1169_v28 = vld [vmem:[%s1697_s1] sm:$0xff]  ;;  %v1139_v33 = vld [vmem:[%s1698_s0 + $0xc] sm:$0xf0] }
   0xa   :  { %500 = vmatpush.bf16.msra.mxu0 %v1174_v8  ;;  %v1178_v25 = vld [vmem:[%s1697_s1 + $0x48] sm:$0xff]  ;;  %v1177_v29 = vld [vmem:[%s1697_s1 + $0x40] sm:$0xff]  ;;  %v885_v35 = vld [vmem:[%s1698_s0 + $0x10] sm:$0xf0] }
   0xb   :  { %549 = vmatpush.bf16.msra.mxu1 %v1182_v9  ;;  %v1186_v26 = vld [vmem:[%s1697_s1 + $0x88] sm:$0xff]  ;;  %v1185_v30 = vld [vmem:[%s1697_s1 + $0x80] sm:$0xff]  ;;  %v1140_v37 = vld [vmem:[%s1698_s0 + $0x14] sm:$0xf0] }
   0xc   :  { %598 = vmatpush.bf16.msra.mxu2 %v1190_v10  ;;  %v1194_v27 = vld [vmem:[%s1697_s1 + $0xc8] sm:$0xff]  ;;  %v1193_v31 = vld [vmem:[%s1697_s1 + $0xc0] sm:$0xff]  ;;  %v893_v39 = vld [vmem:[%s1698_s0 + $0x18] sm:$0xf0] }
   0xd   :  { %647 = vmatpush.bf16.msra.mxu3 %v1198_v11  ;;  %v883_v32 = vld [vmem:[%s1698_s0] sm:$0xf]  ;;  %v1137_v34 = vld [vmem:[%s1698_s0 + $0x4] sm:$0xf]  ;;  %v891_v36 = vld [vmem:[%s1698_s0 + $0x8] sm:$0xf] }
   0xe   :  { %501 = vmatpush.bf16.msra.mxu0 %v1173_v12  ;;  %v1138_v38 = vld [vmem:[%s1698_s0 + $0xc] sm:$0xf]  ;;  %v884_v40 = vor.u32 %v1139_v33, %v883_v32  ;;  %v888_v41 = vor.u32 %v1137_v34, %v885_v35  ;;  %v892_v42 = vor.u32 %v1140_v37, %v891_v36  ;;  %v899_v44 = vld [vmem:[%s1698_s0 + $0x20] sm:$0xf]  ;;  %v1143_v45 = vld [vmem:[%s1698_s0 + $0x2c] sm:$0xf0] }
   0xf   :  { %550 = vmatpush.bf16.msra.mxu1 %v1181_v13  ;;  %v896_v43 = vor.u32 %v1138_v38, %v893_v39  ;;  %v1141_v46 = vld [vmem:[%s1698_s0 + $0x24] sm:$0xf]  ;;  %v901_v47 = vld [vmem:[%s1698_s0 + $0x30] sm:$0xf0]  ;;  %v907_v48 = vld [vmem:[%s1698_s0 + $0x28] sm:$0xf]  ;;  %v900_v52 = vor.u32 %v1143_v45, %v899_v44 }
  0x10   :  { %599 = vmatpush.bf16.msra.mxu2 %v1189_v14  ;;  %v1144_v49 = vld [vmem:[%s1698_s0 + $0x34] sm:$0xf0]  ;;  %v1142_v50 = vld [vmem:[%s1698_s0 + $0x2c] sm:$0xf]  ;;  %v909_v51 = vld [vmem:[%s1698_s0 + $0x38] sm:$0xf0]  ;;  %v904_v53 = vor.u32 %v1141_v46, %v901_v47 }
  0x11   :  { %648 = vmatpush.bf16.msra.mxu3 %v1197_v15  ;;  %v908_v54 = vor.u32 %v1144_v49, %v907_v48  ;;  %v912_v55 = vor.u32 %v1142_v50, %v909_v51  ;;  %v915_v56 = vld [vmem:[%s1698_s0 + $0x40] sm:$0xf]  ;;  %v1147_v57 = vld [vmem:[%s1698_s0 + $0x4c] sm:$0xf0]  ;;  %v1145_v58 = vld [vmem:[%s1698_s0 + $0x44] sm:$0xf] }
  0x12   :  { %502 = vmatpush.bf16.msra.mxu0 %v1172_v16  ;;  %v917_v59 = vld [vmem:[%s1698_s0 + $0x50] sm:$0xf0]  ;;  %v923_v60 = vld [vmem:[%s1698_s0 + $0x48] sm:$0xf]  ;;  %v1148_v61 = vld [vmem:[%s1698_s0 + $0x54] sm:$0xf0]  ;;  %v916_v0 = vor.u32 %v1147_v57, %v915_v56 }
  0x13   :  { %551 = vmatpush.bf16.msra.mxu1 %v1180_v17  ;;  %v1146_v62 = vld [vmem:[%s1698_s0 + $0x4c] sm:$0xf]  ;;  %v925_v63 = vld [vmem:[%s1698_s0 + $0x58] sm:$0xf0]  ;;  %v920_v1 = vor.u32 %v1145_v58, %v917_v59  ;;  %v924_v2 = vor.u32 %v1148_v61, %v923_v60  ;;  %v931_v4 = vld [vmem:[%s1698_s0 + $0x60] sm:$0xf] }
  0x14   :  { %600 = vmatpush.bf16.msra.mxu2 %v1188_v18  ;;  %v928_v3 = vor.u32 %v1146_v62, %v925_v63  ;;  %v1151_v5 = vld [vmem:[%s1698_s0 + $0x6c] sm:$0xf0]  ;;  %v1149_v6 = vld [vmem:[%s1698_s0 + $0x64] sm:$0xf]  ;;  %v933_v7 = vld [vmem:[%s1698_s0 + $0x70] sm:$0xf0] }
  0x15   :  { %649 = vmatpush.bf16.msra.mxu3 %v1196_v19  ;;  %v939_v8 = vld [vmem:[%s1698_s0 + $0x68] sm:$0xf]  ;;  %v1152_v9 = vld [vmem:[%s1698_s0 + $0x74] sm:$0xf0]  ;;  %v1150_v10 = vld [vmem:[%s1698_s0 + $0x6c] sm:$0xf]  ;;  %v932_v12 = vor.u32 %v1151_v5, %v931_v4  ;;  %v936_v13 = vor.u32 %v1149_v6, %v933_v7 }
  0x16   :  { %503 = vmatpush.bf16.msra.mxu0 %v1171_v20  ;;  %v941_v11 = vld [vmem:[%s1698_s0 + $0x78] sm:$0xf0]  ;;  %v940_v14 = vor.u32 %v1152_v9, %v939_v8  ;;  %v947_v16 = vld [vmem:[%s1698_s0 + $0x80] sm:$0xf]  ;;  %v1155_v17 = vld [vmem:[%s1698_s0 + $0x8c] sm:$0xf0] }
  0x17   :  { %552 = vmatpush.bf16.msra.mxu1 %v1179_v21  ;;  %v944_v15 = vor.u32 %v1150_v10, %v941_v11  ;;  %v1153_v18 = vld [vmem:[%s1698_s0 + $0x84] sm:$0xf]  ;;  %v949_v19 = vld [vmem:[%s1698_s0 + $0x90] sm:$0xf0]  ;;  %v955_v20 = vld [vmem:[%s1698_s0 + $0x88] sm:$0xf] }
  0x18   :  { %601 = vmatpush.bf16.msra.mxu2 %v1187_v22  ;;  %v1156_v21 = vld [vmem:[%s1698_s0 + $0x94] sm:$0xf0]  ;;  %v1154_v22 = vld [vmem:[%s1698_s0 + $0x8c] sm:$0xf]  ;;  %v971_v32 = vld [vmem:[%s1698_s0 + $0xa8] sm:$0xf] }
  0x19   :  { %650 = vmatpush.bf16.msra.mxu3 %v1195_v23  ;;  %v957_v23 = vld [vmem:[%s1698_s0 + $0x98] sm:$0xf0]  ;;  %v1160_v33 = vld [vmem:[%s1698_s0 + $0xb4] sm:$0xf0]  ;;  %v1158_v34 = vld [vmem:[%s1698_s0 + $0xac] sm:$0xf] }
  0x1a   :  { %504 = vmatpush.bf16.msra.mxu0 %v1170_v24  ;;  %v948_v24 = vor.u32 %v1155_v17, %v947_v16  ;;  %v973_v35 = vld [vmem:[%s1698_s0 + $0xb8] sm:$0xf0]  ;;  %v972_v38 = vor.u32 %v1160_v33, %v971_v32  ;;  %v987_v44 = vld [vmem:[%s1698_s0 + $0xc8] sm:$0xf]  ;;  %v1164_v45 = vld [vmem:[%s1698_s0 + $0xd4] sm:$0xf0] }
  0x1b   :  { %553 = vmatpush.bf16.msra.mxu1 %v1178_v25  ;;  %v952_v25 = vor.u32 %v1153_v18, %v949_v19  ;;  %v976_v39 = vor.u32 %v1158_v34, %v973_v35  ;;  %v1162_v46 = vld [vmem:[%s1698_s0 + $0xcc] sm:$0xf]  ;;  %v989_v47 = vld [vmem:[%s1698_s0 + $0xd8] sm:$0xf0]  ;;  %v988_v50 = vor.u32 %v1164_v45, %v987_v44  ;;  %v997_v56 = vld [vmem:[%s1698_s0 + $0xf0] sm:$0xf0] }
  0x1c   :  { %602 = vmatpush.bf16.msra.mxu2 %v1186_v26  ;;  %v956_v26 = vor.u32 %v1156_v21, %v955_v20  ;;  %v992_v51 = vor.u32 %v1162_v46, %v989_v47  ;;  %v1003_v57 = vld [vmem:[%s1698_s0 + $0xe8] sm:$0xf]  ;;  %v1168_v58 = vld [vmem:[%s1698_s0 + $0xf4] sm:$0xf0]  ;;  %v1166_v59 = vld [vmem:[%s1698_s0 + $0xec] sm:$0xf] }
  0x1d   :  { %651 = vmatpush.bf16.msra.mxu3 %v1194_v27  ;;  %v960_v27 = vor.u32 %v1154_v22, %v957_v23  ;;  %v1005_v60 = vld [vmem:[%s1698_s0 + $0xf8] sm:$0xf0]  ;;  %v1004_v63 = vor.u32 %v1168_v58, %v1003_v57 }
  0x1e   :  { %505 = vmatpush.bf16.msra.mxu0 %v1169_v28  ;;  %v963_v28 = vld [vmem:[%s1698_s0 + $0xa0] sm:$0xf] }
  0x1f   :  { %554 = vmatpush.bf16.msra.mxu1 %v1177_v29  ;;  %v1159_v29 = vld [vmem:[%s1698_s0 + $0xac] sm:$0xf0] }
  0x20   :  { %603 = vmatpush.bf16.msra.mxu2 %v1185_v30  ;;  %v1157_v30 = vld [vmem:[%s1698_s0 + $0xa4] sm:$0xf]  ;;  %v964_v36 = vor.u32 %v1159_v29, %v963_v28 }
  0x21   :  { %652 = vmatpush.bf16.msra.mxu3 %v1193_v31  ;;  %506 = vmatmul.bf16.vlgmr.msra.gmra.mxu0 %v884_v40  ;;  %v965_v31 = vld [vmem:[%s1698_s0 + $0xb0] sm:$0xf0]  ;;  %v979_v40 = vld [vmem:[%s1698_s0 + $0xc0] sm:$0xf] }
  0x22   :  { %555 = vmatmul.bf16.vlgmr.msra.gmra.mxu1 %v888_v41  ;;  %v968_v37 = vor.u32 %v1157_v30, %v965_v31  ;;  %v1163_v41 = vld [vmem:[%s1698_s0 + $0xcc] sm:$0xf0] }
  0x23   :  { %604 = vmatmul.bf16.vlgmr.msra.gmra.mxu2 %v892_v42  ;;  %v1161_v42 = vld [vmem:[%s1698_s0 + $0xc4] sm:$0xf]  ;;  %v980_v48 = vor.u32 %v1163_v41, %v979_v40 }
  0x24   :  { %653 = vmatmul.bf16.vlgmr.msra.gmra.mxu3 %v896_v43  ;;  %v981_v43 = vld [vmem:[%s1698_s0 + $0xd0] sm:$0xf0] }
  0x25   :  { %v984_v49 = vor.u32 %v1161_v42, %v981_v43 }
  0x31   :  { %511 = vmatmul.bf16.gmra.mxu0 %v900_v52  ;;  %v1202_v52 = vmov 0.0  }
  0x32   :  { %560 = vmatmul.bf16.gmra.mxu1 %v904_v53  ;;  %18 = vst.msk [vmem:[#allocation2] sm:$0xff] %vm17_vm0, %v1202_v52  ;;  %v995_v53 = vld [vmem:[%s1698_s0 + $0xe0] sm:$0xf] }
  0x33   :  { %609 = vmatmul.bf16.gmra.mxu2 %v908_v54  ;;  %19 = vst.msk [vmem:[#allocation2 + $0x8] sm:$0xff] %vm17_vm0, %v1202_v52  ;;  %v1167_v54 = vld [vmem:[%s1698_s0 + $0xec] sm:$0xf0] }
  0x34   :  { %658 = vmatmul.bf16.gmra.mxu3 %v912_v55  ;;  %20 = vst.msk [vmem:[#allocation2 + $0x10] sm:$0xff] %vm17_vm0, %v1202_v52  ;;  %v1165_v55 = vld [vmem:[%s1698_s0 + $0xe4] sm:$0xf]  ;;  %v996_v61 = vor.u32 %v1167_v54, %v995_v53 }
  0x35   :  { %21 = vst.msk [vmem:[#allocation2 + $0x18] sm:$0xff] %vm17_vm0, %v1202_v52  ;;  %v1000_v62 = vor.u32 %v1165_v55, %v997_v56 }
  0x36   :  { %22 = vst.msk [vmem:[#allocation2 + $0x20] sm:$0xff] %vm17_vm0, %v1202_v52 }
  0x37   :  { %23 = vst.msk [vmem:[#allocation2 + $0x28] sm:$0xff] %vm17_vm0, %v1202_v52 }
  0x38   :  { %24 = vst.msk [vmem:[#allocation2 + $0x30] sm:$0xff] %vm17_vm0, %v1202_v52 }
  0x39   :  { %25 = vst.msk [vmem:[#allocation2 + $0x38] sm:$0xff] %vm17_vm0, %v1202_v52  ;;  %v34_v9 = vld [vmem:[#allocation2] sm:$0xff] }
  0x3a   :  { %26 = vst.msk [vmem:[#allocation2 + $0x40] sm:$0xff] %vm17_vm0, %v1202_v52  ;;  %v35_v18 = vld [vmem:[#allocation2 + $0x8] sm:$0xff] }
  0x3b   :  { %27 = vst.msk [vmem:[#allocation2 + $0x48] sm:$0xff] %vm17_vm0, %v1202_v52  ;;  %v36_v29 = vld [vmem:[#allocation2 + $0x10] sm:$0xff] }
  0x3c   :  { %28 = vst.msk [vmem:[#allocation2 + $0x50] sm:$0xff] %vm17_vm0, %v1202_v52 }
  0x3d   :  { %29 = vst.msk [vmem:[#allocation2 + $0x58] sm:$0xff] %vm17_vm0, %v1202_v52 }
  0x3e   :  { %30 = vst.msk [vmem:[#allocation2 + $0x60] sm:$0xff] %vm17_vm0, %v1202_v52 }
  0x3f   :  { %31 = vst.msk [vmem:[#allocation2 + $0x68] sm:$0xff] %vm17_vm0, %v1202_v52 }
  0x40   :  { %32 = vst.msk [vmem:[#allocation2 + $0x70] sm:$0xff] %vm17_vm0, %v1202_v52 }
  0x41   :  { %516 = vmatmul.bf16.gmra.mxu0 %v916_v0  ;;  %v1008_v0 = vor.u32 %v1166_v59, %v1005_v60  ;;  %33 = vst.msk [vmem:[#allocation2 + $0x78] sm:$0xff] %vm17_vm0, %v1202_v52 }
  0x42   :  { %565 = vmatmul.bf16.gmra.mxu1 %v920_v1 }
  0x43   :  { %614 = vmatmul.bf16.gmra.mxu2 %v924_v2 }
  0x44   :  { %663 = vmatmul.bf16.gmra.mxu3 %v928_v3 }
  0x51   :  { %521 = vmatmul.bf16.gmra.mxu0 %v932_v12 }
  0x52   :  { %570 = vmatmul.bf16.gmra.mxu1 %v936_v13 }
  0x53   :  { %619 = vmatmul.bf16.gmra.mxu2 %v940_v14 }
  0x54   :  { %668 = vmatmul.bf16.gmra.mxu3 %v944_v15 }
  0x61   :  { %526 = vmatmul.bf16.gmra.mxu0 %v948_v24 }
  0x62   :  { %575 = vmatmul.bf16.gmra.mxu1 %v952_v25 }
  0x63   :  { %624 = vmatmul.bf16.gmra.mxu2 %v956_v26 }
  0x64   :  { %673 = vmatmul.bf16.gmra.mxu3 %v960_v27 }
  0x71   :  { %531 = vmatmul.bf16.gmra.mxu0 %v964_v36 }
  0x72   :  { %580 = vmatmul.bf16.gmra.mxu1 %v968_v37 }
  0x73   :  { %629 = vmatmul.bf16.gmra.mxu2 %v972_v38 }
  0x74   :  { %678 = vmatmul.bf16.gmra.mxu3 %v976_v39 }
  0x81   :  { %536 = vmatmul.bf16.gmra.mxu0 %v980_v48  ;;  %v37_v48 = vld [vmem:[#allocation2 + $0x18] sm:$0xff] }
  0x82   :  { %585 = vmatmul.bf16.gmra.mxu1 %v984_v49 }
  0x83   :  { %634 = vmatmul.bf16.gmra.mxu2 %v988_v50 }
  0x84   :  { %683 = vmatmul.bf16.gmra.mxu3 %v992_v51 }
  0x91   :  { %541 = vmatmul.bf16.gmra.mxu0 %v996_v61 }
  0x92   :  { %590 = vmatmul.bf16.gmra.mxu1 %v1000_v62 }
  0x93   :  { %639 = vmatmul.bf16.gmra.mxu2 %v1004_v63 }
  0x94   :  { %688 = vmatmul.bf16.gmra.mxu3 %v1008_v0  ;;  %v38_v0 = vld [vmem:[#allocation2 + $0x20] sm:$0xff] }
  0x9e   :  { %v507_v1 = vpop.f32.mrf.mxu0 }
  0x9f   :  { %v556_v2 = vpop.f32.mrf.mxu1 }
  0xa0   :  { %v557_v3 = vadd.f32 %v556_v2, %v507_v1 }
  0xa6   :  { %v605_v4 = vpop.f32.mrf.mxu2  ;;  %v509_v7 = vpop.f32.mrf.mxu0 }
  0xa7   :  { %v654_v5 = vpop.f32.mrf.mxu3  ;;  %v606_v6 = vadd.f32 %v605_v4, %v557_v3  ;;  %v558_v8 = vpop.f32.mrf.mxu1 }
  0xa8   :  { %v559_v12 = vadd.f32 %v558_v8, %v509_v7 }
  0xa9   :  { %v655_v10 = vadd.f32 %v654_v5, %v606_v6 }
  0xab   :  { %v694_v11 = vadd.f32 %v655_v10, %v34_v9 }
  0xad   :  { %711 = vst.msk [vmem:[#allocation2] sm:$0xff] %vm17_vm0, %v694_v11 }
  0xae   :  { %v607_v13 = vpop.f32.mrf.mxu2  ;;  %v512_v16 = vpop.f32.mrf.mxu0 }
  0xaf   :  { %v656_v14 = vpop.f32.mrf.mxu3  ;;  %v608_v15 = vadd.f32 %v607_v13, %v559_v12  ;;  %v561_v17 = vpop.f32.mrf.mxu1 }
  0xb0   :  { %v562_v21 = vadd.f32 %v561_v17, %v512_v16  ;;  %v39_v16 = vld [vmem:[#allocation2 + $0x28] sm:$0xff] }
  0xb1   :  { %v657_v19 = vadd.f32 %v656_v14, %v608_v15 }
  0xb3   :  { %v695_v20 = vadd.f32 %v657_v19, %v35_v18 }
  0xb4   :  { %v730_v22 = vld [vmem:[#allocation2] sm:$0xff] }
  0xb5   :  { %v840_v23 = vpack.c.bf16 %v730_v22, %v730_v22  ;;  %712 = vst.msk [vmem:[#allocation2 + $0x8] sm:$0xff] %vm17_vm0, %v695_v20  ;;  %v783_v31 = vmul.f32 %v730_v22, %v730_v22  ;;  %v746_v33 = vsel %vm17_vm0, %v730_v22, 0.0 }
  0xb6   :  { %v610_v24 = vpop.f32.mrf.mxu2  ;;  %v514_v27 = vpop.f32.mrf.mxu0 }
  0xb7   :  { %v659_v25 = vpop.f32.mrf.mxu3  ;;  %857 = vst.msk [vmem:[%s1699_s2] sm:$0xf] %vm856_vm1, %v840_v23  ;;  %v611_v26 = vadd.f32 %v610_v24, %v562_v21  ;;  %v563_v28 = vpop.f32.mrf.mxu1  ;;  %v799_v42 = vsel %vm17_vm0, %v783_v31, 0.0 }
  0xb8   :  { %v564_v38 = vadd.f32 %v563_v28, %v514_v27 }
  0xb9   :  { %v660_v30 = vadd.f32 %v659_v25, %v611_v26 }
  0xbb   :  { %v696_v32 = vadd.f32 %v660_v30, %v36_v29 }
  0xbc   :  { %v731_v34 = vld [vmem:[#allocation2 + $0x8] sm:$0xff] }
  0xbd   :  { %v747_v35 = vsel %vm17_vm0, %v731_v34, 0.0  ;;  %v784_v36 = vmul.f32 %v731_v34, %v731_v34  ;;  %v841_v37 = vpack.c.bf16 %v731_v34, %v731_v34  ;;  %713 = vst.msk [vmem:[#allocation2 + $0x10] sm:$0xff] %vm17_vm0, %v696_v32  ;;  %v40_v32 = vld [vmem:[#allocation2 + $0x30] sm:$0xff] }
  0xbe   :  { %v748_v39 = vadd.f32 %v747_v35, %v746_v33  ;;  %v612_v40 = vpop.f32.mrf.mxu2  ;;  %v517_v45 = vpop.f32.mrf.mxu0 }
  0xbf   :  { %v661_v41 = vpop.f32.mrf.mxu3  ;;  %v800_v43 = vsel %vm17_vm0, %v784_v36, 0.0  ;;  %858 = vst.msk [vmem:[%s1699_s2 + $0x4] sm:$0xf] %vm856_vm1, %v841_v37  ;;  %v613_v44 = vadd.f32 %v612_v40, %v564_v38  ;;  %v566_v46 = vpop.f32.mrf.mxu1 }
  0xc0   :  { %v801_v47 = vadd.f32 %v800_v43, %v799_v42  ;;  %v567_v51 = vadd.f32 %v566_v46, %v517_v45  ;;  %v41_v43 = vld [vmem:[#allocation2 + $0x38] sm:$0xff] }
  0xc1   :  { %v662_v49 = vadd.f32 %v661_v41, %v613_v44 }
  0xc3   :  { %v697_v50 = vadd.f32 %v662_v49, %v37_v48 }
  0xc4   :  { %v732_v52 = vld [vmem:[#allocation2 + $0x10] sm:$0xff] }
  0xc5   :  { %v749_v53 = vsel %vm17_vm0, %v732_v52, 0.0  ;;  %v785_v54 = vmul.f32 %v732_v52, %v732_v52  ;;  %v842_v55 = vpack.c.bf16 %v732_v52, %v732_v52  ;;  %714 = vst.msk [vmem:[#allocation2 + $0x18] sm:$0xff] %vm17_vm0, %v697_v50 }
  0xc6   :  { %v750_v56 = vadd.f32 %v749_v53, %v748_v39  ;;  %v615_v57 = vpop.f32.mrf.mxu2  ;;  %v519_v61 = vpop.f32.mrf.mxu0 }
  0xc7   :  { %v664_v58 = vpop.f32.mrf.mxu3  ;;  %v802_v59 = vsel %vm17_vm0, %v785_v54, 0.0  ;;  %859 = vst.msk [vmem:[%s1699_s2 + $0x8] sm:$0xf] %vm856_vm1, %v842_v55  ;;  %v616_v60 = vadd.f32 %v615_v57, %v567_v51  ;;  %v568_v62 = vpop.f32.mrf.mxu1  ;;  %v42_v54 = vld [vmem:[#allocation2 + $0x40] sm:$0xff] }
  0xc8   :  { %v803_v63 = vadd.f32 %v802_v59, %v801_v47  ;;  %v569_v7 = vadd.f32 %v568_v62, %v519_v61 }
  0xc9   :  { %v665_v1 = vadd.f32 %v664_v58, %v616_v60 }
  0xcb   :  { %v698_v2 = vadd.f32 %v665_v1, %v38_v0  ;;  %v43_v1 = vld [vmem:[#allocation2 + $0x48] sm:$0xff] }
  0xcc   :  { %v733_v3 = vld [vmem:[#allocation2 + $0x18] sm:$0xff] }
  0xcd   :  { %v751_v4 = vsel %vm17_vm0, %v733_v3, 0.0  ;;  %v786_v5 = vmul.f32 %v733_v3, %v733_v3  ;;  %v843_v6 = vpack.c.bf16 %v733_v3, %v733_v3  ;;  %715 = vst.msk [vmem:[#allocation2 + $0x20] sm:$0xff] %vm17_vm0, %v698_v2 }
  0xce   :  { %v752_v8 = vadd.f32 %v751_v4, %v750_v56  ;;  %v617_v9 = vpop.f32.mrf.mxu2  ;;  %v522_v13 = vpop.f32.mrf.mxu0 }
  0xcf   :  { %v666_v10 = vpop.f32.mrf.mxu3  ;;  %v804_v11 = vsel %vm17_vm0, %v786_v5, 0.0  ;;  %860 = vst.msk [vmem:[%s1699_s2 + $0xc] sm:$0xf] %vm856_vm1, %v843_v6  ;;  %v618_v12 = vadd.f32 %v617_v9, %v569_v7  ;;  %v571_v14 = vpop.f32.mrf.mxu1 }
  0xd0   :  { %v805_v15 = vadd.f32 %v804_v11, %v803_v63  ;;  %v572_v19 = vadd.f32 %v571_v14, %v522_v13 }
  0xd1   :  { %v667_v17 = vadd.f32 %v666_v10, %v618_v12  ;;  %v44_v12 = vld [vmem:[#allocation2 + $0x50] sm:$0xff] }
  0xd3   :  { %v699_v18 = vadd.f32 %v667_v17, %v39_v16 }
  0xd4   :  { %v734_v20 = vld [vmem:[#allocation2 + $0x20] sm:$0xff] }
  0xd5   :  { %v753_v21 = vsel %vm17_vm0, %v734_v20, 0.0  ;;  %v787_v22 = vmul.f32 %v734_v20, %v734_v20  ;;  %v844_v23 = vpack.c.bf16 %v734_v20, %v734_v20  ;;  %716 = vst.msk [vmem:[#allocation2 + $0x28] sm:$0xff] %vm17_vm0, %v699_v18 }
  0xd6   :  { %v1558_v24 = vadd.f32 %v753_v21, %v752_v8  ;;  %v620_v25 = vpop.f32.mrf.mxu2  ;;  %v524_v29 = vpop.f32.mrf.mxu0 }
  0xd7   :  { %v669_v26 = vpop.f32.mrf.mxu3  ;;  %v806_v27 = vsel %vm17_vm0, %v787_v22, 0.0  ;;  %861 = vst.msk [vmem:[%s1699_s2 + $0x10] sm:$0xf] %vm856_vm1, %v844_v23  ;;  %v621_v28 = vadd.f32 %v620_v25, %v572_v19  ;;  %v573_v30 = vpop.f32.mrf.mxu1  ;;  %v45_v23 = vld [vmem:[#allocation2 + $0x58] sm:$0xff] }
  0xd8   :  { %v1565_v31 = vadd.f32 %v806_v27, %v805_v15  ;;  %v574_v37 = vadd.f32 %v573_v30, %v524_v29 }
  0xd9   :  { %v670_v33 = vadd.f32 %v669_v26, %v621_v28 }
  0xdb   :  { %v700_v34 = vadd.f32 %v670_v33, %v40_v32 }
  0xdc   :  { %v1567_v35 = vld [vmem:[#allocation2 + $0x28] sm:$0xff] }
  0xdd   :  { %v845_v36 = vpack.c.bf16 %v1567_v35, %v1567_v35  ;;  %717 = vst.msk [vmem:[#allocation2 + $0x30] sm:$0xff] %vm17_vm0, %v700_v34 }
  0xde   :  { %v622_v38 = vpop.f32.mrf.mxu2  ;;  %v527_v41 = vpop.f32.mrf.mxu0 }
  0xdf   :  { %v671_v39 = vpop.f32.mrf.mxu3  ;;  %862 = vst.msk [vmem:[%s1699_s2 + $0x14] sm:$0xf] %vm856_vm1, %v845_v36  ;;  %v623_v40 = vadd.f32 %v622_v38, %v574_v37  ;;  %v576_v42 = vpop.f32.mrf.mxu1  ;;  %v46_v37 = vld [vmem:[#allocation2 + $0x60] sm:$0xff] }
  0xe0   :  { %v577_v46 = vadd.f32 %v576_v42, %v527_v41 }
  0xe1   :  { %v672_v44 = vadd.f32 %v671_v39, %v623_v40 }
  0xe3   :  { %v701_v45 = vadd.f32 %v672_v44, %v41_v43 }
  0xe4   :  { %v1576_v47 = vld [vmem:[#allocation2 + $0x30] sm:$0xff] }
  0xe5   :  { %v846_v48 = vpack.c.bf16 %v1576_v47, %v1576_v47  ;;  %718 = vst.msk [vmem:[#allocation2 + $0x38] sm:$0xff] %vm17_vm0, %v701_v45 }
  0xe6   :  { %v625_v49 = vpop.f32.mrf.mxu2  ;;  %v529_v52 = vpop.f32.mrf.mxu0 }
  0xe7   :  { %v674_v50 = vpop.f32.mrf.mxu3  ;;  %863 = vst.msk [vmem:[%s1699_s2 + $0x18] sm:$0xf] %vm856_vm1, %v846_v48  ;;  %v626_v51 = vadd.f32 %v625_v49, %v577_v46  ;;  %v578_v53 = vpop.f32.mrf.mxu1  ;;  %v47_v46 = vld [vmem:[#allocation2 + $0x68] sm:$0xff] }
  0xe8   :  { %v579_v59 = vadd.f32 %v578_v53, %v529_v52 }
  0xe9   :  { %v675_v55 = vadd.f32 %v674_v50, %v626_v51 }
  0xeb   :  { %v702_v56 = vadd.f32 %v675_v55, %v42_v54  ;;  %v788_v54 = vmul.f32 %v1567_v35, %v1567_v35 }
  0xec   :  { %v1585_v57 = vld [vmem:[#allocation2 + $0x38] sm:$0xff] }
  0xed   :  { %v847_v58 = vpack.c.bf16 %v1585_v57, %v1585_v57  ;;  %719 = vst.msk [vmem:[#allocation2 + $0x40] sm:$0xff] %vm17_vm0, %v702_v56 }
  0xee   :  { %v627_v60 = vpop.f32.mrf.mxu2  ;;  %v532_v63 = vpop.f32.mrf.mxu0 }
  0xef   :  { %v676_v61 = vpop.f32.mrf.mxu3  ;;  %864 = vst.msk [vmem:[%s1699_s2 + $0x1c] sm:$0xf] %vm856_vm1, %v847_v58  ;;  %v628_v62 = vadd.f32 %v627_v60, %v579_v59  ;;  %v581_v0 = vpop.f32.mrf.mxu1  ;;  %v755_v59 = vsel %vm17_vm0, %v1567_v35, 0.0  ;;  %v789_v60 = vmul.f32 %v1576_v47, %v1576_v47 }
  0xf0   :  { %v582_v4 = vadd.f32 %v581_v0, %v532_v63  ;;  %v48_v63 = vld [vmem:[#allocation2 + $0x70] sm:$0xff]  ;;  %v808_v0 = vsel %vm17_vm0, %v788_v54, 0.0  ;;  %v756_v35 = vadd.f32 %v755_v59, %v1558_v24 }
  0xf1   :  { %v677_v2 = vadd.f32 %v676_v61, %v628_v62  ;;  %v790_v62 = vmul.f32 %v1585_v57, %v1585_v57 }
  0xf3   :  { %v703_v3 = vadd.f32 %v677_v2, %v43_v1  ;;  %v757_v1 = vsel %vm17_vm0, %v1576_v47, 0.0 }
  0xf4   :  { %v1594_v5 = vld [vmem:[#allocation2 + $0x40] sm:$0xff] }
  0xf5   :  { %v848_v6 = vpack.c.bf16 %v1594_v5, %v1594_v5  ;;  %720 = vst.msk [vmem:[#allocation2 + $0x48] sm:$0xff] %vm17_vm0, %v703_v3  ;;  %v761_v24 = vsel %vm17_vm0, %v1594_v5, 0.0 }
  0xf6   :  { %v630_v7 = vpop.f32.mrf.mxu2  ;;  %v534_v10 = vpop.f32.mrf.mxu0 }
  0xf7   :  { %v679_v8 = vpop.f32.mrf.mxu3  ;;  %865 = vst.msk [vmem:[%s1699_s2 + $0x20] sm:$0xf] %vm856_vm1, %v848_v6  ;;  %v631_v9 = vadd.f32 %v630_v7, %v582_v4  ;;  %v583_v11 = vpop.f32.mrf.mxu1  ;;  %v810_v6 = vsel %vm17_vm0, %v789_v60, 0.0  ;;  %v759_v7 = vsel %vm17_vm0, %v1585_v57, 0.0 }
  0xf8   :  { %v584_v17 = vadd.f32 %v583_v11, %v534_v10  ;;  %v809_v10 = vadd.f32 %v808_v0, %v1565_v31  ;;  %v758_v11 = vadd.f32 %v757_v1, %v756_v35 }
  0xf9   :  { %v680_v13 = vadd.f32 %v679_v8, %v631_v9  ;;  %v791_v8 = vmul.f32 %v1594_v5, %v1594_v5 }
  0xfb   :  { %v704_v14 = vadd.f32 %v680_v13, %v44_v12  ;;  %v812_v12 = vsel %vm17_vm0, %v790_v62, 0.0 }
  0xfc   :  { %v1603_v15 = vld [vmem:[#allocation2 + $0x48] sm:$0xff] }
  0xfd   :  { %v849_v16 = vpack.c.bf16 %v1603_v15, %v1603_v15  ;;  %721 = vst.msk [vmem:[#allocation2 + $0x50] sm:$0xff] %vm17_vm0, %v704_v14  ;;  %v792_v13 = vmul.f32 %v1603_v15, %v1603_v15  ;;  %v763_v31 = vsel %vm17_vm0, %v1603_v15, 0.0 }
  0xfe   :  { %v632_v18 = vpop.f32.mrf.mxu2  ;;  %v537_v21 = vpop.f32.mrf.mxu0 }
  0xff   :  { %v681_v19 = vpop.f32.mrf.mxu3  ;;  %866 = vst.msk [vmem:[%s1699_s2 + $0x24] sm:$0xf] %vm856_vm1, %v849_v16  ;;  %v633_v20 = vadd.f32 %v632_v18, %v584_v17  ;;  %v586_v22 = vpop.f32.mrf.mxu1  ;;  %v811_v16 = vadd.f32 %v810_v6, %v809_v10  ;;  %v760_v17 = vadd.f32 %v759_v7, %v758_v11 }
 0x100   :  { %v587_v27 = vadd.f32 %v586_v22, %v537_v21 }
 0x101   :  { %v682_v25 = vadd.f32 %v681_v19, %v633_v20  ;;  %v814_v19 = vsel %vm17_vm0, %v791_v8, 0.0  ;;  %v813_v21 = vadd.f32 %v812_v12, %v811_v16  ;;  %v762_v22 = vadd.f32 %v761_v24, %v760_v17 }
 0x103   :  { %v705_v26 = vadd.f32 %v682_v25, %v45_v23  ;;  %v49_v23 = vld [vmem:[#allocation2 + $0x78] sm:$0xff] }
 0x104   :  { %v1612_v28 = vld [vmem:[#allocation2 + $0x50] sm:$0xff] }
 0x105   :  { %v850_v29 = vpack.c.bf16 %v1612_v28, %v1612_v28  ;;  %722 = vst.msk [vmem:[#allocation2 + $0x58] sm:$0xff] %vm17_vm0, %v705_v26  ;;  %v793_v20 = vmul.f32 %v1612_v28, %v1612_v28  ;;  %v816_v26 = vsel %vm17_vm0, %v792_v13, 0.0 }
 0x106   :  { %v635_v30 = vpop.f32.mrf.mxu2  ;;  %v539_v34 = vpop.f32.mrf.mxu0 }
 0x107   :  { %v684_v32 = vpop.f32.mrf.mxu3  ;;  %867 = vst.msk [vmem:[%s1699_s2 + $0x28] sm:$0xf] %vm856_vm1, %v850_v29  ;;  %v636_v33 = vadd.f32 %v635_v30, %v587_v27  ;;  %v588_v36 = vpop.f32.mrf.mxu1  ;;  %v765_v27 = vsel %vm17_vm0, %v1612_v28, 0.0  ;;  %v815_v30 = vadd.f32 %v814_v19, %v813_v21 }
 0x108   :  { %v589_v42 = vadd.f32 %v588_v36, %v539_v34 }
 0x109   :  { %v685_v38 = vadd.f32 %v684_v32, %v636_v33  ;;  %v764_v32 = vadd.f32 %v763_v31, %v762_v22  ;;  %v818_v33 = vsel %vm17_vm0, %v793_v20, 0.0 }
 0x10b   :  { %v706_v39 = vadd.f32 %v685_v38, %v46_v37  ;;  %v817_v38 = vadd.f32 %v816_v26, %v815_v30 }
 0x10c   :  { %v1621_v40 = vld [vmem:[#allocation2 + $0x58] sm:$0xff] }
 0x10d   :  { %v851_v41 = vpack.c.bf16 %v1621_v40, %v1621_v40  ;;  %723 = vst.msk [vmem:[#allocation2 + $0x60] sm:$0xff] %vm17_vm0, %v706_v39  ;;  %v794_v15 = vmul.f32 %v1621_v40, %v1621_v40  ;;  %v767_v34 = vsel %vm17_vm0, %v1621_v40, 0.0  ;;  %v766_v39 = vadd.f32 %v765_v27, %v764_v32 }
 0x10e   :  { %v637_v43 = vpop.f32.mrf.mxu2  ;;  %v542_v48 = vpop.f32.mrf.mxu0 }
 0x10f   :  { %v686_v44 = vpop.f32.mrf.mxu3  ;;  %868 = vst.msk [vmem:[%s1699_s2 + $0x2c] sm:$0xf] %vm856_vm1, %v851_v41  ;;  %v638_v45 = vadd.f32 %v637_v43, %v589_v42  ;;  %v591_v49 = vpop.f32.mrf.mxu1  ;;  %v820_v42 = vsel %vm17_vm0, %v794_v15, 0.0 }
 0x110   :  { %v592_v52 = vadd.f32 %v591_v49, %v542_v48 }
 0x111   :  { %v687_v50 = vadd.f32 %v686_v44, %v638_v45  ;;  %v819_v45 = vadd.f32 %v818_v33, %v817_v38 }
 0x113   :  { %v707_v51 = vadd.f32 %v687_v50, %v47_v46  ;;  %v768_v46 = vadd.f32 %v767_v34, %v766_v39  ;;  %v821_v50 = vadd.f32 %v820_v42, %v819_v45 }
 0x114   :  { %v742_v53 = vld [vmem:[#allocation2 + $0x60] sm:$0xff] }
 0x115   :  { %v852_v55 = vpack.c.bf16 %v742_v53, %v742_v53  ;;  %724 = vst.msk [vmem:[#allocation2 + $0x68] sm:$0xff] %vm17_vm0, %v707_v51  ;;  %v795_v36 = vmul.f32 %v742_v53, %v742_v53  ;;  %v769_v28 = vsel %vm17_vm0, %v742_v53, 0.0 }
 0x116   :  { %v640_v56 = vpop.f32.mrf.mxu2  ;;  %v544_v3 = vpop.f32.mrf.mxu0  ;;  %v770_v51 = vadd.f32 %v769_v28, %v768_v46 }
 0x117   :  { %v689_v58 = vpop.f32.mrf.mxu3  ;;  %869 = vst.msk [vmem:[%s1699_s2 + $0x30] sm:$0xf] %vm856_vm1, %v852_v55  ;;  %v641_v61 = vadd.f32 %v640_v56, %v592_v52  ;;  %v593_v4 = vpop.f32.mrf.mxu1  ;;  %v822_v48 = vsel %vm17_vm0, %v795_v36, 0.0 }
 0x118   :  { %v594_v57 = vadd.f32 %v593_v4, %v544_v3  ;;  %v823_v54 = vadd.f32 %v822_v48, %v821_v50 }
 0x119   :  { %v690_v2 = vadd.f32 %v689_v58, %v641_v61 }
 0x11b   :  { %v708_v9 = vadd.f32 %v690_v2, %v48_v63 }
 0x11c   :  { %v743_v47 = vld [vmem:[#allocation2 + $0x68] sm:$0xff] }
 0x11d   :  { %v853_v14 = vpack.c.bf16 %v743_v47, %v743_v47  ;;  %725 = vst.msk [vmem:[#allocation2 + $0x70] sm:$0xff] %vm17_vm0, %v708_v9  ;;  %v796_v43 = vmul.f32 %v743_v47, %v743_v47  ;;  %v771_v49 = vsel %vm17_vm0, %v743_v47, 0.0 }
 0x11e   :  { %v642_v18 = vpop.f32.mrf.mxu2  ;;  %v772_v55 = vadd.f32 %v771_v49, %v770_v51 }
 0x11f   :  { %870 = vst.msk [vmem:[%s1699_s2 + $0x34] sm:$0xf] %vm856_vm1, %v853_v14  ;;  %v643_v5 = vadd.f32 %v642_v18, %v594_v57  ;;  %v691_v25 = vpop.f32.mrf.mxu3  ;;  %v824_v52 = vsel %vm17_vm0, %v796_v43, 0.0 }
 0x120   :  { %v825_v58 = vadd.f32 %v824_v52, %v823_v54 }
 0x121   :  { %v692_v29 = vadd.f32 %v691_v25, %v643_v5 }
 0x123   :  { %v709_v37 = vadd.f32 %v692_v29, %v49_v23 }
 0x124   :  { %v744_v41 = vld [vmem:[#allocation2 + $0x70] sm:$0xff] }
 0x125   :  { %v854_v44 = vpack.c.bf16 %v744_v41, %v744_v41  ;;  %726 = vst.msk [vmem:[#allocation2 + $0x78] sm:$0xff] %vm17_vm0, %v709_v37  ;;  %v797_v40 = vmul.f32 %v744_v41, %v744_v41  ;;  %v773_v53 = vsel %vm17_vm0, %v744_v41, 0.0 }
 0x126   :  { %v774_v59 = vadd.f32 %v773_v53, %v772_v55 }
 0x127   :  { %871 = vst.msk [vmem:[%s1699_s2 + $0x38] sm:$0xf] %vm856_vm1, %v854_v44  ;;  %v826_v56 = vsel %vm17_vm0, %v797_v40, 0.0 }
 0x128   :  { %v827_v0 = vadd.f32 %v826_v56, %v825_v58 }
 0x12c   :  { %v745_v60 = vld [vmem:[#allocation2 + $0x78] sm:$0xff] }
 0x12d   :  { %v775_v61 = vsel %vm17_vm0, %v745_v60, 0.0  ;;  %v798_v62 = vmul.f32 %v745_v60, %v745_v60  ;;  %v855_v63 = vpack.c.bf16 %v745_v60, %v745_v60 }
 0x12e   :  { %v776_v1 = vadd.f32 %v775_v61, %v774_v59 }
 0x12f   :  { %v828_v2 = vsel %vm17_vm0, %v798_v62, 0.0  ;;  %872 = vst.msk [vmem:[%s1699_s2 + $0x3c] sm:$0xf] %vm856_vm1, %v855_v63 }
 0x130   :  { %v777_v35 = vrot.slane %v776_v1, 4  ;;  %v829_v3 = vadd.f32 %v828_v2, %v827_v0 }
 0x132   :  { %v778_v4 = vadd.f32 %v777_v35, %v776_v1  ;;  %v830_v6 = vrot.slane %v829_v3, 4 }
 0x134   :  { %v779_v7 = vrot.slane %v778_v4, 2  ;;  %v831_v8 = vadd.f32 %v830_v6, %v829_v3 }
 0x136   :  { %v780_v9 = vadd.f32 %v779_v7, %v778_v4  ;;  %v832_v10 = vrot.slane %v831_v8, 2 }
 0x138   :  { %v781_v11 = vrot.slane %v780_v9, 1  ;;  %v833_v12 = vadd.f32 %v832_v10, %v831_v8 }
 0x13a   :  { %v834_v47 = vrot.slane %v833_v12, 1  ;;  %v782_v24 = vadd.f32 %v781_v11, %v780_v9 }
 0x13c   :  { %v835_v13 = vadd.f32 %v834_v47, %v833_v12 }
 0x13e   :  { %v837_v14 = vsel %vm836_vm2, %v782_v24, %v835_v13 }
 0x13f   :  { %839 = vst.msk [vmem:[%s1700_s3] sm:$0x3] %vm838_vm3, %v837_v14 }

// kernel: discriminator_forward.9
= control target key start
LH: loop header
LB: loop body
LE: loop exit
PB: predicated region body
PF: predicated region fallthrough
CT: control target
= control target key end

     0   :  { %s670_s20 = smov 0   ;;  %s817_s0 = inlined_call_operand.vmem [shape: bf16[2,4096], index: 0, kind: input, shape index: {}]   ;;  %s818_s1 = inlined_call_operand.vmem [shape: f32[1,4096], index: 1, kind: input, shape index: {}]   ;;  %s819_s2 = inlined_call_operand.vmem [shape: f32[1,4096], index: 2, kind: input, shape index: {}]   ;;  %s820_s3 = inlined_call_operand.vmem [shape: f32[1,4096], index: 3, kind: input, shape index: {}]   ;;  %s821_s4 = inlined_call_operand.<no memory space> [shape: f32[1,1], index: 4, kind: input, shape index: {}]   ;;  %s822_s5 = inlined_call_operand.vmem [shape: f32[2,1], index: 5, kind: output, shape index: {}]  }
   0x1   :  { %v10_v0 = vstv %s821_s4 }
   0x2   :  { %11 = vst [vmem:[#allocation3] sm:$0x1] %v10_v0 }
   0x3 LB: > { %s676_s21 = sadd.s32 4294967295, %s634_s20   ;;  %p609_p0 = scmp.ge.s32.totalorder %s634_s20, 1  ;;  %s634_s20 = sphi %s670_s20, %s17_s20  }
   0x4   : > { %p214_p1 = scmp.lt.s32.totalorder %s634_s20, 3 }
   0x6   : > { %p215_p2 = pnand %p609_p0, %p214_p1 }
   0x7   : > { %s610_s22 = sshll.u32 (!%p215_p2), %s676_s21, 4  ;;  %p614_p4 = scmp.ne.s32.totalorder (!%p215_p2), %s676_s21, 0 }
   0x8   : > { %218 = sbr.rel (%p215_p2) target bundleno = 233 (0xe9), region = 40  ;;  %p249_p3 = scmp.lt.s32.totalorder (!%p215_p2), %s610_s22, 31 }
   0xd   : > { %s824_s22 = smov (!%p249_p3, %s610_s22), 31  ;;  %271 = sbr.rel (%p614_p4) target bundleno = 23 (0x17), region = 44 }
   0xe   : > { %s684_s24 = scalar_lea.vmem %s817_s0, %s824_s22  ;;  %s689_s27 = scalar_lea.vmem %s818_s1, %s824_s22 }
   0xf   : > { %s694_s30 = scalar_lea.vmem %s819_s2, %s824_s22  ;;  %s699_s8 = scalar_lea.vmem %s820_s3, %s824_s22 }
  0x12   : > { %v636_v1 = vmov 0.0  }
  0x13   : > { %272 = vst [vmem:[#allocation2 + $0x10] sm:$0xff] %v636_v1 }
  0x14   : > { %273 = vst [vmem:[#allocation2] sm:$0xff] %v636_v1 }
  0x15   : > { %274 = vst [vmem:[#allocation2 + $0x18] sm:$0xff] %v636_v1 }
  0x16   : > { %275 = vst [vmem:[#allocation2 + $0x8] sm:$0xff] %v636_v1 }
  0x17 PF: > { %v703_v2 = vld [vmem:[%s684_s24] sm:$0xff]  ;;  %vm314_vm0 = vcmask 1041408   ;;  %vm316_vm1 = vcmask 1045508   ;;  %vm318_vm2 = vcmask 1043456   ;;  %v729_v57 = vld [vmem:[%s684_s24 + $0x8] sm:$0xff]  ;;  %p615_p5 = scmp.ne.s32.totalorder %s676_s21, 1 }
  0x18   : > { %v282_v3 = vld [vmem:[%s689_s27] sm:$0xff]  ;;  %v278_v5 = vunpack.c.l.bf16 %v703_v2  ;;  %v279_v29 = vunpack.c.h.bf16 %v703_v2 }
  0x19   : > { %v337_v4 = vld [vmem:[%s694_s30] sm:$0xff]  ;;  %v286_v6 = vperm.slane %v282_v3, 0  ;;  %v287_v7 = vperm.slane %v282_v3, 1  ;;  %v288_v8 = vperm.slane %v282_v3, 2  ;;  %v289_v10 = vperm.slane %v282_v3, 3 }
  0x1a   : > { %v709_v9 = vld [vmem:[%s699_s8] sm:$0xff]  ;;  %v341_v11 = vperm.slane %v337_v4, 0  ;;  %v342_v12 = vperm.slane %v337_v4, 1  ;;  %v343_v13 = vperm.slane %v337_v4, 2  ;;  %v344_v16 = vperm.slane %v337_v4, 3  ;;  %v401_v59 = vld [vmem:[#allocation2 + $0x10] sm:$0xff] }
  0x1b   : > { %v302_v14 = vrot.slane %v287_v7, 6  ;;  %v303_v15 = vrot.slane %v288_v8, 4  ;;  %v409_v17 = vperm.slane %v709_v9, 0  ;;  %v304_v18 = vrot.slane %v289_v10, 2  ;;  %v743_v8 = vld [vmem:[%s694_s30 + $0x8] sm:$0xff] }
  0x1c   : > { %v357_v19 = vrot.slane %v342_v12, 6  ;;  %v358_v20 = vrot.slane %v343_v13, 4  ;;  %v410_v21 = vperm.slane %v709_v9, 1  ;;  %v359_v23 = vrot.slane %v344_v16, 2 }
  0x1d   : > { %v315_v22 = vsel %vm314_vm0, %v286_v6, %v302_v14  ;;  %v411_v24 = vperm.slane %v709_v9, 2  ;;  %v412_v25 = vperm.slane %v709_v9, 3  ;;  %v317_v26 = vsel %vm316_vm1, %v303_v15, %v304_v18 }
  0x1e   : > { %v369_v27 = vsel %vm314_vm0, %v341_v11, %v357_v19  ;;  %v425_v28 = vrot.slane %v410_v21, 6  ;;  %v319_v30 = vsel %vm318_vm2, %v315_v22, %v317_v26  ;;  %v370_v31 = vsel %vm316_vm1, %v358_v20, %v359_v23 }
  0x1f   : > { %v426_v32 = vrot.slane %v411_v24, 4  ;;  %v427_v33 = vrot.slane %v412_v25, 2  ;;  %v333_v34 = vmul.f32 %v319_v30, %v278_v5  ;;  %v371_v35 = vsel %vm318_vm2, %v369_v27, %v370_v31  ;;  %v402_v30 = vld [vmem:[#allocation2] sm:$0xff] }
  0x20   : > { %v437_v36 = vsel %vm314_vm0, %v409_v17, %v425_v28  ;;  %v290_v37 = vperm.slane %v282_v3, 4  ;;  %v291_v39 = vperm.slane %v282_v3, 5  ;;  %v292_v40 = vperm.slane %v282_v3, 6  ;;  %v756_v28 = vld [vmem:[%s699_s8 + $0x8] sm:$0xff] }
  0x21   : > { %v438_v38 = vsel %vm316_vm1, %v426_v32, %v427_v33  ;;  %v293_v41 = vperm.slane %v282_v3, 7  ;;  %v385_v42 = vadd.f32 %v371_v35, %v333_v34  ;;  %v345_v44 = vperm.slane %v337_v4, 4  ;;  %v736_v3 = vld [vmem:[%s689_s27 + $0x8] sm:$0xff] }
  0x22   : > { %v439_v43 = vsel %vm318_vm2, %v437_v36, %v438_v38  ;;  %v346_v45 = vperm.slane %v337_v4, 5  ;;  %v305_v46 = vrot.slane %v291_v39, 6  ;;  %v306_v47 = vrot.slane %v292_v40, 4 }
  0x23   : > { %v307_v48 = vrot.slane %v293_v41, 2  ;;  %v347_v49 = vperm.slane %v337_v4, 6  ;;  %vm389_vm3 = vcmp.gt.f32.partialorder %v385_v42, 0.0  ;;  %v393_v50 = vmul.f32 0.2, %v385_v42 }
  0x24   : > { %v348_v51 = vperm.slane %v337_v4, 7  ;;  %v360_v52 = vrot.slane %v346_v45, 6  ;;  %v320_v53 = vsel %vm314_vm0, %v290_v37, %v305_v46  ;;  %v413_v56 = vperm.slane %v709_v9, 4 }
  0x25   : > { %v321_v54 = vsel %vm316_vm1, %v306_v47, %v307_v48  ;;  %v361_v55 = vrot.slane %v347_v49, 4  ;;  %v397_v58 = vsel %vm389_vm3, %v385_v42, %v393_v50  ;;  %v414_v1 = vperm.slane %v709_v9, 5 }
  0x26   : > { %v322_v60 = vsel %vm318_vm2, %v320_v53, %v321_v54  ;;  %v362_v61 = vrot.slane %v348_v51, 2  ;;  %v372_v62 = vsel %vm314_vm0, %v345_v44, %v360_v52  ;;  %v453_v63 = vmul.f32 %v439_v43, %v397_v58 }
  0x27   : > { %v334_v0 = vmul.f32 %v322_v60, %v279_v29  ;;  %v415_v2 = vperm.slane %v709_v9, 6  ;;  %v416_v5 = vperm.slane %v709_v9, 7  ;;  %v280_v6 = vunpack.c.l.bf16 %v729_v57 }
  0x28   : > { %v373_v4 = vsel %vm316_vm1, %v361_v55, %v362_v61  ;;  %v294_v7 = vperm.slane %v736_v3, 0  ;;  %v457_v10 = vadd.f32 %v453_v63, %v401_v59  ;;  %v428_v12 = vrot.slane %v414_v1, 6 }
  0x29   : > { %v374_v11 = vsel %vm318_vm2, %v372_v62, %v373_v4  ;;  %v429_v13 = vrot.slane %v415_v2, 4  ;;  %v430_v15 = vrot.slane %v416_v5, 2  ;;  %v295_v16 = vperm.slane %v736_v3, 1 }
  0x2a   : > { %v386_v14 = vadd.f32 %v374_v11, %v334_v0  ;;  %v296_v17 = vperm.slane %v736_v3, 2  ;;  %461 = vst [vmem:[#allocation2 + $0x10] sm:$0xff] %v457_v10  ;;  %v440_v9 = vsel %vm314_vm0, %v413_v56, %v428_v12  ;;  %v297_v18 = vperm.slane %v736_v3, 3 }
  0x2b   : > { %v349_v19 = vperm.slane %v743_v8, 0  ;;  %v350_v20 = vperm.slane %v743_v8, 1  ;;  %v441_v22 = vsel %vm316_vm1, %v429_v13, %v430_v15  ;;  %v308_v23 = vrot.slane %v295_v16, 6 }
  0x2c   : > { %vm390_vm4 = vcmp.gt.f32.partialorder %v386_v14, 0.0  ;;  %v394_v21 = vmul.f32 0.2, %v386_v14  ;;  %v442_v24 = vsel %vm318_vm2, %v440_v9, %v441_v22  ;;  %v309_v25 = vrot.slane %v296_v17, 4 }
  0x2d   : > { %v310_v26 = vrot.slane %v297_v18, 2  ;;  %v351_v27 = vperm.slane %v743_v8, 2  ;;  %v323_v31 = vsel %vm314_vm0, %v294_v7, %v308_v23  ;;  %v352_v32 = vperm.slane %v743_v8, 3 }
  0x2e   : > { %v398_v29 = vsel %vm390_vm4, %v386_v14, %v394_v21  ;;  %v363_v33 = vrot.slane %v350_v20, 6  ;;  %v417_v37 = vperm.slane %v756_v28, 0  ;;  %v418_v41 = vperm.slane %v756_v28, 1 }
  0x2f   : > { %v454_v34 = vmul.f32 %v442_v24, %v398_v29  ;;  %v324_v35 = vsel %vm316_vm1, %v309_v25, %v310_v26  ;;  %v364_v36 = vrot.slane %v351_v27, 4  ;;  %v365_v39 = vrot.slane %v352_v32, 2 }
  0x30   : > { %v325_v38 = vsel %vm318_vm2, %v323_v31, %v324_v35  ;;  %v375_v40 = vsel %vm314_vm0, %v349_v19, %v363_v33  ;;  %v419_v44 = vperm.slane %v756_v28, 2  ;;  %v420_v45 = vperm.slane %v756_v28, 3  ;;  %v404_v31 = vld [vmem:[#allocation2 + $0x8] sm:$0xff] }
  0x31   : > { %v458_v42 = vadd.f32 %v454_v34, %v402_v30  ;;  %v335_v43 = vmul.f32 %v325_v38, %v280_v6  ;;  %v376_v46 = vsel %vm316_vm1, %v364_v36, %v365_v39  ;;  %v431_v47 = vrot.slane %v418_v41, 6  ;;  %v403_v6 = vld [vmem:[#allocation2 + $0x18] sm:$0xff] }
  0x32   : > { %v281_v48 = vunpack.c.h.bf16 %v729_v57  ;;  %v298_v49 = vperm.slane %v736_v3, 4  ;;  %v377_v50 = vsel %vm318_vm2, %v375_v40, %v376_v46  ;;  %v432_v51 = vrot.slane %v419_v44, 4 }
  0x33   : > { %462 = vst [vmem:[#allocation2] sm:$0xff] %v458_v42  ;;  %v433_v52 = vrot.slane %v420_v45, 2  ;;  %v299_v53 = vperm.slane %v736_v3, 5  ;;  %v387_v54 = vadd.f32 %v377_v50, %v335_v43  ;;  %v443_v55 = vsel %vm314_vm0, %v417_v37, %v431_v47 }
  0x34   : > { %v300_v56 = vperm.slane %v736_v3, 6  ;;  %v301_v58 = vperm.slane %v736_v3, 7  ;;  %v353_v57 = vperm.slane %v743_v8, 4  ;;  %v354_v61 = vperm.slane %v743_v8, 5 }
  0x35   : > { %v444_v59 = vsel %vm316_vm1, %v432_v51, %v433_v52  ;;  %v311_v60 = vrot.slane %v299_v53, 6  ;;  %vm391_vm5 = vcmp.gt.f32.partialorder %v387_v54, 0.0  ;;  %v395_v62 = vmul.f32 0.2, %v387_v54 }
  0x36   : > { %v445_v63 = vsel %vm318_vm2, %v443_v55, %v444_v59  ;;  %v312_v0 = vrot.slane %v300_v56, 4  ;;  %v313_v1 = vrot.slane %v301_v58, 2  ;;  %v355_v4 = vperm.slane %v743_v8, 6 }
  0x37   : > { %v326_v2 = vsel %vm314_vm0, %v298_v49, %v311_v60  ;;  %v356_v5 = vperm.slane %v743_v8, 7  ;;  %v399_v3 = vsel %vm391_vm5, %v387_v54, %v395_v62  ;;  %v366_v7 = vrot.slane %v354_v61, 6 }
  0x38   : > { %v421_v10 = vperm.slane %v756_v28, 4  ;;  %v422_v11 = vperm.slane %v756_v28, 5  ;;  %v455_v12 = vmul.f32 %v445_v63, %v399_v3  ;;  %v327_v13 = vsel %vm316_vm1, %v312_v0, %v313_v1 }
  0x39   : > { %v367_v14 = vrot.slane %v355_v4, 4  ;;  %v368_v15 = vrot.slane %v356_v5, 2  ;;  %v328_v16 = vsel %vm318_vm2, %v326_v2, %v327_v13  ;;  %v378_v17 = vsel %vm314_vm0, %v353_v57, %v366_v7 }
  0x3a   : > { %v423_v9 = vperm.slane %v756_v28, 6  ;;  %v424_v8 = vperm.slane %v756_v28, 7  ;;  %v459_v18 = vadd.f32 %v455_v12, %v403_v6  ;;  %v336_v19 = vmul.f32 %v328_v16, %v281_v48 }
  0x3b   : > { %v379_v20 = vsel %vm316_vm1, %v367_v14, %v368_v15  ;;  %v434_v21 = vrot.slane %v422_v11, 6 }
  0x3c   : > { %v380_v22 = vsel %vm318_vm2, %v378_v17, %v379_v20  ;;  %v435_v23 = vrot.slane %v423_v9, 4  ;;  %v436_v24 = vrot.slane %v424_v8, 2  ;;  %463 = vst [vmem:[#allocation2 + $0x18] sm:$0xff] %v459_v18 }
  0x3d   : > { %v388_v25 = vadd.f32 %v380_v22, %v336_v19  ;;  %v446_v26 = vsel %vm314_vm0, %v421_v10, %v434_v21 }
  0x3e   : > { %v447_v27 = vsel %vm316_vm1, %v435_v23, %v436_v24 }
  0x3f   : > { %vm392_vm6 = vcmp.gt.f32.partialorder %v388_v25, 0.0  ;;  %v396_v29 = vmul.f32 0.2, %v388_v25  ;;  %v448_v30 = vsel %vm318_vm2, %v446_v26, %v447_v27 }
  0x41   : > { %v400_v28 = vsel %vm392_vm6, %v388_v25, %v396_v29 }
  0x42   : > { %v456_v32 = vmul.f32 %v448_v30, %v400_v28  ;;  %468 = sbr.rel (%p615_p5) target bundleno = 233 (0xe9), region = 48 }
  0x44   : > { %v460_v33 = vadd.f32 %v456_v32, %v404_v31 }
  0x46   : > { %464 = vst [vmem:[#allocation2 + $0x8] sm:$0xff] %v460_v33 }
  0x47   : > { %v469_v34 = vld [vmem:[#allocation2 + $0x10] sm:$0xff]  ;;  %v470_v35 = vld [vmem:[#allocation2] sm:$0xff]  ;;  %v471_v36 = vld [vmem:[#allocation2 + $0x18] sm:$0xff]  ;;  %vm552_vm7 = vcmask 1024  }
  0x48   : > { %477 = vst [vmem:[#allocation1] ss:$4 sm:$0xff] %v469_v34  ;;  %v627_v21 = vld [vmem:[#allocation3] ss:$0 sm:$0xff] }
  0x49   : > { %479 = vst [vmem:[#allocation1 + $0x20] ss:$4 sm:$0xff] %v470_v35 }
  0x4d   : > { %v472_v37 = vld [vmem:[#allocation2 + $0x8] sm:$0xff] }
  0x4f   : > { %v480_v38 = vld.sshfl [vmem:[#allocation1] sm:$0xff pattern:$0x73625140]  ;;  %v481_v39 = vld.sshfl [vmem:[#allocation1 + $0x8] sm:$0xff pattern:$0x73625140] }
  0x50   : > { %v482_v40 = vld.sshfl [vmem:[#allocation1 + $0x10] sm:$0xff pattern:$0x73625140]  ;;  %v483_v41 = vld.sshfl [vmem:[#allocation1 + $0x18] sm:$0xff pattern:$0x73625140] }
  0x51   : > { %v484_v42 = vld.sshfl [vmem:[#allocation1 + $0x20] sm:$0xff pattern:$0x73625140]  ;;  %v485_v43 = vld.sshfl [vmem:[#allocation1 + $0x28] sm:$0xff pattern:$0x73625140] }
  0x52   : > { %v486_v44 = vld.sshfl [vmem:[#allocation1 + $0x30] sm:$0xff pattern:$0x73625140]  ;;  %v487_v45 = vld.sshfl [vmem:[#allocation1 + $0x38] sm:$0xff pattern:$0x73625140] }
  0x53   : > { %488 = vst [vmem:[#allocation1] ss:$4 sm:$0xff] %v471_v36  ;;  %v514_v46 = vsel %vm314_vm0, %v480_v38, 0.0  ;;  %v515_v47 = vsel %vm314_vm0, %v481_v39, 0.0  ;;  %v517_v48 = vsel %vm314_vm0, %v482_v40, 0.0  ;;  %v519_v50 = vsel %vm314_vm0, %v483_v41, 0.0 }
  0x54   : > { %489 = vst [vmem:[#allocation1 + $0x20] ss:$4 sm:$0xff] %v472_v37  ;;  %v516_v49 = vadd.f32 %v515_v47, %v514_v46  ;;  %v521_v52 = vsel %vm314_vm0, %v484_v42, 0.0  ;;  %v523_v54 = vsel %vm314_vm0, %v485_v43, 0.0  ;;  %v525_v56 = vsel %vm314_vm0, %v486_v44, 0.0 }
  0x55   : > { %v527_v60 = vsel %vm314_vm0, %v487_v45, 0.0 }
  0x56   : > { %v518_v51 = vadd.f32 %v517_v48, %v516_v49 }
  0x58   : > { %v520_v53 = vadd.f32 %v519_v50, %v518_v51 }
  0x5a   : > { %v522_v55 = vadd.f32 %v521_v52, %v520_v53  ;;  %v490_v58 = vld.sshfl [vmem:[#allocation1] sm:$0xff pattern:$0x73625140]  ;;  %v491_v57 = vld.sshfl [vmem:[#allocation1 + $0x8] sm:$0xff pattern:$0x73625140] }
  0x5b   : > { %v529_v62 = vsel %vm314_vm0, %v490_v58, 0.0  ;;  %v492_v63 = vld.sshfl [vmem:[#allocation1 + $0x10] sm:$0xff pattern:$0x73625140]  ;;  %v531_v1 = vsel %vm314_vm0, %v491_v57, 0.0 }
  0x5c   : > { %v524_v59 = vadd.f32 %v523_v54, %v522_v55  ;;  %v493_v2 = vld.sshfl [vmem:[#allocation1 + $0x18] sm:$0xff pattern:$0x73625140]  ;;  %v533_v5 = vsel %vm314_vm0, %v492_v63, 0.0 }
  0x5d   : > { %v494_v3 = vld.sshfl [vmem:[#allocation1 + $0x20] sm:$0xff pattern:$0x73625140]  ;;  %v535_v7 = vsel %vm314_vm0, %v493_v2, 0.0 }
  0x5e   : > { %v526_v61 = vadd.f32 %v525_v56, %v524_v59  ;;  %v495_v10 = vld.sshfl [vmem:[#allocation1 + $0x28] sm:$0xff pattern:$0x73625140]  ;;  %v537_v12 = vsel %vm314_vm0, %v494_v3, 0.0 }
  0x5f   : > { %v496_v13 = vld.sshfl [vmem:[#allocation1 + $0x30] sm:$0xff pattern:$0x73625140]  ;;  %v539_v15 = vsel %vm314_vm0, %v495_v10, 0.0 }
  0x60   : > { %v528_v0 = vadd.f32 %v527_v60, %v526_v61  ;;  %v497_v16 = vld.sshfl [vmem:[#allocation1 + $0x38] sm:$0xff pattern:$0x73625140]  ;;  %v541_v9 = vsel %vm314_vm0, %v496_v13, 0.0 }
  0x61   : > { %v543_v18 = vsel %vm314_vm0, %v497_v16, 0.0 }
  0x62   : > { %v530_v4 = vadd.f32 %v529_v62, %v528_v0 }
  0x64   : > { %v532_v6 = vadd.f32 %v531_v1, %v530_v4 }
  0x66   : > { %v534_v11 = vadd.f32 %v533_v5, %v532_v6 }
  0x68   : > { %v536_v14 = vadd.f32 %v535_v7, %v534_v11 }
  0x6a   : > { %v538_v17 = vadd.f32 %v537_v12, %v536_v14 }
  0x6c   : > { %v540_v8 = vadd.f32 %v539_v15, %v538_v17 }
  0x6e   : > { %v542_v19 = vadd.f32 %v541_v9, %v540_v8 }
  0x70   : > { %v544_v20 = vadd.f32 %v543_v18, %v542_v19 }
  0x72   : > { %545 = vadd.xlane.f32.xlu0 %v544_v20 }
  0xe5   : > { %v546_v22 = vpop.xlane.xlu0 %545 }
  0xe6   : > { %v551_v23 = vadd.f32 %v627_v21, %v546_v22 }
  0xe8   : > { %553 = vst.msk [vmem:[%s822_s5] sm:$0x3] %vm552_vm7, %v551_v23 }
  0xe9 PF: > { %s17_s20 = sadd.s32 1, %s634_s20  }
  0xea   : > { %p14_p6 = scmp.ge.s32.totalorder %s17_s20, 4  }
  0xec   :  { %16 = sbr.rel (!%p14_p6) target bundleno = 3 (0x3), region = 84 }

</bundles_post_ra>
